<compile_context>
chip_gen: v7x
topology: tpu7x:2x2x1
jax: 0.10.0
libtpu: 0.0.40
codegen_flags: <defaults>
</compile_context>

<pallas_src>
import functools

import jax
import jax.numpy as jnp
from jax.experimental import pallas as pl
from jax.experimental.pallas import tpu as pltpu


_VMEM_SPEC = pl.BlockSpec(memory_space=pltpu.MemorySpace.VMEM)
_NEG_BIG = -1e30   # bias for padded (fake) class lanes: zero probability mass
_CLS_PAD = 128     # lane-dense classifier head width


def _sigmoid_neg(d):
    """sigmoid(-d) == 1 / (1 + exp(d)).  Clamp keeps exp() finite; EUP recip."""
    e = jnp.exp(jnp.minimum(d, 80.0))
    return pl.reciprocal(1.0 + e, approx=True)


# ---------------------------------------------------------------------------
# Fused forward kernel:
#   Q = x @ W_lin1 + b
#   for each of K StepConv layers (step == 0 branch):
#     h3 = Q W1 ; h4 = Q W2 ; hf = relu(Q Wf)
#     S[t,s] = sigmoid(-<h3[s], h4[t]>)              (dense edge gate)
#     out    = hf + (A*S) @ (h3 + h4) - A @ h4       ( == hf + (A*S)h3 - (A*(1-S))h4 )
#     Q      = out / max(||out||_2, 1e-12)           (if Norm == 1)
#   logits = Q @ Wo_pad + bo_pad ; write log_softmax as a lane-dense slab
# ---------------------------------------------------------------------------
def _fused_cmpgnn_kernel(x_ref, adj_ref, lin1_wt_ref, lin1_b_ref, *rest,
                         k, layer_norm, act):
    layer_refs = rest[: 3 * k]
    out_wt_ref, out_b_ref, o_ref = rest[3 * k:]

    a = adj_ref[...].astype(jnp.float32)  # (N, N), A[target, source]

    # Q = lin1(x)   (dropout = 0 / eval mode)
    q = (
        jnp.dot(x_ref[...], lin1_wt_ref[...], preferred_element_type=jnp.float32)
        + lin1_b_ref[...]
    )

    for i in range(k):
        w1t = layer_refs[3 * i + 0][...]
        w2t = layer_refs[3 * i + 1][...]
        wft = layer_refs[3 * i + 2][...]

        h3 = jnp.dot(q, w1t, preferred_element_type=jnp.float32)
        h4 = jnp.dot(q, w2t, preferred_element_type=jnp.float32)
        hf = jnp.dot(q, wft, preferred_element_type=jnp.float32)
        if act == "relu":
            hf = jnp.maximum(hf, 0.0)
        elif act != "None":
            raise NotImplementedError(f"activation {act!r} not implemented")

        # d[t, s] = <h4[target=t], h3[source=s]>; transpose folded into the MXU.
        d = jax.lax.dot_general(
            h4, h3,
            dimension_numbers=(((1,), (1,)), ((), ())),
            preferred_element_type=jnp.float32,
        )
        s = _sigmoid_neg(d)  # (N, N) dense edge gate

        # (A*S)@h3 - (A*(1-S))@h4  ==  (A*S)@(h3+h4) - A@h4
        m3 = a * s
        out = (
            hf
            + jnp.dot(m3, h3 + h4, preferred_element_type=jnp.float32)
            - jnp.dot(a, h4, preferred_element_type=jnp.float32)
        )
        # TODO(synk): step != 0 branch of StepConv references an undefined
        #             global `adj` in the original PyTorch source; only the
        #             step == 0 path is implemented.

        if layer_norm == 1:
            # F.normalize(out, p=2, dim=1), eps=1e-12:
            #   out / max(||out||, 1e-12) == out * rsqrt(max(sum(out^2), 1e-24))
            sumsq = jnp.sum(out * out, axis=1, keepdims=True)
            q = out * jax.lax.rsqrt(jnp.maximum(sumsq, 1e-24))
        # else: the StepConv output is discarded and Q is left unchanged,
        #       exactly as in the original model when Norm != 1.

    # Output head: out_att1 + log_softmax, lane-dense (N, 128) store.
    logits = (
        jnp.dot(q, out_wt_ref[...], preferred_element_type=jnp.float32)
        + out_b_ref[...]
    )
    m = jnp.max(logits, axis=1, keepdims=True)
    z = logits - m
    lse = jnp.log(jnp.sum(jnp.exp(z), axis=1, keepdims=True))
    o_ref[...] = z - lse


# ---------------------------------------------------------------------------
# Wrapper
# ---------------------------------------------------------------------------
@functools.partial(jax.jit, static_argnames=("k", "layer_norm", "act", "nclass"))
def cmpgnn_forward(x, adj, params, *, k, layer_norm, act, nclass):
    n, nfeat = x.shape
    hidden = params["lin1_wt"].shape[1]
    c_pad = params["out_wt_pad"].shape[1]

    layer_w = []
    for i in range(k):
        lyr = params["layers"][i]
        layer_w += [lyr["w1t"], lyr["w2t"], lyr["wft"]]

    # Rough roofline numbers (advisory only).
    flops = 2 * n * nfeat * hidden + 2 * n * hidden * c_pad + 5 * n * c_pad
    flops += k * (
        6 * n * hidden * hidden      # three projections
        + 2 * n * n * hidden         # edge-gate matmul
        + 4 * n * n * hidden         # two aggregation matmuls
        + 8 * n * n                  # gate elementwise + mask
        + 6 * n * hidden             # combine + normalize
    )
    transcendentals = k * 2 * n * n + n * c_pad + k * n
    bytes_accessed = (
        4 * n * nfeat + 2 * n * n + 4 * n * c_pad
        + 4 * (nfeat * hidden + hidden + hidden * c_pad + c_pad
               + 3 * k * hidden * hidden)
    )

    kernel = functools.partial(
        _fused_cmpgnn_kernel, k=k, layer_norm=layer_norm, act=act
    )
    out_pad = pl.pallas_call(
        kernel,
        out_shape=jax.ShapeDtypeStruct((n, c_pad), jnp.float32),
        in_specs=[_VMEM_SPEC] * (6 + 3 * k),
        out_specs=_VMEM_SPEC,
        cost_estimate=pl.CostEstimate(
            flops=flops,
            transcendentals=transcendentals,
            bytes_accessed=bytes_accessed,
        ),
    )(
        x, adj,
        params["lin1_wt"], params["lin1_b"],
        *layer_w,
        params["out_wt_pad"], params["out_b_pad"],
    )
    return out_pad[:, :nclass]


# ---------------------------------------------------------------------------
# Deterministic parameter / input construction
# ---------------------------------------------------------------------------
def make_params(key, nfeat, hidden, nclass, k, c_pad=_CLS_PAD):
    def uni(key, shape, fan_in):
        bound = 1.0 / jnp.sqrt(float(fan_in))
        return jax.random.uniform(
            key, shape, dtype=jnp.float32, minval=-bound, maxval=bound
        )

    keys = jax.random.split(key, 4 + 3 * k)

    out_wt = uni(keys[2], (hidden, nclass), hidden)
    out_b = uni(keys[3], (1, nclass), hidden)
    # Lane-dense padding of the classifier head: zero weights and a huge
    # negative bias in the padded class lanes -> zero probability mass there.
    out_wt_pad = jnp.zeros((hidden, c_pad), jnp.float32).at[:, :nclass].set(out_wt)
    out_b_pad = jnp.full((1, c_pad), _NEG_BIG, jnp.float32).at[:, :nclass].set(out_b)

    params = {
        # stored pre-transposed: (in, out)
        "lin1_wt": uni(keys[0], (nfeat, hidden), nfeat),
        "lin1_b": uni(keys[1], (1, hidden), nfeat),
        "out_wt_pad": out_wt_pad,
        "out_b_pad": out_b_pad,
        "layers": [],
    }
    for i in range(k):
        params["layers"].append(
            {
                "w1t": uni(keys[4 + 3 * i + 0], (hidden, hidden), hidden),
                "w2t": uni(keys[4 + 3 * i + 1], (hidden, hidden), hidden),
                "wft": uni(keys[4 + 3 * i + 2], (hidden, hidden), hidden),
            }
        )
    return params


def make_graph(n):
    # Deterministic bidirectional ring graph.
    # A[target, source] built with scatter-ADD (PyG flow='source_to_target',
    # aggr='add'; duplicate edges accumulate), stored in bf16 (0/1 exact) to
    # halve adjacency HBM traffic; cast back to f32 inside the kernel.
    src = jnp.concatenate([jnp.arange(n), jnp.arange(n)])
    dst = jnp.concatenate([(jnp.arange(n) + 1) % n, (jnp.arange(n) - 1) % n])
    adj = jnp.zeros((n, n), dtype=jnp.float32).at[dst, src].add(1.0)
    return adj.astype(jnp.bfloat16)


if __name__ == "__main__":
    N_NODES = 256   # (8,128)-aligned node count
    N_FEAT = 64
    HIDDEN = 32
    N_CLASS = 4
    K = 2

    key = jax.random.PRNGKey(0)
    kx, kp = jax.random.split(key)

    x = jax.random.normal(kx, (N_NODES, N_FEAT), dtype=jnp.float32)
    adj = make_graph(N_NODES)
    params = make_params(kp, N_FEAT, HIDDEN, N_CLASS, K)

    out = cmpgnn_forward(x, adj, params, k=K, layer_norm=1, act="relu",
                         nclass=N_CLASS)
    out = jax.block_until_ready(out)

    assert out.shape == (N_NODES, N_CLASS)
    assert bool(jnp.all(jnp.isfinite(out)))
    # rows of log_softmax must sum (in prob space) to 1
    assert bool(jnp.allclose(jnp.sum(jnp.exp(out), axis=1), 1.0, atol=1e-5))

    print("KERNEL_OK")
</pallas_src>

<mosaic_0001>
module attributes {stable_mosaic.version = 11 : i64} {
  func.func @_fused_cmpgnn_kernel(%arg0: memref<256x64xf32, #tpu.memory_space<vmem>>, %arg1: memref<256x256xbf16, #tpu.memory_space<vmem>>, %arg2: memref<64x32xf32, #tpu.memory_space<vmem>>, %arg3: memref<1x32xf32, #tpu.memory_space<vmem>>, %arg4: memref<32x32xf32, #tpu.memory_space<vmem>>, %arg5: memref<32x32xf32, #tpu.memory_space<vmem>>, %arg6: memref<32x32xf32, #tpu.memory_space<vmem>>, %arg7: memref<32x32xf32, #tpu.memory_space<vmem>>, %arg8: memref<32x32xf32, #tpu.memory_space<vmem>>, %arg9: memref<32x32xf32, #tpu.memory_space<vmem>>, %arg10: memref<32x128xf32, #tpu.memory_space<vmem>>, %arg11: memref<1x128xf32, #tpu.memory_space<vmem>>, %arg12: memref<256x128xf32, #tpu.memory_space<vmem>>) attributes {dimension_semantics = [], scalar_prefetch = 0 : i64, scratch_operands = 0 : i64, tpu.core_type = #tpu.core_type<tc>} {
    %c0 = arith.constant 0 : index
    %c0_0 = arith.constant 0 : index
    %0 = vector.load %arg1[%c0, %c0_0] : memref<256x256xbf16, #tpu.memory_space<vmem>>, vector<256x256xbf16>
    %1 = arith.extf %0 : vector<256x256xbf16> to vector<256x256xf32>
    %c0_1 = arith.constant 0 : index
    %c0_2 = arith.constant 0 : index
    %2 = vector.load %arg0[%c0_1, %c0_2] : memref<256x64xf32, #tpu.memory_space<vmem>>, vector<256x64xf32>
    %c0_3 = arith.constant 0 : index
    %c0_4 = arith.constant 0 : index
    %3 = vector.load %arg2[%c0_3, %c0_4] : memref<64x32xf32, #tpu.memory_space<vmem>>, vector<64x32xf32>
    %cst = arith.constant dense<0.000000e+00> : vector<256x32xf32>
    %4 = tpu.matmul %2, %3, %cst {dimension_numbers = #tpu.dot_dimension_numbers<[1], [0], [0], [1], [0, 0, 1, 1], [], []>} : vector<256x64xf32>, vector<64x32xf32>, vector<256x32xf32> -> vector<256x32xf32>
    %c0_5 = arith.constant 0 : index
    %c0_6 = arith.constant 0 : index
    %5 = vector.load %arg3[%c0_5, %c0_6] : memref<1x32xf32, #tpu.memory_space<vmem>>, vector<1x32xf32>
    %6 = vector.broadcast %5 : vector<1x32xf32> to vector<256x32xf32>
    %7 = arith.addf %4, %6 : vector<256x32xf32>
    %c0_7 = arith.constant 0 : index
    %c0_8 = arith.constant 0 : index
    %8 = vector.load %arg4[%c0_7, %c0_8] : memref<32x32xf32, #tpu.memory_space<vmem>>, vector<32x32xf32>
    %c0_9 = arith.constant 0 : index
    %c0_10 = arith.constant 0 : index
    %9 = vector.load %arg5[%c0_9, %c0_10] : memref<32x32xf32, #tpu.memory_space<vmem>>, vector<32x32xf32>
    %c0_11 = arith.constant 0 : index
    %c0_12 = arith.constant 0 : index
    %10 = vector.load %arg6[%c0_11, %c0_12] : memref<32x32xf32, #tpu.memory_space<vmem>>, vector<32x32xf32>
    %cst_13 = arith.constant dense<0.000000e+00> : vector<256x32xf32>
    %11 = tpu.matmul %7, %8, %cst_13 {dimension_numbers = #tpu.dot_dimension_numbers<[1], [0], [0], [1], [0, 0, 1, 1], [], []>} : vector<256x32xf32>, vector<32x32xf32>, vector<256x32xf32> -> vector<256x32xf32>
    %cst_14 = arith.constant dense<0.000000e+00> : vector<256x32xf32>
    %12 = tpu.matmul %7, %9, %cst_14 {dimension_numbers = #tpu.dot_dimension_numbers<[1], [0], [0], [1], [0, 0, 1, 1], [], []>} : vector<256x32xf32>, vector<32x32xf32>, vector<256x32xf32> -> vector<256x32xf32>
    %cst_15 = arith.constant dense<0.000000e+00> : vector<256x32xf32>
    %13 = tpu.matmul %7, %10, %cst_15 {dimension_numbers = #tpu.dot_dimension_numbers<[1], [0], [0], [1], [0, 0, 1, 1], [], []>} : vector<256x32xf32>, vector<32x32xf32>, vector<256x32xf32> -> vector<256x32xf32>
    %cst_16 = arith.constant 0.000000e+00 : f32
    %14 = vector.broadcast %cst_16 : f32 to vector<256x32xf32>
    %15 = arith.maximumf %13, %14 : vector<256x32xf32>
    %cst_17 = arith.constant dense<0.000000e+00> : vector<256x256xf32>
    %16 = tpu.matmul %12, %11, %cst_17 {dimension_numbers = #tpu.dot_dimension_numbers<[1], [1], [0], [0], [0, 0, 1, 0], [], []>} : vector<256x32xf32>, vector<256x32xf32>, vector<256x256xf32> -> vector<256x256xf32>
    %cst_18 = arith.constant 8.000000e+01 : f32
    %17 = vector.broadcast %cst_18 : f32 to vector<256x256xf32>
    %18 = arith.minimumf %16, %17 : vector<256x256xf32>
    %19 = math.exp %18 : vector<256x256xf32>
    %cst_19 = arith.constant 1.000000e+00 : f32
    %20 = vector.broadcast %cst_19 : f32 to vector<256x256xf32>
    %21 = arith.addf %20, %19 : vector<256x256xf32>
    %22 = tpu.reciprocal %21 {approx = true} : vector<256x256xf32> -> vector<256x256xf32>
    %23 = arith.mulf %1, %22 : vector<256x256xf32>
    %24 = arith.addf %11, %12 : vector<256x32xf32>
    %cst_20 = arith.constant dense<0.000000e+00> : vector<256x32xf32>
    %25 = tpu.matmul %23, %24, %cst_20 {dimension_numbers = #tpu.dot_dimension_numbers<[1], [0], [0], [1], [0, 0, 1, 1], [], []>} : vector<256x256xf32>, vector<256x32xf32>, vector<256x32xf32> -> vector<256x32xf32>
    %26 = arith.addf %15, %25 : vector<256x32xf32>
    %cst_21 = arith.constant dense<0.000000e+00> : vector<256x32xf32>
    %27 = tpu.matmul %1, %12, %cst_21 {dimension_numbers = #tpu.dot_dimension_numbers<[1], [0], [0], [1], [0, 0, 1, 1], [], []>} : vector<256x256xf32>, vector<256x32xf32>, vector<256x32xf32> -> vector<256x32xf32>
    %28 = arith.subf %26, %27 : vector<256x32xf32>
    %29 = arith.mulf %28, %28 : vector<256x32xf32>
    %cst_22 = arith.constant dense<0.000000e+00> : vector<256xf32>
    %30 = vector.multi_reduction <add>, %29, %cst_22 [1] : vector<256x32xf32> to vector<256xf32>
    %31 = vector.shape_cast %30 : vector<256xf32> to vector<256x1xf32>
    %cst_23 = arith.constant 1.000000e-24 : f32
    %32 = vector.broadcast %cst_23 : f32 to vector<256x1xf32>
    %33 = arith.maximumf %31, %32 : vector<256x1xf32>
    %34 = math.rsqrt %33 : vector<256x1xf32>
    %35 = vector.broadcast %34 : vector<256x1xf32> to vector<256x32xf32>
    %36 = arith.mulf %28, %35 : vector<256x32xf32>
    %c0_24 = arith.constant 0 : index
    %c0_25 = arith.constant 0 : index
    %37 = vector.load %arg7[%c0_24, %c0_25] : memref<32x32xf32, #tpu.memory_space<vmem>>, vector<32x32xf32>
    %c0_26 = arith.constant 0 : index
    %c0_27 = arith.constant 0 : index
    %38 = vector.load %arg8[%c0_26, %c0_27] : memref<32x32xf32, #tpu.memory_space<vmem>>, vector<32x32xf32>
    %c0_28 = arith.constant 0 : index
    %c0_29 = arith.constant 0 : index
    %39 = vector.load %arg9[%c0_28, %c0_29] : memref<32x32xf32, #tpu.memory_space<vmem>>, vector<32x32xf32>
    %cst_30 = arith.constant dense<0.000000e+00> : vector<256x32xf32>
    %40 = tpu.matmul %36, %37, %cst_30 {dimension_numbers = #tpu.dot_dimension_numbers<[1], [0], [0], [1], [0, 0, 1, 1], [], []>} : vector<256x32xf32>, vector<32x32xf32>, vector<256x32xf32> -> vector<256x32xf32>
    %cst_31 = arith.constant dense<0.000000e+00> : vector<256x32xf32>
    %41 = tpu.matmul %36, %38, %cst_31 {dimension_numbers = #tpu.dot_dimension_numbers<[1], [0], [0], [1], [0, 0, 1, 1], [], []>} : vector<256x32xf32>, vector<32x32xf32>, vector<256x32xf32> -> vector<256x32xf32>
    %cst_32 = arith.constant dense<0.000000e+00> : vector<256x32xf32>
    %42 = tpu.matmul %36, %39, %cst_32 {dimension_numbers = #tpu.dot_dimension_numbers<[1], [0], [0], [1], [0, 0, 1, 1], [], []>} : vector<256x32xf32>, vector<32x32xf32>, vector<256x32xf32> -> vector<256x32xf32>
    %cst_33 = arith.constant 0.000000e+00 : f32
    %43 = vector.broadcast %cst_33 : f32 to vector<256x32xf32>
    %44 = arith.maximumf %42, %43 : vector<256x32xf32>
    %cst_34 = arith.constant dense<0.000000e+00> : vector<256x256xf32>
    %45 = tpu.matmul %41, %40, %cst_34 {dimension_numbers = #tpu.dot_dimension_numbers<[1], [1], [0], [0], [0, 0, 1, 0], [], []>} : vector<256x32xf32>, vector<256x32xf32>, vector<256x256xf32> -> vector<256x256xf32>
    %cst_35 = arith.constant 8.000000e+01 : f32
    %46 = vector.broadcast %cst_35 : f32 to vector<256x256xf32>
    %47 = arith.minimumf %45, %46 : vector<256x256xf32>
    %48 = math.exp %47 : vector<256x256xf32>
    %cst_36 = arith.constant 1.000000e+00 : f32
    %49 = vector.broadcast %cst_36 : f32 to vector<256x256xf32>
    %50 = arith.addf %49, %48 : vector<256x256xf32>
    %51 = tpu.reciprocal %50 {approx = true} : vector<256x256xf32> -> vector<256x256xf32>
    %52 = arith.mulf %1, %51 : vector<256x256xf32>
    %53 = arith.addf %40, %41 : vector<256x32xf32>
    %cst_37 = arith.constant dense<0.000000e+00> : vector<256x32xf32>
    %54 = tpu.matmul %52, %53, %cst_37 {dimension_numbers = #tpu.dot_dimension_numbers<[1], [0], [0], [1], [0, 0, 1, 1], [], []>} : vector<256x256xf32>, vector<256x32xf32>, vector<256x32xf32> -> vector<256x32xf32>
    %55 = arith.addf %44, %54 : vector<256x32xf32>
    %cst_38 = arith.constant dense<0.000000e+00> : vector<256x32xf32>
    %56 = tpu.matmul %1, %41, %cst_38 {dimension_numbers = #tpu.dot_dimension_numbers<[1], [0], [0], [1], [0, 0, 1, 1], [], []>} : vector<256x256xf32>, vector<256x32xf32>, vector<256x32xf32> -> vector<256x32xf32>
    %57 = arith.subf %55, %56 : vector<256x32xf32>
    %58 = arith.mulf %57, %57 : vector<256x32xf32>
    %cst_39 = arith.constant dense<0.000000e+00> : vector<256xf32>
    %59 = vector.multi_reduction <add>, %58, %cst_39 [1] : vector<256x32xf32> to vector<256xf32>
    %60 = vector.shape_cast %59 : vector<256xf32> to vector<256x1xf32>
    %cst_40 = arith.constant 1.000000e-24 : f32
    %61 = vector.broadcast %cst_40 : f32 to vector<256x1xf32>
    %62 = arith.maximumf %60, %61 : vector<256x1xf32>
    %63 = math.rsqrt %62 : vector<256x1xf32>
    %64 = vector.broadcast %63 : vector<256x1xf32> to vector<256x32xf32>
    %65 = arith.mulf %57, %64 : vector<256x32xf32>
    %c0_41 = arith.constant 0 : index
    %c0_42 = arith.constant 0 : index
    %66 = vector.load %arg10[%c0_41, %c0_42] : memref<32x128xf32, #tpu.memory_space<vmem>>, vector<32x128xf32>
    %cst_43 = arith.constant dense<0.000000e+00> : vector<256x128xf32>
    %67 = tpu.matmul %65, %66, %cst_43 {dimension_numbers = #tpu.dot_dimension_numbers<[1], [0], [0], [1], [0, 0, 1, 1], [], []>} : vector<256x32xf32>, vector<32x128xf32>, vector<256x128xf32> -> vector<256x128xf32>
    %c0_44 = arith.constant 0 : index
    %c0_45 = arith.constant 0 : index
    %68 = vector.load %arg11[%c0_44, %c0_45] : memref<1x128xf32, #tpu.memory_space<vmem>>, vector<1x128xf32>
    %69 = vector.broadcast %68 : vector<1x128xf32> to vector<256x128xf32>
    %70 = arith.addf %67, %69 : vector<256x128xf32>
    %cst_46 = arith.constant dense<0xFF800000> : vector<256xf32>
    %71 = vector.multi_reduction <maximumf>, %70, %cst_46 [1] : vector<256x128xf32> to vector<256xf32>
    %72 = vector.shape_cast %71 : vector<256xf32> to vector<256x1xf32>
    %73 = vector.broadcast %72 : vector<256x1xf32> to vector<256x128xf32>
    %74 = arith.subf %70, %73 : vector<256x128xf32>
    %75 = math.exp %74 : vector<256x128xf32>
    %cst_47 = arith.constant dense<0.000000e+00> : vector<256xf32>
    %76 = vector.multi_reduction <add>, %75, %cst_47 [1] : vector<256x128xf32> to vector<256xf32>
    %77 = vector.shape_cast %76 : vector<256xf32> to vector<256x1xf32>
    %78 = math.log %77 : vector<256x1xf32>
    %79 = vector.broadcast %78 : vector<256x1xf32> to vector<256x128xf32>
    %80 = arith.subf %74, %79 : vector<256x128xf32>
    %c0_48 = arith.constant 0 : index
    %c0_49 = arith.constant 0 : index
    %81 = vector.load %arg12[%c0_48, %c0_49] : memref<256x128xf32, #tpu.memory_space<vmem>>, vector<256x128xf32>
    tpu.vector_store %arg12[%c0_48, %c0_49], %80 {strides = array<i32>} : memref<256x128xf32, #tpu.memory_space<vmem>>, vector<256x128xf32>,
    return
  }
}

</mosaic_0001>

<bundles_post_ra>
// kernel: cmpgnn_forward.1
= control target key start
LH: loop header
LB: loop body
LE: loop exit
PB: predicated region body
PF: predicated region fallthrough
CT: control target
= control target key end

     0   :  { %vm184_vm0 = vcmask 523264   ;;  %vm518_vm1 = vcmask 261120   ;;  %s11811_s2 = inlined_call_operand.vmem [shape: f32[64,32], index: 2, kind: input, shape index: {}]   ;;  %s11812_s0 = inlined_call_operand.vmem [shape: f32[256,64], index: 0, kind: input, shape index: {}]   ;;  %s11813_s4 = inlined_call_operand.vmem [shape: f32[32,32], index: 4, kind: input, shape index: {}]   ;;  %s11814_s6 = inlined_call_operand.vmem [shape: f32[32,32], index: 6, kind: input, shape index: {}]   ;;  %s11815_s5 = inlined_call_operand.vmem [shape: f32[32,32], index: 5, kind: input, shape index: {}]   ;;  %s11816_s3 = inlined_call_operand.vmem [shape: f32[1,32], index: 3, kind: input, shape index: {}]   ;;  %s11817_s1 = inlined_call_operand.vmem [shape: bf16[256,256], index: 1, kind: input, shape index: {}]   ;;  %s11818_s7 = inlined_call_operand.vmem [shape: f32[32,32], index: 7, kind: input, shape index: {}]   ;;  %s11819_s9 = inlined_call_operand.vmem [shape: f32[32,32], index: 9, kind: input, shape index: {}]   ;;  %s11820_s8 = inlined_call_operand.vmem [shape: f32[32,32], index: 8, kind: input, shape index: {}]   ;;  %s11821_s10 = inlined_call_operand.vmem [shape: f32[32,128], index: 10, kind: input, shape index: {}]   ;;  %s11822_s11 = inlined_call_operand.vmem [shape: f32[1,128], index: 11, kind: input, shape index: {}]   ;;  %s11823_s12 = inlined_call_operand.vmem [shape: f32[256,128], index: 12, kind: output, shape index: {}]  }
   0x1   :  { %v169_v0 = vld [vmem:[%s11811_s2] sm:$0xff]  ;;  %v170_v1 = vld [vmem:[%s11811_s2 + $0x8] sm:$0xff]  ;;  %v171_v2 = vld [vmem:[%s11811_s2 + $0x10] sm:$0xff] }
   0x2   :  { %v7357_v3 = vpack.c.bf16 %v170_v1, %v169_v0  ;;  %v172_v4 = vld [vmem:[%s11811_s2 + $0x18] sm:$0xff]  ;;  %v173_v6 = vld [vmem:[%s11811_s2 + $0x20] sm:$0xff]  ;;  %v174_v7 = vld [vmem:[%s11811_s2 + $0x28] sm:$0xff] }
   0x3   :  { %v7361_v5 = vpack.c.bf16 %v172_v4, %v171_v2  ;;  %v137_v8 = vld [vmem:[%s11812_s0] sm:$0xff]  ;;  %v7365_v9 = vpack.c.bf16 %v174_v7, %v173_v6  ;;  %v175_v10 = vld [vmem:[%s11811_s2 + $0x30] sm:$0xff]  ;;  %v176_v11 = vld [vmem:[%s11811_s2 + $0x38] sm:$0xff] }
   0x4   :  { %7358 = vmatprep.subr.bf16.mxu0 %v7357_v3  ;;  %6917 = vmatprep.mubr.msk.f32.mxu0 %vm184_vm0, %v137_v8  ;;  %v7369_v12 = vpack.c.bf16 %v176_v11, %v175_v10  ;;  %v506_v13 = vld [vmem:[%s11813_s4] sm:$0xff]  ;;  %v507_v14 = vld [vmem:[%s11813_s4 + $0x8] sm:$0xff]  ;;  %v139_v20 = vld [vmem:[%s11812_s0 + $0x10] sm:$0xff] }
   0x5   :  { %7360 = vmatpush3.bf16.msra.mxu0 %v7357_v3  ;;  %v7373_v15 = vpack.c.bf16 %v507_v14, %v506_v13  ;;  %v514_v16 = vld [vmem:[%s11814_s6] sm:$0xff]  ;;  %v515_v17 = vld [vmem:[%s11814_s6 + $0x8] sm:$0xff]  ;;  %v140_v21 = vld [vmem:[%s11812_s0 + $0x18] sm:$0xff] }
   0x6   :  { %7362 = vmatprep.subr.bf16.mxu0 %v7361_v5  ;;  %v7389_v18 = vpack.c.bf16 %v515_v17, %v514_v16  ;;  %v138_v19 = vld [vmem:[%s11812_s0 + $0x8] sm:$0xff]  ;;  %v141_v22 = vld [vmem:[%s11812_s0 + $0x20] sm:$0xff]  ;;  %v143_v24 = vld [vmem:[%s11812_s0 + $0x30] sm:$0xff] }
   0x7   :  { %7374 = vmatprep.subr.bf16.mxu1 %v7373_v15  ;;  %v142_v23 = vld [vmem:[%s11812_s0 + $0x28] sm:$0xff]  ;;  %v144_v25 = vld [vmem:[%s11812_s0 + $0x38] sm:$0xff]  ;;  %v145_v26 = vld [vmem:[%s11812_s0 + $0x40] sm:$0xff] }
   0x8   :  { %7376 = vmatpush3.bf16.msra.mxu1 %v7373_v15  ;;  %v146_v27 = vld [vmem:[%s11812_s0 + $0x48] sm:$0xff]  ;;  %v147_v28 = vld [vmem:[%s11812_s0 + $0x50] sm:$0xff]  ;;  %v148_v29 = vld [vmem:[%s11812_s0 + $0x58] sm:$0xff] }
   0x9   :  { %7364 = vmatpush3.bf16.msra.mxu0 %v7361_v5  ;;  %v149_v30 = vld [vmem:[%s11812_s0 + $0x60] sm:$0xff]  ;;  %v150_v31 = vld [vmem:[%s11812_s0 + $0x68] sm:$0xff]  ;;  %v151_v32 = vld [vmem:[%s11812_s0 + $0x70] sm:$0xff] }
   0xa   :  { %7366 = vmatprep.subr.bf16.mxu0 %v7365_v9  ;;  %v152_v33 = vld [vmem:[%s11812_s0 + $0x78] sm:$0xff]  ;;  %v153_v34 = vld [vmem:[%s11812_s0 + $0x80] sm:$0xff]  ;;  %v154_v35 = vld [vmem:[%s11812_s0 + $0x88] sm:$0xff] }
   0xb   :  { %v155_v36 = vld [vmem:[%s11812_s0 + $0x90] sm:$0xff]  ;;  %v156_v37 = vld [vmem:[%s11812_s0 + $0x98] sm:$0xff]  ;;  %v157_v38 = vld [vmem:[%s11812_s0 + $0xa0] sm:$0xff] }
   0xc   :  { %v158_v39 = vld [vmem:[%s11812_s0 + $0xa8] sm:$0xff]  ;;  %v159_v40 = vld [vmem:[%s11812_s0 + $0xb0] sm:$0xff]  ;;  %v160_v41 = vld [vmem:[%s11812_s0 + $0xb8] sm:$0xff] }
   0xd   :  { %7368 = vmatpush3.bf16.msra.mxu0 %v7365_v9  ;;  %v161_v42 = vld [vmem:[%s11812_s0 + $0xc0] sm:$0xff]  ;;  %v162_v43 = vld [vmem:[%s11812_s0 + $0xc8] sm:$0xff]  ;;  %v163_v44 = vld [vmem:[%s11812_s0 + $0xd0] sm:$0xff] }
   0xe   :  { %7370 = vmatprep.subr.bf16.mxu0 %v7369_v12  ;;  %v164_v45 = vld [vmem:[%s11812_s0 + $0xd8] sm:$0xff]  ;;  %v165_v46 = vld [vmem:[%s11812_s0 + $0xe0] sm:$0xff]  ;;  %v166_v47 = vld [vmem:[%s11812_s0 + $0xe8] sm:$0xff] }
   0xf   :  { %v167_v48 = vld [vmem:[%s11812_s0 + $0xf0] sm:$0xff]  ;;  %v168_v49 = vld [vmem:[%s11812_s0 + $0xf8] sm:$0xff]  ;;  %v510_v56 = vld [vmem:[%s11815_s5] sm:$0xff] }
  0x10   :  { %v508_v50 = vld [vmem:[%s11813_s4 + $0x10] sm:$0xff]  ;;  %v509_v51 = vld [vmem:[%s11813_s4 + $0x18] sm:$0xff]  ;;  %v511_v57 = vld [vmem:[%s11815_s5 + $0x8] sm:$0xff] }
  0x11   :  { %7372 = vmatpush3.bf16.msra.mxu0 %v7369_v12  ;;  %v516_v52 = vld [vmem:[%s11814_s6 + $0x10] sm:$0xff]  ;;  %v7377_v53 = vpack.c.bf16 %v509_v51, %v508_v50  ;;  %v517_v54 = vld [vmem:[%s11814_s6 + $0x18] sm:$0xff]  ;;  %v7381_v58 = vpack.c.bf16 %v511_v57, %v510_v56  ;;  %v8737_v59 = vld [vmem:[%s11816_s3] ss:$0 sm:$0xff] }
  0x12   :  { %7390 = vmatprep.subr.bf16.mxu0 %v7389_v18  ;;  %v7393_v55 = vpack.c.bf16 %v517_v54, %v516_v52  ;;  %v512_v61 = vld [vmem:[%s11815_s5 + $0x10] sm:$0xff]  ;;  %v513_v62 = vld [vmem:[%s11815_s5 + $0x18] sm:$0xff]  ;;  %vm9079_vm2 = vmpackc.low %vm518_vm1, %vm518_vm1 }
  0x13   :  { %7378 = vmatprep.subr.bf16.mxu1 %v7377_v53  ;;  %v7385_v2 = vpack.c.bf16 %v513_v62, %v512_v61 }
  0x14   :  { %6918 = vmatmul.mubr.msk.f32.vlgmr.msra.gmra.mrb[0].mxu0 %vm184_vm0, %v138_v19  ;;  %7380 = vmatpush3.bf16.msra.mxu1 %v7377_v53 }
  0x15   :  { %6920 = vmatprep.mubr.msk.f32.mxu0 %vm184_vm0, %v139_v20  ;;  %7392 = vmatpush3.bf16.msra.mxu0 %v7389_v18 }
  0x16   :  { %7394 = vmatprep.subr.bf16.mxu0 %v7393_v55  ;;  %7382 = vmatprep.subr.bf16.mxu1 %v7381_v58 }
  0x18   :  { %6921 = vmatmul.mubr.msk.f32.gmra.mrb[2].mxu0 %vm184_vm0, %v140_v21 }
  0x19   :  { %6923 = vmatprep.mubr.msk.f32.mxu0 %vm184_vm0, %v141_v22  ;;  %7396 = vmatpush3.bf16.msra.mxu0 %v7393_v55 }
  0x1c   :  { %6924 = vmatmul.mubr.msk.f32.gmra.mrb[4].mxu0 %vm184_vm0, %v142_v23 }
  0x1d   :  { %6926 = vmatprep.mubr.msk.f32.mxu0 %vm184_vm0, %v143_v24 }
  0x20   :  { %6927 = vmatmul.mubr.msk.f32.gmra.mrb[6].mxu0 %vm184_vm0, %v144_v25 }
  0x21   :  { %6929 = vmatprep.mubr.msk.f32.mxu0 %vm184_vm0, %v145_v26 }
  0x24   :  { %6930 = vmatmul.mubr.msk.f32.gmra.mrb[8].mxu0 %vm184_vm0, %v146_v27 }
  0x25   :  { %6932 = vmatprep.mubr.msk.f32.mxu0 %vm184_vm0, %v147_v28 }
  0x28   :  { %6933 = vmatmul.mubr.msk.f32.gmra.mrb[10].mxu0 %vm184_vm0, %v148_v29 }
  0x29   :  { %6935 = vmatprep.mubr.msk.f32.mxu0 %vm184_vm0, %v149_v30 }
  0x2c   :  { %6936 = vmatmul.mubr.msk.f32.gmra.mrb[12].mxu0 %vm184_vm0, %v150_v31 }
  0x2d   :  { %6938 = vmatprep.mubr.msk.f32.mxu0 %vm184_vm0, %v151_v32 }
  0x30   :  { %6939 = vmatmul.mubr.msk.f32.gmra.mrb[14].mxu0 %vm184_vm0, %v152_v33 }
  0x31   :  { %6941 = vmatprep.mubr.msk.f32.mxu0 %vm184_vm0, %v153_v34 }
  0x34   :  { %6942 = vmatmul.mubr.msk.f32.gmra.mrb[16].mxu0 %vm184_vm0, %v154_v35 }
  0x35   :  { %6944 = vmatprep.mubr.msk.f32.mxu0 %vm184_vm0, %v155_v36 }
  0x38   :  { %6945 = vmatmul.mubr.msk.f32.gmra.mrb[18].mxu0 %vm184_vm0, %v156_v37 }
  0x39   :  { %6947 = vmatprep.mubr.msk.f32.mxu0 %vm184_vm0, %v157_v38 }
  0x3c   :  { %6948 = vmatmul.mubr.msk.f32.gmra.mrb[20].mxu0 %vm184_vm0, %v158_v39 }
  0x3d   :  { %6950 = vmatprep.mubr.msk.f32.mxu0 %vm184_vm0, %v159_v40 }
  0x40   :  { %6951 = vmatmul.mubr.msk.f32.gmra.mrb[22].mxu0 %vm184_vm0, %v160_v41 }
  0x41   :  { %6953 = vmatprep.mubr.msk.f32.mxu0 %vm184_vm0, %v161_v42 }
  0x44   :  { %6954 = vmatmul.mubr.msk.f32.gmra.mrb[24].mxu0 %vm184_vm0, %v162_v43 }
  0x45   :  { %6956 = vmatprep.mubr.msk.f32.mxu0 %vm184_vm0, %v163_v44 }
  0x48   :  { %6957 = vmatmul.mubr.msk.f32.gmra.mrb[26].mxu0 %vm184_vm0, %v164_v45 }
  0x49   :  { %6959 = vmatprep.mubr.msk.f32.mxu0 %vm184_vm0, %v165_v46 }
  0x4c   :  { %6960 = vmatmul.mubr.msk.f32.gmra.mrb[28].mxu0 %vm184_vm0, %v166_v47 }
  0x4d   :  { %6962 = vmatprep.mubr.msk.f32.mxu0 %vm184_vm0, %v167_v48 }
  0x50   :  { %6963 = vmatmul.mubr.msk.f32.gmra.mrb[30].mxu0 %vm184_vm0, %v168_v49 }
  0xe7   :  { %v6919_v60 = vpop.f32.mrb[0].mxu0 }
  0xe8   :  { %v347_v63 = vpop.f32.mrb[1].mxu0  ;;  %v8749_v1 = vadd.f32 %v6919_v60, %v8737_v59 }
  0xe9   :  { %v8746_v0 = vadd.f32 %v8737_v59, %v347_v63 }
  0xeb   :  { %v6922_v3 = vpop.f32.mrb[2].mxu0  ;;  %6973 = vmatprep.mubr.msk.f32.mxu1 %vm518_vm1, %v8746_v0  ;;  %7085 = vmatprep.mubr.msk.f32.mxu0 %vm518_vm1, %v8746_v0 }
  0xec   :  { %v357_v4 = vpop.f32.mrb[3].mxu0  ;;  %6974 = vmatmul.mubr.msk.f32.vlgmr.msra.gmra.mrb[0].mxu1 %vm518_vm1, %v8749_v1  ;;  %7086 = vmatmul.mubr.msk.f32.vlgmr.msra.gmra.mrb[32].mxu0 %vm518_vm1, %v8749_v1  ;;  %v8763_v6 = vadd.f32 %v6922_v3, %v8737_v59 }
  0xed   :  { %v8760_v5 = vadd.f32 %v8737_v59, %v357_v4  ;;  %7384 = vmatpush3.bf16.msra.mxu1 %v7381_v58 }
  0xee   :  { %7386 = vmatprep.subr.bf16.mxu1 %v7385_v2 }
  0xef   :  { %v6925_v7 = vpop.f32.mrb[4].mxu0  ;;  %6976 = vmatprep.mubr.msk.f32.mxu1 %vm518_vm1, %v8760_v5  ;;  %7088 = vmatprep.mubr.msk.f32.mxu0 %vm518_vm1, %v8760_v5 }
  0xf0   :  { %v367_v8 = vpop.f32.mrb[5].mxu0  ;;  %6977 = vmatmul.mubr.msk.f32.gmra.mrb[2].mxu1 %vm518_vm1, %v8763_v6  ;;  %7089 = vmatmul.mubr.msk.f32.gmra.mrb[34].mxu0 %vm518_vm1, %v8763_v6  ;;  %v8777_v10 = vadd.f32 %v6925_v7, %v8737_v59 }
  0xf1   :  { %v8774_v9 = vadd.f32 %v8737_v59, %v367_v8  ;;  %7388 = vmatpush3.bf16.msra.mxu1 %v7385_v2 }
  0xf3   :  { %v6928_v11 = vpop.f32.mrb[6].mxu0  ;;  %6979 = vmatprep.mubr.msk.f32.mxu1 %vm518_vm1, %v8774_v9  ;;  %7091 = vmatprep.mubr.msk.f32.mxu0 %vm518_vm1, %v8774_v9 }
  0xf4   :  { %v377_v12 = vpop.f32.mrb[7].mxu0  ;;  %6980 = vmatmul.mubr.msk.f32.gmra.mrb[4].mxu1 %vm518_vm1, %v8777_v10  ;;  %7092 = vmatmul.mubr.msk.f32.gmra.mrb[36].mxu0 %vm518_vm1, %v8777_v10  ;;  %v8791_v14 = vadd.f32 %v6928_v11, %v8737_v59 }
  0xf5   :  { %v8788_v13 = vadd.f32 %v8737_v59, %v377_v12 }
  0xf7   :  { %v6931_v15 = vpop.f32.mrb[8].mxu0  ;;  %6982 = vmatprep.mubr.msk.f32.mxu1 %vm518_vm1, %v8788_v13  ;;  %7094 = vmatprep.mubr.msk.f32.mxu0 %vm518_vm1, %v8788_v13 }
  0xf8   :  { %v387_v16 = vpop.f32.mrb[9].mxu0  ;;  %6983 = vmatmul.mubr.msk.f32.gmra.mrb[6].mxu1 %vm518_vm1, %v8791_v14  ;;  %7095 = vmatmul.mubr.msk.f32.gmra.mrb[38].mxu0 %vm518_vm1, %v8791_v14  ;;  %v8805_v18 = vadd.f32 %v6931_v15, %v8737_v59 }
  0xf9   :  { %v8802_v17 = vadd.f32 %v8737_v59, %v387_v16 }
  0xfb   :  { %v6934_v19 = vpop.f32.mrb[10].mxu0  ;;  %6985 = vmatprep.mubr.msk.f32.mxu1 %vm518_vm1, %v8802_v17  ;;  %7097 = vmatprep.mubr.msk.f32.mxu0 %vm518_vm1, %v8802_v17 }
  0xfc   :  { %v397_v20 = vpop.f32.mrb[11].mxu0  ;;  %6986 = vmatmul.mubr.msk.f32.gmra.mrb[8].mxu1 %vm518_vm1, %v8805_v18  ;;  %7098 = vmatmul.mubr.msk.f32.gmra.mrb[40].mxu0 %vm518_vm1, %v8805_v18  ;;  %v8819_v22 = vadd.f32 %v6934_v19, %v8737_v59 }
  0xfd   :  { %v8816_v21 = vadd.f32 %v8737_v59, %v397_v20 }
  0xff   :  { %v6937_v23 = vpop.f32.mrb[12].mxu0  ;;  %6988 = vmatprep.mubr.msk.f32.mxu1 %vm518_vm1, %v8816_v21  ;;  %7100 = vmatprep.mubr.msk.f32.mxu0 %vm518_vm1, %v8816_v21 }
 0x100   :  { %v407_v24 = vpop.f32.mrb[13].mxu0  ;;  %6989 = vmatmul.mubr.msk.f32.gmra.mrb[10].mxu1 %vm518_vm1, %v8819_v22  ;;  %7101 = vmatmul.mubr.msk.f32.gmra.mrb[42].mxu0 %vm518_vm1, %v8819_v22  ;;  %v8833_v26 = vadd.f32 %v6937_v23, %v8737_v59 }
 0x101   :  { %v8830_v25 = vadd.f32 %v8737_v59, %v407_v24 }
 0x103   :  { %v6940_v27 = vpop.f32.mrb[14].mxu0  ;;  %6991 = vmatprep.mubr.msk.f32.mxu1 %vm518_vm1, %v8830_v25  ;;  %7103 = vmatprep.mubr.msk.f32.mxu0 %vm518_vm1, %v8830_v25 }
 0x104   :  { %v417_v28 = vpop.f32.mrb[15].mxu0  ;;  %6992 = vmatmul.mubr.msk.f32.gmra.mrb[12].mxu1 %vm518_vm1, %v8833_v26  ;;  %7104 = vmatmul.mubr.msk.f32.gmra.mrb[44].mxu0 %vm518_vm1, %v8833_v26  ;;  %v8847_v30 = vadd.f32 %v6940_v27, %v8737_v59 }
 0x105   :  { %v8844_v29 = vadd.f32 %v8737_v59, %v417_v28 }
 0x107   :  { %v6943_v31 = vpop.f32.mrb[16].mxu0  ;;  %6994 = vmatprep.mubr.msk.f32.mxu1 %vm518_vm1, %v8844_v29  ;;  %7106 = vmatprep.mubr.msk.f32.mxu0 %vm518_vm1, %v8844_v29 }
 0x108   :  { %v427_v32 = vpop.f32.mrb[17].mxu0  ;;  %6995 = vmatmul.mubr.msk.f32.gmra.mrb[14].mxu1 %vm518_vm1, %v8847_v30  ;;  %7107 = vmatmul.mubr.msk.f32.gmra.mrb[46].mxu0 %vm518_vm1, %v8847_v30  ;;  %v8861_v34 = vadd.f32 %v6943_v31, %v8737_v59 }
 0x109   :  { %v8858_v33 = vadd.f32 %v8737_v59, %v427_v32 }
 0x10b   :  { %v6946_v35 = vpop.f32.mrb[18].mxu0  ;;  %6997 = vmatprep.mubr.msk.f32.mxu1 %vm518_vm1, %v8858_v33  ;;  %7109 = vmatprep.mubr.msk.f32.mxu0 %vm518_vm1, %v8858_v33 }
 0x10c   :  { %v8868_v36 = vadd.f32 %v6946_v35, %v8737_v59  ;;  %v437_v37 = vpop.f32.mrb[19].mxu0  ;;  %6998 = vmatmul.mubr.msk.f32.gmra.mrb[16].mxu1 %vm518_vm1, %v8861_v34  ;;  %7110 = vmatmul.mubr.msk.f32.gmra.mrb[48].mxu0 %vm518_vm1, %v8861_v34 }
 0x10d   :  { %v8875_v38 = vadd.f32 %v8737_v59, %v437_v37 }
 0x10f   :  { %v6949_v39 = vpop.f32.mrb[20].mxu0  ;;  %7000 = vmatprep.mubr.msk.f32.mxu1 %vm518_vm1, %v8875_v38  ;;  %7112 = vmatprep.mubr.msk.f32.mxu0 %vm518_vm1, %v8875_v38 }
 0x110   :  { %v8882_v40 = vadd.f32 %v6949_v39, %v8737_v59  ;;  %v447_v41 = vpop.f32.mrb[21].mxu0  ;;  %7001 = vmatmul.mubr.msk.f32.gmra.mrb[18].mxu1 %vm518_vm1, %v8868_v36  ;;  %7113 = vmatmul.mubr.msk.f32.gmra.mrb[50].mxu0 %vm518_vm1, %v8868_v36 }
 0x111   :  { %v8889_v42 = vadd.f32 %v8737_v59, %v447_v41 }
 0x113   :  { %v6952_v43 = vpop.f32.mrb[22].mxu0  ;;  %7003 = vmatprep.mubr.msk.f32.mxu1 %vm518_vm1, %v8889_v42  ;;  %7115 = vmatprep.mubr.msk.f32.mxu0 %vm518_vm1, %v8889_v42 }
 0x114   :  { %v8896_v44 = vadd.f32 %v6952_v43, %v8737_v59  ;;  %v457_v45 = vpop.f32.mrb[23].mxu0  ;;  %7004 = vmatmul.mubr.msk.f32.gmra.mrb[20].mxu1 %vm518_vm1, %v8882_v40  ;;  %7116 = vmatmul.mubr.msk.f32.gmra.mrb[52].mxu0 %vm518_vm1, %v8882_v40 }
 0x115   :  { %v458_v46 = vadd.f32 %v8737_v59, %v457_v45 }
 0x117   :  { %v6955_v47 = vpop.f32.mrb[24].mxu0  ;;  %7006 = vmatprep.mubr.msk.f32.mxu1 %vm518_vm1, %v458_v46  ;;  %7118 = vmatprep.mubr.msk.f32.mxu0 %vm518_vm1, %v458_v46 }
 0x118   :  { %v473_v48 = vadd.f32 %v6955_v47, %v8737_v59  ;;  %v467_v49 = vpop.f32.mrb[25].mxu0  ;;  %7007 = vmatmul.mubr.msk.f32.gmra.mrb[22].mxu1 %vm518_vm1, %v8896_v44  ;;  %7119 = vmatmul.mubr.msk.f32.gmra.mrb[54].mxu0 %vm518_vm1, %v8896_v44 }
 0x119   :  { %v468_v50 = vadd.f32 %v8737_v59, %v467_v49 }
 0x11b   :  { %v6958_v51 = vpop.f32.mrb[26].mxu0  ;;  %7009 = vmatprep.mubr.msk.f32.mxu1 %vm518_vm1, %v468_v50  ;;  %7121 = vmatprep.mubr.msk.f32.mxu0 %vm518_vm1, %v468_v50 }
 0x11c   :  { %v483_v52 = vadd.f32 %v6958_v51, %v8737_v59  ;;  %v477_v53 = vpop.f32.mrb[27].mxu0  ;;  %7010 = vmatmul.mubr.msk.f32.gmra.mrb[24].mxu1 %vm518_vm1, %v473_v48  ;;  %7122 = vmatmul.mubr.msk.f32.gmra.mrb[56].mxu0 %vm518_vm1, %v473_v48 }
 0x11d   :  { %v478_v54 = vadd.f32 %v8737_v59, %v477_v53 }
 0x11f   :  { %v6961_v55 = vpop.f32.mrb[28].mxu0  ;;  %7012 = vmatprep.mubr.msk.f32.mxu1 %vm518_vm1, %v478_v54  ;;  %7124 = vmatprep.mubr.msk.f32.mxu0 %vm518_vm1, %v478_v54 }
 0x120   :  { %v493_v56 = vadd.f32 %v6961_v55, %v8737_v59  ;;  %v487_v57 = vpop.f32.mrb[29].mxu0  ;;  %7013 = vmatmul.mubr.msk.f32.gmra.mrb[26].mxu1 %vm518_vm1, %v483_v52  ;;  %7125 = vmatmul.mubr.msk.f32.gmra.mrb[58].mxu0 %vm518_vm1, %v483_v52 }
 0x121   :  { %v488_v58 = vadd.f32 %v8737_v59, %v487_v57 }
 0x123   :  { %v6964_v60 = vpop.f32.mrb[30].mxu0  ;;  %7015 = vmatprep.mubr.msk.f32.mxu1 %vm518_vm1, %v488_v58  ;;  %7127 = vmatprep.mubr.msk.f32.mxu0 %vm518_vm1, %v488_v58 }
 0x124   :  { %v503_v61 = vadd.f32 %v6964_v60, %v8737_v59  ;;  %v497_v62 = vpop.f32.mrb[31].mxu0  ;;  %7016 = vmatmul.mubr.msk.f32.gmra.mrb[28].mxu1 %vm518_vm1, %v493_v56  ;;  %7128 = vmatmul.mubr.msk.f32.gmra.mrb[60].mxu0 %vm518_vm1, %v493_v56 }
 0x125   :  { %v498_v63 = vadd.f32 %v8737_v59, %v497_v62  ;;  %v11824_v59 = vmov 0.0|0.0  }
 0x126   :  { %7445 = vmatprep.subr.bf16.mxu0 %v11824_v59 }
 0x127   :  { %7018 = vmatprep.mubr.msk.f32.mxu1 %vm518_vm1, %v498_v63  ;;  %7130 = vmatprep.mubr.msk.f32.mxu0 %vm518_vm1, %v498_v63 }
 0x128   :  { %7019 = vmatmul.mubr.msk.f32.gmra.mrb[30].mxu1 %vm518_vm1, %v503_v61  ;;  %7131 = vmatmul.mubr.msk.f32.gmra.mrb[62].mxu0 %vm518_vm1, %v503_v61 }
 0x129   :  { %7029 = vmatprep.mubr.msk.f32.mxu1 %vm518_vm1, %v8746_v0 }
 0x12c   :  { %7030 = vmatmul.mubr.msk.f32.vlgmr.msra.gmra.mrb[32].mxu1 %vm518_vm1, %v8749_v1 }
 0x12d   :  { %7032 = vmatprep.mubr.msk.f32.mxu1 %vm518_vm1, %v8760_v5 }
 0x130   :  { %7033 = vmatmul.mubr.msk.f32.gmra.mrb[34].mxu1 %vm518_vm1, %v8763_v6 }
 0x131   :  { %7035 = vmatprep.mubr.msk.f32.mxu1 %vm518_vm1, %v8774_v9 }
 0x134   :  { %7036 = vmatmul.mubr.msk.f32.gmra.mrb[36].mxu1 %vm518_vm1, %v8777_v10 }
 0x135   :  { %7038 = vmatprep.mubr.msk.f32.mxu1 %vm518_vm1, %v8788_v13 }
 0x138   :  { %7039 = vmatmul.mubr.msk.f32.gmra.mrb[38].mxu1 %vm518_vm1, %v8791_v14 }
 0x139   :  { %7041 = vmatprep.mubr.msk.f32.mxu1 %vm518_vm1, %v8802_v17 }
 0x13c   :  { %7042 = vmatmul.mubr.msk.f32.gmra.mrb[40].mxu1 %vm518_vm1, %v8805_v18 }
 0x13d   :  { %7044 = vmatprep.mubr.msk.f32.mxu1 %vm518_vm1, %v8816_v21 }
 0x140   :  { %7045 = vmatmul.mubr.msk.f32.gmra.mrb[42].mxu1 %vm518_vm1, %v8819_v22 }
 0x141   :  { %7047 = vmatprep.mubr.msk.f32.mxu1 %vm518_vm1, %v8830_v25 }
 0x144   :  { %7048 = vmatmul.mubr.msk.f32.gmra.mrb[44].mxu1 %vm518_vm1, %v8833_v26 }
 0x145   :  { %7050 = vmatprep.mubr.msk.f32.mxu1 %vm518_vm1, %v8844_v29 }
 0x148   :  { %7051 = vmatmul.mubr.msk.f32.gmra.mrb[46].mxu1 %vm518_vm1, %v8847_v30 }
 0x149   :  { %7053 = vmatprep.mubr.msk.f32.mxu1 %vm518_vm1, %v8858_v33 }
 0x14c   :  { %7054 = vmatmul.mubr.msk.f32.gmra.mrb[48].mxu1 %vm518_vm1, %v8861_v34 }
 0x14d   :  { %7056 = vmatprep.mubr.msk.f32.mxu1 %vm518_vm1, %v8875_v38 }
 0x150   :  { %7057 = vmatmul.mubr.msk.f32.gmra.mrb[50].mxu1 %vm518_vm1, %v8868_v36 }
 0x151   :  { %7059 = vmatprep.mubr.msk.f32.mxu1 %vm518_vm1, %v8889_v42 }
 0x154   :  { %7060 = vmatmul.mubr.msk.f32.gmra.mrb[52].mxu1 %vm518_vm1, %v8882_v40 }
 0x155   :  { %7062 = vmatprep.mubr.msk.f32.mxu1 %vm518_vm1, %v458_v46 }
 0x158   :  { %7063 = vmatmul.mubr.msk.f32.gmra.mrb[54].mxu1 %vm518_vm1, %v8896_v44  ;;  %v11943_v44 = vmov 0 }
 0x159   :  { %7065 = vmatprep.mubr.msk.f32.mxu1 %vm518_vm1, %v468_v50  ;;  %v11944_v44 = vsel %vm9079_vm2, 4294967295, %v11943_v44 }
 0x15a   :  { %11945 = vst [vmem:[#allocation20_spill] sm:$0xff] %v11944_v44 }
 0x15c   :  { %7066 = vmatmul.mubr.msk.f32.gmra.mrb[56].mxu1 %vm518_vm1, %v473_v48 }
 0x15d   :  { %7068 = vmatprep.mubr.msk.f32.mxu1 %vm518_vm1, %v478_v54 }
 0x160   :  { %7069 = vmatmul.mubr.msk.f32.gmra.mrb[58].mxu1 %vm518_vm1, %v483_v52 }
 0x161   :  { %7071 = vmatprep.mubr.msk.f32.mxu1 %vm518_vm1, %v488_v58 }
 0x164   :  { %7072 = vmatmul.mubr.msk.f32.gmra.mrb[60].mxu1 %vm518_vm1, %v493_v56 }
 0x165   :  { %7074 = vmatprep.mubr.msk.f32.mxu1 %vm518_vm1, %v498_v63 }
 0x168   :  { %7075 = vmatmul.mubr.msk.f32.gmra.mrb[62].mxu1 %vm518_vm1, %v503_v61 }
 0x1bf   :  { %v8989_v0 = vpop.f32.mrb[0].mxu1  ;;  %v8991_v1 = vpop.f32.mrb[32].mxu0 }
 0x1c0   :  { %11925 = vst [vmem:[#allocation2_spill] sm:$0xff] %v8991_v1  ;;  %v8993_v2 = vpop.f32.mrb[1].mxu1  ;;  %v8995_v3 = vpop.f32.mrb[33].mxu0  ;;  %v67_v1 = vld [vmem:[%s11817_s1 + $0xd0] sm:$0xff] }
 0x1c1   :  { %11926 = vst [vmem:[#allocation3_spill] sm:$0xff] %v8995_v3  ;;  %v7400_v4 = vpack.c.bf16 %v8989_v0, %v8993_v2 }
 0x1c3   :  { %v8999_v5 = vpop.f32.mrb[2].mxu1  ;;  %v9001_v6 = vpop.f32.mrb[34].mxu0 }
 0x1c4   :  { %11927 = vst [vmem:[#allocation4_spill] sm:$0xff] %v9001_v6  ;;  %v9003_v7 = vpop.f32.mrb[3].mxu1  ;;  %v9005_v8 = vpop.f32.mrb[35].mxu0  ;;  %v66_v6 = vld [vmem:[%s11817_s1 + $0xc8] sm:$0xff] }
 0x1c5   :  { %11928 = vst [vmem:[#allocation5_spill] sm:$0xff] %v9005_v8  ;;  %v7406_v9 = vpack.c.bf16 %v8999_v5, %v9003_v7  ;;  %v9784_v8 = vunpack.c.h.bf16 %v66_v6 }
 0x1c7   :  { %v9009_v10 = vpop.f32.mrb[4].mxu1  ;;  %v9011_v11 = vpop.f32.mrb[36].mxu0  ;;  %12004 = vst [vmem:[#allocation69_spill] sm:$0xff] %v9784_v8 }
 0x1c8   :  { %11929 = vst [vmem:[#allocation6_spill] sm:$0xff] %v9011_v11  ;;  %v9013_v12 = vpop.f32.mrb[5].mxu1  ;;  %v9015_v13 = vpop.f32.mrb[37].mxu0 }
 0x1c9   :  { %11930 = vst [vmem:[#allocation7_spill] sm:$0xff] %v9015_v13  ;;  %v7412_v14 = vpack.c.bf16 %v9009_v10, %v9013_v12 }
 0x1cb   :  { %v9019_v15 = vpop.f32.mrb[6].mxu1  ;;  %v9021_v16 = vpop.f32.mrb[38].mxu0 }
 0x1cc   :  { %11931 = vst [vmem:[#allocation8_spill] sm:$0xff] %v9021_v16  ;;  %v9023_v17 = vpop.f32.mrb[7].mxu1  ;;  %v9025_v18 = vpop.f32.mrb[39].mxu0 }
 0x1cd   :  { %11932 = vst [vmem:[#allocation9_spill] sm:$0xff] %v9025_v18  ;;  %v65_v18 = vld [vmem:[%s11817_s1 + $0xc0] sm:$0xff] }
 0x1ce   :  { %v9775_v13 = vunpack.c.h.bf16 %v65_v18 }
 0x1cf   :  { %v9029_v20 = vpop.f32.mrb[8].mxu1  ;;  %v9031_v21 = vpop.f32.mrb[40].mxu0 }
 0x1d0   :  { %11933 = vst [vmem:[#allocation10_spill] sm:$0xff] %v9031_v21  ;;  %v9033_v22 = vpop.f32.mrb[9].mxu1  ;;  %v9035_v23 = vpop.f32.mrb[41].mxu0  ;;  %12002 = vst [vmem:[#allocation67_spill] sm:$0xff] %v9775_v13 }
 0x1d1   :  { %11934 = vst [vmem:[#allocation11_spill] sm:$0xff] %v9035_v23 }
 0x1d3   :  { %v9039_v25 = vpop.f32.mrb[10].mxu1  ;;  %v9041_v26 = vpop.f32.mrb[42].mxu0 }
 0x1d4   :  { %11935 = vst [vmem:[#allocation12_spill] sm:$0xff] %v9041_v26  ;;  %v9043_v27 = vpop.f32.mrb[11].mxu1  ;;  %v9045_v28 = vpop.f32.mrb[43].mxu0 }
 0x1d5   :  { %11936 = vst [vmem:[#allocation13_spill] sm:$0xff] %v9045_v28 }
 0x1d7   :  { %v9049_v30 = vpop.f32.mrb[12].mxu1  ;;  %v9051_v31 = vpop.f32.mrb[44].mxu0 }
 0x1d8   :  { %11937 = vst [vmem:[#allocation14_spill] sm:$0xff] %v9051_v31  ;;  %v9053_v32 = vpop.f32.mrb[13].mxu1  ;;  %v9055_v33 = vpop.f32.mrb[45].mxu0 }
 0x1d9   :  { %11938 = vst [vmem:[#allocation15_spill] sm:$0xff] %v9055_v33 }
 0x1db   :  { %v9059_v35 = vpop.f32.mrb[14].mxu1  ;;  %v9061_v36 = vpop.f32.mrb[46].mxu0 }
 0x1dc   :  { %11939 = vst [vmem:[#allocation16_spill] sm:$0xff] %v9061_v36  ;;  %v9063_v37 = vpop.f32.mrb[15].mxu1  ;;  %v9065_v38 = vpop.f32.mrb[47].mxu0 }
 0x1dd   :  { %11940 = vst [vmem:[#allocation17_spill] sm:$0xff] %v9065_v38 }
 0x1df   :  { %v9069_v40 = vpop.f32.mrb[16].mxu1  ;;  %v9071_v41 = vpop.f32.mrb[48].mxu0 }
 0x1e0   :  { %11941 = vst [vmem:[#allocation18_spill] sm:$0xff] %v9071_v41  ;;  %v9073_v42 = vpop.f32.mrb[17].mxu1  ;;  %v9075_v43 = vpop.f32.mrb[49].mxu0 }
 0x1e1   :  { %11942 = vst [vmem:[#allocation19_spill] sm:$0xff] %v9075_v43  ;;  %v7397_v45 = vpack.c.bf16 %v9069_v40, %v9073_v42 }
 0x1e3   :  { %7399 = vmatprep.subr.msk.bf16.mxu1 %vm9079_vm2, %v7397_v45  ;;  %v9087_v46 = vpop.f32.mrb[18].mxu1  ;;  %v9089_v47 = vpop.f32.mrb[50].mxu0 }
 0x1e4   :  { %11946 = vst [vmem:[#allocation21_spill] sm:$0xff] %v9089_v47  ;;  %7402 = vmatpush3.bf16.xpose.msk.msra.mxu1 %vm9079_vm2, %v7400_v4  ;;  %v9093_v48 = vpop.f32.mrb[19].mxu1  ;;  %v9095_v49 = vpop.f32.mrb[51].mxu0  ;;  %v11961_v47 = vpack.c.bf16 %v9029_v20, %v9033_v22 }
 0x1e5   :  { %11947 = vst [vmem:[#allocation22_spill] sm:$0xff] %v9095_v49  ;;  %v7403_v50 = vpack.c.bf16 %v9087_v46, %v9093_v48 }
 0x1e7   :  { %7405 = vmatprep.subr.msk.bf16.mxu1 %vm9079_vm2, %v7403_v50  ;;  %v9101_v51 = vpop.f32.mrb[20].mxu1  ;;  %v9103_v52 = vpop.f32.mrb[52].mxu0 }
 0x1e8   :  { %11948 = vst [vmem:[#allocation23_spill] sm:$0xff] %v9103_v52  ;;  %v9105_v53 = vpop.f32.mrb[21].mxu1  ;;  %v9107_v54 = vpop.f32.mrb[53].mxu0 }
 0x1e9   :  { %11949 = vst [vmem:[#allocation24_spill] sm:$0xff] %v9107_v54  ;;  %v7409_v55 = vpack.c.bf16 %v9101_v51, %v9105_v53 }
 0x1eb   :  { %v9111_v56 = vpop.f32.mrb[22].mxu1  ;;  %v9113_v57 = vpop.f32.mrb[54].mxu0 }
 0x1ec   :  { %11950 = vst [vmem:[#allocation25_spill] sm:$0xff] %v9113_v57  ;;  %7408 = vmatpush3.bf16.xpose.msk.msra.mxu1 %vm9079_vm2, %v7406_v9  ;;  %v9117_v58 = vpop.f32.mrb[23].mxu1  ;;  %v9119_v60 = vpop.f32.mrb[55].mxu0 }
 0x1ed   :  { %11951 = vst [vmem:[#allocation26_spill] sm:$0xff] %v9119_v60  ;;  %7411 = vmatprep.subr.msk.bf16.mxu1 %vm9079_vm2, %v7409_v55  ;;  %v7415_v61 = vpack.c.bf16 %v9111_v56, %v9117_v58 }
 0x1ef   :  { %v9125_v62 = vpop.f32.mrb[24].mxu1  ;;  %v9127_v63 = vpop.f32.mrb[56].mxu0 }
 0x1f0   :  { %11952 = vst [vmem:[#allocation27_spill] sm:$0xff] %v9127_v63  ;;  %v9129_v4 = vpop.f32.mrb[25].mxu1  ;;  %v9131_v45 = vpop.f32.mrb[57].mxu0 }
 0x1f1   :  { %11953 = vst [vmem:[#allocation28_spill] sm:$0xff] %v9131_v45  ;;  %v7421_v9 = vpack.c.bf16 %v9125_v62, %v9129_v4 }
 0x1f3   :  { %v9135_v50 = vpop.f32.mrb[26].mxu1  ;;  %v9137_v39 = vpop.f32.mrb[58].mxu0 }
 0x1f4   :  { %11954 = vst [vmem:[#allocation29_spill] sm:$0xff] %v9137_v39  ;;  %7414 = vmatpush3.bf16.xpose.msk.msra.mxu1 %vm9079_vm2, %v7412_v14  ;;  %v9141_v55 = vpop.f32.mrb[27].mxu1  ;;  %v9143_v34 = vpop.f32.mrb[59].mxu0 }
 0x1f5   :  { %11955 = vst [vmem:[#allocation30_spill] sm:$0xff] %v9143_v34  ;;  %7417 = vmatprep.subr.msk.bf16.mxu1 %vm9079_vm2, %v7415_v61  ;;  %v7427_v29 = vpack.c.bf16 %v9135_v50, %v9141_v55  ;;  %v11959_v61 = vpack.c.bf16 %v9019_v15, %v9023_v17 }
 0x1f7   :  { %v9149_v59 = vpop.f32.mrb[28].mxu1  ;;  %v9151_v24 = vpop.f32.mrb[60].mxu0 }
 0x1f8   :  { %11956 = vst [vmem:[#allocation31_spill] sm:$0xff] %v9151_v24  ;;  %v9153_v19 = vpop.f32.mrb[29].mxu1  ;;  %v9155_v39 = vpop.f32.mrb[61].mxu0 }
 0x1f9   :  { %11957 = vst [vmem:[#allocation32_spill] sm:$0xff] %v9155_v39  ;;  %v7433_v14 = vpack.c.bf16 %v9149_v59, %v9153_v19 }
 0x1fb   :  { %v9159_v63 = vpop.f32.mrb[30].mxu1  ;;  %v9161_v34 = vpop.f32.mrb[62].mxu0 }
 0x1fc   :  { %11958 = vst [vmem:[#allocation33_spill] sm:$0xff] %v9161_v34  ;;  %7420 = vmatpush3.bf16.xpose.msk.msra.mxu1 %vm9079_vm2, %v11959_v61  ;;  %v9168_v45 = vpop.f32.mrb[31].mxu1  ;;  %v9170_v24 = vpop.f32.mrb[63].mxu0 }
 0x1fd   :  { %11960 = vst [vmem:[#allocation34_spill] sm:$0xff] %v9170_v24  ;;  %v7439_v39 = vpack.c.bf16 %v9159_v63, %v9168_v45  ;;  %7423 = vmatprep.subr.msk.bf16.mxu1 %vm9079_vm2, %v7421_v9 }
 0x1ff   :  { %v9176_v57 = vpop.f32.mrb[32].mxu1 }
 0x200   :  { %v9178_v60 = vpop.f32.mrb[33].mxu1  ;;  %v2156_v34 = vadd.f32 %v9176_v57, %v8989_v0 }
 0x201   :  { %6597 = vmatprep.mubr.msk.f32.mxu1 %vm518_vm1, %v9178_v60  ;;  %v2155_v61 = vadd.f32 %v9178_v60, %v8993_v2 }
 0x203   :  { %v9188_v52 = vpop.f32.mrb[34].mxu1  ;;  %v7446_v54 = vpack.c.bf16 %v2156_v34, %v2155_v61  ;;  %v11962_v61 = vmov 0.0|0.0  }
 0x204   :  { %v9190_v9 = vpop.f32.mrb[35].mxu1  ;;  %7426 = vmatpush3.bf16.xpose.msk.msra.mxu1 %vm9079_vm2, %v11961_v47  ;;  %v2158_v0 = vadd.f32 %v9188_v52, %v8999_v5 }
 0x205   :  { %7447 = vmatpush1.bf16.msra.mxu0 %v7446_v54  ;;  %7429 = vmatprep.subr.msk.bf16.mxu1 %vm9079_vm2, %v7427_v29  ;;  %v2157_v2 = vadd.f32 %v9190_v9, %v9003_v7 }
 0x206   :  { %7448 = vmatprep.subr.bf16.mxu0 %v11962_v61 }
 0x207   :  { %v9206_v24 = vpop.f32.mrb[36].mxu1  ;;  %v7449_v49 = vpack.c.bf16 %v2158_v0, %v2157_v2  ;;  %v11963_v0 = vpack.c.bf16 %v9039_v25, %v9043_v27 }
 0x208   :  { %v9208_v41 = vpop.f32.mrb[37].mxu1  ;;  %v2160_v5 = vadd.f32 %v9206_v24, %v9009_v10 }
 0x209   :  { %7450 = vmatpush1.bf16.msra.mxu0 %v7449_v49  ;;  %v2159_v29 = vadd.f32 %v9208_v41, %v9013_v12  ;;  %v7500_v7 = vpack.c.bf16 %v9206_v24, %v9208_v41 }
 0x20a   :  { %7451 = vmatprep.subr.bf16.mxu0 %v11962_v61 }
 0x20b   :  { %v9217_v47 = vpop.f32.mrb[38].mxu1  ;;  %v7452_v54 = vpack.c.bf16 %v2160_v5, %v2159_v29 }
 0x20c   :  { %v9219_v34 = vpop.f32.mrb[39].mxu1  ;;  %7432 = vmatpush3.bf16.xpose.msk.msra.mxu1 %vm9079_vm2, %v11963_v0  ;;  %v2162_v10 = vadd.f32 %v9217_v47, %v9019_v15 }
 0x20d   :  { %7453 = vmatpush1.bf16.msra.mxu0 %v7452_v54  ;;  %7435 = vmatprep.subr.msk.bf16.mxu1 %vm9079_vm2, %v7433_v14  ;;  %v2161_v12 = vadd.f32 %v9219_v34, %v9023_v17 }
 0x20e   :  { %7454 = vmatprep.subr.bf16.mxu0 %v11962_v61 }
 0x20f   :  { %v9235_v2 = vpop.f32.mrb[40].mxu1  ;;  %v7455_v5 = vpack.c.bf16 %v2162_v10, %v2161_v12  ;;  %v11964_v10 = vpack.c.bf16 %v9049_v30, %v9053_v32 }
 0x210   :  { %v9237_v29 = vpop.f32.mrb[41].mxu1  ;;  %v2164_v15 = vadd.f32 %v9235_v2, %v9029_v20 }
 0x211   :  { %7456 = vmatpush1.bf16.msra.mxu0 %v7455_v5  ;;  %v2163_v14 = vadd.f32 %v9237_v29, %v9033_v22  ;;  %v7506_v17 = vpack.c.bf16 %v9235_v2, %v9237_v29 }
 0x212   :  { %7457 = vmatprep.subr.bf16.mxu0 %v11962_v61 }
 0x213   :  { %v9246_v54 = vpop.f32.mrb[42].mxu1  ;;  %v7458_v0 = vpack.c.bf16 %v2164_v15, %v2163_v14 }
 0x214   :  { %v9248_v49 = vpop.f32.mrb[43].mxu1  ;;  %7438 = vmatpush3.bf16.xpose.msk.msra.mxu1 %vm9079_vm2, %v11964_v10  ;;  %v2166_v20 = vadd.f32 %v9246_v54, %v9039_v25 }
 0x215   :  { %7459 = vmatpush1.bf16.msra.mxu0 %v7458_v0  ;;  %7441 = vmatprep.subr.msk.bf16.mxu1 %vm9079_vm2, %v7439_v39  ;;  %v2165_v22 = vadd.f32 %v9248_v49, %v9043_v27 }
 0x216   :  { %7460 = vmatprep.subr.bf16.mxu0 %v11962_v61 }
 0x217   :  { %v9264_v5 = vpop.f32.mrb[44].mxu1  ;;  %v7461_v15 = vpack.c.bf16 %v2166_v20, %v2165_v22  ;;  %v11965_v20 = vpack.c.bf16 %v9059_v35, %v9063_v37 }
 0x218   :  { %v9266_v14 = vpop.f32.mrb[45].mxu1  ;;  %v2168_v25 = vadd.f32 %v9264_v5, %v9049_v30 }
 0x219   :  { %7462 = vmatpush1.bf16.msra.mxu0 %v7461_v15  ;;  %v2167_v39 = vadd.f32 %v9266_v14, %v9053_v32  ;;  %v7512_v27 = vpack.c.bf16 %v9264_v5, %v9266_v14 }
 0x21a   :  { %7463 = vmatprep.subr.bf16.mxu0 %v11962_v61 }
 0x21b   :  { %v9275_v0 = vpop.f32.mrb[46].mxu1  ;;  %v7464_v10 = vpack.c.bf16 %v2168_v25, %v2167_v39 }
 0x21c   :  { %v9277_v12 = vpop.f32.mrb[47].mxu1  ;;  %7444 = vmatpush3.bf16.xpose.msk.msra.mxu1 %vm9079_vm2, %v11965_v20  ;;  %v2170_v30 = vadd.f32 %v9275_v0, %v9059_v35 }
 0x21d   :  { %7465 = vmatpush1.bf16.msra.mxu0 %v7464_v10  ;;  %v2169_v32 = vadd.f32 %v9277_v12, %v9063_v37  ;;  %7493 = vmatprep.subr.bf16.mxu1 %v11962_v61  ;;  %v7515_v22 = vpack.c.bf16 %v9275_v0, %v9277_v12 }
 0x21e   :  { %7466 = vmatprep.subr.bf16.mxu0 %v11962_v61 }
 0x21f   :  { %v9292_v15 = vpop.f32.mrb[48].mxu1  ;;  %v7467_v25 = vpack.c.bf16 %v2170_v30, %v2169_v32 }
 0x220   :  { %v9294_v39 = vpop.f32.mrb[49].mxu1  ;;  %v2172_v20 = vadd.f32 %v9292_v15, %v9069_v40  ;;  %v11966_v40 = vpack.c.bf16 %v9176_v57, %v9178_v60 }
 0x221   :  { %7468 = vmatpush1.bf16.msra.mxu0 %v7467_v25  ;;  %v2171_v35 = vadd.f32 %v9294_v39, %v9073_v42  ;;  %v7518_v37 = vpack.c.bf16 %v9292_v15, %v9294_v39 }
 0x222   :  { %7469 = vmatprep.subr.bf16.mxu0 %v11962_v61 }
 0x223   :  { %v9303_v10 = vpop.f32.mrb[50].mxu1  ;;  %6598 = vmatmul.mubr.msk.f32.vlgmr.msra.gmra.mrb[64].mxu1 %vm518_vm1, %v9178_v60  ;;  %v7470_v30 = vpack.c.bf16 %v2172_v20, %v2171_v35 }
 0x224   :  { %v9307_v32 = vpop.f32.mrb[51].mxu1  ;;  %6599 = vmatprep.mubr.msk.f32.mxu1 %vm518_vm1, %v9176_v57  ;;  %7495 = vmatpush1.bf16.msra.mxu1 %v11966_v40  ;;  %v2174_v42 = vadd.f32 %v9303_v10, %v9087_v46  ;;  %v11967_v46 = vpack.c.bf16 %v9188_v52, %v9190_v9 }
 0x225   :  { %7471 = vmatpush1.bf16.msra.mxu0 %v7470_v30  ;;  %7496 = vmatprep.subr.bf16.mxu1 %v11962_v61  ;;  %v2173_v25 = vadd.f32 %v9307_v32, %v9093_v48  ;;  %v7521_v20 = vpack.c.bf16 %v9303_v10, %v9307_v32 }
 0x226   :  { %7472 = vmatprep.subr.bf16.mxu0 %v11962_v61 }
 0x227   :  { %v9322_v35 = vpop.f32.mrb[52].mxu1  ;;  %6600 = vmatmul.mubr.msk.f32.gmra.mrb[66].mxu1 %vm518_vm1, %v9176_v57  ;;  %v7473_v60 = vpack.c.bf16 %v2174_v42, %v2173_v25 }
 0x228   :  { %v9326_v40 = vpop.f32.mrb[53].mxu1  ;;  %6601 = vmatprep.mubr.msk.f32.mxu1 %vm518_vm1, %v9190_v9  ;;  %7498 = vmatpush1.bf16.msra.mxu1 %v11967_v46  ;;  %v2176_v48 = vadd.f32 %v9322_v35, %v9101_v51 }
 0x229   :  { %7474 = vmatpush1.bf16.msra.mxu0 %v7473_v60  ;;  %7499 = vmatprep.subr.bf16.mxu1 %v11962_v61  ;;  %v2175_v30 = vadd.f32 %v9326_v40, %v9105_v53  ;;  %v7524_v57 = vpack.c.bf16 %v9322_v35, %v9326_v40 }
 0x22a   :  { %7475 = vmatprep.subr.bf16.mxu0 %v11962_v61 }
 0x22b   :  { %v9341_v42 = vpop.f32.mrb[54].mxu1  ;;  %6602 = vmatmul.mubr.msk.f32.gmra.mrb[68].mxu1 %vm518_vm1, %v9190_v9  ;;  %v7476_v25 = vpack.c.bf16 %v2176_v48, %v2175_v30 }
 0x22c   :  { %v9345_v46 = vpop.f32.mrb[55].mxu1  ;;  %6603 = vmatprep.mubr.msk.f32.mxu1 %vm518_vm1, %v9188_v52  ;;  %7501 = vmatpush1.bf16.msra.mxu1 %v7500_v7  ;;  %v2178_v51 = vadd.f32 %v9341_v42, %v9111_v56  ;;  %v11968_v56 = vpack.c.bf16 %v9217_v47, %v9219_v34 }
 0x22d   :  { %7477 = vmatpush1.bf16.msra.mxu0 %v7476_v25  ;;  %7502 = vmatprep.subr.bf16.mxu1 %v11962_v61  ;;  %v2177_v53 = vadd.f32 %v9345_v46, %v9117_v58  ;;  %v7527_v9 = vpack.c.bf16 %v9341_v42, %v9345_v46 }
 0x22e   :  { %7478 = vmatprep.subr.bf16.mxu0 %v11962_v61 }
 0x22f   :  { %v9360_v60 = vpop.f32.mrb[56].mxu1  ;;  %6604 = vmatmul.mubr.msk.f32.gmra.mrb[70].mxu1 %vm518_vm1, %v9188_v52  ;;  %v7479_v7 = vpack.c.bf16 %v2178_v51, %v2177_v53 }
 0x230   :  { %v9364_v48 = vpop.f32.mrb[57].mxu1  ;;  %6605 = vmatprep.mubr.msk.f32.mxu1 %vm518_vm1, %v9208_v41  ;;  %7504 = vmatpush1.bf16.msra.mxu1 %v11968_v56  ;;  %v2180_v58 = vadd.f32 %v9360_v60, %v9125_v62 }
 0x231   :  { %7480 = vmatpush1.bf16.msra.mxu0 %v7479_v7  ;;  %7505 = vmatprep.subr.bf16.mxu1 %v11962_v61  ;;  %v2179_v30 = vadd.f32 %v9364_v48, %v9129_v4  ;;  %v7530_v52 = vpack.c.bf16 %v9360_v60, %v9364_v48 }
 0x232   :  { %7481 = vmatprep.subr.bf16.mxu0 %v11962_v61 }
 0x233   :  { %v9379_v25 = vpop.f32.mrb[58].mxu1  ;;  %6606 = vmatmul.mubr.msk.f32.gmra.mrb[72].mxu1 %vm518_vm1, %v9208_v41  ;;  %v7482_v51 = vpack.c.bf16 %v2180_v58, %v2179_v30 }
 0x234   :  { %v9383_v53 = vpop.f32.mrb[59].mxu1  ;;  %6607 = vmatprep.mubr.msk.f32.mxu1 %vm518_vm1, %v9206_v24  ;;  %7507 = vmatpush1.bf16.msra.mxu1 %v7506_v17  ;;  %v2182_v62 = vadd.f32 %v9379_v25, %v9135_v50  ;;  %v11969_v50 = vpack.c.bf16 %v9246_v54, %v9248_v49 }
 0x235   :  { %7483 = vmatpush1.bf16.msra.mxu0 %v7482_v51  ;;  %7508 = vmatprep.subr.bf16.mxu1 %v11962_v61  ;;  %v2181_v4 = vadd.f32 %v9383_v53, %v9141_v55  ;;  %v7533_v41 = vpack.c.bf16 %v9379_v25, %v9383_v53 }
 0x236   :  { %7484 = vmatprep.subr.bf16.mxu0 %v11962_v61 }
 0x237   :  { %v9398_v7 = vpop.f32.mrb[60].mxu1  ;;  %6608 = vmatmul.mubr.msk.f32.gmra.mrb[74].mxu1 %vm518_vm1, %v9206_v24  ;;  %v7485_v17 = vpack.c.bf16 %v2182_v62, %v2181_v4 }
 0x238   :  { %v9402_v56 = vpop.f32.mrb[61].mxu1  ;;  %6609 = vmatprep.mubr.msk.f32.mxu1 %vm518_vm1, %v9219_v34  ;;  %7510 = vmatpush1.bf16.msra.mxu1 %v11969_v50  ;;  %v2184_v55 = vadd.f32 %v9398_v7, %v9149_v59 }
 0x239   :  { %7486 = vmatpush1.bf16.msra.mxu0 %v7485_v17  ;;  %7511 = vmatprep.subr.bf16.mxu1 %v11962_v61  ;;  %v2183_v58 = vadd.f32 %v9402_v56, %v9153_v19  ;;  %v7536_v24 = vpack.c.bf16 %v9398_v7, %v9402_v56  ;;  %v52_v17 = vld [vmem:[%s11817_s1 + $0x58] sm:$0xff] }
 0x23a   :  { %7487 = vmatprep.subr.bf16.mxu0 %v11962_v61  ;;  %v9658_v50 = vunpack.c.h.bf16 %v52_v17 }
 0x23b   :  { %v9417_v30 = vpop.f32.mrb[62].mxu1  ;;  %6610 = vmatmul.mubr.msk.f32.gmra.mrb[76].mxu1 %vm518_vm1, %v9219_v34  ;;  %v7488_v51 = vpack.c.bf16 %v2184_v55, %v2183_v58  ;;  %v53_v55 = vld [vmem:[%s11817_s1 + $0x60] sm:$0xff]  ;;  %v9665_v58 = vunpack.c.l.bf16 %v52_v17  ;;  %v60_v17 = vld [vmem:[%s11817_s1 + $0x98] sm:$0xff] }
 0x23c   :  { %v9421_v62 = vpop.f32.mrb[63].mxu1  ;;  %6611 = vmatprep.mubr.msk.f32.mxu1 %vm518_vm1, %v9217_v47  ;;  %7513 = vmatpush1.bf16.msra.mxu1 %v7512_v27  ;;  %v2186_v59 = vadd.f32 %v9417_v30, %v9159_v63  ;;  %v41_v63 = vld [vmem:[%s11817_s1] sm:$0xff]  ;;  %11976 = vst [vmem:[#allocation41_spill] sm:$0xff] %v9658_v50 }
 0x23d   :  { %7489 = vmatpush1.bf16.msra.mxu0 %v7488_v51  ;;  %7514 = vmatprep.subr.bf16.mxu1 %v11962_v61  ;;  %v2185_v19 = vadd.f32 %v9421_v62, %v9168_v45  ;;  %v7539_v34 = vpack.c.bf16 %v9417_v30, %v9421_v62  ;;  %v9558_v45 = vunpack.c.h.bf16 %v41_v63  ;;  %11977 = vst [vmem:[#allocation42_spill] sm:$0xff] %v9665_v58  ;;  %v9674_v51 = vunpack.c.l.bf16 %v53_v55 }
 0x23e   :  { %7490 = vmatprep.subr.bf16.mxu0 %v11962_v61 }
 0x23f   :  { %6612 = vmatmul.mubr.msk.f32.gmra.mrb[78].mxu1 %vm518_vm1, %v9217_v47  ;;  %v7491_v4 = vpack.c.bf16 %v2186_v59, %v2185_v19  ;;  %11970 = vst [vmem:[#allocation35_spill] sm:$0xff] %v9558_v45  ;;  %v42_v47 = vld [vmem:[%s11817_s1 + $0x8] sm:$0xff]  ;;  %11979 = vst [vmem:[#allocation44_spill] sm:$0xff] %v9674_v51  ;;  %v55_v59 = vld [vmem:[%s11817_s1 + $0x70] sm:$0xff] }
 0x240   :  { %6613 = vmatprep.mubr.msk.f32.mxu1 %vm518_vm1, %v9237_v29  ;;  %7516 = vmatpush1.bf16.msra.mxu1 %v7515_v22 }
 0x241   :  { %7492 = vmatpush1.bf16.msra.mxu0 %v7491_v4  ;;  %7517 = vmatprep.subr.bf16.mxu1 %v11962_v61  ;;  %v56_v4 = vld [vmem:[%s11817_s1 + $0x78] sm:$0xff] }
 0x243   :  { %6614 = vmatmul.mubr.msk.f32.gmra.mrb[80].mxu1 %vm518_vm1, %v9237_v29  ;;  %v43_v29 = vld [vmem:[%s11817_s1 + $0x10] sm:$0xff] }
 0x244   :  { %6615 = vmatprep.mubr.msk.f32.mxu1 %vm518_vm1, %v9235_v2  ;;  %7519 = vmatpush1.bf16.msra.mxu1 %v7518_v37 }
 0x245   :  { %7520 = vmatprep.subr.bf16.mxu1 %v11962_v61 }
 0x247   :  { %6616 = vmatmul.mubr.msk.f32.gmra.mrb[82].mxu1 %vm518_vm1, %v9235_v2  ;;  %v9568_v2 = vunpack.c.h.bf16 %v42_v47 }
 0x248   :  { %6617 = vmatprep.mubr.msk.f32.mxu1 %vm518_vm1, %v9248_v49  ;;  %7522 = vmatpush1.bf16.msra.mxu1 %v7521_v20 }
 0x249   :  { %7523 = vmatprep.subr.bf16.mxu1 %v11962_v61 }
 0x24b   :  { %6618 = vmatmul.mubr.msk.f32.gmra.mrb[84].mxu1 %vm518_vm1, %v9248_v49  ;;  %v9566_v49 = vunpack.c.l.bf16 %v41_v63  ;;  %v9692_v63 = vunpack.c.l.bf16 %v55_v59 }
 0x24c   :  { %6619 = vmatprep.mubr.msk.f32.mxu1 %vm518_vm1, %v9246_v54  ;;  %7525 = vmatpush1.bf16.msra.mxu1 %v7524_v57 }
 0x24d   :  { %7526 = vmatprep.subr.bf16.mxu1 %v11962_v61  ;;  %11971 = vst [vmem:[#allocation36_spill] sm:$0xff] %v9566_v49  ;;  %11983 = vst [vmem:[#allocation48_spill] sm:$0xff] %v9692_v63 }
 0x24f   :  { %6620 = vmatmul.mubr.msk.f32.gmra.mrb[86].mxu1 %vm518_vm1, %v9246_v54  ;;  %v9575_v54 = vunpack.c.l.bf16 %v42_v47  ;;  %v9694_v47 = vunpack.c.h.bf16 %v56_v4 }
 0x250   :  { %6621 = vmatprep.mubr.msk.f32.mxu1 %vm518_vm1, %v9266_v14  ;;  %7528 = vmatpush1.bf16.msra.mxu1 %v7527_v9 }
 0x251   :  { %7529 = vmatprep.subr.bf16.mxu1 %v11962_v61  ;;  %11972 = vst [vmem:[#allocation37_spill] sm:$0xff] %v9575_v54  ;;  %11984 = vst [vmem:[#allocation49_spill] sm:$0xff] %v9694_v47 }
 0x253   :  { %6622 = vmatmul.mubr.msk.f32.gmra.mrb[88].mxu1 %vm518_vm1, %v9266_v14  ;;  %v9584_v14 = vunpack.c.l.bf16 %v43_v29 }
 0x254   :  { %6623 = vmatprep.mubr.msk.f32.mxu1 %vm518_vm1, %v9264_v5  ;;  %7531 = vmatpush1.bf16.msra.mxu1 %v7530_v52 }
 0x255   :  { %7532 = vmatprep.subr.bf16.mxu1 %v11962_v61  ;;  %11974 = vst [vmem:[#allocation39_spill] sm:$0xff] %v9584_v14 }
 0x257   :  { %6624 = vmatmul.mubr.msk.f32.gmra.mrb[90].mxu1 %vm518_vm1, %v9264_v5  ;;  %v44_v5 = vld [vmem:[%s11817_s1 + $0x18] sm:$0xff] }
 0x258   :  { %6625 = vmatprep.mubr.msk.f32.mxu1 %vm518_vm1, %v9277_v12  ;;  %7534 = vmatpush1.bf16.msra.mxu1 %v7533_v41  ;;  %v9586_v27 = vunpack.c.h.bf16 %v44_v5  ;;  %v9593_v22 = vunpack.c.l.bf16 %v44_v5  ;;  %v9701_v5 = vunpack.c.l.bf16 %v56_v4  ;;  %v9737_v4 = vunpack.c.l.bf16 %v60_v17 }
 0x259   :  { %7535 = vmatprep.subr.bf16.mxu1 %v11962_v61 }
 0x25a   :  { %11985 = vst [vmem:[#allocation50_spill] sm:$0xff] %v9701_v5  ;;  %11993 = vst [vmem:[#allocation58_spill] sm:$0xff] %v9737_v4 }
 0x25b   :  { %6626 = vmatmul.mubr.msk.f32.gmra.mrb[92].mxu1 %vm518_vm1, %v9277_v12  ;;  %v9577_v12 = vunpack.c.h.bf16 %v43_v29  ;;  %v57_v29 = vld [vmem:[%s11817_s1 + $0x80] sm:$0xff] }
 0x25c   :  { %6627 = vmatprep.mubr.msk.f32.mxu1 %vm518_vm1, %v9275_v0  ;;  %7537 = vmatpush1.bf16.msra.mxu1 %v7536_v24  ;;  %v9667_v24 = vunpack.c.h.bf16 %v53_v55 }
 0x25d   :  { %7538 = vmatprep.subr.bf16.mxu1 %v11962_v61  ;;  %11973 = vst [vmem:[#allocation38_spill] sm:$0xff] %v9577_v12 }
 0x25e   :  { %11978 = vst [vmem:[#allocation43_spill] sm:$0xff] %v9667_v24 }
 0x25f   :  { %6628 = vmatmul.mubr.msk.f32.gmra.mrb[94].mxu1 %vm518_vm1, %v9275_v0  ;;  %v45_v0 = vld [vmem:[%s11817_s1 + $0x20] sm:$0xff] }
 0x260   :  { %6629 = vmatprep.mubr.msk.f32.mxu1 %vm518_vm1, %v9294_v39  ;;  %7540 = vmatpush1.bf16.msra.mxu1 %v7539_v34  ;;  %v9602_v37 = vunpack.c.l.bf16 %v45_v0  ;;  %v9685_v34 = vunpack.c.h.bf16 %v55_v59  ;;  %v61_v59 = vld [vmem:[%s11817_s1 + $0xa0] sm:$0xff] }
 0x262   :  { %11982 = vst [vmem:[#allocation47_spill] sm:$0xff] %v9685_v34 }
 0x263   :  { %6630 = vmatmul.mubr.msk.f32.gmra.mrb[96].mxu1 %vm518_vm1, %v9294_v39  ;;  %v46_v39 = vld [vmem:[%s11817_s1 + $0x28] sm:$0xff] }
 0x264   :  { %6631 = vmatprep.mubr.msk.f32.mxu1 %vm518_vm1, %v9292_v15  ;;  %v9611_v20 = vunpack.c.l.bf16 %v46_v39 }
 0x267   :  { %6632 = vmatmul.mubr.msk.f32.gmra.mrb[98].mxu1 %vm518_vm1, %v9292_v15  ;;  %v9595_v15 = vunpack.c.h.bf16 %v45_v0  ;;  %v9703_v0 = vunpack.c.h.bf16 %v57_v29 }
 0x268   :  { %6633 = vmatprep.mubr.msk.f32.mxu1 %vm518_vm1, %v9307_v32 }
 0x269   :  { %11986 = vst [vmem:[#allocation51_spill] sm:$0xff] %v9703_v0 }
 0x26b   :  { %6634 = vmatmul.mubr.msk.f32.gmra.mrb[100].mxu1 %vm518_vm1, %v9307_v32  ;;  %v47_v32 = vld [vmem:[%s11817_s1 + $0x30] sm:$0xff] }
 0x26c   :  { %6635 = vmatprep.mubr.msk.f32.mxu1 %vm518_vm1, %v9303_v10  ;;  %v9620_v57 = vunpack.c.l.bf16 %v47_v32 }
 0x26f   :  { %6636 = vmatmul.mubr.msk.f32.gmra.mrb[102].mxu1 %vm518_vm1, %v9303_v10  ;;  %v9604_v10 = vunpack.c.h.bf16 %v46_v39  ;;  %v58_v39 = vld [vmem:[%s11817_s1 + $0x88] sm:$0xff] }
 0x270   :  { %6637 = vmatprep.mubr.msk.f32.mxu1 %vm518_vm1, %v9326_v40 }
 0x273   :  { %6638 = vmatmul.mubr.msk.f32.gmra.mrb[104].mxu1 %vm518_vm1, %v9326_v40  ;;  %v48_v40 = vld [vmem:[%s11817_s1 + $0x38] sm:$0xff] }
 0x274   :  { %6639 = vmatprep.mubr.msk.f32.mxu1 %vm518_vm1, %v9322_v35  ;;  %v9629_v9 = vunpack.c.l.bf16 %v48_v40 }
 0x277   :  { %6640 = vmatmul.mubr.msk.f32.gmra.mrb[106].mxu1 %vm518_vm1, %v9322_v35  ;;  %v9613_v35 = vunpack.c.h.bf16 %v47_v32  ;;  %v9710_v32 = vunpack.c.l.bf16 %v57_v29  ;;  %v9739_v29 = vunpack.c.h.bf16 %v61_v59 }
 0x278   :  { %6641 = vmatprep.mubr.msk.f32.mxu1 %vm518_vm1, %v9345_v46 }
 0x279   :  { %11987 = vst [vmem:[#allocation52_spill] sm:$0xff] %v9710_v32  ;;  %11994 = vst [vmem:[#allocation59_spill] sm:$0xff] %v9739_v29 }
 0x27b   :  { %6642 = vmatmul.mubr.msk.f32.gmra.mrb[108].mxu1 %vm518_vm1, %v9345_v46  ;;  %v49_v46 = vld [vmem:[%s11817_s1 + $0x40] sm:$0xff] }
 0x27c   :  { %6643 = vmatprep.mubr.msk.f32.mxu1 %vm518_vm1, %v9341_v42  ;;  %v9638_v52 = vunpack.c.l.bf16 %v49_v46 }
 0x27e   :  { %11975 = vst [vmem:[#allocation40_spill] sm:$0xff] %v9638_v52 }
 0x27f   :  { %6644 = vmatmul.mubr.msk.f32.gmra.mrb[110].mxu1 %vm518_vm1, %v9341_v42  ;;  %v9622_v42 = vunpack.c.h.bf16 %v48_v40  ;;  %v9712_v40 = vunpack.c.h.bf16 %v58_v39 }
 0x280   :  { %6645 = vmatprep.mubr.msk.f32.mxu1 %vm518_vm1, %v9364_v48 }
 0x281   :  { %11988 = vst [vmem:[#allocation53_spill] sm:$0xff] %v9712_v40 }
 0x283   :  { %6646 = vmatmul.mubr.msk.f32.gmra.mrb[112].mxu1 %vm518_vm1, %v9364_v48  ;;  %v50_v48 = vld [vmem:[%s11817_s1 + $0x48] sm:$0xff] }
 0x284   :  { %6647 = vmatprep.mubr.msk.f32.mxu1 %vm518_vm1, %v9360_v60  ;;  %v9647_v41 = vunpack.c.l.bf16 %v50_v48 }
 0x287   :  { %6648 = vmatmul.mubr.msk.f32.gmra.mrb[114].mxu1 %vm518_vm1, %v9360_v60  ;;  %v9631_v60 = vunpack.c.h.bf16 %v49_v46  ;;  %v59_v46 = vld [vmem:[%s11817_s1 + $0x90] sm:$0xff] }
 0x288   :  { %6649 = vmatprep.mubr.msk.f32.mxu1 %vm518_vm1, %v9383_v53  ;;  %v9728_v55 = vunpack.c.l.bf16 %v59_v46 }
 0x28a   :  { %11991 = vst [vmem:[#allocation56_spill] sm:$0xff] %v9728_v55 }
 0x28b   :  { %6650 = vmatmul.mubr.msk.f32.gmra.mrb[116].mxu1 %vm518_vm1, %v9383_v53  ;;  %v51_v53 = vld [vmem:[%s11817_s1 + $0x50] sm:$0xff] }
 0x28c   :  { %6651 = vmatprep.mubr.msk.f32.mxu1 %vm518_vm1, %v9379_v25 }
 0x28f   :  { %6652 = vmatmul.mubr.msk.f32.gmra.mrb[118].mxu1 %vm518_vm1, %v9379_v25  ;;  %v9640_v25 = vunpack.c.h.bf16 %v50_v48  ;;  %v9719_v48 = vunpack.c.l.bf16 %v58_v39  ;;  %v62_v39 = vld [vmem:[%s11817_s1 + $0xa8] sm:$0xff] }
 0x290   :  { %6653 = vmatprep.mubr.msk.f32.mxu1 %vm518_vm1, %v9402_v56  ;;  %v9748_v44 = vunpack.c.h.bf16 %v62_v39  ;;  %v9755_v43 = vunpack.c.l.bf16 %v62_v39 }
 0x291   :  { %11989 = vst [vmem:[#allocation54_spill] sm:$0xff] %v9719_v48 }
 0x292   :  { %11996 = vst [vmem:[#allocation61_spill] sm:$0xff] %v9748_v44  ;;  %11997 = vst [vmem:[#allocation62_spill] sm:$0xff] %v9755_v43 }
 0x293   :  { %6654 = vmatmul.mubr.msk.f32.gmra.mrb[120].mxu1 %vm518_vm1, %v9402_v56  ;;  %v9656_v56 = vunpack.c.l.bf16 %v51_v53 }
 0x294   :  { %6655 = vmatprep.mubr.msk.f32.mxu1 %vm518_vm1, %v9398_v7 }
 0x297   :  { %6656 = vmatmul.mubr.msk.f32.gmra.mrb[122].mxu1 %vm518_vm1, %v9398_v7  ;;  %v9649_v7 = vunpack.c.h.bf16 %v51_v53  ;;  %v9721_v53 = vunpack.c.h.bf16 %v59_v46  ;;  %v9746_v46 = vunpack.c.l.bf16 %v61_v59  ;;  %v64_v59 = vld [vmem:[%s11817_s1 + $0xb8] sm:$0xff] }
 0x298   :  { %6657 = vmatprep.mubr.msk.f32.mxu1 %vm518_vm1, %v9421_v62  ;;  %v9766_v23 = vunpack.c.h.bf16 %v64_v59 }
 0x299   :  { %11990 = vst [vmem:[#allocation55_spill] sm:$0xff] %v9721_v53  ;;  %11995 = vst [vmem:[#allocation60_spill] sm:$0xff] %v9746_v46 }
 0x29a   :  { %12000 = vst [vmem:[#allocation65_spill] sm:$0xff] %v9766_v23 }
 0x29b   :  { %6658 = vmatmul.mubr.msk.f32.gmra.mrb[124].mxu1 %vm518_vm1, %v9421_v62 }
 0x29c   :  { %6659 = vmatprep.mubr.msk.f32.mxu1 %vm518_vm1, %v9417_v30 }
 0x29f   :  { %6660 = vmatmul.mubr.msk.f32.gmra.mrb[126].mxu1 %vm518_vm1, %v9417_v30  ;;  %v54_v30 = vld [vmem:[%s11817_s1 + $0x68] sm:$0xff] }
 0x2a0   :  { %2508 = vmatprep.mubr.f32.mxu1 %v9558_v45  ;;  %v9676_v62 = vunpack.c.h.bf16 %v54_v30  ;;  %v9683_v19 = vunpack.c.l.bf16 %v54_v30  ;;  %v9730_v30 = vunpack.c.h.bf16 %v60_v17  ;;  %v63_v17 = vld [vmem:[%s11817_s1 + $0xb0] sm:$0xff] }
 0x2a1   :  { %v9757_v38 = vunpack.c.h.bf16 %v63_v17  ;;  %v9764_v28 = vunpack.c.l.bf16 %v63_v17  ;;  %v9773_v17 = vunpack.c.l.bf16 %v64_v59  ;;  %v9782_v59 = vunpack.c.l.bf16 %v65_v18 }
 0x2a2   :  { %11980 = vst [vmem:[#allocation45_spill] sm:$0xff] %v9676_v62  ;;  %11981 = vst [vmem:[#allocation46_spill] sm:$0xff] %v9683_v19 }
 0x2a3   :  { %2509 = vmatmul.mubr.f32.vlgmr.msra.gmra.mrb[128].mxu1 %v9566_v49  ;;  %11992 = vst [vmem:[#allocation57_spill] sm:$0xff] %v9730_v30  ;;  %11998 = vst [vmem:[#allocation63_spill] sm:$0xff] %v9757_v38 }
 0x2a4   :  { %2513 = vmatprep.mubr.f32.mxu1 %v9568_v2  ;;  %11999 = vst [vmem:[#allocation64_spill] sm:$0xff] %v9764_v28  ;;  %12001 = vst [vmem:[#allocation66_spill] sm:$0xff] %v9773_v17 }
 0x2a5   :  { %12003 = vst [vmem:[#allocation68_spill] sm:$0xff] %v9782_v59 }
 0x2a7   :  { %2514 = vmatmul.mubr.f32.gmra.mrb[130].mxu1 %v9575_v54 }
 0x2a8   :  { %2518 = vmatprep.mubr.f32.mxu1 %v9577_v12 }
 0x2ab   :  { %2519 = vmatmul.mubr.f32.gmra.mrb[132].mxu1 %v9584_v14 }
 0x2ac   :  { %2523 = vmatprep.mubr.f32.mxu1 %v9586_v27 }
 0x2af   :  { %2524 = vmatmul.mubr.f32.gmra.mrb[134].mxu1 %v9593_v22 }
 0x2b0   :  { %2528 = vmatprep.mubr.f32.mxu1 %v9595_v15 }
 0x2b3   :  { %2529 = vmatmul.mubr.f32.gmra.mrb[136].mxu1 %v9602_v37 }
 0x2b4   :  { %2533 = vmatprep.mubr.f32.mxu1 %v9604_v10 }
 0x2b7   :  { %2534 = vmatmul.mubr.f32.gmra.mrb[138].mxu1 %v9611_v20 }
 0x2b8   :  { %2538 = vmatprep.mubr.f32.mxu1 %v9613_v35 }
 0x2bb   :  { %2539 = vmatmul.mubr.f32.gmra.mrb[140].mxu1 %v9620_v57 }
 0x2bc   :  { %2543 = vmatprep.mubr.f32.mxu1 %v9622_v42 }
 0x2bf   :  { %2544 = vmatmul.mubr.f32.gmra.mrb[142].mxu1 %v9629_v9 }
 0x2c0   :  { %2548 = vmatprep.mubr.f32.mxu1 %v9631_v60 }
 0x2c3   :  { %2549 = vmatmul.mubr.f32.gmra.mrb[144].mxu1 %v9638_v52 }
 0x2c4   :  { %2553 = vmatprep.mubr.f32.mxu1 %v9640_v25 }
 0x2c7   :  { %2554 = vmatmul.mubr.f32.gmra.mrb[146].mxu1 %v9647_v41 }
 0x2c8   :  { %2558 = vmatprep.mubr.f32.mxu1 %v9649_v7 }
 0x2cb   :  { %2559 = vmatmul.mubr.f32.gmra.mrb[148].mxu1 %v9656_v56 }
 0x2cc   :  { %2563 = vmatprep.mubr.f32.mxu1 %v9658_v50 }
 0x2cf   :  { %2564 = vmatmul.mubr.f32.gmra.mrb[150].mxu1 %v9665_v58 }
 0x2d0   :  { %2568 = vmatprep.mubr.f32.mxu1 %v9667_v24 }
 0x2d3   :  { %2569 = vmatmul.mubr.f32.gmra.mrb[152].mxu1 %v9674_v51 }
 0x2d4   :  { %2573 = vmatprep.mubr.f32.mxu1 %v9676_v62 }
 0x2d7   :  { %2574 = vmatmul.mubr.f32.gmra.mrb[154].mxu1 %v9683_v19 }
 0x2d8   :  { %2578 = vmatprep.mubr.f32.mxu1 %v9685_v34 }
 0x2db   :  { %2579 = vmatmul.mubr.f32.gmra.mrb[156].mxu1 %v9692_v63 }
 0x2dc   :  { %2583 = vmatprep.mubr.f32.mxu1 %v9694_v47 }
 0x2df   :  { %2584 = vmatmul.mubr.f32.gmra.mrb[158].mxu1 %v9701_v5 }
 0x2e0   :  { %2588 = vmatprep.mubr.f32.mxu1 %v9703_v0 }
 0x2e3   :  { %2589 = vmatmul.mubr.f32.gmra.mrb[160].mxu1 %v9710_v32 }
 0x2e4   :  { %2593 = vmatprep.mubr.f32.mxu1 %v9712_v40 }
 0x2e7   :  { %2594 = vmatmul.mubr.f32.gmra.mrb[162].mxu1 %v9719_v48 }
 0x2e8   :  { %2598 = vmatprep.mubr.f32.mxu1 %v9721_v53 }
 0x2eb   :  { %2599 = vmatmul.mubr.f32.gmra.mrb[164].mxu1 %v9728_v55 }
 0x2ec   :  { %2603 = vmatprep.mubr.f32.mxu1 %v9730_v30 }
 0x2ef   :  { %2604 = vmatmul.mubr.f32.gmra.mrb[166].mxu1 %v9737_v4 }
 0x2f0   :  { %2608 = vmatprep.mubr.f32.mxu1 %v9739_v29 }
 0x2f3   :  { %2609 = vmatmul.mubr.f32.gmra.mrb[168].mxu1 %v9746_v46 }
 0x2f4   :  { %2613 = vmatprep.mubr.f32.mxu1 %v9748_v44 }
 0x2f6   :  { %v1580_v36 = vpop.f32.mrb[64].mxu1 }
 0x2f7   :  { %v1771_v31 = vmin.f32 %v1580_v36, 80.0  ;;  %v1582_v33 = vpop.f32.mrb[65].mxu1  ;;  %2614 = vmatmul.mubr.f32.gmra.mrb[170].mxu1 %v9755_v43 }
 0x2f8   :  { %v1772_v26 = vmin.f32 %v1582_v33, 80.0  ;;  %2618 = vmatprep.mubr.f32.mxu1 %v9757_v38 }
 0x2f9   :  { %v1835_v61 = vmul.f32 1.442695, %v1771_v31 }
 0x2fa   :  { %v1837_v21 = vmul.f32 1.442695, %v1772_v26  ;;  %v1586_v39 = vpop.f32.mrb[66].mxu1 }
 0x2fb   :  { %7718 = vpow2.f32 %v1835_v61  ;;  %v1773_v16 = vmin.f32 %v1586_v39, 80.0  ;;  %v1588_v36 = vpop.f32.mrb[67].mxu1  ;;  %2619 = vmatmul.mubr.f32.gmra.mrb[172].mxu1 %v9764_v28 }
 0x2fc   :  { %7720 = vpow2.f32 %v1837_v21  ;;  %v1774_v33 = vmin.f32 %v1588_v36, 80.0  ;;  %2623 = vmatprep.mubr.f32.mxu1 %v9766_v23 }
 0x2fd   :  { %v1839_v31 = vmul.f32 1.442695, %v1773_v16 }
 0x2fe   :  { %v1841_v26 = vmul.f32 1.442695, %v1774_v33  ;;  %v1592_v11 = vpop.f32.mrb[68].mxu1 }
 0x2ff   :  { %7722 = vpow2.f32 %v1839_v31  ;;  %v1775_v61 = vmin.f32 %v1592_v11, 80.0  ;;  %v1594_v39 = vpop.f32.mrb[69].mxu1  ;;  %2624 = vmatmul.mubr.f32.gmra.mrb[174].mxu1 %v9773_v17 }
 0x300   :  { %7724 = vpow2.f32 %v1841_v26  ;;  %v1776_v21 = vmin.f32 %v1594_v39, 80.0  ;;  %2628 = vmatprep.mubr.f32.mxu1 %v9775_v13  ;;  %v9791_v39 = vunpack.c.l.bf16 %v66_v6 }
 0x301   :  { %v1843_v16 = vmul.f32 1.442695, %v1775_v61 }
 0x302   :  { %v1845_v36 = vmul.f32 1.442695, %v1776_v21  ;;  %v1598_v33 = vpop.f32.mrb[70].mxu1  ;;  %12005 = vst [vmem:[#allocation70_spill] sm:$0xff] %v9791_v39 }
 0x303   :  { %7726 = vpow2.f32 %v1843_v16  ;;  %v1777_v11 = vmin.f32 %v1598_v33, 80.0  ;;  %v1600_v31 = vpop.f32.mrb[71].mxu1  ;;  %2629 = vmatmul.mubr.f32.gmra.mrb[176].mxu1 %v9782_v59  ;;  %v9793_v33 = vunpack.c.h.bf16 %v67_v1 }
 0x304   :  { %7728 = vpow2.f32 %v1845_v36  ;;  %v1778_v26 = vmin.f32 %v1600_v31, 80.0  ;;  %2633 = vmatprep.mubr.f32.mxu1 %v9784_v8  ;;  %v68_v36 = vld [vmem:[%s11817_s1 + $0xd8] sm:$0xff] }
 0x305   :  { %v7719_v61 = vpop.eup %7718  ;;  %v1847_v18 = vmul.f32 1.442695, %v1777_v11  ;;  %12006 = vst [vmem:[#allocation71_spill] sm:$0xff] %v9793_v33  ;;  %v9802_v8 = vunpack.c.h.bf16 %v68_v36 }
 0x306   :  { %v7721_v21 = vpop.eup %7720  ;;  %v1963_v3 = vadd.f32 1.0, %v7719_v61  ;;  %v1849_v13 = vmul.f32 1.442695, %v1778_v26  ;;  %v1604_v16 = vpop.f32.mrb[72].mxu1  ;;  %v9800_v26 = vunpack.c.l.bf16 %v67_v1 }
 0x307   :  { %v1964_v17 = vadd.f32 1.0, %v7721_v21  ;;  %7730 = vpow2.f32 %v1847_v18  ;;  %v1779_v59 = vmin.f32 %v1604_v16, 80.0  ;;  %v1606_v23 = vpop.f32.mrb[73].mxu1  ;;  %2634 = vmatmul.mubr.f32.gmra.mrb[178].mxu1 %v9791_v39  ;;  %12008 = vst [vmem:[#allocation73_spill] sm:$0xff] %v9802_v8 }
 0x308   :  { %7732 = vrcp.f32 %v1963_v3  ;;  %v1780_v11 = vmin.f32 %v1606_v23, 80.0  ;;  %2638 = vmatprep.mubr.f32.mxu1 %v9793_v33  ;;  %12007 = vst [vmem:[#allocation72_spill] sm:$0xff] %v9800_v26  ;;  %v69_v3 = vld [vmem:[%s11817_s1 + $0xe0] sm:$0xff] }
 0x309   :  { %v7723_v6 = vpop.eup %7722  ;;  %7734 = vrcp.f32 %v1964_v17  ;;  %v1851_v31 = vmul.f32 1.442695, %v1779_v59  ;;  %v9809_v17 = vunpack.c.l.bf16 %v68_v36 }
 0x30a   :  { %v7725_v61 = vpop.eup %7724  ;;  %v1965_v21 = vadd.f32 1.0, %v7723_v6  ;;  %7736 = vpow2.f32 %v1849_v13  ;;  %v1853_v18 = vmul.f32 1.442695, %v1780_v11  ;;  %v1610_v16 = vpop.f32.mrb[74].mxu1 }
 0x30b   :  { %v1966_v39 = vadd.f32 1.0, %v7725_v61  ;;  %7738 = vpow2.f32 %v1851_v31  ;;  %v1781_v28 = vmin.f32 %v1610_v16, 80.0  ;;  %v1612_v38 = vpop.f32.mrb[75].mxu1  ;;  %2639 = vmatmul.mubr.f32.gmra.mrb[180].mxu1 %v9800_v26  ;;  %12009 = vst [vmem:[#allocation74_spill] sm:$0xff] %v9809_v17  ;;  %v9811_v61 = vunpack.c.h.bf16 %v69_v3 }
 0x30c   :  { %7740 = vrcp.f32 %v1965_v21  ;;  %v1782_v1 = vmin.f32 %v1612_v38, 80.0  ;;  %2643 = vmatprep.mubr.f32.mxu1 %v9802_v8  ;;  %v70_v38 = vld [vmem:[%s11817_s1 + $0xe8] sm:$0xff]  ;;  %v9818_v21 = vunpack.c.l.bf16 %v69_v3 }
 0x30d   :  { %v7727_v23 = vpop.eup %7726  ;;  %7742 = vrcp.f32 %v1966_v39  ;;  %v1855_v13 = vmul.f32 1.442695, %v1781_v28  ;;  %12010 = vst [vmem:[#allocation75_spill] sm:$0xff] %v9811_v61 }
 0x30e   :  { %v7729_v59 = vpop.eup %7728  ;;  %v1967_v11 = vadd.f32 1.0, %v7727_v23  ;;  %7744 = vpow2.f32 %v1853_v18  ;;  %v1857_v6 = vmul.f32 1.442695, %v1782_v1  ;;  %v1616_v31 = vpop.f32.mrb[76].mxu1  ;;  %12011 = vst [vmem:[#allocation76_spill] sm:$0xff] %v9818_v21 }
 0x30f   :  { %v1968_v16 = vadd.f32 1.0, %v7729_v59  ;;  %7746 = vpow2.f32 %v1855_v13  ;;  %v1783_v26 = vmin.f32 %v1616_v31, 80.0  ;;  %v1618_v33 = vpop.f32.mrb[77].mxu1  ;;  %2644 = vmatmul.mubr.f32.gmra.mrb[182].mxu1 %v9809_v17  ;;  %v9820_v59 = vunpack.c.h.bf16 %v70_v38 }
 0x310   :  { %7748 = vrcp.f32 %v1967_v11  ;;  %v1784_v28 = vmin.f32 %v1618_v33, 80.0  ;;  %2648 = vmatprep.mubr.f32.mxu1 %v9811_v61  ;;  %v71_v33 = vld [vmem:[%s11817_s1 + $0xf0] sm:$0xff] }
 0x311   :  { %v7731_v39 = vpop.eup %7730  ;;  %7750 = vrcp.f32 %v1968_v16  ;;  %v1859_v36 = vmul.f32 1.442695, %v1783_v26  ;;  %12012 = vst [vmem:[#allocation77_spill] sm:$0xff] %v9820_v59  ;;  %v9827_v16 = vunpack.c.l.bf16 %v70_v38  ;;  %v9831_v44 = vunpack.c.h.bf16 %v71_v33 }
 0x312   :  { %v7733_v18 = vpop.eup %7732  ;;  %v1969_v1 = vadd.f32 1.0, %v7731_v39  ;;  %7752 = vpow2.f32 %v1857_v6  ;;  %v1861_v23 = vmul.f32 1.442695, %v1784_v28  ;;  %v1622_v13 = vpop.f32.mrb[78].mxu1 }
 0x313   :  { %v7735_v31 = vpop.eup %7734  ;;  %7754 = vpow2.f32 %v1859_v36  ;;  %v1785_v17 = vmin.f32 %v1622_v13, 80.0  ;;  %v1624_v8 = vpop.f32.mrb[79].mxu1  ;;  %2649 = vmatmul.mubr.f32.gmra.mrb[184].mxu1 %v9818_v21  ;;  %12013 = vst [vmem:[#allocation78_spill] sm:$0xff] %v9827_v16  ;;  %v2091_v36 = vmul.f32 %v7733_v18, %v9566_v49  ;;  %12014 = vst [vmem:[#allocation79_spill] sm:$0xff] %v9831_v44 }
 0x314   :  { %v7737_v26 = vpop.eup %7736  ;;  %v1786_v3 = vmin.f32 %v1624_v8, 80.0  ;;  %v2092_v11 = vmul.f32 %v7735_v31, %v9558_v45  ;;  %2653 = vmatprep.mubr.f32.mxu1 %v9820_v59  ;;  %7756 = vpow2.f32 %v1861_v23 }
 0x315   :  { %v7739_v6 = vpop.eup %7738  ;;  %v1970_v28 = vadd.f32 1.0, %v7737_v26  ;;  %v1863_v39 = vmul.f32 1.442695, %v1785_v17  ;;  %7758 = vrcp.f32 %v1969_v1  ;;  %v72_v17 = vld [vmem:[%s11817_s1 + $0xf8] sm:$0xff]  ;;  %v9838_v26 = vunpack.c.l.bf16 %v71_v33 }
 0x316   :  { %v7741_v13 = vpop.eup %7740  ;;  %v1971_v21 = vadd.f32 1.0, %v7739_v6  ;;  %v1865_v61 = vmul.f32 1.442695, %v1786_v3  ;;  %v1628_v43 = vpop.f32.mrb[80].mxu1  ;;  %2251 = vmatprep.mubr.f32.mxu0 %v2092_v11 }
 0x317   :  { %v7743_v8 = vpop.eup %7742  ;;  %7760 = vrcp.f32 %v1970_v28  ;;  %v1787_v38 = vmin.f32 %v1628_v43, 80.0  ;;  %v1630_v31 = vpop.f32.mrb[81].mxu1  ;;  %2252 = vmatmul.mubr.f32.vlgmr.msra.gmra.mrb[64].mxu0 %v2091_v36  ;;  %2654 = vmatmul.mubr.f32.gmra.mrb[186].mxu1 %v9827_v16  ;;  %12015 = vst [vmem:[#allocation80_spill] sm:$0xff] %v9838_v26  ;;  %v2093_v6 = vmul.f32 %v7741_v13, %v9575_v54 }
 0x318   :  { %v7745_v18 = vpop.eup %7744  ;;  %7762 = vrcp.f32 %v1971_v21  ;;  %v1788_v1 = vmin.f32 %v1630_v31, 80.0  ;;  %v2094_v23 = vmul.f32 %v7743_v8, %v9568_v2  ;;  %2658 = vmatprep.mubr.f32.mxu1 %v9831_v44  ;;  %v9842_v21 = vunpack.c.h.bf16 %v72_v17 }
 0x319   :  { %v7747_v3 = vpop.eup %7746  ;;  %v1972_v11 = vadd.f32 1.0, %v7745_v18  ;;  %7764 = vpow2.f32 %v1863_v39  ;;  %v1867_v43 = vmul.f32 1.442695, %v1787_v38  ;;  %v9846_v38 = vunpack.c.l.bf16 %v72_v17 }
 0x31a   :  { %v7749_v28 = vpop.eup %7748  ;;  %v1973_v36 = vadd.f32 1.0, %v7747_v3  ;;  %7766 = vpow2.f32 %v1865_v61  ;;  %v1869_v49 = vmul.f32 1.442695, %v1788_v1  ;;  %v1634_v45 = vpop.f32.mrb[82].mxu1  ;;  %2256 = vmatprep.mubr.f32.mxu0 %v2094_v23  ;;  %12016 = vst [vmem:[#allocation81_spill] sm:$0xff] %v9842_v21 }
 0x31b   :  { %v7751_v31 = vpop.eup %7750  ;;  %7768 = vrcp.f32 %v1972_v11  ;;  %v1789_v33 = vmin.f32 %v1634_v45, 80.0  ;;  %v1636_v8 = vpop.f32.mrb[83].mxu1  ;;  %2257 = vmatmul.mubr.f32.gmra.mrb[66].mxu0 %v2093_v6  ;;  %2659 = vmatmul.mubr.f32.gmra.mrb[188].mxu1 %v9838_v26  ;;  %12017 = vst [vmem:[#allocation82_spill] sm:$0xff] %v9846_v38  ;;  %v2095_v3 = vmul.f32 %v7749_v28, %v9584_v14 }
 0x31c   :  { %v7753_v18 = vpop.eup %7752  ;;  %7770 = vrcp.f32 %v1973_v36  ;;  %v1790_v39 = vmin.f32 %v1636_v8, 80.0  ;;  %v2096_v13 = vmul.f32 %v7751_v31, %v9577_v12  ;;  %2663 = vmatprep.mubr.f32.mxu1 %v9842_v21 }
 0x31d   :  { %v7755_v61 = vpop.eup %7754  ;;  %v1974_v1 = vadd.f32 1.0, %v7753_v18  ;;  %7772 = vpow2.f32 %v1867_v43  ;;  %v1871_v23 = vmul.f32 1.442695, %v1789_v33 }
 0x31e   :  { %v1975_v45 = vadd.f32 1.0, %v7755_v61  ;;  %7774 = vpow2.f32 %v1869_v49  ;;  %v1640_v11 = vpop.f32.mrb[84].mxu1  ;;  %2261 = vmatprep.mubr.f32.mxu0 %v2096_v13  ;;  %v7757_v6 = vpop.eup %7756  ;;  %v1873_v36 = vmul.f32 1.442695, %v1790_v39 }
 0x31f   :  { %7776 = vrcp.f32 %v1974_v1  ;;  %v1791_v8 = vmin.f32 %v1640_v11, 80.0  ;;  %v1642_v54 = vpop.f32.mrb[85].mxu1  ;;  %2262 = vmatmul.mubr.f32.gmra.mrb[68].mxu0 %v2095_v3  ;;  %2664 = vmatmul.mubr.f32.gmra.mrb[190].mxu1 %v9846_v38  ;;  %v7759_v17 = vpop.eup %7758  ;;  %v1976_v31 = vadd.f32 1.0, %v7757_v6 }
 0x320   :  { %7778 = vrcp.f32 %v1975_v45  ;;  %v1792_v18 = vmin.f32 %v1642_v54, 80.0  ;;  %v2097_v3 = vmul.f32 %v7759_v17, %v9593_v22 }
 0x321   :  { %v7761_v43 = vpop.eup %7760  ;;  %7780 = vpow2.f32 %v1871_v23  ;;  %v1875_v33 = vmul.f32 1.442695, %v1791_v8 }
 0x322   :  { %v7763_v28 = vpop.eup %7762  ;;  %7782 = vrcp.f32 %v1976_v31  ;;  %v1877_v49 = vmul.f32 1.442695, %v1792_v18  ;;  %v1646_v61 = vpop.f32.mrb[86].mxu1  ;;  %v2098_v13 = vmul.f32 %v7761_v43, %v9586_v27 }
 0x323   :  { %v7765_v1 = vpop.eup %7764  ;;  %7784 = vpow2.f32 %v1873_v36  ;;  %v1793_v39 = vmin.f32 %v1646_v61, 80.0  ;;  %v1648_v11 = vpop.f32.mrb[87].mxu1 }
 0x324   :  { %v7767_v14 = vpop.eup %7766  ;;  %v1977_v12 = vadd.f32 1.0, %v7765_v1  ;;  %7786 = vpow2.f32 %v1875_v33  ;;  %2266 = vmatprep.mubr.f32.mxu0 %v2098_v13  ;;  %v1794_v54 = vmin.f32 %v1648_v11, 80.0  ;;  %v2099_v1 = vmul.f32 %v7763_v28, %v9602_v37 }
 0x325   :  { %v7769_v45 = vpop.eup %7768  ;;  %v1978_v23 = vadd.f32 1.0, %v7767_v14  ;;  %7788 = vpow2.f32 %v1877_v49  ;;  %v1879_v6 = vmul.f32 1.442695, %v1793_v39  ;;  %2267 = vmatmul.mubr.f32.gmra.mrb[70].mxu0 %v2097_v3 }
 0x326   :  { %v7771_v8 = vpop.eup %7770  ;;  %7790 = vrcp.f32 %v1977_v12  ;;  %v1881_v31 = vmul.f32 1.442695, %v1794_v54  ;;  %v1652_v18 = vpop.f32.mrb[88].mxu1  ;;  %v2100_v36 = vmul.f32 %v7769_v45, %v9595_v15 }
 0x327   :  { %v7773_v43 = vpop.eup %7772  ;;  %7792 = vrcp.f32 %v1978_v23  ;;  %v1795_v61 = vmin.f32 %v1652_v18, 80.0  ;;  %v1654_v17 = vpop.f32.mrb[89].mxu1 }
 0x328   :  { %v7775_v33 = vpop.eup %7774  ;;  %v1979_v13 = vadd.f32 1.0, %v7773_v43  ;;  %7794 = vpow2.f32 %v1879_v6  ;;  %2271 = vmatprep.mubr.f32.mxu0 %v2100_v36  ;;  %v1796_v14 = vmin.f32 %v1654_v17, 80.0  ;;  %v2101_v43 = vmul.f32 %v7771_v8, %v9611_v20 }
 0x329   :  { %v7777_v49 = vpop.eup %7776  ;;  %v1980_v39 = vadd.f32 1.0, %v7775_v33  ;;  %7796 = vpow2.f32 %v1881_v31  ;;  %v1883_v11 = vmul.f32 1.442695, %v1795_v61  ;;  %2272 = vmatmul.mubr.f32.gmra.mrb[72].mxu0 %v2099_v1 }
 0x32a   :  { %v7779_v12 = vpop.eup %7778  ;;  %7798 = vrcp.f32 %v1979_v13  ;;  %v1885_v3 = vmul.f32 1.442695, %v1796_v14  ;;  %v1658_v54 = vpop.f32.mrb[90].mxu1  ;;  %v2102_v45 = vmul.f32 %v7777_v49, %v9604_v10 }
 0x32b   :  { %v7781_v23 = vpop.eup %7780  ;;  %7800 = vrcp.f32 %v1980_v39  ;;  %v1797_v18 = vmin.f32 %v1658_v54, 80.0  ;;  %v1660_v28 = vpop.f32.mrb[91].mxu1  ;;  %v2103_v49 = vmul.f32 %v7779_v12, %v9620_v57 }
 0x32c   :  { %v7783_v6 = vpop.eup %7782  ;;  %v1981_v36 = vadd.f32 1.0, %v7781_v23  ;;  %7802 = vpow2.f32 %v1883_v11  ;;  %2276 = vmatprep.mubr.f32.mxu0 %v2102_v45  ;;  %v1798_v17 = vmin.f32 %v1660_v28, 80.0 }
 0x32d   :  { %v7785_v31 = vpop.eup %7784  ;;  %7804 = vpow2.f32 %v1885_v3  ;;  %v1887_v61 = vmul.f32 1.442695, %v1797_v18  ;;  %2277 = vmatmul.mubr.f32.gmra.mrb[74].mxu0 %v2101_v43  ;;  %v2104_v1 = vmul.f32 %v7783_v6, %v9613_v35 }
 0x32e   :  { %v7787_v33 = vpop.eup %7786  ;;  %7806 = vrcp.f32 %v1981_v36  ;;  %v1982_v13 = vadd.f32 1.0, %v7785_v31  ;;  %v1664_v14 = vpop.f32.mrb[92].mxu1  ;;  %v1889_v8 = vmul.f32 1.442695, %v1798_v17 }
 0x32f   :  { %v7789_v39 = vpop.eup %7788  ;;  %v1983_v54 = vadd.f32 1.0, %v7787_v33  ;;  %7808 = vpow2.f32 %v1887_v61  ;;  %v1799_v23 = vmin.f32 %v1664_v14, 80.0  ;;  %2281 = vmatprep.mubr.f32.mxu0 %v2104_v1  ;;  %v1666_v11 = vpop.f32.mrb[93].mxu1 }
 0x330   :  { %v7791_v45 = vpop.eup %7790  ;;  %7810 = vrcp.f32 %v1982_v13  ;;  %v1984_v3 = vadd.f32 1.0, %v7789_v39  ;;  %v1800_v18 = vmin.f32 %v1666_v11, 80.0 }
 0x331   :  { %v7793_v28 = vpop.eup %7792  ;;  %7812 = vrcp.f32 %v1983_v54  ;;  %v1891_v43 = vmul.f32 1.442695, %v1799_v23  ;;  %2282 = vmatmul.mubr.f32.gmra.mrb[76].mxu0 %v2103_v49  ;;  %v2105_v31 = vmul.f32 %v7791_v45, %v9629_v9 }
 0x332   :  { %v7795_v6 = vpop.eup %7794  ;;  %7814 = vrcp.f32 %v1984_v3  ;;  %v1670_v36 = vpop.f32.mrb[94].mxu1  ;;  %v2106_v12 = vmul.f32 %v7793_v28, %v9622_v42  ;;  %v1893_v1 = vmul.f32 1.442695, %v1800_v18 }
 0x333   :  { %v7797_v61 = vpop.eup %7796  ;;  %v1985_v17 = vadd.f32 1.0, %v7795_v6  ;;  %7816 = vpow2.f32 %v1889_v8  ;;  %v1801_v33 = vmin.f32 %v1670_v36, 80.0  ;;  %v1672_v14 = vpop.f32.mrb[95].mxu1 }
 0x334   :  { %v7799_v13 = vpop.eup %7798  ;;  %v1986_v39 = vadd.f32 1.0, %v7797_v61  ;;  %7818 = vpow2.f32 %v1891_v43  ;;  %2286 = vmatprep.mubr.f32.mxu0 %v2106_v12  ;;  %v1802_v54 = vmin.f32 %v1672_v14, 80.0 }
 0x335   :  { %v7801_v23 = vpop.eup %7800  ;;  %7820 = vrcp.f32 %v1985_v17  ;;  %v1895_v49 = vmul.f32 1.442695, %v1801_v33  ;;  %2287 = vmatmul.mubr.f32.gmra.mrb[78].mxu0 %v2105_v31  ;;  %v2107_v28 = vmul.f32 %v7799_v13, %v9638_v52 }
 0x336   :  { %v7803_v11 = vpop.eup %7802  ;;  %7822 = vrcp.f32 %v1986_v39  ;;  %v1676_v3 = vpop.f32.mrb[96].mxu1  ;;  %v2108_v45 = vmul.f32 %v7801_v23, %v9631_v60  ;;  %v1897_v6 = vmul.f32 1.442695, %v1802_v54 }
 0x337   :  { %v7805_v8 = vpop.eup %7804  ;;  %v1987_v18 = vadd.f32 1.0, %v7803_v11  ;;  %7824 = vpow2.f32 %v1893_v1  ;;  %v1803_v36 = vmin.f32 %v1676_v3, 80.0  ;;  %v1678_v61 = vpop.f32.mrb[97].mxu1 }
 0x338   :  { %v7807_v43 = vpop.eup %7806  ;;  %v1988_v12 = vadd.f32 1.0, %v7805_v8  ;;  %7826 = vpow2.f32 %v1895_v49  ;;  %2291 = vmatprep.mubr.f32.mxu0 %v2108_v45  ;;  %v1804_v17 = vmin.f32 %v1678_v61, 80.0 }
 0x339   :  { %v7809_v33 = vpop.eup %7808  ;;  %7828 = vrcp.f32 %v1987_v18  ;;  %v1899_v31 = vmul.f32 1.442695, %v1803_v36  ;;  %2292 = vmatmul.mubr.f32.gmra.mrb[80].mxu0 %v2107_v28  ;;  %v2109_v45 = vmul.f32 %v7807_v43, %v9647_v41 }
 0x33a   :  { %v7811_v14 = vpop.eup %7810  ;;  %7830 = vrcp.f32 %v1988_v12  ;;  %v1989_v39 = vadd.f32 1.0, %v7809_v33  ;;  %v1901_v23 = vmul.f32 1.442695, %v1804_v17  ;;  %v1682_v13 = vpop.f32.mrb[98].mxu1 }
 0x33b   :  { %v7813_v52 = vpop.eup %7812  ;;  %7832 = vpow2.f32 %v1897_v6  ;;  %v1805_v1 = vmin.f32 %v1682_v13, 80.0  ;;  %v2110_v54 = vmul.f32 %v7811_v14, %v9640_v25  ;;  %v1684_v11 = vpop.f32.mrb[99].mxu1 }
 0x33c   :  { %v7815_v3 = vpop.eup %7814  ;;  %7834 = vrcp.f32 %v1989_v39  ;;  %v1806_v49 = vmin.f32 %v1684_v11, 80.0 }
 0x33d   :  { %v7817_v8 = vpop.eup %7816  ;;  %7836 = vpow2.f32 %v1899_v31  ;;  %v1903_v18 = vmul.f32 1.442695, %v1805_v1  ;;  %2296 = vmatprep.mubr.f32.mxu0 %v2110_v54  ;;  %v2112_v28 = vmul.f32 %v7815_v3, %v9649_v7  ;;  %v2111_v31 = vmul.f32 %v7813_v52, %v9656_v56 }
 0x33e   :  { %v7819_v36 = vpop.eup %7818  ;;  %v1990_v61 = vadd.f32 1.0, %v7817_v8  ;;  %7838 = vpow2.f32 %v1901_v23  ;;  %v1905_v12 = vmul.f32 1.442695, %v1806_v49  ;;  %2297 = vmatmul.mubr.f32.gmra.mrb[82].mxu0 %v2109_v45  ;;  %v1688_v6 = vpop.f32.mrb[100].mxu1 }
 0x33f   :  { %v7821_v17 = vpop.eup %7820  ;;  %v1991_v33 = vadd.f32 1.0, %v7819_v36  ;;  %7840 = vpow2.f32 %v1903_v18  ;;  %v1807_v14 = vmin.f32 %v1688_v6, 80.0  ;;  %2301 = vmatprep.mubr.f32.mxu0 %v2112_v28  ;;  %v1690_v39 = vpop.f32.mrb[101].mxu1 }
 0x340   :  { %v7823_v13 = vpop.eup %7822  ;;  %7842 = vrcp.f32 %v1990_v61  ;;  %v1808_v43 = vmin.f32 %v1690_v39, 80.0  ;;  %v2113_v6 = vmul.f32 %v7821_v17, %v9665_v58  ;;  %v12039_v58 = vld [vmem:[#allocation6_spill] sm:$0xff] }
 0x341   :  { %v7825_v1 = vpop.eup %7824  ;;  %7844 = vrcp.f32 %v1991_v33  ;;  %v1907_v54 = vmul.f32 1.442695, %v1807_v14  ;;  %v2114_v11 = vmul.f32 %v7823_v13, %v9658_v50 }
 0x342   :  { %v7827_v23 = vpop.eup %7826  ;;  %v1992_v3 = vadd.f32 1.0, %v7825_v1  ;;  %7846 = vpow2.f32 %v1905_v12  ;;  %v1909_v49 = vmul.f32 1.442695, %v1808_v43  ;;  %2302 = vmatmul.mubr.f32.gmra.mrb[84].mxu0 %v2111_v31  ;;  %v1694_v45 = vpop.f32.mrb[102].mxu1 }
 0x343   :  { %v7829_v8 = vpop.eup %7828  ;;  %v1993_v18 = vadd.f32 1.0, %v7827_v23  ;;  %7848 = vpow2.f32 %v1907_v54  ;;  %v1809_v28 = vmin.f32 %v1694_v45, 80.0  ;;  %2306 = vmatprep.mubr.f32.mxu0 %v2114_v11  ;;  %v1696_v36 = vpop.f32.mrb[103].mxu1 }
 0x344   :  { %v7831_v61 = vpop.eup %7830  ;;  %7850 = vrcp.f32 %v1992_v3  ;;  %v1810_v52 = vmin.f32 %v1696_v36, 80.0  ;;  %v2115_v45 = vmul.f32 %v7829_v8, %v9674_v51 }
 0x345   :  { %v7833_v33 = vpop.eup %7832  ;;  %7852 = vrcp.f32 %v1993_v18  ;;  %v1911_v14 = vmul.f32 1.442695, %v1809_v28  ;;  %v2116_v39 = vmul.f32 %v7831_v61, %v9667_v24 }
 0x346   :  { %v7835_v12 = vpop.eup %7834  ;;  %v1994_v13 = vadd.f32 1.0, %v7833_v33  ;;  %7854 = vpow2.f32 %v1909_v49  ;;  %v1913_v43 = vmul.f32 1.442695, %v1810_v52  ;;  %2307 = vmatmul.mubr.f32.gmra.mrb[86].mxu0 %v2113_v6  ;;  %v1700_v31 = vpop.f32.mrb[104].mxu1 }
 0x347   :  { %v7837_v1 = vpop.eup %7836  ;;  %7856 = vpow2.f32 %v1911_v14  ;;  %v1811_v54 = vmin.f32 %v1700_v31, 80.0  ;;  %2311 = vmatprep.mubr.f32.mxu0 %v2116_v39  ;;  %v1702_v11 = vpop.f32.mrb[105].mxu1  ;;  %v2117_v8 = vmul.f32 %v7835_v12, %v9683_v19 }
 0x348   :  { %v7839_v23 = vpop.eup %7838  ;;  %7858 = vrcp.f32 %v1994_v13  ;;  %v1995_v3 = vadd.f32 1.0, %v7837_v1  ;;  %v1812_v17 = vmin.f32 %v1702_v11, 80.0 }
 0x349   :  { %v7841_v18 = vpop.eup %7840  ;;  %v1996_v28 = vadd.f32 1.0, %v7839_v23  ;;  %7860 = vpow2.f32 %v1913_v43  ;;  %v1915_v36 = vmul.f32 1.442695, %v1811_v54 }
 0x34a   :  { %v7843_v61 = vpop.eup %7842  ;;  %7862 = vrcp.f32 %v1995_v3  ;;  %v1997_v49 = vadd.f32 1.0, %v7841_v18  ;;  %v1917_v52 = vmul.f32 1.442695, %v1812_v17  ;;  %2312 = vmatmul.mubr.f32.gmra.mrb[88].mxu0 %v2115_v45  ;;  %v1706_v6 = vpop.f32.mrb[106].mxu1 }
 0x34b   :  { %v7845_v33 = vpop.eup %7844  ;;  %7864 = vrcp.f32 %v1996_v28  ;;  %v1813_v14 = vmin.f32 %v1706_v6, 80.0  ;;  %v2118_v39 = vmul.f32 %v7843_v61, %v9676_v62  ;;  %v1708_v13 = vpop.f32.mrb[107].mxu1 }
 0x34c   :  { %v7847_v31 = vpop.eup %7846  ;;  %7866 = vrcp.f32 %v1997_v49  ;;  %v1814_v1 = vmin.f32 %v1708_v13, 80.0  ;;  %v2119_v13 = vmul.f32 %v7845_v33, %v9692_v63 }
 0x34d   :  { %v7849_v11 = vpop.eup %7848  ;;  %v1998_v43 = vadd.f32 1.0, %v7847_v31  ;;  %7868 = vpow2.f32 %v1915_v36  ;;  %v1919_v54 = vmul.f32 1.442695, %v1813_v14  ;;  %2316 = vmatprep.mubr.f32.mxu0 %v2118_v39 }
 0x34e   :  { %v7851_v23 = vpop.eup %7850  ;;  %v1999_v3 = vadd.f32 1.0, %v7849_v11  ;;  %7870 = vpow2.f32 %v1917_v52  ;;  %v1921_v17 = vmul.f32 1.442695, %v1814_v1  ;;  %2317 = vmatmul.mubr.f32.gmra.mrb[90].mxu0 %v2117_v8  ;;  %v1712_v45 = vpop.f32.mrb[108].mxu1 }
 0x34f   :  { %v7853_v18 = vpop.eup %7852  ;;  %7872 = vrcp.f32 %v1998_v43  ;;  %v1815_v28 = vmin.f32 %v1712_v45, 80.0  ;;  %v2120_v61 = vmul.f32 %v7851_v23, %v9685_v34  ;;  %v1714_v49 = vpop.f32.mrb[109].mxu1 }
 0x350   :  { %v7855_v6 = vpop.eup %7854  ;;  %7874 = vrcp.f32 %v1999_v3  ;;  %v1816_v12 = vmin.f32 %v1714_v49, 80.0 }
 0x351   :  { %v7857_v36 = vpop.eup %7856  ;;  %v2000_v14 = vadd.f32 1.0, %v7855_v6  ;;  %7876 = vpow2.f32 %v1919_v54  ;;  %v1923_v39 = vmul.f32 1.442695, %v1815_v28  ;;  %2321 = vmatprep.mubr.f32.mxu0 %v2120_v61  ;;  %v2121_v54 = vmul.f32 %v7853_v18, %v9701_v5 }
 0x352   :  { %v7859_v52 = vpop.eup %7858  ;;  %v2001_v31 = vadd.f32 1.0, %v7857_v36  ;;  %7878 = vpow2.f32 %v1921_v17  ;;  %2322 = vmatmul.mubr.f32.gmra.mrb[92].mxu0 %v2119_v13  ;;  %v1718_v1 = vpop.f32.mrb[110].mxu1  ;;  %v1925_v11 = vmul.f32 1.442695, %v1816_v12 }
 0x353   :  { %v7861_v8 = vpop.eup %7860  ;;  %7880 = vrcp.f32 %v2000_v14  ;;  %v1817_v43 = vmin.f32 %v1718_v1, 80.0  ;;  %v2122_v23 = vmul.f32 %v7859_v52, %v9694_v47  ;;  %v1720_v3 = vpop.f32.mrb[111].mxu1 }
 0x354   :  { %v7863_v45 = vpop.eup %7862  ;;  %7882 = vrcp.f32 %v2001_v31  ;;  %v2002_v33 = vadd.f32 1.0, %v7861_v8  ;;  %v1818_v49 = vmin.f32 %v1720_v3, 80.0 }
 0x355   :  { %v7865_v28 = vpop.eup %7864  ;;  %7884 = vpow2.f32 %v1923_v39  ;;  %v1927_v61 = vmul.f32 1.442695, %v1817_v43  ;;  %2326 = vmatprep.mubr.f32.mxu0 %v2122_v23  ;;  %v2123_v39 = vmul.f32 %v7863_v45, %v9710_v32  ;;  %v12034_v32 = vld [vmem:[#allocation3_spill] sm:$0xff] }
 0x356   :  { %v7867_v17 = vpop.eup %7866  ;;  %7886 = vrcp.f32 %v2002_v33  ;;  %v1929_v6 = vmul.f32 1.442695, %v1818_v49  ;;  %2327 = vmatmul.mubr.f32.gmra.mrb[94].mxu0 %v2121_v54  ;;  %v1724_v13 = vpop.f32.mrb[112].mxu1  ;;  %v2124_v12 = vmul.f32 %v7865_v28, %v9703_v0 }
 0x357   :  { %v7869_v36 = vpop.eup %7868  ;;  %7888 = vpow2.f32 %v1925_v11  ;;  %v1819_v14 = vmin.f32 %v1724_v13, 80.0  ;;  %v1726_v52 = vpop.f32.mrb[113].mxu1 }
 0x358   :  { %v7871_v31 = vpop.eup %7870  ;;  %v2003_v1 = vadd.f32 1.0, %v7869_v36  ;;  %7890 = vpow2.f32 %v1927_v61  ;;  %2331 = vmatprep.mubr.f32.mxu0 %v2124_v12  ;;  %v1820_v18 = vmin.f32 %v1726_v52, 80.0  ;;  %v2125_v36 = vmul.f32 %v7867_v17, %v9719_v48 }
 0x359   :  { %v7873_v8 = vpop.eup %7872  ;;  %v2004_v43 = vadd.f32 1.0, %v7871_v31  ;;  %7892 = vpow2.f32 %v1929_v6  ;;  %v1931_v23 = vmul.f32 1.442695, %v1819_v14 }
 0x35a   :  { %v7875_v3 = vpop.eup %7874  ;;  %7894 = vrcp.f32 %v2003_v1  ;;  %v1933_v33 = vmul.f32 1.442695, %v1820_v18  ;;  %2332 = vmatmul.mubr.f32.gmra.mrb[96].mxu0 %v2123_v39  ;;  %v1730_v49 = vpop.f32.mrb[114].mxu1  ;;  %v2126_v11 = vmul.f32 %v7873_v8, %v9712_v40 }
 0x35b   :  { %v7877_v54 = vpop.eup %7876  ;;  %7896 = vrcp.f32 %v2004_v43  ;;  %v1821_v28 = vmin.f32 %v1730_v49, 80.0  ;;  %v1732_v13 = vpop.f32.mrb[115].mxu1 }
 0x35c   :  { %v7879_v61 = vpop.eup %7878  ;;  %v2005_v12 = vadd.f32 1.0, %v7877_v54  ;;  %7898 = vpow2.f32 %v1931_v23  ;;  %2336 = vmatprep.mubr.f32.mxu0 %v2126_v11  ;;  %v1822_v45 = vmin.f32 %v1732_v13, 80.0  ;;  %v2127_v54 = vmul.f32 %v7875_v3, %v9728_v55 }
 0x35d   :  { %v7881_v6 = vpop.eup %7880  ;;  %v2006_v14 = vadd.f32 1.0, %v7879_v61  ;;  %7900 = vpow2.f32 %v1933_v33  ;;  %v1935_v52 = vmul.f32 1.442695, %v1821_v28 }
 0x35e   :  { %v7883_v31 = vpop.eup %7882  ;;  %7902 = vrcp.f32 %v2005_v12  ;;  %v1937_v1 = vmul.f32 1.442695, %v1822_v45  ;;  %2337 = vmatmul.mubr.f32.gmra.mrb[98].mxu0 %v2125_v36  ;;  %v1736_v18 = vpop.f32.mrb[116].mxu1  ;;  %v2128_v39 = vmul.f32 %v7881_v6, %v9721_v53 }
 0x35f   :  { %v7885_v8 = vpop.eup %7884  ;;  %7904 = vrcp.f32 %v2006_v14  ;;  %v1823_v43 = vmin.f32 %v1736_v18, 80.0  ;;  %v1738_v49 = vpop.f32.mrb[117].mxu1 }
 0x360   :  { %v7887_v23 = vpop.eup %7886  ;;  %v2007_v11 = vadd.f32 1.0, %v7885_v8  ;;  %7906 = vpow2.f32 %v1935_v52  ;;  %2341 = vmatprep.mubr.f32.mxu0 %v2128_v39  ;;  %v1824_v17 = vmin.f32 %v1738_v49, 80.0 }
 0x361   :  { %v7889_v33 = vpop.eup %7888  ;;  %7908 = vpow2.f32 %v1937_v1  ;;  %v1939_v28 = vmul.f32 1.442695, %v1823_v43  ;;  %v2130_v13 = vmul.f32 %v7887_v23, %v9730_v30  ;;  %v2129_v1 = vmul.f32 %v7883_v31, %v9737_v4 }
 0x362   :  { %v7891_v61 = vpop.eup %7890  ;;  %7910 = vrcp.f32 %v2007_v11  ;;  %v2008_v12 = vadd.f32 1.0, %v7889_v33  ;;  %2342 = vmatmul.mubr.f32.gmra.mrb[100].mxu0 %v2127_v54  ;;  %v1742_v45 = vpop.f32.mrb[118].mxu1  ;;  %v1941_v14 = vmul.f32 1.442695, %v1824_v17 }
 0x363   :  { %v7893_v36 = vpop.eup %7892  ;;  %v2009_v6 = vadd.f32 1.0, %v7891_v61  ;;  %7912 = vpow2.f32 %v1939_v28  ;;  %v1825_v18 = vmin.f32 %v1742_v45, 80.0  ;;  %2346 = vmatprep.mubr.f32.mxu0 %v2130_v13  ;;  %v1744_v52 = vpop.f32.mrb[119].mxu1 }
 0x364   :  { %v7895_v39 = vpop.eup %7894  ;;  %7914 = vrcp.f32 %v2008_v12  ;;  %v2010_v3 = vadd.f32 1.0, %v7893_v36  ;;  %v1826_v8 = vmin.f32 %v1744_v52, 80.0 }
 0x365   :  { %v7897_v43 = vpop.eup %7896  ;;  %7916 = vrcp.f32 %v2009_v6  ;;  %v1943_v49 = vmul.f32 1.442695, %v1825_v18  ;;  %v2131_v36 = vmul.f32 %v7895_v39, %v9746_v46 }
 0x366   :  { %v7899_v23 = vpop.eup %7898  ;;  %7918 = vrcp.f32 %v2010_v3  ;;  %2347 = vmatmul.mubr.f32.gmra.mrb[102].mxu0 %v2129_v1  ;;  %v1748_v11 = vpop.f32.mrb[120].mxu1  ;;  %v2132_v54 = vmul.f32 %v7897_v43, %v9739_v29  ;;  %v1945_v28 = vmul.f32 1.442695, %v1826_v8  ;;  %v12018_v1 = vld [vmem:[#allocation61_spill] sm:$0xff] }
 0x367   :  { %v7901_v33 = vpop.eup %7900  ;;  %v2011_v17 = vadd.f32 1.0, %v7899_v23  ;;  %7920 = vpow2.f32 %v1941_v14  ;;  %v1827_v13 = vmin.f32 %v1748_v11, 80.0  ;;  %v1750_v61 = vpop.f32.mrb[121].mxu1 }
 0x368   :  { %v7903_v12 = vpop.eup %7902  ;;  %v2012_v45 = vadd.f32 1.0, %v7901_v33  ;;  %7922 = vpow2.f32 %v1943_v49  ;;  %2351 = vmatprep.mubr.f32.mxu0 %v2132_v54  ;;  %v1828_v31 = vmin.f32 %v1750_v61, 80.0  ;;  %v12019_v61 = vld [vmem:[#allocation62_spill] sm:$0xff] }
 0x369   :  { %v7905_v6 = vpop.eup %7904  ;;  %7924 = vrcp.f32 %v2011_v17  ;;  %v1947_v18 = vmul.f32 1.442695, %v1827_v13  ;;  %v2133_v17 = vmul.f32 %v7903_v12, %v12019_v61 }
 0x36a   :  { %v7907_v52 = vpop.eup %7906  ;;  %7926 = vrcp.f32 %v2012_v45  ;;  %2352 = vmatmul.mubr.f32.gmra.mrb[104].mxu0 %v2131_v36  ;;  %v1754_v3 = vpop.f32.mrb[122].mxu1  ;;  %v2134_v43 = vmul.f32 %v7905_v6, %v12018_v1  ;;  %v1949_v23 = vmul.f32 1.442695, %v1828_v31 }
 0x36b   :  { %v7909_v14 = vpop.eup %7908  ;;  %v2013_v8 = vadd.f32 1.0, %v7907_v52  ;;  %7928 = vpow2.f32 %v1945_v28  ;;  %v1829_v11 = vmin.f32 %v1754_v3, 80.0  ;;  %v1756_v33 = vpop.f32.mrb[123].mxu1  ;;  %v12020_v3 = vld [vmem:[#allocation63_spill] sm:$0xff] }
 0x36c   :  { %v7911_v49 = vpop.eup %7910  ;;  %v2014_v54 = vadd.f32 1.0, %v7909_v14  ;;  %7930 = vpow2.f32 %v1947_v18  ;;  %2356 = vmatprep.mubr.f32.mxu0 %v2134_v43  ;;  %v1830_v39 = vmin.f32 %v1756_v33, 80.0  ;;  %v12021_v33 = vld [vmem:[#allocation64_spill] sm:$0xff] }
 0x36d   :  { %v7913_v13 = vpop.eup %7912  ;;  %7932 = vrcp.f32 %v2013_v8  ;;  %v1951_v45 = vmul.f32 1.442695, %v1829_v11  ;;  %v2135_v12 = vmul.f32 %v7911_v49, %v12021_v33  ;;  %v12022_v11 = vld [vmem:[#allocation65_spill] sm:$0xff]  ;;  %v12031_v33 = vld [vmem:[#allocation74_spill] sm:$0xff] }
 0x36e   :  { %v7915_v36 = vpop.eup %7914  ;;  %7934 = vrcp.f32 %v2014_v54  ;;  %v2015_v46 = vadd.f32 1.0, %v7913_v13  ;;  %v1953_v6 = vmul.f32 1.442695, %v1830_v39  ;;  %2357 = vmatmul.mubr.f32.gmra.mrb[106].mxu0 %v2133_v17  ;;  %v1760_v52 = vpop.f32.mrb[124].mxu1 }
 0x36f   :  { %v7917_v28 = vpop.eup %7916  ;;  %7936 = vpow2.f32 %v1949_v23  ;;  %v1831_v31 = vmin.f32 %v1760_v52, 80.0  ;;  %v2136_v1 = vmul.f32 %v7915_v36, %v12020_v3  ;;  %v1762_v14 = vpop.f32.mrb[125].mxu1 }
 0x370   :  { %v7919_v18 = vpop.eup %7918  ;;  %7938 = vrcp.f32 %v2015_v46  ;;  %v1832_v43 = vmin.f32 %v1762_v14, 80.0 }
 0x371   :  { %v7921_v61 = vpop.eup %7920  ;;  %7940 = vpow2.f32 %v1951_v45  ;;  %v1955_v8 = vmul.f32 1.442695, %v1831_v31  ;;  %2361 = vmatprep.mubr.f32.mxu0 %v2136_v1  ;;  %v2138_v54 = vmul.f32 %v7919_v18, %v12022_v11  ;;  %v12023_v45 = vld [vmem:[#allocation66_spill] sm:$0xff]  ;;  %v12024_v11 = vld [vmem:[#allocation67_spill] sm:$0xff] }
 0x372   :  { %v7923_v39 = vpop.eup %7922  ;;  %v2016_v17 = vadd.f32 1.0, %v7921_v61  ;;  %7942 = vpow2.f32 %v1953_v6  ;;  %v1957_v13 = vmul.f32 1.442695, %v1832_v43  ;;  %2362 = vmatmul.mubr.f32.gmra.mrb[108].mxu0 %v2135_v12  ;;  %v1766_v23 = vpop.f32.mrb[126].mxu1  ;;  %v2137_v31 = vmul.f32 %v7917_v28, %v12023_v45  ;;  %v12025_v28 = vld [vmem:[#allocation68_spill] sm:$0xff] }
 0x373   :  { %v7925_v52 = vpop.eup %7924  ;;  %v2017_v36 = vadd.f32 1.0, %v7923_v39  ;;  %7944 = vpow2.f32 %v1955_v8  ;;  %v1833_v3 = vmin.f32 %v1766_v23, 80.0  ;;  %2366 = vmatprep.mubr.f32.mxu0 %v2138_v54  ;;  %v1768_v46 = vpop.f32.mrb[127].mxu1 }
 0x374   :  { %v7927_v14 = vpop.eup %7926  ;;  %7946 = vrcp.f32 %v2016_v17  ;;  %v1834_v49 = vmin.f32 %v1768_v46, 80.0  ;;  %v2139_v46 = vmul.f32 %v7925_v52, %v12025_v28 }
 0x375   :  { %v7929_v1 = vpop.eup %7928  ;;  %7948 = vrcp.f32 %v2017_v36  ;;  %v1959_v18 = vmul.f32 1.442695, %v1833_v3  ;;  %v2140_v61 = vmul.f32 %v7927_v14, %v12024_v11  ;;  %v12026_v3 = vld [vmem:[#allocation69_spill] sm:$0xff] }
 0x376   :  { %v7931_v6 = vpop.eup %7930  ;;  %v2018_v43 = vadd.f32 1.0, %v7929_v1  ;;  %7950 = vpow2.f32 %v1957_v13  ;;  %v1961_v12 = vmul.f32 1.442695, %v1834_v49  ;;  %2367 = vmatmul.mubr.f32.gmra.mrb[110].mxu0 %v2137_v31  ;;  %v9894_v39 = vpop.f32.mrb[128].mxu1 }
 0x377   :  { %v7933_v8 = vpop.eup %7932  ;;  %v2019_v54 = vadd.f32 1.0, %v7931_v6  ;;  %7952 = vpow2.f32 %v1959_v18  ;;  %2371 = vmatprep.mubr.f32.mxu0 %v2140_v61  ;;  %v2512_v17 = vpop.f32.mrb[129].mxu1  ;;  %v12027_v61 = vld [vmem:[#allocation70_spill] sm:$0xff] }
 0x378   :  { %v7935_v23 = vpop.eup %7934  ;;  %7954 = vrcp.f32 %v2018_v43  ;;  %v2141_v6 = vmul.f32 %v7933_v8, %v12027_v61 }
 0x379   :  { %v7937_v36 = vpop.eup %7936  ;;  %v2142_v45 = vmul.f32 %v7935_v23, %v12026_v3  ;;  %7956 = vpow2.f32 %v1961_v12 }
 0x37a   :  { %v7939_v14 = vpop.eup %7938  ;;  %v2020_v11 = vadd.f32 1.0, %v7937_v36  ;;  %2372 = vmatmul.mubr.f32.gmra.mrb[112].mxu0 %v2139_v46  ;;  %v9898_v13 = vpop.f32.mrb[130].mxu1  ;;  %7958 = vrcp.f32 %v2019_v54  ;;  %v12028_v46 = vld [vmem:[#allocation71_spill] sm:$0xff] }
 0x37b   :  { %v7941_v49 = vpop.eup %7940  ;;  %2376 = vmatprep.mubr.f32.mxu0 %v2142_v45  ;;  %v2517_v31 = vpop.f32.mrb[131].mxu1 }
 0x37c   :  { %v7943_v1 = vpop.eup %7942  ;;  %7960 = vrcp.f32 %v2020_v11  ;;  %v2021_v18 = vadd.f32 1.0, %v7941_v49  ;;  %v12029_v31 = vld [vmem:[#allocation72_spill] sm:$0xff] }
 0x37d   :  { %v7945_v43 = vpop.eup %7944  ;;  %v2022_v52 = vadd.f32 1.0, %v7943_v1  ;;  %v2143_v28 = vmul.f32 %v7939_v14, %v12029_v31 }
 0x37e   :  { %v7947_v17 = vpop.eup %7946  ;;  %7962 = vrcp.f32 %v2021_v18  ;;  %v2023_v23 = vadd.f32 1.0, %v7945_v43  ;;  %2377 = vmatmul.mubr.f32.gmra.mrb[114].mxu0 %v2141_v6  ;;  %v9901_v36 = vpop.f32.mrb[132].mxu1  ;;  %v12030_v6 = vld [vmem:[#allocation73_spill] sm:$0xff] }
 0x37f   :  { %v7949_v12 = vpop.eup %7948  ;;  %7964 = vrcp.f32 %v2022_v52  ;;  %v2144_v3 = vmul.f32 %v7947_v17, %v12028_v46  ;;  %v2522_v54 = vpop.f32.mrb[133].mxu1 }
 0x380   :  { %v7951_v45 = vpop.eup %7950  ;;  %7966 = vrcp.f32 %v2023_v23  ;;  %v2145_v17 = vmul.f32 %v7949_v12, %v12031_v33  ;;  %v12032_v23 = vld [vmem:[#allocation75_spill] sm:$0xff] }
 0x381   :  { %v7953_v11 = vpop.eup %7952  ;;  %v2024_v49 = vadd.f32 1.0, %v7951_v45  ;;  %2381 = vmatprep.mubr.f32.mxu0 %v2144_v3 }
 0x382   :  { %v7955_v8 = vpop.eup %7954  ;;  %v2025_v1 = vadd.f32 1.0, %v7953_v11  ;;  %2382 = vmatmul.mubr.f32.gmra.mrb[116].mxu0 %v2143_v28  ;;  %v9905_v18 = vpop.f32.mrb[134].mxu1 }
 0x383   :  { %7968 = vrcp.f32 %v2024_v49  ;;  %v2146_v43 = vmul.f32 %v7955_v8, %v12030_v6  ;;  %v2527_v61 = vpop.f32.mrb[135].mxu1  ;;  %v7957_v52 = vpop.eup %7956  ;;  %v12033_v49 = vld [vmem:[#allocation76_spill] sm:$0xff] }
 0x384   :  { %v7959_v54 = vpop.eup %7958  ;;  %v2026_v46 = vadd.f32 1.0, %v7957_v52  ;;  %7970 = vrcp.f32 %v2025_v1 }
 0x385   :  { %2386 = vmatprep.mubr.f32.mxu0 %v2146_v43  ;;  %v2147_v31 = vmul.f32 %v7959_v54, %v12033_v49 }
 0x386   :  { %v7961_v14 = vpop.eup %7960  ;;  %2387 = vmatmul.mubr.f32.gmra.mrb[118].mxu0 %v2145_v17  ;;  %v9909_v3 = vpop.f32.mrb[136].mxu1  ;;  %7972 = vrcp.f32 %v2026_v46 }
 0x387   :  { %v2148_v28 = vmul.f32 %v7961_v14, %v12032_v23  ;;  %v2532_v45 = vpop.f32.mrb[137].mxu1 }
 0x388   :  { %v7963_v11 = vpop.eup %7962 }
 0x389   :  { %v7965_v8 = vpop.eup %7964  ;;  %2391 = vmatprep.mubr.f32.mxu0 %v2148_v28  ;;  %v2149_v1 = vmul.f32 %v7963_v11, %v9827_v16 }
 0x38a   :  { %2392 = vmatmul.mubr.f32.gmra.mrb[120].mxu0 %v2147_v31  ;;  %v2150_v61 = vmul.f32 %v7965_v8, %v9820_v59  ;;  %v9914_v12 = vpop.f32.mrb[138].mxu1  ;;  %v7967_v52 = vpop.eup %7966 }
 0x38b   :  { %v2537_v43 = vpop.f32.mrb[139].mxu1  ;;  %v2151_v31 = vmul.f32 %v7967_v52, %v9838_v26 }
 0x38c   :  { %2396 = vmatprep.mubr.f32.mxu0 %v2150_v61 }
 0x38d   :  { %v7969_v17 = vpop.eup %7968 }
 0x38e   :  { %2397 = vmatmul.mubr.f32.gmra.mrb[122].mxu0 %v2149_v1  ;;  %v2152_v46 = vmul.f32 %v7969_v17, %v9831_v44  ;;  %v9918_v14 = vpop.f32.mrb[140].mxu1  ;;  %v7971_v54 = vpop.eup %7970 }
 0x38f   :  { %v2542_v45 = vpop.f32.mrb[141].mxu1  ;;  %v2153_v11 = vmul.f32 %v7971_v54, %v9846_v38 }
 0x390   :  { %2401 = vmatprep.mubr.f32.mxu0 %v2152_v46  ;;  %v7973_v28 = vpop.eup %7972 }
 0x391   :  { %v2154_v8 = vmul.f32 %v7973_v28, %v9842_v21 }
 0x392   :  { %2402 = vmatmul.mubr.f32.gmra.mrb[124].mxu0 %v2151_v31  ;;  %v9922_v43 = vpop.f32.mrb[142].mxu1 }
 0x393   :  { %v2547_v61 = vpop.f32.mrb[143].mxu1  ;;  %2406 = vmatprep.mubr.f32.mxu0 %v2154_v8 }
 0x396   :  { %2407 = vmatmul.mubr.f32.gmra.mrb[126].mxu0 %v2153_v11  ;;  %v9925_v1 = vpop.f32.mrb[144].mxu1 }
 0x397   :  { %v2552_v17 = vpop.f32.mrb[145].mxu1 }
 0x39a   :  { %v9927_v44 = vpop.f32.mrb[146].mxu1 }
 0x39b   :  { %v2557_v45 = vpop.f32.mrb[147].mxu1 }
 0x39e   :  { %v9929_v46 = vpop.f32.mrb[148].mxu1 }
 0x39f   :  { %v2562_v52 = vpop.f32.mrb[149].mxu1 }
 0x3a0   :  { %v2925_v52 = vld [vmem:[%s11818_s7] sm:$0xff] }
 0x3a2   :  { %v9931_v26 = vpop.f32.mrb[150].mxu1 }
 0x3a3   :  { %v2567_v31 = vpop.f32.mrb[151].mxu1 }
 0x3a6   :  { %v9933_v28 = vpop.f32.mrb[152].mxu1 }
 0x3a7   :  { %v2572_v21 = vpop.f32.mrb[153].mxu1 }
 0x3a8   :  { %v2926_v21 = vld [vmem:[%s11818_s7 + $0x8] sm:$0xff] }
 0x3aa   :  { %v9935_v61 = vpop.f32.mrb[154].mxu1 }
 0x3ab   :  { %v2577_v8 = vpop.f32.mrb[155].mxu1 }
 0x3ac   :  { %v7541_v8 = vpack.c.bf16 %v2926_v21, %v2925_v52 }
 0x3ae   :  { %v9937_v54 = vpop.f32.mrb[156].mxu1  ;;  %7542 = vmatprep.subr.bf16.mxu0 %v7541_v8 }
 0x3af   :  { %v2582_v11 = vpop.f32.mrb[157].mxu1  ;;  %7544 = vmatpush3.bf16.msra.mxu0 %v7541_v8 }
 0x3b2   :  { %v9939_v38 = vpop.f32.mrb[158].mxu1 }
 0x3b3   :  { %v2587_v17 = vpop.f32.mrb[159].mxu1 }
 0x3b6   :  { %v9941_v16 = vpop.f32.mrb[160].mxu1 }
 0x3b7   :  { %v2592_v45 = vpop.f32.mrb[161].mxu1 }
 0x3ba   :  { %v9949_v31 = vpop.f32.mrb[162].mxu1 }
 0x3bb   :  { %v2597_v59 = vpop.f32.mrb[163].mxu1 }
 0x3be   :  { %v9951_v11 = vpop.f32.mrb[164].mxu1 }
 0x3bf   :  { %v2602_v17 = vpop.f32.mrb[165].mxu1 }
 0x3c2   :  { %v9953_v49 = vpop.f32.mrb[166].mxu1 }
 0x3c3   :  { %v2607_v45 = vpop.f32.mrb[167].mxu1 }
 0x3c6   :  { %v9955_v23 = vpop.f32.mrb[168].mxu1 }
 0x3c7   :  { %v2612_v33 = vpop.f32.mrb[169].mxu1 }
 0x3ca   :  { %v9957_v6 = vpop.f32.mrb[170].mxu1 }
 0x3cb   :  { %v2617_v29 = vpop.f32.mrb[171].mxu1 }
 0x3ce   :  { %v9959_v4 = vpop.f32.mrb[172].mxu1 }
 0x3cf   :  { %v2622_v30 = vpop.f32.mrb[173].mxu1 }
 0x3d0   :  { %v1290_v30 = vmax.f32 %v12034_v32, 0.0 }
 0x3d2   :  { %v9961_v55 = vpop.f32.mrb[174].mxu1 }
 0x3d3   :  { %v2627_v59 = vpop.f32.mrb[175].mxu1 }
 0x3d6   :  { %v9963_v52 = vpop.f32.mrb[176].mxu1 }
 0x3d7   :  { %v2632_v21 = vpop.f32.mrb[177].mxu1 }
 0x3da   :  { %v9965_v8 = vpop.f32.mrb[178].mxu1 }
 0x3db   :  { %v2637_v17 = vpop.f32.mrb[179].mxu1 }
 0x3dc   :  { %v12035_v17 = vld [vmem:[#allocation2_spill] sm:$0xff] }
 0x3dd   :  { %v1291_v34 = vmax.f32 %v12035_v17, 0.0 }
 0x3de   :  { %v9967_v53 = vpop.f32.mrb[180].mxu1 }
 0x3df   :  { %v2642_v45 = vpop.f32.mrb[181].mxu1 }
 0x3e2   :  { %v9969_v48 = vpop.f32.mrb[182].mxu1 }
 0x3e3   :  { %v2647_v33 = vpop.f32.mrb[183].mxu1 }
 0x3e6   :  { %v9971_v40 = vpop.f32.mrb[184].mxu1 }
 0x3e7   :  { %v2652_v29 = vpop.f32.mrb[185].mxu1 }
 0x3ea   :  { %v2253_v0 = vpop.f32.mrb[64].mxu0  ;;  %v9974_v5 = vpop.f32.mrb[186].mxu1 }
 0x3eb   :  { %v2412_v59 = vadd.f32 %v2253_v0, %v1290_v30  ;;  %v2255_v47 = vpop.f32.mrb[65].mxu0  ;;  %v2657_v21 = vpop.f32.mrb[187].mxu1  ;;  %v12036_v0 = vld [vmem:[#allocation5_spill] sm:$0xff] }
 0x3ec   :  { %v1292_v47 = vmax.f32 %v12036_v0, 0.0  ;;  %v12037_v0 = vld [vmem:[#allocation4_spill] sm:$0xff] }
 0x3ed   :  { %v9977_v63 = vsub.f32 %v2412_v59, %v9894_v39  ;;  %v2927_v39 = vld [vmem:[%s11818_s7 + $0x10] sm:$0xff]  ;;  %v1293_v24 = vmax.f32 %v12037_v0, 0.0 }
 0x3ee   :  { %v2258_v45 = vpop.f32.mrb[66].mxu0  ;;  %v9980_v19 = vpop.f32.mrb[188].mxu1 }
 0x3ef   :  { %v2413_v33 = vadd.f32 %v2258_v45, %v1291_v34  ;;  %v2260_v62 = vpop.f32.mrb[67].mxu0  ;;  %v2701_v29 = vmul.f32 %v9977_v63, %v9977_v63  ;;  %v2662_v32 = vpop.f32.mrb[189].mxu1  ;;  %v2928_v34 = vld [vmem:[%s11818_s7 + $0x18] sm:$0xff] }
 0x3f0   :  { %v7545_v21 = vpack.c.bf16 %v2928_v34, %v2927_v39 }
 0x3f1   :  { %v9985_v51 = vsub.f32 %v2413_v33, %v9898_v13  ;;  %v2733_v30 = vsel %vm518_vm1, %v2701_v29, 0.0 }
 0x3f2   :  { %v2263_v62 = vpop.f32.mrb[68].mxu0  ;;  %2734 = vadd.xlane.f32.xlu0 %v2733_v30  ;;  %v9995_v59 = vpop.f32.mrb[190].mxu1  ;;  %7546 = vmatprep.subr.bf16.mxu0 %v7545_v21 }
 0x3f3   :  { %v2414_v17 = vadd.f32 %v2263_v62, %v1292_v47  ;;  %v2265_v13 = vpop.f32.mrb[69].mxu0  ;;  %v2702_v45 = vmul.f32 %v9985_v51, %v9985_v51  ;;  %v2667_v33 = vpop.f32.mrb[191].mxu1  ;;  %7548 = vmatpush3.bf16.msra.mxu0 %v7545_v21 }
 0x3f5   :  { %v10000_v29 = vsub.f32 %v2414_v17, %v9901_v36  ;;  %v2736_v32 = vsel %vm518_vm1, %v2702_v45, 0.0  ;;  %v12038_v36 = vld [vmem:[#allocation7_spill] sm:$0xff] }
 0x3f6   :  { %2737 = vadd.xlane.f32.xlu0 %v2736_v32  ;;  %v1294_v17 = vmax.f32 %v12038_v36, 0.0  ;;  %v12040_v36 = vld [vmem:[#allocation9_spill] sm:$0xff] }
 0x3f7   :  { %v2703_v30 = vmul.f32 %v10000_v29, %v10000_v29 }
 0x3f8   :  { %v2268_v39 = vpop.f32.mrb[70].mxu0 }
 0x3f9   :  { %v2415_v47 = vadd.f32 %v2268_v39, %v1293_v24  ;;  %v2270_v34 = vpop.f32.mrb[71].mxu0  ;;  %v2739_v62 = vsel %vm518_vm1, %v2703_v30, 0.0  ;;  %v1295_v24 = vmax.f32 %v12039_v58, 0.0 }
 0x3fa   :  { %2740 = vadd.xlane.f32.xlu1 %v2739_v62 }
 0x3fb   :  { %v10008_v13 = vsub.f32 %v2415_v47, %v9905_v18 }
 0x3fc   :  { %v2273_v33 = vpop.f32.mrb[72].mxu0 }
 0x3fd   :  { %v2416_v45 = vadd.f32 %v2273_v33, %v1294_v17  ;;  %v2275_v21 = vpop.f32.mrb[73].mxu0  ;;  %v2704_v32 = vmul.f32 %v10008_v13, %v10008_v13  ;;  %v1296_v17 = vmax.f32 %v12040_v36, 0.0 }
 0x3ff   :  { %v10014_v0 = vsub.f32 %v2416_v45, %v9909_v3  ;;  %v2742_v39 = vsel %vm518_vm1, %v2704_v32, 0.0 }
 0x400   :  { %v2278_v30 = vpop.f32.mrb[74].mxu0  ;;  %2743 = vadd.xlane.f32.xlu1 %v2742_v39 }
 0x401   :  { %v2417_v34 = vadd.f32 %v2278_v30, %v1295_v24  ;;  %v2280_v18 = vpop.f32.mrb[75].mxu0  ;;  %v2705_v47 = vmul.f32 %v10014_v0, %v10014_v0  ;;  %v12041_v24 = vld [vmem:[#allocation8_spill] sm:$0xff] }
 0x402   :  { %v1297_v39 = vmax.f32 %v12041_v24, 0.0 }
 0x403   :  { %v10021_v62 = vsub.f32 %v2417_v34, %v9914_v12  ;;  %v2745_v33 = vsel %vm518_vm1, %v2705_v47, 0.0 }
 0x404   :  { %v2283_v3 = vpop.f32.mrb[76].mxu0  ;;  %2746 = vadd.xlane.f32.xlu0 %v2745_v33 }
 0x405   :  { %v2418_v45 = vadd.f32 %v2283_v3, %v1296_v17  ;;  %v2285_v58 = vpop.f32.mrb[77].mxu0  ;;  %v2706_v21 = vmul.f32 %v10021_v62, %v10021_v62  ;;  %v12042_v17 = vld [vmem:[#allocation11_spill] sm:$0xff] }
 0x406   :  { %v1298_v33 = vmax.f32 %v12042_v17, 0.0 }
 0x407   :  { %v10028_v32 = vsub.f32 %v2418_v45, %v9918_v14  ;;  %v2748_v30 = vsel %vm518_vm1, %v2706_v21, 0.0  ;;  %v2933_v14 = vld [vmem:[%s11819_s9] sm:$0xff]  ;;  %v2934_v45 = vld [vmem:[%s11819_s9 + $0x8] sm:$0xff] }
 0x408   :  { %v2288_v12 = vpop.f32.mrb[78].mxu0  ;;  %2749 = vadd.xlane.f32.xlu1 %v2748_v30  ;;  %v7557_v21 = vpack.c.bf16 %v2934_v45, %v2933_v14 }
 0x409   :  { %v2419_v34 = vadd.f32 %v2288_v12, %v1297_v39  ;;  %v2290_v18 = vpop.f32.mrb[79].mxu0  ;;  %v2707_v47 = vmul.f32 %v10028_v32, %v10028_v32 }
 0x40a   :  { %7558 = vmatprep.subr.bf16.mxu1 %v7557_v21  ;;  %v2936_v18 = vld [vmem:[%s11819_s9 + $0x18] sm:$0xff] }
 0x40b   :  { %v10035_v36 = vsub.f32 %v2419_v34, %v9922_v43  ;;  %v2751_v3 = vsel %vm518_vm1, %v2707_v47, 0.0  ;;  %7560 = vmatpush3.bf16.msra.mxu1 %v7557_v21  ;;  %v2935_v34 = vld [vmem:[%s11819_s9 + $0x10] sm:$0xff]  ;;  %v12043_v47 = vld [vmem:[#allocation10_spill] sm:$0xff] }
 0x40c   :  { %v2293_v58 = vpop.f32.mrb[80].mxu0  ;;  %2752 = vadd.xlane.f32.xlu0 %v2751_v3  ;;  %v1299_v17 = vmax.f32 %v12043_v47, 0.0 }
 0x40d   :  { %v2420_v24 = vadd.f32 %v2293_v58, %v1298_v33  ;;  %v2295_v39 = vpop.f32.mrb[81].mxu0  ;;  %v2708_v43 = vmul.f32 %v10035_v36, %v10035_v36  ;;  %v7561_v33 = vpack.c.bf16 %v2936_v18, %v2935_v34 }
 0x40f   :  { %v10048_v30 = vsub.f32 %v2420_v24, %v9925_v1  ;;  %v2754_v12 = vsel %vm518_vm1, %v2708_v43, 0.0  ;;  %7562 = vmatprep.subr.bf16.mxu1 %v7561_v33  ;;  %v12044_v24 = vld [vmem:[#allocation13_spill] sm:$0xff]  ;;  %v12045_v43 = vmov 0.0|0.0  }
 0x410   :  { %2755 = vadd.xlane.f32.xlu1 %v2754_v12  ;;  %7564 = vmatpush3.bf16.msra.mxu1 %v7561_v33  ;;  %v1300_v39 = vmax.f32 %v12044_v24, 0.0 }
 0x411   :  { %v2298_v3 = vpop.f32.mrb[82].mxu0  ;;  %v2709_v1 = vmul.f32 %v10048_v30, %v10048_v30  ;;  %7613 = vmatprep.subr.bf16.mxu1 %v12045_v43 }
 0x412   :  { %v2421_v14 = vadd.f32 %v2298_v3, %v1299_v17  ;;  %v2300_v45 = vpop.f32.mrb[83].mxu0  ;;  %v12046_v3 = vld [vmem:[#allocation12_spill] sm:$0xff] }
 0x413   :  { %v2757_v58 = vsel %vm518_vm1, %v2709_v1, 0.0  ;;  %v1301_v1 = vmax.f32 %v12046_v3, 0.0 }
 0x414   :  { %v10062_v21 = vsub.f32 %v2421_v14, %v9927_v44  ;;  %2758 = vadd.xlane.f32.xlu0 %v2757_v58 }
 0x415   :  { %v2303_v12 = vpop.f32.mrb[84].mxu0 }
 0x416   :  { %v2422_v34 = vadd.f32 %v2303_v12, %v1300_v39  ;;  %v2305_v18 = vpop.f32.mrb[85].mxu0  ;;  %v2710_v47 = vmul.f32 %v10062_v21, %v10062_v21  ;;  %v12047_v39 = vld [vmem:[#allocation15_spill] sm:$0xff] }
 0x417   :  { %v1302_v12 = vmax.f32 %v12047_v39, 0.0 }
 0x418   :  { %v10069_v17 = vsub.f32 %v2422_v34, %v9929_v46  ;;  %v2760_v33 = vsel %vm518_vm1, %v2710_v47, 0.0 }
 0x419   :  { %v2308_v44 = vpop.f32.mrb[86].mxu0  ;;  %2761 = vadd.xlane.f32.xlu1 %v2760_v33  ;;  %v12048_v33 = vld [vmem:[#allocation14_spill] sm:$0xff] }
 0x41a   :  { %v2423_v14 = vadd.f32 %v2308_v44, %v1301_v1  ;;  %v2310_v45 = vpop.f32.mrb[87].mxu0  ;;  %v2711_v58 = vmul.f32 %v10069_v17, %v10069_v17  ;;  %v1303_v44 = vmax.f32 %v12048_v33, 0.0 }
 0x41c   :  { %v10076_v24 = vsub.f32 %v2423_v14, %v9931_v26  ;;  %v2763_v18 = vsel %vm518_vm1, %v2711_v58, 0.0 }
 0x41d   :  { %v2313_v46 = vpop.f32.mrb[88].mxu0  ;;  %2764 = vadd.xlane.f32.xlu0 %v2763_v18  ;;  %v12049_v18 = vld [vmem:[#allocation17_spill] sm:$0xff] }
 0x41e   :  { %v2424_v34 = vadd.f32 %v2313_v46, %v1302_v12  ;;  %v2315_v3 = vpop.f32.mrb[89].mxu0  ;;  %v2712_v47 = vmul.f32 %v10076_v24, %v10076_v24  ;;  %v1304_v46 = vmax.f32 %v12049_v18, 0.0 }
 0x420   :  { %v10083_v1 = vsub.f32 %v2424_v34, %v9933_v28  ;;  %v2766_v45 = vsel %vm518_vm1, %v2712_v47, 0.0 }
 0x421   :  { %v2318_v26 = vpop.f32.mrb[90].mxu0  ;;  %2767 = vadd.xlane.f32.xlu1 %v2766_v45  ;;  %v12050_v45 = vld [vmem:[#allocation16_spill] sm:$0xff] }
 0x422   :  { %v2425_v14 = vadd.f32 %v2318_v26, %v1303_v44  ;;  %v2320_v39 = vpop.f32.mrb[91].mxu0  ;;  %v2713_v58 = vmul.f32 %v10083_v1, %v10083_v1  ;;  %v1305_v26 = vmax.f32 %v12050_v45, 0.0 }
 0x424   :  { %v10090_v12 = vsub.f32 %v2425_v14, %v9935_v61  ;;  %v2769_v3 = vsel %vm518_vm1, %v2713_v58, 0.0 }
 0x425   :  { %v2323_v28 = vpop.f32.mrb[92].mxu0  ;;  %2770 = vadd.xlane.f32.xlu0 %v2769_v3  ;;  %v12051_v3 = vld [vmem:[#allocation19_spill] sm:$0xff] }
 0x426   :  { %v2426_v34 = vadd.f32 %v2323_v28, %v1304_v46  ;;  %v2325_v33 = vpop.f32.mrb[93].mxu0  ;;  %v2714_v47 = vmul.f32 %v10090_v12, %v10090_v12  ;;  %v1306_v28 = vmax.f32 %v12051_v3, 0.0 }
 0x428   :  { %v10097_v44 = vsub.f32 %v2426_v34, %v9937_v54  ;;  %v2772_v39 = vsel %vm518_vm1, %v2714_v47, 0.0 }
 0x429   :  { %v2328_v61 = vpop.f32.mrb[94].mxu0  ;;  %2773 = vadd.xlane.f32.xlu1 %v2772_v39  ;;  %v12052_v39 = vld [vmem:[#allocation18_spill] sm:$0xff] }
 0x42a   :  { %v2427_v14 = vadd.f32 %v2328_v61, %v1305_v26  ;;  %v2330_v18 = vpop.f32.mrb[95].mxu0  ;;  %v2715_v58 = vmul.f32 %v10097_v44, %v10097_v44  ;;  %v1307_v61 = vmax.f32 %v12052_v39, 0.0 }
 0x42c   :  { %v10104_v46 = vsub.f32 %v2427_v14, %v9939_v38  ;;  %v2775_v33 = vsel %vm518_vm1, %v2715_v58, 0.0 }
 0x42d   :  { %v2333_v54 = vpop.f32.mrb[96].mxu0  ;;  %2776 = vadd.xlane.f32.xlu0 %v2775_v33  ;;  %v12053_v33 = vld [vmem:[#allocation22_spill] sm:$0xff] }
 0x42e   :  { %v2428_v34 = vadd.f32 %v2333_v54, %v1306_v28  ;;  %v2335_v45 = vpop.f32.mrb[97].mxu0  ;;  %v2716_v47 = vmul.f32 %v10104_v46, %v10104_v46  ;;  %v1308_v54 = vmax.f32 %v12053_v33, 0.0 }
 0x430   :  { %v10111_v26 = vsub.f32 %v2428_v34, %v9941_v16  ;;  %v2778_v18 = vsel %vm518_vm1, %v2716_v47, 0.0 }
 0x431   :  { %v2338_v38 = vpop.f32.mrb[98].mxu0  ;;  %2779 = vadd.xlane.f32.xlu1 %v2778_v18  ;;  %v12054_v18 = vld [vmem:[#allocation21_spill] sm:$0xff] }
 0x432   :  { %v2429_v14 = vadd.f32 %v2338_v38, %v1307_v61  ;;  %v2340_v3 = vpop.f32.mrb[99].mxu0  ;;  %v2717_v58 = vmul.f32 %v10111_v26, %v10111_v26  ;;  %v1309_v38 = vmax.f32 %v12054_v18, 0.0 }
 0x434   :  { %v10118_v28 = vsub.f32 %v2429_v14, %v9949_v31  ;;  %v2781_v45 = vsel %vm518_vm1, %v2717_v58, 0.0 }
 0x435   :  { %v2343_v16 = vpop.f32.mrb[100].mxu0  ;;  %2782 = vadd.xlane.f32.xlu0 %v2781_v45  ;;  %v12055_v45 = vld [vmem:[#allocation24_spill] sm:$0xff] }
 0x436   :  { %v2430_v34 = vadd.f32 %v2343_v16, %v1308_v54  ;;  %v2345_v39 = vpop.f32.mrb[101].mxu0  ;;  %v2718_v47 = vmul.f32 %v10118_v28, %v10118_v28  ;;  %v1310_v16 = vmax.f32 %v12055_v45, 0.0 }
 0x438   :  { %v10125_v61 = vsub.f32 %v2430_v34, %v9951_v11  ;;  %v2784_v3 = vsel %vm518_vm1, %v2718_v47, 0.0 }
 0x439   :  { %v2348_v31 = vpop.f32.mrb[102].mxu0  ;;  %2785 = vadd.xlane.f32.xlu1 %v2784_v3  ;;  %v12056_v3 = vld [vmem:[#allocation23_spill] sm:$0xff] }
 0x43a   :  { %v2431_v14 = vadd.f32 %v2348_v31, %v1309_v38  ;;  %v2350_v33 = vpop.f32.mrb[103].mxu0  ;;  %v2719_v58 = vmul.f32 %v10125_v61, %v10125_v61  ;;  %v1311_v31 = vmax.f32 %v12056_v3, 0.0 }
 0x43c   :  { %v10132_v54 = vsub.f32 %v2431_v14, %v9953_v49  ;;  %v2787_v39 = vsel %vm518_vm1, %v2719_v58, 0.0 }
 0x43d   :  { %v2353_v11 = vpop.f32.mrb[104].mxu0  ;;  %2788 = vadd.xlane.f32.xlu0 %v2787_v39  ;;  %v12057_v39 = vld [vmem:[#allocation26_spill] sm:$0xff] }
 0x43e   :  { %v2432_v34 = vadd.f32 %v2353_v11, %v1310_v16  ;;  %v2355_v18 = vpop.f32.mrb[105].mxu0  ;;  %v2720_v47 = vmul.f32 %v10132_v54, %v10132_v54  ;;  %v1312_v11 = vmax.f32 %v12057_v39, 0.0 }
 0x440   :  { %v10139_v38 = vsub.f32 %v2432_v34, %v9955_v23  ;;  %v2790_v33 = vsel %vm518_vm1, %v2720_v47, 0.0 }
 0x441   :  { %v2358_v49 = vpop.f32.mrb[106].mxu0  ;;  %2791 = vadd.xlane.f32.xlu1 %v2790_v33  ;;  %v12058_v33 = vld [vmem:[#allocation25_spill] sm:$0xff] }
 0x442   :  { %v2433_v14 = vadd.f32 %v2358_v49, %v1311_v31  ;;  %v2360_v45 = vpop.f32.mrb[107].mxu0  ;;  %v2721_v58 = vmul.f32 %v10139_v38, %v10139_v38  ;;  %v1313_v49 = vmax.f32 %v12058_v33, 0.0 }
 0x444   :  { %v10146_v16 = vsub.f32 %v2433_v14, %v9957_v6  ;;  %v2793_v18 = vsel %vm518_vm1, %v2721_v58, 0.0 }
 0x445   :  { %v2363_v23 = vpop.f32.mrb[108].mxu0  ;;  %2794 = vadd.xlane.f32.xlu0 %v2793_v18  ;;  %v12059_v18 = vld [vmem:[#allocation28_spill] sm:$0xff] }
 0x446   :  { %v2434_v34 = vadd.f32 %v2363_v23, %v1312_v11  ;;  %v2365_v3 = vpop.f32.mrb[109].mxu0  ;;  %v2722_v47 = vmul.f32 %v10146_v16, %v10146_v16  ;;  %v1314_v23 = vmax.f32 %v12059_v18, 0.0 }
 0x448   :  { %v10153_v31 = vsub.f32 %v2434_v34, %v9959_v4  ;;  %v2796_v45 = vsel %vm518_vm1, %v2722_v47, 0.0 }
 0x449   :  { %v2368_v6 = vpop.f32.mrb[110].mxu0  ;;  %2797 = vadd.xlane.f32.xlu1 %v2796_v45  ;;  %v12060_v45 = vld [vmem:[#allocation27_spill] sm:$0xff] }
 0x44a   :  { %v2435_v14 = vadd.f32 %v2368_v6, %v1313_v49  ;;  %v2370_v39 = vpop.f32.mrb[111].mxu0  ;;  %v2723_v58 = vmul.f32 %v10153_v31, %v10153_v31  ;;  %v1315_v6 = vmax.f32 %v12060_v45, 0.0 }
 0x44c   :  { %v10160_v11 = vsub.f32 %v2435_v14, %v9961_v55  ;;  %v2799_v3 = vsel %vm518_vm1, %v2723_v58, 0.0 }
 0x44d   :  { %v2373_v4 = vpop.f32.mrb[112].mxu0  ;;  %2800 = vadd.xlane.f32.xlu0 %v2799_v3  ;;  %v12061_v3 = vld [vmem:[#allocation30_spill] sm:$0xff] }
 0x44e   :  { %v2436_v34 = vadd.f32 %v2373_v4, %v1314_v23  ;;  %v2375_v33 = vpop.f32.mrb[113].mxu0  ;;  %v2724_v47 = vmul.f32 %v10160_v11, %v10160_v11  ;;  %v1316_v4 = vmax.f32 %v12061_v3, 0.0 }
 0x450   :  { %v10167_v49 = vsub.f32 %v2436_v34, %v9963_v52  ;;  %v2802_v39 = vsel %vm518_vm1, %v2724_v47, 0.0 }
 0x451   :  { %v2378_v55 = vpop.f32.mrb[114].mxu0  ;;  %2803 = vadd.xlane.f32.xlu1 %v2802_v39  ;;  %v12062_v39 = vld [vmem:[#allocation29_spill] sm:$0xff] }
 0x452   :  { %v2437_v14 = vadd.f32 %v2378_v55, %v1315_v6  ;;  %v2380_v18 = vpop.f32.mrb[115].mxu0  ;;  %v2725_v58 = vmul.f32 %v10167_v49, %v10167_v49  ;;  %v1317_v55 = vmax.f32 %v12062_v39, 0.0 }
 0x454   :  { %v10174_v23 = vsub.f32 %v2437_v14, %v9965_v8  ;;  %v2805_v33 = vsel %vm518_vm1, %v2725_v58, 0.0 }
 0x455   :  { %v2383_v52 = vpop.f32.mrb[116].mxu0  ;;  %2806 = vadd.xlane.f32.xlu0 %v2805_v33 }
 0x456   :  { %v2438_v34 = vadd.f32 %v2383_v52, %v1316_v4  ;;  %v2385_v45 = vpop.f32.mrb[117].mxu0  ;;  %v2726_v47 = vmul.f32 %v10174_v23, %v10174_v23  ;;  %v2929_v4 = vld [vmem:[%s11820_s8] sm:$0xff] }
 0x458   :  { %v10181_v6 = vsub.f32 %v2438_v34, %v9967_v53  ;;  %v2808_v18 = vsel %vm518_vm1, %v2726_v47, 0.0  ;;  %v2930_v53 = vld [vmem:[%s11820_s8 + $0x8] sm:$0xff]  ;;  %v12063_v34 = vld [vmem:[#allocation32_spill] sm:$0xff] }
 0x459   :  { %v2388_v8 = vpop.f32.mrb[118].mxu0  ;;  %2809 = vadd.xlane.f32.xlu1 %v2808_v18  ;;  %v10193_v33 = vpack.c.bf16 %v2930_v53, %v2929_v4  ;;  %v1318_v45 = vmax.f32 %v12063_v34, 0.0  ;;  %v12064_v4 = vld [vmem:[#allocation31_spill] sm:$0xff] }
 0x45a   :  { %v2439_v14 = vadd.f32 %v2388_v8, %v1317_v55  ;;  %v2390_v3 = vpop.f32.mrb[119].mxu0  ;;  %v2727_v58 = vmul.f32 %v10181_v6, %v10181_v6  ;;  %v1319_v53 = vmax.f32 %v12064_v4, 0.0 }
 0x45b   :  { %7550 = vmatprep.subr.bf16.mxu0 %v10193_v33 }
 0x45c   :  { %v10196_v52 = vsub.f32 %v2439_v14, %v9969_v48  ;;  %v2811_v47 = vsel %vm518_vm1, %v2727_v58, 0.0 }
 0x45d   :  { %v2393_v39 = vpop.f32.mrb[120].mxu0  ;;  %2812 = vadd.xlane.f32.xlu0 %v2811_v47 }
 0x45e   :  { %v2440_v55 = vadd.f32 %v2393_v39, %v1318_v45  ;;  %v2395_v18 = vpop.f32.mrb[121].mxu0  ;;  %v2728_v8 = vmul.f32 %v10196_v52, %v10196_v52  ;;  %v12065_v39 = vld [vmem:[#allocation34_spill] sm:$0xff] }
 0x45f   :  { %v1320_v18 = vmax.f32 %v12065_v39, 0.0 }
 0x460   :  { %v10204_v3 = vsub.f32 %v2440_v55, %v9971_v40  ;;  %v2814_v48 = vsel %vm518_vm1, %v2728_v8, 0.0 }
 0x461   :  { %v2398_v14 = vpop.f32.mrb[122].mxu0  ;;  %2815 = vadd.xlane.f32.xlu1 %v2814_v48 }
 0x462   :  { %v2441_v34 = vadd.f32 %v2398_v14, %v1319_v53  ;;  %v2400_v58 = vpop.f32.mrb[123].mxu0  ;;  %v2729_v47 = vmul.f32 %v10204_v3, %v10204_v3  ;;  %v12066_v14 = vld [vmem:[#allocation33_spill] sm:$0xff] }
 0x463   :  { %v1321_v58 = vmax.f32 %v12066_v14, 0.0 }
 0x464   :  { %v10211_v45 = vsub.f32 %v2441_v34, %v9974_v5  ;;  %v2817_v50 = vsel %vm518_vm1, %v2729_v47, 0.0 }
 0x465   :  { %v2403_v40 = vpop.f32.mrb[124].mxu0  ;;  %2818 = vadd.xlane.f32.xlu0 %v2817_v50 }
 0x466   :  { %v2442_v55 = vadd.f32 %v2403_v40, %v1320_v18  ;;  %v2405_v4 = vpop.f32.mrb[125].mxu0  ;;  %v2730_v8 = vmul.f32 %v10211_v45, %v10211_v45 }
 0x468   :  { %v10218_v53 = vsub.f32 %v2442_v55, %v9980_v19  ;;  %v2820_v48 = vsel %vm518_vm1, %v2730_v8, 0.0 }
 0x469   :  { %2821 = vadd.xlane.f32.xlu1 %v2820_v48  ;;  %v2408_v5 = vpop.f32.mrb[126].mxu0 }
 0x46a   :  { %v2443_v34 = vadd.f32 %v2408_v5, %v1321_v58  ;;  %v2410_v39 = vpop.f32.mrb[127].mxu0  ;;  %v2731_v47 = vmul.f32 %v10218_v53, %v10218_v53 }
 0x46c   :  { %v10225_v50 = vsub.f32 %v2443_v34, %v9995_v59  ;;  %v2823_v18 = vsel %vm518_vm1, %v2731_v47, 0.0  ;;  %v2931_v47 = vld [vmem:[%s11820_s8 + $0x10] sm:$0xff] }
 0x46d   :  { %2824 = vadd.xlane.f32.xlu0 %v2823_v18  ;;  %v2932_v18 = vld [vmem:[%s11820_s8 + $0x18] sm:$0xff] }
 0x46e   :  { %v2732_v19 = vmul.f32 %v10225_v50, %v10225_v50 }
 0x470   :  { %v2826_v40 = vsel %vm518_vm1, %v2732_v19, 0.0 }
 0x471   :  { %2827 = vadd.xlane.f32.xlu1 %v2826_v40 }
 0x47f   :  { %v2735_v55 = vpop.xlane.xlu0 %2734 }
 0x480   :  { %v2829_v4 = vmax.f32 %v2735_v55, 1e-24  ;;  %v7553_v55 = vpack.c.bf16 %v2932_v18, %v2931_v47 }
 0x482   :  { %7974 = vrsqrt.f32 %v2829_v4 }
 0x483   :  { %v2738_v8 = vpop.xlane.xlu0 %2737 }
 0x484   :  { %v2830_v48 = vmax.f32 %v2738_v8, 1e-24 }
 0x486   :  { %7976 = vrsqrt.f32 %v2830_v48 }
 0x487   :  { %v2741_v14 = vpop.xlane.xlu1 %2740 }
 0x488   :  { %v2831_v58 = vmax.f32 %v2741_v14, 1e-24 }
 0x48a   :  { %7978 = vrsqrt.f32 %v2831_v58 }
 0x48c   :  { %v7975_v59 = vpop.eup %7974 }
 0x48d   :  { %v2744_v5 = vpop.xlane.xlu1 %2743  ;;  %v10232_v34 = vmul.f32 %v7975_v59, %v9977_v63 }
 0x48e   :  { %v2832_v39 = vmax.f32 %v2744_v5, 1e-24 }
 0x48f   :  { %7253 = vmatprep.mubr.msk.f32.mxu1 %vm518_vm1, %v10232_v34  ;;  %7141 = vmatprep.mubr.msk.f32.mxu0 %vm518_vm1, %v10232_v34 }
 0x490   :  { %v7977_v19 = vpop.eup %7976  ;;  %7980 = vrsqrt.f32 %v2832_v39 }
 0x491   :  { %v10245_v63 = vmul.f32 %v7977_v19, %v9985_v51  ;;  %v2747_v40 = vpop.xlane.xlu0 %2746 }
 0x492   :  { %v2833_v4 = vmax.f32 %v2747_v40, 1e-24 }
 0x493   :  { %7254 = vmatmul.mubr.msk.f32.vlgmr.msra.gmra.mrb[192].mxu1 %vm518_vm1, %v10245_v63  ;;  %7142 = vmatmul.mubr.msk.f32.vlgmr.msra.gmra.mrb[128].mxu0 %vm518_vm1, %v10245_v63 }
 0x494   :  { %v7979_v8 = vpop.eup %7978  ;;  %7982 = vrsqrt.f32 %v2833_v4  ;;  %7552 = vmatpush3.bf16.msra.mxu0 %v10193_v33 }
 0x495   :  { %v2750_v48 = vpop.xlane.xlu1 %2749  ;;  %v10253_v14 = vmul.f32 %v7979_v8, %v10000_v29  ;;  %7554 = vmatprep.subr.bf16.mxu0 %v7553_v55 }
 0x496   :  { %v2834_v51 = vmax.f32 %v2750_v48, 1e-24 }
 0x497   :  { %7256 = vmatprep.mubr.msk.f32.mxu1 %vm518_vm1, %v10253_v14  ;;  %7144 = vmatprep.mubr.msk.f32.mxu0 %vm518_vm1, %v10253_v14 }
 0x498   :  { %7984 = vrsqrt.f32 %v2834_v51  ;;  %7556 = vmatpush3.bf16.msra.mxu0 %v7553_v55 }
 0x499   :  { %v2753_v58 = vpop.xlane.xlu0 %2752 }
 0x49a   :  { %v7981_v59 = vpop.eup %7980  ;;  %v2835_v5 = vmax.f32 %v2753_v58, 1e-24 }
 0x49b   :  { %v10260_v39 = vmul.f32 %v7981_v59, %v10008_v13 }
 0x49c   :  { %7986 = vrsqrt.f32 %v2835_v5 }
 0x49d   :  { %7257 = vmatmul.mubr.msk.f32.gmra.mrb[194].mxu1 %vm518_vm1, %v10260_v39  ;;  %v2756_v29 = vpop.xlane.xlu1 %2755  ;;  %7145 = vmatmul.mubr.msk.f32.gmra.mrb[130].mxu0 %vm518_vm1, %v10260_v39 }
 0x49e   :  { %v7983_v33 = vpop.eup %7982  ;;  %v2836_v47 = vmax.f32 %v2756_v29, 1e-24 }
 0x49f   :  { %v10267_v18 = vmul.f32 %v7983_v33, %v10014_v0 }
 0x4a0   :  { %7988 = vrsqrt.f32 %v2836_v47 }
 0x4a1   :  { %7259 = vmatprep.mubr.msk.f32.mxu1 %vm518_vm1, %v10267_v18  ;;  %v2759_v19 = vpop.xlane.xlu0 %2758  ;;  %7147 = vmatprep.mubr.msk.f32.mxu0 %vm518_vm1, %v10267_v18 }
 0x4a2   :  { %v7985_v13 = vpop.eup %7984  ;;  %v2837_v40 = vmax.f32 %v2759_v19, 1e-24 }
 0x4a3   :  { %v10274_v55 = vmul.f32 %v7985_v13, %v10021_v62 }
 0x4a4   :  { %7990 = vrsqrt.f32 %v2837_v40 }
 0x4a5   :  { %7260 = vmatmul.mubr.msk.f32.gmra.mrb[196].mxu1 %vm518_vm1, %v10274_v55  ;;  %7148 = vmatmul.mubr.msk.f32.gmra.mrb[132].mxu0 %vm518_vm1, %v10274_v55 }
 0x4a6   :  { %v7987_v0 = vpop.eup %7986  ;;  %v2762_v4 = vpop.xlane.xlu1 %2761 }
 0x4a7   :  { %v2838_v8 = vmax.f32 %v2762_v4, 1e-24  ;;  %v10281_v48 = vmul.f32 %v7987_v0, %v10028_v32 }
 0x4a9   :  { %7992 = vrsqrt.f32 %v2838_v8  ;;  %7262 = vmatprep.mubr.msk.f32.mxu1 %vm518_vm1, %v10281_v48  ;;  %7150 = vmatprep.mubr.msk.f32.mxu0 %vm518_vm1, %v10281_v48 }
 0x4aa   :  { %v7989_v62 = vpop.eup %7988  ;;  %v2765_v51 = vpop.xlane.xlu0 %2764 }
 0x4ab   :  { %v2839_v58 = vmax.f32 %v2765_v51, 1e-24  ;;  %v10288_v59 = vmul.f32 %v7989_v62, %v10035_v36 }
 0x4ad   :  { %7994 = vrsqrt.f32 %v2839_v58  ;;  %7263 = vmatmul.mubr.msk.f32.gmra.mrb[198].mxu1 %vm518_vm1, %v10288_v59  ;;  %7151 = vmatmul.mubr.msk.f32.gmra.mrb[134].mxu0 %vm518_vm1, %v10288_v59 }
 0x4ae   :  { %v7991_v32 = vpop.eup %7990  ;;  %v2768_v5 = vpop.xlane.xlu1 %2767 }
 0x4af   :  { %v2840_v29 = vmax.f32 %v2768_v5, 1e-24  ;;  %v10295_v33 = vmul.f32 %v7991_v32, %v10048_v30 }
 0x4b1   :  { %7996 = vrsqrt.f32 %v2840_v29  ;;  %7265 = vmatprep.mubr.msk.f32.mxu1 %vm518_vm1, %v10295_v33  ;;  %7153 = vmatprep.mubr.msk.f32.mxu0 %vm518_vm1, %v10295_v33 }
 0x4b2   :  { %v2771_v36 = vpop.xlane.xlu0 %2770 }
 0x4b3   :  { %v7993_v47 = vpop.eup %7992  ;;  %v2841_v19 = vmax.f32 %v2771_v36, 1e-24 }
 0x4b4   :  { %v10302_v13 = vmul.f32 %v7993_v47, %v10062_v21 }
 0x4b5   :  { %7998 = vrsqrt.f32 %v2841_v19 }
 0x4b6   :  { %7266 = vmatmul.mubr.msk.f32.gmra.mrb[200].mxu1 %vm518_vm1, %v10302_v13  ;;  %v2774_v40 = vpop.xlane.xlu1 %2773  ;;  %7154 = vmatmul.mubr.msk.f32.gmra.mrb[136].mxu0 %vm518_vm1, %v10302_v13 }
 0x4b7   :  { %v7995_v30 = vpop.eup %7994  ;;  %v2842_v0 = vmax.f32 %v2774_v40, 1e-24 }
 0x4b8   :  { %v10309_v4 = vmul.f32 %v7995_v30, %v10069_v17 }
 0x4b9   :  { %8000 = vrsqrt.f32 %v2842_v0 }
 0x4ba   :  { %7268 = vmatprep.mubr.msk.f32.mxu1 %vm518_vm1, %v10309_v4  ;;  %v2777_v8 = vpop.xlane.xlu0 %2776  ;;  %7156 = vmatprep.mubr.msk.f32.mxu0 %vm518_vm1, %v10309_v4 }
 0x4bb   :  { %v7997_v21 = vpop.eup %7996  ;;  %v2843_v62 = vmax.f32 %v2777_v8, 1e-24 }
 0x4bc   :  { %v10316_v51 = vmul.f32 %v7997_v21, %v10076_v24 }
 0x4bd   :  { %8002 = vrsqrt.f32 %v2843_v62 }
 0x4be   :  { %7269 = vmatmul.mubr.msk.f32.gmra.mrb[202].mxu1 %vm518_vm1, %v10316_v51  ;;  %v2780_v58 = vpop.xlane.xlu1 %2779  ;;  %7157 = vmatmul.mubr.msk.f32.gmra.mrb[138].mxu0 %vm518_vm1, %v10316_v51 }
 0x4bf   :  { %v7999_v17 = vpop.eup %7998  ;;  %v2844_v32 = vmax.f32 %v2780_v58, 1e-24 }
 0x4c0   :  { %v10323_v5 = vmul.f32 %v7999_v17, %v10083_v1 }
 0x4c1   :  { %8004 = vrsqrt.f32 %v2844_v32 }
 0x4c2   :  { %7271 = vmatprep.mubr.msk.f32.mxu1 %vm518_vm1, %v10323_v5  ;;  %v2783_v29 = vpop.xlane.xlu0 %2782  ;;  %7159 = vmatprep.mubr.msk.f32.mxu0 %vm518_vm1, %v10323_v5 }
 0x4c3   :  { %v8001_v24 = vpop.eup %8000  ;;  %v2845_v36 = vmax.f32 %v2783_v29, 1e-24 }
 0x4c4   :  { %v10330_v47 = vmul.f32 %v8001_v24, %v10090_v12 }
 0x4c5   :  { %8006 = vrsqrt.f32 %v2845_v36 }
 0x4c6   :  { %7272 = vmatmul.mubr.msk.f32.gmra.mrb[204].mxu1 %vm518_vm1, %v10330_v47  ;;  %v2786_v19 = vpop.xlane.xlu1 %2785  ;;  %7160 = vmatmul.mubr.msk.f32.gmra.mrb[140].mxu0 %vm518_vm1, %v10330_v47 }
 0x4c7   :  { %v8003_v1 = vpop.eup %8002  ;;  %v2846_v40 = vmax.f32 %v2786_v19, 1e-24 }
 0x4c8   :  { %v10337_v30 = vmul.f32 %v8003_v1, %v10097_v44 }
 0x4c9   :  { %8008 = vrsqrt.f32 %v2846_v40 }
 0x4ca   :  { %7274 = vmatprep.mubr.msk.f32.mxu1 %vm518_vm1, %v10337_v30  ;;  %v2789_v0 = vpop.xlane.xlu0 %2788  ;;  %7162 = vmatprep.mubr.msk.f32.mxu0 %vm518_vm1, %v10337_v30 }
 0x4cb   :  { %v8005_v12 = vpop.eup %8004  ;;  %v2847_v8 = vmax.f32 %v2789_v0, 1e-24 }
 0x4cc   :  { %v10344_v21 = vmul.f32 %v8005_v12, %v10104_v46 }
 0x4cd   :  { %8010 = vrsqrt.f32 %v2847_v8 }
 0x4ce   :  { %7275 = vmatmul.mubr.msk.f32.gmra.mrb[206].mxu1 %vm518_vm1, %v10344_v21  ;;  %v2792_v62 = vpop.xlane.xlu1 %2791  ;;  %7163 = vmatmul.mubr.msk.f32.gmra.mrb[142].mxu0 %vm518_vm1, %v10344_v21 }
 0x4cf   :  { %v8007_v44 = vpop.eup %8006  ;;  %v2848_v58 = vmax.f32 %v2792_v62, 1e-24 }
 0x4d0   :  { %v10351_v17 = vmul.f32 %v8007_v44, %v10111_v26 }
 0x4d1   :  { %8012 = vrsqrt.f32 %v2848_v58 }
 0x4d2   :  { %7277 = vmatprep.mubr.msk.f32.mxu1 %vm518_vm1, %v10351_v17  ;;  %v2795_v32 = vpop.xlane.xlu0 %2794  ;;  %7165 = vmatprep.mubr.msk.f32.mxu0 %vm518_vm1, %v10351_v17 }
 0x4d3   :  { %v8009_v46 = vpop.eup %8008  ;;  %v2849_v29 = vmax.f32 %v2795_v32, 1e-24 }
 0x4d4   :  { %v10358_v24 = vmul.f32 %v8009_v46, %v10118_v28 }
 0x4d5   :  { %8014 = vrsqrt.f32 %v2849_v29 }
 0x4d6   :  { %7278 = vmatmul.mubr.msk.f32.gmra.mrb[208].mxu1 %vm518_vm1, %v10358_v24  ;;  %v2798_v36 = vpop.xlane.xlu1 %2797  ;;  %7166 = vmatmul.mubr.msk.f32.gmra.mrb[144].mxu0 %vm518_vm1, %v10358_v24 }
 0x4d7   :  { %v8011_v26 = vpop.eup %8010  ;;  %v2850_v19 = vmax.f32 %v2798_v36, 1e-24 }
 0x4d8   :  { %v10365_v1 = vmul.f32 %v8011_v26, %v10125_v61 }
 0x4d9   :  { %8016 = vrsqrt.f32 %v2850_v19 }
 0x4da   :  { %7280 = vmatprep.mubr.msk.f32.mxu1 %vm518_vm1, %v10365_v1  ;;  %v2801_v40 = vpop.xlane.xlu0 %2800  ;;  %7168 = vmatprep.mubr.msk.f32.mxu0 %vm518_vm1, %v10365_v1 }
 0x4db   :  { %v8013_v28 = vpop.eup %8012  ;;  %v2851_v0 = vmax.f32 %v2801_v40, 1e-24 }
 0x4dc   :  { %v10372_v12 = vmul.f32 %v8013_v28, %v10132_v54 }
 0x4dd   :  { %8018 = vrsqrt.f32 %v2851_v0 }
 0x4de   :  { %7281 = vmatmul.mubr.msk.f32.gmra.mrb[210].mxu1 %vm518_vm1, %v10372_v12  ;;  %v2804_v8 = vpop.xlane.xlu1 %2803  ;;  %7169 = vmatmul.mubr.msk.f32.gmra.mrb[146].mxu0 %vm518_vm1, %v10372_v12 }
 0x4df   :  { %v8015_v61 = vpop.eup %8014  ;;  %v2852_v62 = vmax.f32 %v2804_v8, 1e-24 }
 0x4e0   :  { %v10379_v44 = vmul.f32 %v8015_v61, %v10139_v38 }
 0x4e1   :  { %8020 = vrsqrt.f32 %v2852_v62 }
 0x4e2   :  { %7283 = vmatprep.mubr.msk.f32.mxu1 %vm518_vm1, %v10379_v44  ;;  %v2807_v58 = vpop.xlane.xlu0 %2806  ;;  %7171 = vmatprep.mubr.msk.f32.mxu0 %vm518_vm1, %v10379_v44 }
 0x4e3   :  { %v8017_v54 = vpop.eup %8016  ;;  %v2853_v32 = vmax.f32 %v2807_v58, 1e-24 }
 0x4e4   :  { %v10386_v46 = vmul.f32 %v8017_v54, %v10146_v16 }
 0x4e5   :  { %8022 = vrsqrt.f32 %v2853_v32 }
 0x4e6   :  { %7284 = vmatmul.mubr.msk.f32.gmra.mrb[212].mxu1 %vm518_vm1, %v10386_v46  ;;  %v2810_v29 = vpop.xlane.xlu1 %2809  ;;  %7172 = vmatmul.mubr.msk.f32.gmra.mrb[148].mxu0 %vm518_vm1, %v10386_v46 }
 0x4e7   :  { %v8019_v38 = vpop.eup %8018  ;;  %v2854_v36 = vmax.f32 %v2810_v29, 1e-24 }
 0x4e8   :  { %v10393_v26 = vmul.f32 %v8019_v38, %v10153_v31 }
 0x4e9   :  { %8024 = vrsqrt.f32 %v2854_v36 }
 0x4ea   :  { %7286 = vmatprep.mubr.msk.f32.mxu1 %vm518_vm1, %v10393_v26  ;;  %v2813_v19 = vpop.xlane.xlu0 %2812  ;;  %7174 = vmatprep.mubr.msk.f32.mxu0 %vm518_vm1, %v10393_v26 }
 0x4eb   :  { %v8021_v16 = vpop.eup %8020  ;;  %v2855_v40 = vmax.f32 %v2813_v19, 1e-24 }
 0x4ec   :  { %v10400_v28 = vmul.f32 %v8021_v16, %v10160_v11 }
 0x4ed   :  { %8026 = vrsqrt.f32 %v2855_v40 }
 0x4ee   :  { %7287 = vmatmul.mubr.msk.f32.gmra.mrb[214].mxu1 %vm518_vm1, %v10400_v28  ;;  %v2816_v0 = vpop.xlane.xlu1 %2815  ;;  %7175 = vmatmul.mubr.msk.f32.gmra.mrb[150].mxu0 %vm518_vm1, %v10400_v28 }
 0x4ef   :  { %v8023_v31 = vpop.eup %8022  ;;  %v2856_v8 = vmax.f32 %v2816_v0, 1e-24 }
 0x4f0   :  { %v10407_v61 = vmul.f32 %v8023_v31, %v10167_v49 }
 0x4f1   :  { %8028 = vrsqrt.f32 %v2856_v8 }
 0x4f2   :  { %7289 = vmatprep.mubr.msk.f32.mxu1 %vm518_vm1, %v10407_v61  ;;  %v2819_v62 = vpop.xlane.xlu0 %2818  ;;  %7177 = vmatprep.mubr.msk.f32.mxu0 %vm518_vm1, %v10407_v61 }
 0x4f3   :  { %v8025_v11 = vpop.eup %8024  ;;  %v2857_v58 = vmax.f32 %v2819_v62, 1e-24 }
 0x4f4   :  { %v2918_v54 = vmul.f32 %v8025_v11, %v10174_v23 }
 0x4f5   :  { %8030 = vrsqrt.f32 %v2857_v58 }
 0x4f6   :  { %7290 = vmatmul.mubr.msk.f32.gmra.mrb[216].mxu1 %vm518_vm1, %v2918_v54  ;;  %v2822_v32 = vpop.xlane.xlu1 %2821  ;;  %7178 = vmatmul.mubr.msk.f32.gmra.mrb[152].mxu0 %vm518_vm1, %v2918_v54 }
 0x4f7   :  { %v8027_v49 = vpop.eup %8026  ;;  %v2858_v29 = vmax.f32 %v2822_v32, 1e-24 }
 0x4f8   :  { %v2919_v38 = vmul.f32 %v8027_v49, %v10181_v6 }
 0x4f9   :  { %8032 = vrsqrt.f32 %v2858_v29 }
 0x4fa   :  { %7292 = vmatprep.mubr.msk.f32.mxu1 %vm518_vm1, %v2919_v38  ;;  %v2825_v36 = vpop.xlane.xlu0 %2824  ;;  %7180 = vmatprep.mubr.msk.f32.mxu0 %vm518_vm1, %v2919_v38 }
 0x4fb   :  { %v8029_v19 = vpop.eup %8028  ;;  %v2859_v16 = vmax.f32 %v2825_v36, 1e-24 }
 0x4fc   :  { %v2920_v23 = vmul.f32 %v8029_v19, %v10196_v52 }
 0x4fd   :  { %8034 = vrsqrt.f32 %v2859_v16 }
 0x4fe   :  { %7181 = vmatmul.mubr.msk.f32.gmra.mrb[154].mxu0 %vm518_vm1, %v2920_v23  ;;  %7293 = vmatmul.mubr.msk.f32.gmra.mrb[218].mxu1 %vm518_vm1, %v2920_v23  ;;  %v2828_v40 = vpop.xlane.xlu1 %2827 }
 0x4ff   :  { %v8031_v0 = vpop.eup %8030  ;;  %v2860_v31 = vmax.f32 %v2828_v40, 1e-24 }
 0x500   :  { %v2921_v6 = vmul.f32 %v8031_v0, %v10204_v3 }
 0x501   :  { %8036 = vrsqrt.f32 %v2860_v31 }
 0x502   :  { %7183 = vmatprep.mubr.msk.f32.mxu0 %vm518_vm1, %v2921_v6  ;;  %7295 = vmatprep.mubr.msk.f32.mxu1 %vm518_vm1, %v2921_v6 }
 0x503   :  { %v8033_v8 = vpop.eup %8032 }
 0x504   :  { %v2922_v62 = vmul.f32 %v8033_v8, %v10211_v45 }
 0x506   :  { %7184 = vmatmul.mubr.msk.f32.gmra.mrb[156].mxu0 %vm518_vm1, %v2922_v62  ;;  %7296 = vmatmul.mubr.msk.f32.gmra.mrb[220].mxu1 %vm518_vm1, %v2922_v62 }
 0x507   :  { %v8035_v52 = vpop.eup %8034 }
 0x508   :  { %v2923_v11 = vmul.f32 %v8035_v52, %v10218_v53 }
 0x50a   :  { %7186 = vmatprep.mubr.msk.f32.mxu0 %vm518_vm1, %v2923_v11  ;;  %7298 = vmatprep.mubr.msk.f32.mxu1 %vm518_vm1, %v2923_v11 }
 0x50b   :  { %v8037_v3 = vpop.eup %8036 }
 0x50c   :  { %v2924_v58 = vmul.f32 %v8037_v3, %v10225_v50 }
 0x50e   :  { %7187 = vmatmul.mubr.msk.f32.gmra.mrb[158].mxu0 %vm518_vm1, %v2924_v58  ;;  %7299 = vmatmul.mubr.msk.f32.gmra.mrb[222].mxu1 %vm518_vm1, %v2924_v58 }
 0x50f   :  { %7197 = vmatprep.mubr.msk.f32.mxu0 %vm518_vm1, %v10232_v34 }
 0x512   :  { %7198 = vmatmul.mubr.msk.f32.vlgmr.msra.gmra.mrb[160].mxu0 %vm518_vm1, %v10245_v63 }
 0x513   :  { %7200 = vmatprep.mubr.msk.f32.mxu0 %vm518_vm1, %v10253_v14 }
 0x516   :  { %7201 = vmatmul.mubr.msk.f32.gmra.mrb[162].mxu0 %vm518_vm1, %v10260_v39 }
 0x517   :  { %7203 = vmatprep.mubr.msk.f32.mxu0 %vm518_vm1, %v10267_v18 }
 0x51a   :  { %7204 = vmatmul.mubr.msk.f32.gmra.mrb[164].mxu0 %vm518_vm1, %v10274_v55 }
 0x51b   :  { %7206 = vmatprep.mubr.msk.f32.mxu0 %vm518_vm1, %v10281_v48 }
 0x51e   :  { %7207 = vmatmul.mubr.msk.f32.gmra.mrb[166].mxu0 %vm518_vm1, %v10288_v59 }
 0x51f   :  { %7209 = vmatprep.mubr.msk.f32.mxu0 %vm518_vm1, %v10295_v33 }
 0x522   :  { %7210 = vmatmul.mubr.msk.f32.gmra.mrb[168].mxu0 %vm518_vm1, %v10302_v13 }
 0x523   :  { %7212 = vmatprep.mubr.msk.f32.mxu0 %vm518_vm1, %v10309_v4 }
 0x526   :  { %7213 = vmatmul.mubr.msk.f32.gmra.mrb[170].mxu0 %vm518_vm1, %v10316_v51 }
 0x527   :  { %7215 = vmatprep.mubr.msk.f32.mxu0 %vm518_vm1, %v10323_v5 }
 0x52a   :  { %7216 = vmatmul.mubr.msk.f32.gmra.mrb[172].mxu0 %vm518_vm1, %v10330_v47 }
 0x52b   :  { %7218 = vmatprep.mubr.msk.f32.mxu0 %vm518_vm1, %v10337_v30 }
 0x52e   :  { %7219 = vmatmul.mubr.msk.f32.gmra.mrb[174].mxu0 %vm518_vm1, %v10344_v21 }
 0x52f   :  { %7221 = vmatprep.mubr.msk.f32.mxu0 %vm518_vm1, %v10351_v17 }
 0x532   :  { %7222 = vmatmul.mubr.msk.f32.gmra.mrb[176].mxu0 %vm518_vm1, %v10358_v24 }
 0x533   :  { %7224 = vmatprep.mubr.msk.f32.mxu0 %vm518_vm1, %v10365_v1 }
 0x536   :  { %7225 = vmatmul.mubr.msk.f32.gmra.mrb[178].mxu0 %vm518_vm1, %v10372_v12 }
 0x537   :  { %7227 = vmatprep.mubr.msk.f32.mxu0 %vm518_vm1, %v10379_v44 }
 0x53a   :  { %7228 = vmatmul.mubr.msk.f32.gmra.mrb[180].mxu0 %vm518_vm1, %v10386_v46 }
 0x53b   :  { %7230 = vmatprep.mubr.msk.f32.mxu0 %vm518_vm1, %v10393_v26 }
 0x53e   :  { %7231 = vmatmul.mubr.msk.f32.gmra.mrb[182].mxu0 %vm518_vm1, %v10400_v28 }
 0x53f   :  { %7233 = vmatprep.mubr.msk.f32.mxu0 %vm518_vm1, %v10407_v61 }
 0x542   :  { %7234 = vmatmul.mubr.msk.f32.gmra.mrb[184].mxu0 %vm518_vm1, %v2918_v54 }
 0x543   :  { %7236 = vmatprep.mubr.msk.f32.mxu0 %vm518_vm1, %v2919_v38 }
 0x546   :  { %7237 = vmatmul.mubr.msk.f32.gmra.mrb[186].mxu0 %vm518_vm1, %v2920_v23 }
 0x547   :  { %7239 = vmatprep.mubr.msk.f32.mxu0 %vm518_vm1, %v2921_v6 }
 0x54a   :  { %7240 = vmatmul.mubr.msk.f32.gmra.mrb[188].mxu0 %vm518_vm1, %v2922_v62 }
 0x54b   :  { %7242 = vmatprep.mubr.msk.f32.mxu0 %vm518_vm1, %v2923_v11 }
 0x54e   :  { %7243 = vmatmul.mubr.msk.f32.gmra.mrb[190].mxu0 %vm518_vm1, %v2924_v58 }
 0x566   :  { %v10491_v45 = vpop.f32.mrb[128].mxu0  ;;  %v10493_v53 = vpop.f32.mrb[192].mxu1 }
 0x567   :  { %12067 = vst [vmem:[#allocation3_spill] sm:$0xff] %v10493_v53  ;;  %v10495_v50 = vpop.f32.mrb[129].mxu0  ;;  %v10497_v34 = vpop.f32.mrb[193].mxu1  ;;  %v12133_v53 = vld [vmem:[#allocation68_spill] sm:$0xff] }
 0x568   :  { %12068 = vst [vmem:[#allocation2_spill] sm:$0xff] %v10497_v34  ;;  %v7568_v63 = vpack.c.bf16 %v10491_v45, %v10495_v50 }
 0x570   :  { %v10501_v14 = vpop.f32.mrb[130].mxu0  ;;  %v10503_v39 = vpop.f32.mrb[194].mxu1 }
 0x571   :  { %12069 = vst [vmem:[#allocation5_spill] sm:$0xff] %v10503_v39  ;;  %v10505_v18 = vpop.f32.mrb[131].mxu0  ;;  %v10507_v55 = vpop.f32.mrb[195].mxu1 }
 0x572   :  { %12070 = vst [vmem:[#allocation4_spill] sm:$0xff] %v10507_v55  ;;  %v7574_v48 = vpack.c.bf16 %v10501_v14, %v10505_v18 }
 0x578   :  { %v10511_v59 = vpop.f32.mrb[132].mxu0  ;;  %v10513_v33 = vpop.f32.mrb[196].mxu1 }
 0x579   :  { %12071 = vst [vmem:[#allocation7_spill] sm:$0xff] %v10513_v33  ;;  %v10515_v13 = vpop.f32.mrb[133].mxu0  ;;  %v10517_v4 = vpop.f32.mrb[197].mxu1 }
 0x57a   :  { %12072 = vst [vmem:[#allocation6_spill] sm:$0xff] %v10517_v4  ;;  %v7580_v51 = vpack.c.bf16 %v10511_v59, %v10515_v13 }
 0x580   :  { %v10521_v5 = vpop.f32.mrb[134].mxu0  ;;  %v10523_v47 = vpop.f32.mrb[198].mxu1 }
 0x581   :  { %12073 = vst [vmem:[#allocation9_spill] sm:$0xff] %v10523_v47  ;;  %v10525_v30 = vpop.f32.mrb[135].mxu0  ;;  %v10527_v21 = vpop.f32.mrb[199].mxu1 }
 0x582   :  { %12074 = vst [vmem:[#allocation8_spill] sm:$0xff] %v10527_v21  ;;  %v7586_v17 = vpack.c.bf16 %v10521_v5, %v10525_v30 }
 0x589   :  { %v10531_v24 = vpop.f32.mrb[136].mxu0  ;;  %v10533_v1 = vpop.f32.mrb[200].mxu1 }
 0x58a   :  { %12075 = vst [vmem:[#allocation11_spill] sm:$0xff] %v10533_v1  ;;  %v10535_v12 = vpop.f32.mrb[137].mxu0  ;;  %v10537_v44 = vpop.f32.mrb[201].mxu1 }
 0x58b   :  { %12076 = vst [vmem:[#allocation10_spill] sm:$0xff] %v10537_v44  ;;  %v7592_v46 = vpack.c.bf16 %v10531_v24, %v10535_v12 }
 0x591   :  { %v10541_v26 = vpop.f32.mrb[138].mxu0  ;;  %v10543_v28 = vpop.f32.mrb[202].mxu1 }
 0x592   :  { %12077 = vst [vmem:[#allocation13_spill] sm:$0xff] %v10543_v28  ;;  %v10545_v61 = vpop.f32.mrb[139].mxu0  ;;  %v10547_v54 = vpop.f32.mrb[203].mxu1 }
 0x593   :  { %12078 = vst [vmem:[#allocation12_spill] sm:$0xff] %v10547_v54  ;;  %v7598_v32 = vpack.c.bf16 %v10541_v26, %v10545_v61 }
 0x599   :  { %v10551_v49 = vpop.f32.mrb[140].mxu0  ;;  %v10553_v29 = vpop.f32.mrb[204].mxu1 }
 0x59a   :  { %12079 = vst [vmem:[#allocation15_spill] sm:$0xff] %v10553_v29  ;;  %v10555_v38 = vpop.f32.mrb[141].mxu0  ;;  %v10557_v36 = vpop.f32.mrb[205].mxu1 }
 0x59b   :  { %12080 = vst [vmem:[#allocation14_spill] sm:$0xff] %v10557_v36  ;;  %v7604_v19 = vpack.c.bf16 %v10551_v49, %v10555_v38 }
 0x5a1   :  { %v10561_v16 = vpop.f32.mrb[142].mxu0  ;;  %v10563_v23 = vpop.f32.mrb[206].mxu1 }
 0x5a2   :  { %12081 = vst [vmem:[#allocation17_spill] sm:$0xff] %v10563_v23  ;;  %v10565_v40 = vpop.f32.mrb[143].mxu0  ;;  %v10567_v0 = vpop.f32.mrb[207].mxu1 }
 0x5a3   :  { %12082 = vst [vmem:[#allocation16_spill] sm:$0xff] %v10567_v0  ;;  %v7610_v31 = vpack.c.bf16 %v10561_v16, %v10565_v40 }
 0x5a9   :  { %v10571_v6 = vpop.f32.mrb[144].mxu0  ;;  %v10573_v8 = vpop.f32.mrb[208].mxu1 }
 0x5aa   :  { %12083 = vst [vmem:[#allocation19_spill] sm:$0xff] %v10573_v8  ;;  %v10575_v62 = vpop.f32.mrb[145].mxu0  ;;  %v10577_v52 = vpop.f32.mrb[209].mxu1 }
 0x5ab   :  { %12084 = vst [vmem:[#allocation18_spill] sm:$0xff] %v10577_v52  ;;  %v7565_v11 = vpack.c.bf16 %v10571_v6, %v10575_v62 }
 0x5ad   :  { %7567 = vmatprep.subr.msk.bf16.mxu0 %vm9079_vm2, %v7565_v11 }
 0x5ae   :  { %7570 = vmatpush3.bf16.xpose.msk.msra.mxu0 %vm9079_vm2, %v7568_v63 }
 0x5b1   :  { %v10585_v58 = vpop.f32.mrb[146].mxu0  ;;  %v10587_v23 = vpop.f32.mrb[210].mxu1 }
 0x5b2   :  { %12086 = vst [vmem:[#allocation22_spill] sm:$0xff] %v10587_v23  ;;  %v10589_v0 = vpop.f32.mrb[147].mxu0  ;;  %v10591_v8 = vpop.f32.mrb[211].mxu1 }
 0x5b3   :  { %12087 = vst [vmem:[#allocation21_spill] sm:$0xff] %v10591_v8  ;;  %v7571_v52 = vpack.c.bf16 %v10585_v58, %v10589_v0 }
 0x5b5   :  { %7573 = vmatprep.subr.msk.bf16.mxu0 %vm9079_vm2, %v7571_v52 }
 0x5b6   :  { %7576 = vmatpush3.bf16.xpose.msk.msra.mxu0 %vm9079_vm2, %v7574_v48 }
 0x5b9   :  { %v10599_v11 = vpop.f32.mrb[148].mxu0  ;;  %v10601_v63 = vpop.f32.mrb[212].mxu1 }
 0x5ba   :  { %12088 = vst [vmem:[#allocation24_spill] sm:$0xff] %v10601_v63  ;;  %v10603_v29 = vpop.f32.mrb[149].mxu0  ;;  %v10605_v23 = vpop.f32.mrb[213].mxu1 }
 0x5bb   :  { %12089 = vst [vmem:[#allocation23_spill] sm:$0xff] %v10605_v23  ;;  %v7577_v8 = vpack.c.bf16 %v10599_v11, %v10603_v29 }
 0x5bd   :  { %7579 = vmatprep.subr.msk.bf16.mxu0 %vm9079_vm2, %v7577_v8 }
 0x5be   :  { %7582 = vmatpush3.bf16.xpose.msk.msra.mxu0 %vm9079_vm2, %v7580_v51 }
 0x5c1   :  { %v10613_v52 = vpop.f32.mrb[150].mxu0  ;;  %v10615_v48 = vpop.f32.mrb[214].mxu1 }
 0x5c2   :  { %12090 = vst [vmem:[#allocation26_spill] sm:$0xff] %v10615_v48  ;;  %v10617_v36 = vpop.f32.mrb[151].mxu0  ;;  %v10619_v63 = vpop.f32.mrb[215].mxu1 }
 0x5c3   :  { %12091 = vst [vmem:[#allocation25_spill] sm:$0xff] %v10619_v63  ;;  %v7583_v23 = vpack.c.bf16 %v10613_v52, %v10617_v36 }
 0x5c5   :  { %7585 = vmatprep.subr.msk.bf16.mxu0 %vm9079_vm2, %v7583_v23 }
 0x5c6   :  { %7588 = vmatpush3.bf16.xpose.msk.msra.mxu0 %vm9079_vm2, %v7586_v17 }
 0x5c9   :  { %v10627_v8 = vpop.f32.mrb[152].mxu0  ;;  %v10629_v51 = vpop.f32.mrb[216].mxu1 }
 0x5ca   :  { %12092 = vst [vmem:[#allocation28_spill] sm:$0xff] %v10629_v51  ;;  %v10631_v28 = vpop.f32.mrb[153].mxu0  ;;  %v10633_v48 = vpop.f32.mrb[217].mxu1 }
 0x5cb   :  { %12093 = vst [vmem:[#allocation27_spill] sm:$0xff] %v10633_v48  ;;  %v7589_v63 = vpack.c.bf16 %v10627_v8, %v10631_v28 }
 0x5cd   :  { %7591 = vmatprep.subr.msk.bf16.mxu0 %vm9079_vm2, %v7589_v63 }
 0x5ce   :  { %7594 = vmatpush3.bf16.xpose.msk.msra.mxu0 %vm9079_vm2, %v7592_v46 }
 0x5d1   :  { %v10641_v23 = vpop.f32.mrb[154].mxu0  ;;  %v10643_v17 = vpop.f32.mrb[218].mxu1 }
 0x5d2   :  { %12094 = vst [vmem:[#allocation30_spill] sm:$0xff] %v10643_v17  ;;  %v10645_v54 = vpop.f32.mrb[155].mxu0  ;;  %v10647_v51 = vpop.f32.mrb[219].mxu1 }
 0x5d3   :  { %12095 = vst [vmem:[#allocation29_spill] sm:$0xff] %v10647_v51  ;;  %v7595_v48 = vpack.c.bf16 %v10641_v23, %v10645_v54 }
 0x5d5   :  { %7597 = vmatprep.subr.msk.bf16.mxu0 %vm9079_vm2, %v7595_v48 }
 0x5d6   :  { %7600 = vmatpush3.bf16.xpose.msk.msra.mxu0 %vm9079_vm2, %v7598_v32 }
 0x5d9   :  { %v10655_v63 = vpop.f32.mrb[156].mxu0  ;;  %v10657_v46 = vpop.f32.mrb[220].mxu1 }
 0x5da   :  { %12096 = vst [vmem:[#allocation32_spill] sm:$0xff] %v10657_v46  ;;  %v10659_v1 = vpop.f32.mrb[157].mxu0  ;;  %v10661_v17 = vpop.f32.mrb[221].mxu1 }
 0x5db   :  { %12097 = vst [vmem:[#allocation31_spill] sm:$0xff] %v10661_v17  ;;  %v7601_v51 = vpack.c.bf16 %v10655_v63, %v10659_v1 }
 0x5dd   :  { %7603 = vmatprep.subr.msk.bf16.mxu0 %vm9079_vm2, %v7601_v51 }
 0x5de   :  { %7606 = vmatpush3.bf16.xpose.msk.msra.mxu0 %vm9079_vm2, %v7604_v19 }
 0x5e1   :  { %v10669_v48 = vpop.f32.mrb[158].mxu0  ;;  %v10671_v32 = vpop.f32.mrb[222].mxu1 }
 0x5e2   :  { %12098 = vst [vmem:[#allocation34_spill] sm:$0xff] %v10671_v32  ;;  %v10673_v44 = vpop.f32.mrb[159].mxu0  ;;  %v10675_v46 = vpop.f32.mrb[223].mxu1 }
 0x5e3   :  { %12099 = vst [vmem:[#allocation33_spill] sm:$0xff] %v10675_v46  ;;  %v7607_v17 = vpack.c.bf16 %v10669_v48, %v10673_v44 }
 0x5e5   :  { %v7199_v47 = vpop.f32.mrb[160].mxu0  ;;  %7609 = vmatprep.subr.msk.bf16.mxu0 %vm9079_vm2, %v7607_v17 }
 0x5e6   :  { %v4574_v51 = vadd.f32 %v7199_v47, %v10491_v45  ;;  %v3324_v21 = vpop.f32.mrb[161].mxu0  ;;  %7612 = vmatpush3.bf16.xpose.msk.msra.mxu0 %vm9079_vm2, %v7610_v31 }
 0x5e7   :  { %v4573_v19 = vadd.f32 %v3324_v21, %v10495_v50  ;;  %v7662_v32 = vpack.c.bf16 %v7199_v47, %v3324_v21  ;;  %6801 = vmatprep.mubr.msk.f32.mxu0 %vm518_vm1, %v3324_v21  ;;  %7661 = vmatprep.subr.bf16.mxu0 %v12045_v43 }
 0x5e9   :  { %v7202_v46 = vpop.f32.mrb[162].mxu0  ;;  %v7614_v33 = vpack.c.bf16 %v4574_v51, %v4573_v19 }
 0x5ea   :  { %v4576_v4 = vadd.f32 %v7202_v46, %v10501_v14  ;;  %v3334_v39 = vpop.f32.mrb[163].mxu0 }
 0x5eb   :  { %v4575_v17 = vadd.f32 %v3334_v39, %v10505_v18  ;;  %v7665_v55 = vpack.c.bf16 %v7202_v46, %v3334_v39  ;;  %7615 = vmatpush1.bf16.msra.mxu1 %v7614_v33 }
 0x5ec   :  { %7616 = vmatprep.subr.bf16.mxu1 %v12045_v43 }
 0x5ed   :  { %v7205_v45 = vpop.f32.mrb[164].mxu0  ;;  %6802 = vmatmul.mubr.msk.f32.vlgmr.msra.gmra.mrb[192].mxu0 %vm518_vm1, %v3324_v21  ;;  %v7617_v50 = vpack.c.bf16 %v4576_v4, %v4575_v17 }
 0x5ee   :  { %v4578_v31 = vadd.f32 %v7205_v45, %v10511_v59  ;;  %v3344_v3 = vpop.f32.mrb[165].mxu0  ;;  %6803 = vmatprep.mubr.msk.f32.mxu0 %vm518_vm1, %v7199_v47  ;;  %7663 = vmatpush1.bf16.msra.mxu0 %v7662_v32 }
 0x5ef   :  { %v4577_v51 = vadd.f32 %v3344_v3, %v10515_v13  ;;  %v7668_v14 = vpack.c.bf16 %v7205_v45, %v3344_v3  ;;  %7618 = vmatpush1.bf16.msra.mxu1 %v7617_v50  ;;  %7664 = vmatprep.subr.bf16.mxu0 %v12045_v43 }
 0x5f0   :  { %7619 = vmatprep.subr.bf16.mxu1 %v12045_v43 }
 0x5f1   :  { %v10696_v18 = vpop.f32.mrb[166].mxu0  ;;  %6804 = vmatmul.mubr.msk.f32.gmra.mrb[194].mxu0 %vm518_vm1, %v7199_v47  ;;  %v7620_v33 = vpack.c.bf16 %v4578_v31, %v4577_v51 }
 0x5f2   :  { %v4580_v59 = vadd.f32 %v10696_v18, %v10521_v5  ;;  %v3354_v4 = vpop.f32.mrb[167].mxu0  ;;  %6805 = vmatprep.mubr.msk.f32.mxu0 %vm518_vm1, %v3334_v39  ;;  %7666 = vmatpush1.bf16.msra.mxu0 %v7665_v55 }
 0x5f3   :  { %v4579_v13 = vadd.f32 %v3354_v4, %v10525_v30  ;;  %v7671_v21 = vpack.c.bf16 %v10696_v18, %v3354_v4  ;;  %7621 = vmatpush1.bf16.msra.mxu1 %v7620_v33  ;;  %7667 = vmatprep.subr.bf16.mxu0 %v12045_v43 }
 0x5f4   :  { %7622 = vmatprep.subr.bf16.mxu1 %v12045_v43 }
 0x5f5   :  { %v10706_v32 = vpop.f32.mrb[168].mxu0  ;;  %6806 = vmatmul.mubr.msk.f32.gmra.mrb[196].mxu0 %vm518_vm1, %v3334_v39  ;;  %v7623_v47 = vpack.c.bf16 %v4580_v59, %v4579_v13 }
 0x5f6   :  { %v4582_v5 = vadd.f32 %v10706_v32, %v10531_v24  ;;  %v10711_v19 = vpop.f32.mrb[169].mxu0  ;;  %6807 = vmatprep.mubr.msk.f32.mxu0 %vm518_vm1, %v7202_v46  ;;  %7669 = vmatpush1.bf16.msra.mxu0 %v7668_v14 }
 0x5f7   :  { %v4581_v55 = vadd.f32 %v10711_v19, %v10535_v12  ;;  %v7674_v30 = vpack.c.bf16 %v10706_v32, %v10711_v19  ;;  %7624 = vmatpush1.bf16.msra.mxu1 %v7623_v47  ;;  %7670 = vmatprep.subr.bf16.mxu0 %v12045_v43 }
 0x5f8   :  { %7625 = vmatprep.subr.bf16.mxu1 %v12045_v43 }
 0x5f9   :  { %v10720_v39 = vpop.f32.mrb[170].mxu0  ;;  %6808 = vmatmul.mubr.msk.f32.gmra.mrb[198].mxu0 %vm518_vm1, %v7202_v46  ;;  %v7626_v24 = vpack.c.bf16 %v4582_v5, %v4581_v55 }
 0x5fa   :  { %v4584_v17 = vadd.f32 %v10720_v39, %v10541_v26  ;;  %v10725_v50 = vpop.f32.mrb[171].mxu0  ;;  %6809 = vmatprep.mubr.msk.f32.mxu0 %vm518_vm1, %v3344_v3  ;;  %7672 = vmatpush1.bf16.msra.mxu0 %v7671_v21 }
 0x5fb   :  { %v4583_v12 = vadd.f32 %v10725_v50, %v10545_v61  ;;  %v7677_v31 = vpack.c.bf16 %v10720_v39, %v10725_v50  ;;  %7627 = vmatpush1.bf16.msra.mxu1 %v7626_v24  ;;  %7673 = vmatprep.subr.bf16.mxu0 %v12045_v43 }
 0x5fc   :  { %7628 = vmatprep.subr.bf16.mxu1 %v12045_v43 }
 0x5fd   :  { %v10734_v46 = vpop.f32.mrb[172].mxu0  ;;  %6810 = vmatmul.mubr.msk.f32.gmra.mrb[200].mxu0 %vm518_vm1, %v3344_v3  ;;  %v7629_v26 = vpack.c.bf16 %v4584_v17, %v4583_v12 }
 0x5fe   :  { %v4586_v51 = vadd.f32 %v10734_v46, %v10551_v49  ;;  %v10739_v14 = vpop.f32.mrb[173].mxu0  ;;  %6811 = vmatprep.mubr.msk.f32.mxu0 %vm518_vm1, %v7205_v45  ;;  %7675 = vmatpush1.bf16.msra.mxu0 %v7674_v30 }
 0x5ff   :  { %v4585_v61 = vadd.f32 %v10739_v14, %v10555_v38  ;;  %v7680_v33 = vpack.c.bf16 %v10734_v46, %v10739_v14  ;;  %7630 = vmatpush1.bf16.msra.mxu1 %v7629_v26  ;;  %7676 = vmatprep.subr.bf16.mxu0 %v12045_v43 }
 0x600   :  { %7631 = vmatprep.subr.bf16.mxu1 %v12045_v43 }
 0x601   :  { %v10748_v3 = vpop.f32.mrb[174].mxu0  ;;  %6812 = vmatmul.mubr.msk.f32.gmra.mrb[202].mxu0 %vm518_vm1, %v7205_v45  ;;  %v7632_v49 = vpack.c.bf16 %v4586_v51, %v4585_v61 }
 0x602   :  { %v4588_v59 = vadd.f32 %v10748_v3, %v10561_v16  ;;  %v10753_v13 = vpop.f32.mrb[175].mxu0  ;;  %6813 = vmatprep.mubr.msk.f32.mxu0 %vm518_vm1, %v3354_v4  ;;  %7678 = vmatpush1.bf16.msra.mxu0 %v7677_v31 }
 0x603   :  { %v4587_v38 = vadd.f32 %v10753_v13, %v10565_v40  ;;  %v7683_v21 = vpack.c.bf16 %v10748_v3, %v10753_v13  ;;  %7633 = vmatpush1.bf16.msra.mxu1 %v7632_v49  ;;  %7679 = vmatprep.subr.bf16.mxu0 %v12045_v43 }
 0x604   :  { %7634 = vmatprep.subr.bf16.mxu1 %v12045_v43 }
 0x605   :  { %v10762_v45 = vpop.f32.mrb[176].mxu0  ;;  %6814 = vmatmul.mubr.msk.f32.gmra.mrb[204].mxu0 %vm518_vm1, %v3354_v4  ;;  %v7635_v16 = vpack.c.bf16 %v4588_v59, %v4587_v38 }
 0x606   :  { %v4590_v47 = vadd.f32 %v10762_v45, %v10571_v6  ;;  %v10767_v5 = vpop.f32.mrb[177].mxu0  ;;  %6815 = vmatprep.mubr.msk.f32.mxu0 %vm518_vm1, %v10696_v18  ;;  %7681 = vmatpush1.bf16.msra.mxu0 %v7680_v33 }
 0x607   :  { %v4589_v40 = vadd.f32 %v10767_v5, %v10575_v62  ;;  %v7686_v55 = vpack.c.bf16 %v10762_v45, %v10767_v5  ;;  %7636 = vmatpush1.bf16.msra.mxu1 %v7635_v16  ;;  %7682 = vmatprep.subr.bf16.mxu0 %v12045_v43 }
 0x608   :  { %7637 = vmatprep.subr.bf16.mxu1 %v12045_v43 }
 0x609   :  { %v10777_v4 = vpop.f32.mrb[178].mxu0  ;;  %6816 = vmatmul.mubr.msk.f32.gmra.mrb[206].mxu0 %vm518_vm1, %v10696_v18  ;;  %v7638_v6 = vpack.c.bf16 %v4590_v47, %v4589_v40 }
 0x60a   :  { %v4592_v30 = vadd.f32 %v10777_v4, %v10585_v58  ;;  %v10783_v24 = vpop.f32.mrb[179].mxu0  ;;  %6817 = vmatprep.mubr.msk.f32.mxu0 %vm518_vm1, %v10711_v19  ;;  %7684 = vmatpush1.bf16.msra.mxu0 %v7683_v21 }
 0x60b   :  { %v4591_v62 = vadd.f32 %v10783_v24, %v10589_v0  ;;  %v7689_v17 = vpack.c.bf16 %v10777_v4, %v10783_v24  ;;  %7639 = vmatpush1.bf16.msra.mxu1 %v7638_v6  ;;  %7685 = vmatprep.subr.bf16.mxu0 %v12045_v43 }
 0x60c   :  { %7640 = vmatprep.subr.bf16.mxu1 %v12045_v43 }
 0x60d   :  { %v10793_v18 = vpop.f32.mrb[180].mxu0  ;;  %6818 = vmatmul.mubr.msk.f32.gmra.mrb[208].mxu0 %vm518_vm1, %v10711_v19  ;;  %v7641_v58 = vpack.c.bf16 %v4592_v30, %v4591_v62 }
 0x60e   :  { %v4594_v12 = vadd.f32 %v10793_v18, %v10599_v11  ;;  %v10799_v31 = vpop.f32.mrb[181].mxu0  ;;  %6819 = vmatprep.mubr.msk.f32.mxu0 %vm518_vm1, %v10706_v32  ;;  %7687 = vmatpush1.bf16.msra.mxu0 %v7686_v55 }
 0x60f   :  { %v4593_v0 = vadd.f32 %v10799_v31, %v10603_v29  ;;  %v7692_v26 = vpack.c.bf16 %v10793_v18, %v10799_v31  ;;  %7642 = vmatpush1.bf16.msra.mxu1 %v7641_v58  ;;  %7688 = vmatprep.subr.bf16.mxu0 %v12045_v43  ;;  %v12110_v58 = vld [vmem:[#allocation45_spill] sm:$0xff] }
 0x610   :  { %7643 = vmatprep.subr.bf16.mxu1 %v12045_v43 }
 0x611   :  { %v10809_v19 = vpop.f32.mrb[182].mxu0  ;;  %6820 = vmatmul.mubr.msk.f32.gmra.mrb[210].mxu0 %vm518_vm1, %v10706_v32  ;;  %v7644_v11 = vpack.c.bf16 %v4594_v12, %v4593_v0  ;;  %v12111_v12 = vld [vmem:[#allocation46_spill] sm:$0xff]  ;;  %v12113_v0 = vld [vmem:[#allocation48_spill] sm:$0xff] }
 0x612   :  { %v4596_v51 = vadd.f32 %v10809_v19, %v10613_v52  ;;  %v10815_v61 = vpop.f32.mrb[183].mxu0  ;;  %6821 = vmatprep.mubr.msk.f32.mxu0 %vm518_vm1, %v10725_v50  ;;  %7690 = vmatpush1.bf16.msra.mxu0 %v7689_v17 }
 0x613   :  { %v4595_v29 = vadd.f32 %v10815_v61, %v10617_v36  ;;  %v7695_v33 = vpack.c.bf16 %v10809_v19, %v10815_v61  ;;  %7645 = vmatpush1.bf16.msra.mxu1 %v7644_v11  ;;  %7691 = vmatprep.subr.bf16.mxu0 %v12045_v43  ;;  %v12116_v11 = vld [vmem:[#allocation51_spill] sm:$0xff] }
 0x614   :  { %7646 = vmatprep.subr.bf16.mxu1 %v12045_v43 }
 0x615   :  { %v10825_v32 = vpop.f32.mrb[184].mxu0  ;;  %6822 = vmatmul.mubr.msk.f32.gmra.mrb[212].mxu0 %vm518_vm1, %v10725_v50  ;;  %v7647_v52 = vpack.c.bf16 %v4596_v51, %v4595_v29  ;;  %v12117_v51 = vld [vmem:[#allocation52_spill] sm:$0xff]  ;;  %v12119_v29 = vld [vmem:[#allocation54_spill] sm:$0xff] }
 0x616   :  { %v4598_v49 = vadd.f32 %v10825_v32, %v10627_v8  ;;  %v10831_v59 = vpop.f32.mrb[185].mxu0  ;;  %6823 = vmatprep.mubr.msk.f32.mxu0 %vm518_vm1, %v10720_v39  ;;  %7693 = vmatpush1.bf16.msra.mxu0 %v7692_v26  ;;  %v12114_v26 = vld [vmem:[#allocation49_spill] sm:$0xff] }
 0x617   :  { %v4597_v36 = vadd.f32 %v10831_v59, %v10631_v28  ;;  %v7698_v38 = vpack.c.bf16 %v10825_v32, %v10831_v59  ;;  %7648 = vmatpush1.bf16.msra.mxu1 %v7647_v52  ;;  %7694 = vmatprep.subr.bf16.mxu0 %v12045_v43  ;;  %v12122_v52 = vld [vmem:[#allocation57_spill] sm:$0xff] }
 0x618   :  { %7649 = vmatprep.subr.bf16.mxu1 %v12045_v43 }
 0x619   :  { %v10841_v50 = vpop.f32.mrb[186].mxu0  ;;  %6824 = vmatmul.mubr.msk.f32.gmra.mrb[214].mxu0 %vm518_vm1, %v10720_v39  ;;  %v7650_v8 = vpack.c.bf16 %v4598_v49, %v4597_v36  ;;  %v12123_v49 = vld [vmem:[#allocation58_spill] sm:$0xff]  ;;  %v12125_v36 = vld [vmem:[#allocation60_spill] sm:$0xff] }
 0x61a   :  { %v4600_v21 = vadd.f32 %v10841_v50, %v10641_v23  ;;  %v3454_v16 = vpop.f32.mrb[187].mxu0  ;;  %6825 = vmatprep.mubr.msk.f32.mxu0 %vm518_vm1, %v10739_v14  ;;  %7696 = vmatpush1.bf16.msra.mxu0 %v7695_v33  ;;  %v12120_v33 = vld [vmem:[#allocation55_spill] sm:$0xff] }
 0x61b   :  { %v4599_v28 = vadd.f32 %v3454_v16, %v10645_v54  ;;  %v7701_v47 = vpack.c.bf16 %v10841_v50, %v3454_v16  ;;  %7651 = vmatpush1.bf16.msra.mxu1 %v7650_v8  ;;  %7697 = vmatprep.subr.bf16.mxu0 %v12045_v43 }
 0x61c   :  { %7652 = vmatprep.subr.bf16.mxu1 %v12045_v43 }
 0x61d   :  { %v7241_v40 = vpop.f32.mrb[188].mxu0  ;;  %6826 = vmatmul.mubr.msk.f32.gmra.mrb[216].mxu0 %vm518_vm1, %v10739_v14  ;;  %v7653_v39 = vpack.c.bf16 %v4600_v21, %v4599_v28 }
 0x61e   :  { %v4602_v23 = vadd.f32 %v7241_v40, %v10655_v63  ;;  %v3464_v55 = vpop.f32.mrb[189].mxu0  ;;  %6827 = vmatprep.mubr.msk.f32.mxu0 %vm518_vm1, %v10734_v46  ;;  %7699 = vmatpush1.bf16.msra.mxu0 %v7698_v38  ;;  %v12126_v38 = vld [vmem:[#allocation61_spill] sm:$0xff] }
 0x61f   :  { %v4601_v54 = vadd.f32 %v3464_v55, %v10659_v1  ;;  %v7704_v6 = vpack.c.bf16 %v7241_v40, %v3464_v55  ;;  %7654 = vmatpush1.bf16.msra.mxu1 %v7653_v39  ;;  %7700 = vmatprep.subr.bf16.mxu0 %v12045_v43 }
 0x620   :  { %7655 = vmatprep.subr.bf16.mxu1 %v12045_v43 }
 0x621   :  { %v7244_v30 = vpop.f32.mrb[190].mxu0  ;;  %6828 = vmatmul.mubr.msk.f32.gmra.mrb[218].mxu0 %vm518_vm1, %v10734_v46  ;;  %v7656_v14 = vpack.c.bf16 %v4602_v23, %v4601_v54 }
 0x622   :  { %v4604_v63 = vadd.f32 %v7244_v30, %v10669_v48  ;;  %v3474_v62 = vpop.f32.mrb[191].mxu0  ;;  %6829 = vmatprep.mubr.msk.f32.mxu0 %vm518_vm1, %v10753_v13  ;;  %7702 = vmatpush1.bf16.msra.mxu0 %v7701_v47  ;;  %v12102_v48 = vld [vmem:[#allocation37_spill] sm:$0xff]  ;;  %v12128_v47 = vld [vmem:[#allocation63_spill] sm:$0xff] }
 0x623   :  { %v4603_v1 = vadd.f32 %v3474_v62, %v10673_v44  ;;  %v7707_v17 = vpack.c.bf16 %v7244_v30, %v3474_v62  ;;  %7657 = vmatpush1.bf16.msra.mxu1 %v7656_v14  ;;  %7703 = vmatprep.subr.bf16.mxu0 %v12045_v43  ;;  %v12101_v44 = vld [vmem:[#allocation36_spill] sm:$0xff]  ;;  %v12130_v14 = vld [vmem:[#allocation65_spill] sm:$0xff] }
 0x624   :  { %7658 = vmatprep.subr.bf16.mxu1 %v12045_v43 }
 0x625   :  { %6830 = vmatmul.mubr.msk.f32.gmra.mrb[220].mxu0 %vm518_vm1, %v10753_v13  ;;  %v7659_v46 = vpack.c.bf16 %v4604_v63, %v4603_v1  ;;  %v12104_v13 = vld [vmem:[#allocation39_spill] sm:$0xff] }
 0x626   :  { %6831 = vmatprep.mubr.msk.f32.mxu0 %vm518_vm1, %v10748_v3  ;;  %7705 = vmatpush1.bf16.msra.mxu0 %v7704_v6  ;;  %v12129_v6 = vld [vmem:[#allocation64_spill] sm:$0xff] }
 0x627   :  { %7660 = vmatpush1.bf16.msra.mxu1 %v7659_v46  ;;  %7706 = vmatprep.subr.bf16.mxu0 %v12045_v43  ;;  %v12100_v43 = vld [vmem:[#allocation35_spill] sm:$0xff] }
 0x629   :  { %6832 = vmatmul.mubr.msk.f32.gmra.mrb[222].mxu0 %vm518_vm1, %v10748_v3  ;;  %v12103_v3 = vld [vmem:[#allocation38_spill] sm:$0xff] }
 0x62a   :  { %6833 = vmatprep.mubr.msk.f32.mxu0 %vm518_vm1, %v10767_v5  ;;  %7708 = vmatpush1.bf16.msra.mxu0 %v7707_v17 }
 0x62d   :  { %6834 = vmatmul.mubr.msk.f32.gmra.mrb[224].mxu0 %vm518_vm1, %v10767_v5  ;;  %v12106_v5 = vld [vmem:[#allocation41_spill] sm:$0xff] }
 0x62e   :  { %6835 = vmatprep.mubr.msk.f32.mxu0 %vm518_vm1, %v10762_v45 }
 0x631   :  { %6836 = vmatmul.mubr.msk.f32.gmra.mrb[226].mxu0 %vm518_vm1, %v10762_v45  ;;  %v12105_v45 = vld [vmem:[#allocation40_spill] sm:$0xff] }
 0x632   :  { %6837 = vmatprep.mubr.msk.f32.mxu0 %vm518_vm1, %v10783_v24 }
 0x635   :  { %6838 = vmatmul.mubr.msk.f32.gmra.mrb[228].mxu0 %vm518_vm1, %v10783_v24  ;;  %v12108_v24 = vld [vmem:[#allocation43_spill] sm:$0xff] }
 0x636   :  { %6839 = vmatprep.mubr.msk.f32.mxu0 %vm518_vm1, %v10777_v4 }
 0x639   :  { %6840 = vmatmul.mubr.msk.f32.gmra.mrb[230].mxu0 %vm518_vm1, %v10777_v4  ;;  %v12107_v4 = vld [vmem:[#allocation42_spill] sm:$0xff] }
 0x63a   :  { %6841 = vmatprep.mubr.msk.f32.mxu0 %vm518_vm1, %v10799_v31 }
 0x63d   :  { %6842 = vmatmul.mubr.msk.f32.gmra.mrb[232].mxu0 %vm518_vm1, %v10799_v31  ;;  %v12112_v31 = vld [vmem:[#allocation47_spill] sm:$0xff] }
 0x63e   :  { %6843 = vmatprep.mubr.msk.f32.mxu0 %vm518_vm1, %v10793_v18 }
 0x641   :  { %6844 = vmatmul.mubr.msk.f32.gmra.mrb[234].mxu0 %vm518_vm1, %v10793_v18  ;;  %v12109_v18 = vld [vmem:[#allocation44_spill] sm:$0xff] }
 0x642   :  { %6845 = vmatprep.mubr.msk.f32.mxu0 %vm518_vm1, %v10815_v61 }
 0x645   :  { %6846 = vmatmul.mubr.msk.f32.gmra.mrb[236].mxu0 %vm518_vm1, %v10815_v61  ;;  %v12118_v61 = vld [vmem:[#allocation53_spill] sm:$0xff] }
 0x646   :  { %6847 = vmatprep.mubr.msk.f32.mxu0 %vm518_vm1, %v10809_v19 }
 0x649   :  { %6848 = vmatmul.mubr.msk.f32.gmra.mrb[238].mxu0 %vm518_vm1, %v10809_v19  ;;  %v12115_v19 = vld [vmem:[#allocation50_spill] sm:$0xff] }
 0x64a   :  { %6849 = vmatprep.mubr.msk.f32.mxu0 %vm518_vm1, %v10831_v59 }
 0x64d   :  { %6850 = vmatmul.mubr.msk.f32.gmra.mrb[240].mxu0 %vm518_vm1, %v10831_v59  ;;  %v12124_v59 = vld [vmem:[#allocation59_spill] sm:$0xff] }
 0x64e   :  { %6851 = vmatprep.mubr.msk.f32.mxu0 %vm518_vm1, %v10825_v32 }
 0x651   :  { %6852 = vmatmul.mubr.msk.f32.gmra.mrb[242].mxu0 %vm518_vm1, %v10825_v32  ;;  %v12121_v32 = vld [vmem:[#allocation56_spill] sm:$0xff] }
 0x652   :  { %6853 = vmatprep.mubr.msk.f32.mxu0 %vm518_vm1, %v3454_v16 }
 0x655   :  { %6854 = vmatmul.mubr.msk.f32.gmra.mrb[244].mxu0 %vm518_vm1, %v3454_v16  ;;  %v12127_v16 = vld [vmem:[#allocation62_spill] sm:$0xff] }
 0x656   :  { %6855 = vmatprep.mubr.msk.f32.mxu0 %vm518_vm1, %v10841_v50 }
 0x659   :  { %6856 = vmatmul.mubr.msk.f32.gmra.mrb[246].mxu0 %vm518_vm1, %v10841_v50 }
 0x65a   :  { %6857 = vmatprep.mubr.msk.f32.mxu0 %vm518_vm1, %v3464_v55 }
 0x65d   :  { %6858 = vmatmul.mubr.msk.f32.gmra.mrb[248].mxu0 %vm518_vm1, %v3464_v55 }
 0x65e   :  { %6859 = vmatprep.mubr.msk.f32.mxu0 %vm518_vm1, %v7241_v40 }
 0x661   :  { %6860 = vmatmul.mubr.msk.f32.gmra.mrb[250].mxu0 %vm518_vm1, %v7241_v40 }
 0x662   :  { %6861 = vmatprep.mubr.msk.f32.mxu0 %vm518_vm1, %v3474_v62 }
 0x665   :  { %6862 = vmatmul.mubr.msk.f32.gmra.mrb[252].mxu0 %vm518_vm1, %v3474_v62 }
 0x666   :  { %6863 = vmatprep.mubr.msk.f32.mxu0 %vm518_vm1, %v7244_v30 }
 0x669   :  { %6864 = vmatmul.mubr.msk.f32.gmra.mrb[254].mxu0 %vm518_vm1, %v7244_v30 }
 0x66a   :  { %4926 = vmatprep.mubr.f32.mxu0 %v12100_v43 }
 0x66d   :  { %4927 = vmatmul.mubr.f32.vlgmr.msra.gmra.mrb[0].mxu0 %v12101_v44 }
 0x66e   :  { %4931 = vmatprep.mubr.f32.mxu0 %v9568_v2 }
 0x671   :  { %4932 = vmatmul.mubr.f32.gmra.mrb[2].mxu0 %v12102_v48 }
 0x672   :  { %4936 = vmatprep.mubr.f32.mxu0 %v12103_v3 }
 0x675   :  { %4937 = vmatmul.mubr.f32.gmra.mrb[4].mxu0 %v12104_v13 }
 0x676   :  { %4941 = vmatprep.mubr.f32.mxu0 %v9586_v27 }
 0x679   :  { %4942 = vmatmul.mubr.f32.gmra.mrb[6].mxu0 %v9593_v22 }
 0x67a   :  { %4946 = vmatprep.mubr.f32.mxu0 %v9595_v15 }
 0x67d   :  { %4947 = vmatmul.mubr.f32.gmra.mrb[8].mxu0 %v9602_v37 }
 0x67e   :  { %4951 = vmatprep.mubr.f32.mxu0 %v9604_v10 }
 0x681   :  { %4952 = vmatmul.mubr.f32.gmra.mrb[10].mxu0 %v9611_v20 }
 0x682   :  { %4956 = vmatprep.mubr.f32.mxu0 %v9613_v35 }
 0x685   :  { %4957 = vmatmul.mubr.f32.gmra.mrb[12].mxu0 %v9620_v57 }
 0x686   :  { %4961 = vmatprep.mubr.f32.mxu0 %v9622_v42 }
 0x689   :  { %4962 = vmatmul.mubr.f32.gmra.mrb[14].mxu0 %v9629_v9 }
 0x68a   :  { %4966 = vmatprep.mubr.f32.mxu0 %v9631_v60 }
 0x68d   :  { %4967 = vmatmul.mubr.f32.gmra.mrb[16].mxu0 %v12105_v45 }
 0x68e   :  { %4971 = vmatprep.mubr.f32.mxu0 %v9640_v25 }
 0x691   :  { %4972 = vmatmul.mubr.f32.gmra.mrb[18].mxu0 %v9647_v41 }
 0x692   :  { %4976 = vmatprep.mubr.f32.mxu0 %v9649_v7 }
 0x695   :  { %4977 = vmatmul.mubr.f32.gmra.mrb[20].mxu0 %v9656_v56 }
 0x696   :  { %4981 = vmatprep.mubr.f32.mxu0 %v12106_v5 }
 0x699   :  { %4982 = vmatmul.mubr.f32.gmra.mrb[22].mxu0 %v12107_v4 }
 0x69a   :  { %4986 = vmatprep.mubr.f32.mxu0 %v12108_v24 }
 0x69d   :  { %4987 = vmatmul.mubr.f32.gmra.mrb[24].mxu0 %v12109_v18 }
 0x69e   :  { %4991 = vmatprep.mubr.f32.mxu0 %v12110_v58 }
 0x6a1   :  { %4992 = vmatmul.mubr.f32.gmra.mrb[26].mxu0 %v12111_v12 }
 0x6a2   :  { %4996 = vmatprep.mubr.f32.mxu0 %v12112_v31 }
 0x6a5   :  { %4997 = vmatmul.mubr.f32.gmra.mrb[28].mxu0 %v12113_v0 }
 0x6a6   :  { %5001 = vmatprep.mubr.f32.mxu0 %v12114_v26 }
 0x6a9   :  { %5002 = vmatmul.mubr.f32.gmra.mrb[30].mxu0 %v12115_v19 }
 0x6aa   :  { %5006 = vmatprep.mubr.f32.mxu0 %v12116_v11 }
 0x6ad   :  { %5007 = vmatmul.mubr.f32.gmra.mrb[32].mxu0 %v12117_v51 }
 0x6ae   :  { %5011 = vmatprep.mubr.f32.mxu0 %v12118_v61 }
 0x6b1   :  { %5012 = vmatmul.mubr.f32.gmra.mrb[34].mxu0 %v12119_v29 }
 0x6b2   :  { %5016 = vmatprep.mubr.f32.mxu0 %v12120_v33 }
 0x6b5   :  { %5017 = vmatmul.mubr.f32.gmra.mrb[36].mxu0 %v12121_v32 }
 0x6b6   :  { %5021 = vmatprep.mubr.f32.mxu0 %v12122_v52 }
 0x6b9   :  { %5022 = vmatmul.mubr.f32.gmra.mrb[38].mxu0 %v12123_v49 }
 0x6ba   :  { %5026 = vmatprep.mubr.f32.mxu0 %v12124_v59 }
 0x6bd   :  { %5027 = vmatmul.mubr.f32.gmra.mrb[40].mxu0 %v12125_v36 }
 0x6be   :  { %5031 = vmatprep.mubr.f32.mxu0 %v12126_v38 }
 0x6c0   :  { %v3998_v50 = vpop.f32.mrb[192].mxu0 }
 0x6c1   :  { %v4189_v8 = vmin.f32 %v3998_v50, 80.0  ;;  %v4000_v21 = vpop.f32.mrb[193].mxu0  ;;  %5032 = vmatmul.mubr.f32.gmra.mrb[42].mxu0 %v12127_v16  ;;  %v12131_v50 = vld [vmem:[#allocation66_spill] sm:$0xff] }
 0x6c2   :  { %v4190_v28 = vmin.f32 %v4000_v21, 80.0  ;;  %5036 = vmatprep.mubr.f32.mxu0 %v12128_v47  ;;  %v12132_v21 = vld [vmem:[#allocation67_spill] sm:$0xff] }
 0x6c3   :  { %v4253_v40 = vmul.f32 1.442695, %v4189_v8 }
 0x6c4   :  { %v4255_v39 = vmul.f32 1.442695, %v4190_v28  ;;  %v4004_v23 = vpop.f32.mrb[194].mxu0 }
 0x6c5   :  { %8038 = vpow2.f32 %v4253_v40  ;;  %v4191_v55 = vmin.f32 %v4004_v23, 80.0  ;;  %v4006_v54 = vpop.f32.mrb[195].mxu0  ;;  %5037 = vmatmul.mubr.f32.gmra.mrb[44].mxu0 %v12129_v6 }
 0x6c6   :  { %8040 = vpow2.f32 %v4255_v39  ;;  %v4192_v30 = vmin.f32 %v4006_v54, 80.0  ;;  %5041 = vmatprep.mubr.f32.mxu0 %v12130_v14 }
 0x6c7   :  { %v4257_v63 = vmul.f32 1.442695, %v4191_v55 }
 0x6c8   :  { %v4259_v62 = vmul.f32 1.442695, %v4192_v30  ;;  %v4010_v1 = vpop.f32.mrb[196].mxu0  ;;  %v12134_v30 = vld [vmem:[#allocation69_spill] sm:$0xff] }
 0x6c9   :  { %8042 = vpow2.f32 %v4257_v63  ;;  %v4193_v17 = vmin.f32 %v4010_v1, 80.0  ;;  %v4012_v46 = vpop.f32.mrb[197].mxu0  ;;  %5042 = vmatmul.mubr.f32.gmra.mrb[46].mxu0 %v12131_v50 }
 0x6ca   :  { %8044 = vpow2.f32 %v4259_v62  ;;  %v4194_v8 = vmin.f32 %v4012_v46, 80.0  ;;  %5046 = vmatprep.mubr.f32.mxu0 %v12132_v21  ;;  %v12135_v21 = vld [vmem:[#allocation70_spill] sm:$0xff] }
 0x6cb   :  { %v4261_v28 = vmul.f32 1.442695, %v4193_v17 }
 0x6cc   :  { %v4263_v40 = vmul.f32 1.442695, %v4194_v8  ;;  %v4016_v23 = vpop.f32.mrb[198].mxu0 }
 0x6cd   :  { %8046 = vpow2.f32 %v4261_v28  ;;  %v4195_v39 = vmin.f32 %v4016_v23, 80.0  ;;  %v4018_v54 = vpop.f32.mrb[199].mxu0  ;;  %5047 = vmatmul.mubr.f32.gmra.mrb[48].mxu0 %v12133_v53  ;;  %v12136_v23 = vld [vmem:[#allocation71_spill] sm:$0xff] }
 0x6ce   :  { %8048 = vpow2.f32 %v4263_v40  ;;  %v4196_v55 = vmin.f32 %v4018_v54, 80.0  ;;  %5051 = vmatprep.mubr.f32.mxu0 %v12134_v30 }
 0x6cf   :  { %v8039_v63 = vpop.eup %8038  ;;  %v4265_v1 = vmul.f32 1.442695, %v4195_v39 }
 0x6d0   :  { %v8041_v34 = vpop.eup %8040  ;;  %v4381_v50 = vadd.f32 1.0, %v8039_v63  ;;  %v4267_v62 = vmul.f32 1.442695, %v4196_v55  ;;  %v4022_v46 = vpop.f32.mrb[200].mxu0 }
 0x6d1   :  { %v4382_v14 = vadd.f32 1.0, %v8041_v34  ;;  %8050 = vpow2.f32 %v4265_v1  ;;  %v4197_v17 = vmin.f32 %v4022_v46, 80.0  ;;  %v4024_v8 = vpop.f32.mrb[201].mxu0  ;;  %5052 = vmatmul.mubr.f32.gmra.mrb[50].mxu0 %v12135_v21  ;;  %v12137_v46 = vld [vmem:[#allocation72_spill] sm:$0xff] }
 0x6d2   :  { %8052 = vrcp.f32 %v4381_v50  ;;  %v4198_v28 = vmin.f32 %v4024_v8, 80.0  ;;  %5056 = vmatprep.mubr.f32.mxu0 %v12136_v23  ;;  %v12138_v50 = vld [vmem:[#allocation73_spill] sm:$0xff] }
 0x6d3   :  { %v8043_v40 = vpop.eup %8042  ;;  %8054 = vrcp.f32 %v4382_v14  ;;  %v4269_v54 = vmul.f32 1.442695, %v4197_v17 }
 0x6d4   :  { %v8045_v30 = vpop.eup %8044  ;;  %v4383_v53 = vadd.f32 1.0, %v8043_v40  ;;  %8056 = vpow2.f32 %v4267_v62  ;;  %v4271_v39 = vmul.f32 1.442695, %v4198_v28  ;;  %v4028_v63 = vpop.f32.mrb[202].mxu0 }
 0x6d5   :  { %v4384_v55 = vadd.f32 1.0, %v8045_v30  ;;  %8058 = vpow2.f32 %v4269_v54  ;;  %v4199_v34 = vmin.f32 %v4028_v63, 80.0  ;;  %v4030_v1 = vpop.f32.mrb[203].mxu0  ;;  %5057 = vmatmul.mubr.f32.gmra.mrb[52].mxu0 %v12137_v46  ;;  %v12139_v63 = vld [vmem:[#allocation74_spill] sm:$0xff] }
 0x6d6   :  { %8060 = vrcp.f32 %v4383_v53  ;;  %v4200_v21 = vmin.f32 %v4030_v1, 80.0  ;;  %5061 = vmatprep.mubr.f32.mxu0 %v12138_v50  ;;  %v12140_v53 = vld [vmem:[#allocation75_spill] sm:$0xff] }
 0x6d7   :  { %v8047_v8 = vpop.eup %8046  ;;  %8062 = vrcp.f32 %v4384_v55  ;;  %v4273_v23 = vmul.f32 1.442695, %v4199_v34 }
 0x6d8   :  { %v8049_v14 = vpop.eup %8048  ;;  %v4385_v17 = vadd.f32 1.0, %v8047_v8  ;;  %8064 = vpow2.f32 %v4271_v39  ;;  %v4275_v40 = vmul.f32 1.442695, %v4200_v21  ;;  %v4034_v62 = vpop.f32.mrb[204].mxu0 }
 0x6d9   :  { %v4386_v28 = vadd.f32 1.0, %v8049_v14  ;;  %8066 = vpow2.f32 %v4273_v23  ;;  %v4201_v30 = vmin.f32 %v4034_v62, 80.0  ;;  %v4036_v54 = vpop.f32.mrb[205].mxu0  ;;  %5062 = vmatmul.mubr.f32.gmra.mrb[54].mxu0 %v12139_v63  ;;  %v12141_v62 = vld [vmem:[#allocation76_spill] sm:$0xff] }
 0x6da   :  { %8068 = vrcp.f32 %v4385_v17  ;;  %v4202_v46 = vmin.f32 %v4036_v54, 80.0  ;;  %5066 = vmatprep.mubr.f32.mxu0 %v12140_v53  ;;  %v12142_v54 = vld [vmem:[#allocation77_spill] sm:$0xff] }
 0x6db   :  { %v8051_v1 = vpop.eup %8050  ;;  %8070 = vrcp.f32 %v4386_v28  ;;  %v4277_v50 = vmul.f32 1.442695, %v4201_v30 }
 0x6dc   :  { %v8053_v55 = vpop.eup %8052  ;;  %v4387_v34 = vadd.f32 1.0, %v8051_v1  ;;  %8072 = vpow2.f32 %v4275_v40  ;;  %v4279_v8 = vmul.f32 1.442695, %v4202_v46  ;;  %v4040_v39 = vpop.f32.mrb[206].mxu0 }
 0x6dd   :  { %v8055_v21 = vpop.eup %8054  ;;  %8074 = vpow2.f32 %v4277_v50  ;;  %v4203_v14 = vmin.f32 %v4040_v39, 80.0  ;;  %v4042_v23 = vpop.f32.mrb[207].mxu0  ;;  %5067 = vmatmul.mubr.f32.gmra.mrb[56].mxu0 %v12141_v62  ;;  %v4509_v40 = vmul.f32 %v8053_v55, %v12101_v44 }
 0x6de   :  { %v8057_v6 = vpop.eup %8056  ;;  %v4204_v63 = vmin.f32 %v4042_v23, 80.0  ;;  %v4510_v17 = vmul.f32 %v8055_v21, %v12100_v43  ;;  %5071 = vmatprep.mubr.f32.mxu0 %v12142_v54  ;;  %8076 = vpow2.f32 %v4279_v8  ;;  %v12143_v43 = vld [vmem:[#allocation78_spill] sm:$0xff] }
 0x6df   :  { %v8059_v53 = vpop.eup %8058  ;;  %v4388_v28 = vadd.f32 1.0, %v8057_v6  ;;  %v4281_v30 = vmul.f32 1.442695, %v4203_v14  ;;  %8078 = vrcp.f32 %v4387_v34  ;;  %v12144_v14 = vld [vmem:[#allocation79_spill] sm:$0xff] }
 0x6e0   :  { %v8061_v46 = vpop.eup %8060  ;;  %v4389_v1 = vadd.f32 1.0, %v8059_v53  ;;  %v4283_v50 = vmul.f32 1.442695, %v4204_v63  ;;  %v4046_v39 = vpop.f32.mrb[208].mxu0  ;;  %4669 = vmatprep.mubr.f32.mxu1 %v4510_v17 }
 0x6e1   :  { %v8063_v47 = vpop.eup %8062  ;;  %8080 = vrcp.f32 %v4388_v28  ;;  %v4205_v62 = vmin.f32 %v4046_v39, 80.0  ;;  %v4048_v23 = vpop.f32.mrb[209].mxu0  ;;  %4670 = vmatmul.mubr.f32.vlgmr.msra.gmra.mrb[224].mxu1 %v4509_v40  ;;  %5072 = vmatmul.mubr.f32.gmra.mrb[58].mxu0 %v12143_v43  ;;  %v4511_v53 = vmul.f32 %v8061_v46, %v12102_v48 }
 0x6e2   :  { %v8065_v21 = vpop.eup %8064  ;;  %8082 = vrcp.f32 %v4389_v1  ;;  %v4206_v6 = vmin.f32 %v4048_v23, 80.0  ;;  %v4512_v8 = vmul.f32 %v8063_v47, %v9568_v2  ;;  %5076 = vmatprep.mubr.f32.mxu0 %v12144_v14  ;;  %v12145_v2 = vld [vmem:[#allocation80_spill] sm:$0xff] }
 0x6e3   :  { %v8067_v44 = vpop.eup %8066  ;;  %v4390_v55 = vadd.f32 1.0, %v8065_v21  ;;  %8084 = vpow2.f32 %v4281_v30  ;;  %v4285_v63 = vmul.f32 1.442695, %v4205_v62  ;;  %v12146_v30 = vld [vmem:[#allocation81_spill] sm:$0xff] }
 0x6e4   :  { %v8069_v34 = vpop.eup %8068  ;;  %v4391_v17 = vadd.f32 1.0, %v8067_v44  ;;  %8086 = vpow2.f32 %v4283_v50  ;;  %v4287_v28 = vmul.f32 1.442695, %v4206_v6  ;;  %v4052_v40 = vpop.f32.mrb[210].mxu0  ;;  %4674 = vmatprep.mubr.f32.mxu1 %v4512_v8 }
 0x6e5   :  { %v8071_v39 = vpop.eup %8070  ;;  %8088 = vrcp.f32 %v4390_v55  ;;  %v4207_v1 = vmin.f32 %v4052_v40, 80.0  ;;  %v4054_v23 = vpop.f32.mrb[211].mxu0  ;;  %4675 = vmatmul.mubr.f32.gmra.mrb[226].mxu1 %v4511_v53  ;;  %5077 = vmatmul.mubr.f32.gmra.mrb[60].mxu0 %v12145_v2  ;;  %v4513_v6 = vmul.f32 %v8069_v34, %v12104_v13 }
 0x6e6   :  { %v8073_v47 = vpop.eup %8072  ;;  %8090 = vrcp.f32 %v4391_v17  ;;  %v4208_v21 = vmin.f32 %v4054_v23, 80.0  ;;  %v4514_v62 = vmul.f32 %v8071_v39, %v12103_v3  ;;  %5081 = vmatprep.mubr.f32.mxu0 %v12146_v30  ;;  %v12147_v23 = vld [vmem:[#allocation82_spill] sm:$0xff] }
 0x6e7   :  { %v8075_v48 = vpop.eup %8074  ;;  %v4392_v46 = vadd.f32 1.0, %v8073_v47  ;;  %8092 = vpow2.f32 %v4285_v63  ;;  %v4289_v50 = vmul.f32 1.442695, %v4207_v1 }
 0x6e8   :  { %v4393_v8 = vadd.f32 1.0, %v8075_v48  ;;  %8094 = vpow2.f32 %v4287_v28  ;;  %v4058_v44 = vpop.f32.mrb[212].mxu0  ;;  %4679 = vmatprep.mubr.f32.mxu1 %v4514_v62  ;;  %v8077_v55 = vpop.eup %8076  ;;  %v4291_v53 = vmul.f32 1.442695, %v4208_v21 }
 0x6e9   :  { %8096 = vrcp.f32 %v4392_v46  ;;  %v4209_v40 = vmin.f32 %v4058_v44, 80.0  ;;  %v4060_v17 = vpop.f32.mrb[213].mxu0  ;;  %4680 = vmatmul.mubr.f32.gmra.mrb[228].mxu1 %v4513_v6  ;;  %5082 = vmatmul.mubr.f32.gmra.mrb[62].mxu0 %v12147_v23  ;;  %v8079_v3 = vpop.eup %8078  ;;  %v4394_v39 = vadd.f32 1.0, %v8077_v55 }
 0x6ea   :  { %8098 = vrcp.f32 %v4393_v8  ;;  %v4210_v47 = vmin.f32 %v4060_v17, 80.0  ;;  %v4515_v6 = vmul.f32 %v8079_v3, %v9593_v22 }
 0x6eb   :  { %v8081_v63 = vpop.eup %8080  ;;  %8100 = vpow2.f32 %v4289_v50  ;;  %v4293_v1 = vmul.f32 1.442695, %v4209_v40 }
 0x6ec   :  { %v8083_v13 = vpop.eup %8082  ;;  %8102 = vrcp.f32 %v4394_v39  ;;  %v4295_v34 = vmul.f32 1.442695, %v4210_v47  ;;  %v4064_v28 = vpop.f32.mrb[214].mxu0  ;;  %v4516_v62 = vmul.f32 %v8081_v63, %v9586_v27 }
 0x6ed   :  { %v8085_v48 = vpop.eup %8084  ;;  %8104 = vpow2.f32 %v4291_v53  ;;  %v4211_v21 = vmin.f32 %v4064_v28, 80.0  ;;  %v4066_v46 = vpop.f32.mrb[215].mxu0  ;;  %v4517_v3 = vmul.f32 %v8083_v13, %v9602_v37 }
 0x6ee   :  { %v8087_v44 = vpop.eup %8086  ;;  %v4395_v23 = vadd.f32 1.0, %v8085_v48  ;;  %8106 = vpow2.f32 %v4293_v1  ;;  %4684 = vmatprep.mubr.f32.mxu1 %v4516_v62  ;;  %v4212_v8 = vmin.f32 %v4066_v46, 80.0 }
 0x6ef   :  { %v8089_v55 = vpop.eup %8088  ;;  %v4396_v50 = vadd.f32 1.0, %v8087_v44  ;;  %8108 = vpow2.f32 %v4295_v34  ;;  %v4297_v40 = vmul.f32 1.442695, %v4211_v21  ;;  %4685 = vmatmul.mubr.f32.gmra.mrb[230].mxu1 %v4515_v6 }
 0x6f0   :  { %v8091_v17 = vpop.eup %8090  ;;  %8110 = vrcp.f32 %v4395_v23  ;;  %v4299_v39 = vmul.f32 1.442695, %v4212_v8  ;;  %v4070_v27 = vpop.f32.mrb[216].mxu0  ;;  %v4518_v53 = vmul.f32 %v8089_v55, %v9595_v15 }
 0x6f1   :  { %v8093_v47 = vpop.eup %8092  ;;  %8112 = vrcp.f32 %v4396_v50  ;;  %v4213_v63 = vmin.f32 %v4070_v27, 80.0  ;;  %v4072_v22 = vpop.f32.mrb[217].mxu0  ;;  %v4519_v13 = vmul.f32 %v8091_v17, %v9611_v20 }
 0x6f2   :  { %v8095_v1 = vpop.eup %8094  ;;  %v4397_v28 = vadd.f32 1.0, %v8093_v47  ;;  %8114 = vpow2.f32 %v4297_v40  ;;  %4689 = vmatprep.mubr.f32.mxu1 %v4518_v53  ;;  %v4214_v62 = vmin.f32 %v4072_v22, 80.0 }
 0x6f3   :  { %v8097_v34 = vpop.eup %8096  ;;  %v4398_v48 = vadd.f32 1.0, %v8095_v1  ;;  %8116 = vpow2.f32 %v4299_v39  ;;  %v4301_v21 = vmul.f32 1.442695, %v4213_v63  ;;  %4690 = vmatmul.mubr.f32.gmra.mrb[232].mxu1 %v4517_v3 }
 0x6f4   :  { %v8099_v23 = vpop.eup %8098  ;;  %8118 = vrcp.f32 %v4397_v28  ;;  %v4303_v46 = vmul.f32 1.442695, %v4214_v62  ;;  %v4076_v15 = vpop.f32.mrb[218].mxu0  ;;  %v4520_v6 = vmul.f32 %v8097_v34, %v9604_v10 }
 0x6f5   :  { %v8101_v44 = vpop.eup %8100  ;;  %8120 = vrcp.f32 %v4398_v48  ;;  %v4215_v8 = vmin.f32 %v4076_v15, 80.0  ;;  %v4078_v37 = vpop.f32.mrb[219].mxu0  ;;  %v4521_v22 = vmul.f32 %v8099_v23, %v9620_v57 }
 0x6f6   :  { %v8103_v55 = vpop.eup %8102  ;;  %v4399_v50 = vadd.f32 1.0, %v8101_v44  ;;  %8122 = vpow2.f32 %v4301_v21  ;;  %4694 = vmatprep.mubr.f32.mxu1 %v4520_v6  ;;  %v4216_v40 = vmin.f32 %v4078_v37, 80.0 }
 0x6f7   :  { %v8105_v39 = vpop.eup %8104  ;;  %8124 = vpow2.f32 %v4303_v46  ;;  %v4305_v27 = vmul.f32 1.442695, %v4215_v8  ;;  %4695 = vmatmul.mubr.f32.gmra.mrb[234].mxu1 %v4519_v13  ;;  %v4522_v53 = vmul.f32 %v8103_v55, %v9613_v35 }
 0x6f8   :  { %v8107_v47 = vpop.eup %8106  ;;  %8126 = vrcp.f32 %v4399_v50  ;;  %v4400_v10 = vadd.f32 1.0, %v8105_v39  ;;  %v4082_v63 = vpop.f32.mrb[220].mxu0  ;;  %v4307_v20 = vmul.f32 1.442695, %v4216_v40 }
 0x6f9   :  { %v8109_v3 = vpop.eup %8108  ;;  %v4401_v1 = vadd.f32 1.0, %v8107_v47  ;;  %8128 = vpow2.f32 %v4305_v27  ;;  %v4217_v17 = vmin.f32 %v4082_v63, 80.0  ;;  %4699 = vmatprep.mubr.f32.mxu1 %v4522_v53  ;;  %v4084_v28 = vpop.f32.mrb[221].mxu0 }
 0x6fa   :  { %v8111_v62 = vpop.eup %8110  ;;  %8130 = vrcp.f32 %v4400_v10  ;;  %v4402_v34 = vadd.f32 1.0, %v8109_v3  ;;  %v4218_v48 = vmin.f32 %v4084_v28, 80.0 }
 0x6fb   :  { %v8113_v21 = vpop.eup %8112  ;;  %8132 = vrcp.f32 %v4401_v1  ;;  %v4309_v35 = vmul.f32 1.442695, %v4217_v17  ;;  %4700 = vmatmul.mubr.f32.gmra.mrb[236].mxu1 %v4521_v22  ;;  %v4523_v23 = vmul.f32 %v8111_v62, %v9629_v9 }
 0x6fc   :  { %v8115_v46 = vpop.eup %8114  ;;  %8134 = vrcp.f32 %v4402_v34  ;;  %v4088_v15 = vpop.f32.mrb[222].mxu0  ;;  %v4524_v57 = vmul.f32 %v8113_v21, %v9622_v42  ;;  %v4311_v8 = vmul.f32 1.442695, %v4218_v48 }
 0x6fd   :  { %v8117_v6 = vpop.eup %8116  ;;  %v4403_v44 = vadd.f32 1.0, %v8115_v46  ;;  %8136 = vpow2.f32 %v4307_v20  ;;  %v4219_v37 = vmin.f32 %v4088_v15, 80.0  ;;  %v4090_v13 = vpop.f32.mrb[223].mxu0 }
 0x6fe   :  { %v8119_v55 = vpop.eup %8118  ;;  %v4404_v50 = vadd.f32 1.0, %v8117_v6  ;;  %8138 = vpow2.f32 %v4309_v35  ;;  %4704 = vmatprep.mubr.f32.mxu1 %v4524_v57  ;;  %v4220_v40 = vmin.f32 %v4090_v13, 80.0 }
 0x6ff   :  { %v8121_v39 = vpop.eup %8120  ;;  %8140 = vrcp.f32 %v4403_v44  ;;  %v4313_v27 = vmul.f32 1.442695, %v4219_v37  ;;  %4705 = vmatmul.mubr.f32.gmra.mrb[238].mxu1 %v4523_v23  ;;  %v4525_v47 = vmul.f32 %v8119_v55, %v12105_v45 }
 0x700   :  { %v8123_v53 = vpop.eup %8122  ;;  %8142 = vrcp.f32 %v4404_v50  ;;  %v4094_v42 = vpop.f32.mrb[224].mxu0  ;;  %v4526_v9 = vmul.f32 %v8121_v39, %v9631_v60  ;;  %v4315_v22 = vmul.f32 1.442695, %v4220_v40 }
 0x701   :  { %v8125_v10 = vpop.eup %8124  ;;  %v4405_v63 = vadd.f32 1.0, %v8123_v53  ;;  %8144 = vpow2.f32 %v4311_v8  ;;  %v4221_v3 = vmin.f32 %v4094_v42, 80.0  ;;  %v4096_v1 = vpop.f32.mrb[225].mxu0 }
 0x702   :  { %v8127_v20 = vpop.eup %8126  ;;  %v4406_v17 = vadd.f32 1.0, %v8125_v10  ;;  %8146 = vpow2.f32 %v4313_v27  ;;  %4709 = vmatprep.mubr.f32.mxu1 %v4526_v9  ;;  %v4222_v28 = vmin.f32 %v4096_v1, 80.0 }
 0x703   :  { %v8129_v62 = vpop.eup %8128  ;;  %8148 = vrcp.f32 %v4405_v63  ;;  %v4317_v34 = vmul.f32 1.442695, %v4221_v3  ;;  %4710 = vmatmul.mubr.f32.gmra.mrb[240].mxu1 %v4525_v47  ;;  %v4527_v44 = vmul.f32 %v8127_v20, %v9647_v41 }
 0x704   :  { %v8131_v48 = vpop.eup %8130  ;;  %8150 = vrcp.f32 %v4406_v17  ;;  %v4407_v60 = vadd.f32 1.0, %v8129_v62  ;;  %v4319_v21 = vmul.f32 1.442695, %v4222_v28  ;;  %v4100_v45 = vpop.f32.mrb[226].mxu0 }
 0x705   :  { %v8133_v35 = vpop.eup %8132  ;;  %8152 = vpow2.f32 %v4315_v22  ;;  %v4223_v46 = vmin.f32 %v4100_v45, 80.0  ;;  %v4528_v15 = vmul.f32 %v8131_v48, %v9640_v25  ;;  %v4102_v57 = vpop.f32.mrb[227].mxu0 }
 0x706   :  { %v8135_v23 = vpop.eup %8134  ;;  %8154 = vrcp.f32 %v4407_v60  ;;  %v4224_v6 = vmin.f32 %v4102_v57, 80.0  ;;  %v4529_v47 = vmul.f32 %v8133_v35, %v9656_v56 }
 0x707   :  { %v8137_v8 = vpop.eup %8136  ;;  %8156 = vpow2.f32 %v4317_v34  ;;  %v4321_v37 = vmul.f32 1.442695, %v4223_v46  ;;  %4714 = vmatprep.mubr.f32.mxu1 %v4528_v15  ;;  %v4530_v13 = vmul.f32 %v8135_v23, %v9649_v7 }
 0x708   :  { %v8139_v55 = vpop.eup %8138  ;;  %v4408_v50 = vadd.f32 1.0, %v8137_v8  ;;  %8158 = vpow2.f32 %v4319_v21  ;;  %v4323_v40 = vmul.f32 1.442695, %v4224_v6  ;;  %4715 = vmatmul.mubr.f32.gmra.mrb[242].mxu1 %v4527_v44  ;;  %v4106_v39 = vpop.f32.mrb[228].mxu0 }
 0x709   :  { %v8141_v27 = vpop.eup %8140  ;;  %v4409_v25 = vadd.f32 1.0, %v8139_v55  ;;  %8160 = vpow2.f32 %v4321_v37  ;;  %v4225_v53 = vmin.f32 %v4106_v39, 80.0  ;;  %4719 = vmatprep.mubr.f32.mxu1 %v4530_v13  ;;  %v4108_v42 = vpop.f32.mrb[229].mxu0 }
 0x70a   :  { %v8143_v9 = vpop.eup %8142  ;;  %8162 = vrcp.f32 %v4408_v50  ;;  %v4226_v41 = vmin.f32 %v4108_v42, 80.0  ;;  %v4531_v60 = vmul.f32 %v8141_v27, %v12107_v4 }
 0x70b   :  { %v8145_v10 = vpop.eup %8144  ;;  %8164 = vrcp.f32 %v4409_v25  ;;  %v4325_v7 = vmul.f32 1.442695, %v4225_v53  ;;  %v4532_v63 = vmul.f32 %v8143_v9, %v12106_v5 }
 0x70c   :  { %v8147_v22 = vpop.eup %8146  ;;  %v4410_v3 = vadd.f32 1.0, %v8145_v10  ;;  %8166 = vpow2.f32 %v4323_v40  ;;  %v4327_v1 = vmul.f32 1.442695, %v4226_v41  ;;  %4720 = vmatmul.mubr.f32.gmra.mrb[244].mxu1 %v4529_v47  ;;  %v4112_v20 = vpop.f32.mrb[230].mxu0 }
 0x70d   :  { %v8149_v17 = vpop.eup %8148  ;;  %v4411_v28 = vadd.f32 1.0, %v8147_v22  ;;  %8168 = vpow2.f32 %v4325_v7  ;;  %v4227_v62 = vmin.f32 %v4112_v20, 80.0  ;;  %4724 = vmatprep.mubr.f32.mxu1 %v4532_v63  ;;  %v4114_v34 = vpop.f32.mrb[231].mxu0 }
 0x70e   :  { %v8151_v48 = vpop.eup %8150  ;;  %8170 = vrcp.f32 %v4410_v3  ;;  %v4228_v56 = vmin.f32 %v4114_v34, 80.0  ;;  %v4533_v13 = vmul.f32 %v8149_v17, %v12109_v18 }
 0x70f   :  { %v8153_v21 = vpop.eup %8152  ;;  %8172 = vrcp.f32 %v4411_v28  ;;  %v4329_v5 = vmul.f32 1.442695, %v4227_v62  ;;  %v4534_v45 = vmul.f32 %v8151_v48, %v12108_v24 }
 0x710   :  { %v8155_v35 = vpop.eup %8154  ;;  %v4412_v46 = vadd.f32 1.0, %v8153_v21  ;;  %8174 = vpow2.f32 %v4327_v1  ;;  %v4331_v15 = vmul.f32 1.442695, %v4228_v56  ;;  %4725 = vmatmul.mubr.f32.gmra.mrb[246].mxu1 %v4531_v60  ;;  %v4118_v57 = vpop.f32.mrb[232].mxu0 }
 0x711   :  { %v8157_v23 = vpop.eup %8156  ;;  %8176 = vpow2.f32 %v4329_v5  ;;  %v4229_v6 = vmin.f32 %v4118_v57, 80.0  ;;  %4729 = vmatprep.mubr.f32.mxu1 %v4534_v45  ;;  %v4120_v44 = vpop.f32.mrb[233].mxu0  ;;  %v4535_v18 = vmul.f32 %v8155_v35, %v12111_v12 }
 0x712   :  { %v8159_v8 = vpop.eup %8158  ;;  %8178 = vrcp.f32 %v4412_v46  ;;  %v4413_v37 = vadd.f32 1.0, %v8157_v23  ;;  %v4230_v4 = vmin.f32 %v4120_v44, 80.0 }
 0x713   :  { %v8161_v55 = vpop.eup %8160  ;;  %v4414_v50 = vadd.f32 1.0, %v8159_v8  ;;  %8180 = vpow2.f32 %v4331_v15  ;;  %v4333_v24 = vmul.f32 1.442695, %v4229_v6 }
 0x714   :  { %v8163_v40 = vpop.eup %8162  ;;  %8182 = vrcp.f32 %v4413_v37  ;;  %v4415_v39 = vadd.f32 1.0, %v8161_v55  ;;  %v4335_v27 = vmul.f32 1.442695, %v4230_v4  ;;  %4730 = vmatmul.mubr.f32.gmra.mrb[248].mxu1 %v4533_v13  ;;  %v4124_v25 = vpop.f32.mrb[234].mxu0 }
 0x715   :  { %v8165_v53 = vpop.eup %8164  ;;  %8184 = vrcp.f32 %v4414_v50  ;;  %v4231_v42 = vmin.f32 %v4124_v25, 80.0  ;;  %v4536_v9 = vmul.f32 %v8163_v40, %v12110_v58  ;;  %v4126_v41 = vpop.f32.mrb[235].mxu0 }
 0x716   :  { %v8167_v47 = vpop.eup %8166  ;;  %8186 = vrcp.f32 %v4415_v39  ;;  %v4232_v10 = vmin.f32 %v4126_v41, 80.0  ;;  %v4537_v56 = vmul.f32 %v8165_v53, %v12113_v0 }
 0x717   :  { %v8169_v7 = vpop.eup %8168  ;;  %v4416_v63 = vadd.f32 1.0, %v8167_v47  ;;  %8188 = vpow2.f32 %v4333_v24  ;;  %v4337_v22 = vmul.f32 1.442695, %v4231_v42  ;;  %4734 = vmatprep.mubr.f32.mxu1 %v4536_v9 }
 0x718   :  { %v8171_v3 = vpop.eup %8170  ;;  %v4417_v1 = vadd.f32 1.0, %v8169_v7  ;;  %8190 = vpow2.f32 %v4335_v27  ;;  %v4339_v20 = vmul.f32 1.442695, %v4232_v10  ;;  %4735 = vmatmul.mubr.f32.gmra.mrb[250].mxu1 %v4535_v18  ;;  %v4130_v17 = vpop.f32.mrb[236].mxu0 }
 0x719   :  { %v8173_v28 = vpop.eup %8172  ;;  %8192 = vrcp.f32 %v4416_v63  ;;  %v4233_v58 = vmin.f32 %v4130_v17, 80.0  ;;  %v4538_v62 = vmul.f32 %v8171_v3, %v12112_v31  ;;  %v4132_v34 = vpop.f32.mrb[237].mxu0 }
 0x71a   :  { %v8175_v48 = vpop.eup %8174  ;;  %8194 = vrcp.f32 %v4417_v1  ;;  %v4234_v12 = vmin.f32 %v4132_v34, 80.0  ;;  %v4539_v37 = vmul.f32 %v8173_v28, %v12115_v19 }
 0x71b   :  { %v8177_v60 = vpop.eup %8176  ;;  %v4418_v21 = vadd.f32 1.0, %v8175_v48  ;;  %8196 = vpow2.f32 %v4337_v22  ;;  %v4341_v5 = vmul.f32 1.442695, %v4233_v58  ;;  %4739 = vmatprep.mubr.f32.mxu1 %v4538_v62 }
 0x71c   :  { %v8179_v45 = vpop.eup %8178  ;;  %v4419_v35 = vadd.f32 1.0, %v8177_v60  ;;  %8198 = vpow2.f32 %v4339_v20  ;;  %4740 = vmatmul.mubr.f32.gmra.mrb[252].mxu1 %v4537_v56  ;;  %v4136_v46 = vpop.f32.mrb[238].mxu0  ;;  %v4343_v57 = vmul.f32 1.442695, %v4234_v12 }
 0x71d   :  { %v8181_v15 = vpop.eup %8180  ;;  %8200 = vrcp.f32 %v4418_v21  ;;  %v4235_v31 = vmin.f32 %v4136_v46, 80.0  ;;  %v4540_v23 = vmul.f32 %v8179_v45, %v12114_v26  ;;  %v4138_v6 = vpop.f32.mrb[239].mxu0 }
 0x71e   :  { %v8183_v44 = vpop.eup %8182  ;;  %8202 = vrcp.f32 %v4419_v35  ;;  %v4420_v0 = vadd.f32 1.0, %v8181_v15  ;;  %v4236_v8 = vmin.f32 %v4138_v6, 80.0 }
 0x71f   :  { %v8185_v4 = vpop.eup %8184  ;;  %8204 = vpow2.f32 %v4341_v5  ;;  %v4345_v13 = vmul.f32 1.442695, %v4235_v31  ;;  %4744 = vmatprep.mubr.f32.mxu1 %v4540_v23  ;;  %v4541_v42 = vmul.f32 %v8183_v44, %v12117_v51 }
 0x720   :  { %v8187_v55 = vpop.eup %8186  ;;  %8206 = vrcp.f32 %v4420_v0  ;;  %v4347_v50 = vmul.f32 1.442695, %v4236_v8  ;;  %4745 = vmatmul.mubr.f32.gmra.mrb[254].mxu1 %v4539_v37  ;;  %v4142_v24 = vpop.f32.mrb[240].mxu0  ;;  %v4542_v40 = vmul.f32 %v8185_v4, %v12116_v11 }
 0x721   :  { %v8189_v39 = vpop.eup %8188  ;;  %8208 = vpow2.f32 %v4343_v57  ;;  %v4237_v26 = vmin.f32 %v4142_v24, 80.0  ;;  %v4144_v27 = vpop.f32.mrb[241].mxu0  ;;  %v4543_v17 = vmul.f32 %v8187_v55, %v12119_v29 }
 0x722   :  { %v8191_v25 = vpop.eup %8190  ;;  %v4421_v53 = vadd.f32 1.0, %v8189_v39  ;;  %8210 = vpow2.f32 %v4345_v13  ;;  %4749 = vmatprep.mubr.f32.mxu1 %v4542_v40  ;;  %v4238_v19 = vmin.f32 %v4144_v27, 80.0 }
 0x723   :  { %v8193_v9 = vpop.eup %8192  ;;  %v4422_v41 = vadd.f32 1.0, %v8191_v25  ;;  %8212 = vpow2.f32 %v4347_v50  ;;  %v4349_v47 = vmul.f32 1.442695, %v4237_v26 }
 0x724   :  { %v8195_v10 = vpop.eup %8194  ;;  %8214 = vrcp.f32 %v4421_v53  ;;  %v4351_v18 = vmul.f32 1.442695, %v4238_v19  ;;  %4750 = vmatmul.mubr.f32.gmra.mrb[0].mxu1 %v4541_v42  ;;  %v4148_v11 = vpop.f32.mrb[242].mxu0  ;;  %v4544_v7 = vmul.f32 %v8193_v9, %v12118_v61 }
 0x725   :  { %v8197_v63 = vpop.eup %8196  ;;  %8216 = vrcp.f32 %v4422_v41  ;;  %v4239_v22 = vmin.f32 %v4148_v11, 80.0  ;;  %v4150_v3 = vpop.f32.mrb[243].mxu0  ;;  %v4545_v35 = vmul.f32 %v8195_v10, %v12121_v32 }
 0x726   :  { %v8199_v1 = vpop.eup %8198  ;;  %v4423_v20 = vadd.f32 1.0, %v8197_v63  ;;  %8218 = vpow2.f32 %v4349_v47  ;;  %4754 = vmatprep.mubr.f32.mxu1 %v4544_v7  ;;  %v4240_v51 = vmin.f32 %v4150_v3, 80.0 }
 0x727   :  { %v8201_v28 = vpop.eup %8200  ;;  %v4424_v58 = vadd.f32 1.0, %v8199_v1  ;;  %8220 = vpow2.f32 %v4351_v18  ;;  %v4353_v62 = vmul.f32 1.442695, %v4239_v22 }
 0x728   :  { %v8203_v34 = vpop.eup %8202  ;;  %8222 = vrcp.f32 %v4423_v20  ;;  %v4355_v48 = vmul.f32 1.442695, %v4240_v51  ;;  %4755 = vmatmul.mubr.f32.gmra.mrb[2].mxu1 %v4543_v17  ;;  %v4154_v61 = vpop.f32.mrb[244].mxu0  ;;  %v4546_v12 = vmul.f32 %v8201_v28, %v12120_v33 }
 0x729   :  { %v8205_v56 = vpop.eup %8204  ;;  %8224 = vrcp.f32 %v4424_v58  ;;  %v4241_v60 = vmin.f32 %v4154_v61, 80.0  ;;  %v4156_v21 = vpop.f32.mrb[245].mxu0  ;;  %v4547_v55 = vmul.f32 %v8203_v34, %v12123_v49 }
 0x72a   :  { %v8207_v5 = vpop.eup %8206  ;;  %v4425_v45 = vadd.f32 1.0, %v8205_v56  ;;  %8226 = vpow2.f32 %v4353_v62  ;;  %4759 = vmatprep.mubr.f32.mxu1 %v4546_v12  ;;  %v4242_v29 = vmin.f32 %v4156_v21, 80.0  ;;  %v12148_v56 = vld [vmem:[#allocation63_spill] sm:$0xff] }
 0x72b   :  { %v8209_v46 = vpop.eup %8208  ;;  %8228 = vpow2.f32 %v4355_v48  ;;  %v4357_v15 = vmul.f32 1.442695, %v4241_v60  ;;  %v4548_v57 = vmul.f32 %v8207_v5, %v12122_v52 }
 0x72c   :  { %v8211_v31 = vpop.eup %8210  ;;  %8230 = vrcp.f32 %v4425_v45  ;;  %v4426_v23 = vadd.f32 1.0, %v8209_v46  ;;  %4760 = vmatmul.mubr.f32.gmra.mrb[4].mxu1 %v4545_v35  ;;  %v4160_v33 = vpop.f32.mrb[246].mxu0  ;;  %v4359_v0 = vmul.f32 1.442695, %v4242_v29  ;;  %v12149_v29 = vld [vmem:[#allocation64_spill] sm:$0xff] }
 0x72d   :  { %v8213_v6 = vpop.eup %8212  ;;  %v4427_v44 = vadd.f32 1.0, %v8211_v31  ;;  %8232 = vpow2.f32 %v4357_v15  ;;  %v4243_v8 = vmin.f32 %v4160_v33, 80.0  ;;  %4764 = vmatprep.mubr.f32.mxu1 %v4548_v57  ;;  %v4162_v37 = vpop.f32.mrb[247].mxu0  ;;  %v12150_v15 = vld [vmem:[#allocation65_spill] sm:$0xff] }
 0x72e   :  { %v8215_v4 = vpop.eup %8214  ;;  %8234 = vrcp.f32 %v4426_v23  ;;  %v4428_v32 = vadd.f32 1.0, %v8213_v6  ;;  %v4244_v13 = vmin.f32 %v4162_v37, 80.0 }
 0x72f   :  { %v8217_v50 = vpop.eup %8216  ;;  %8236 = vrcp.f32 %v4427_v44  ;;  %v4361_v52 = vmul.f32 1.442695, %v4243_v8  ;;  %v4549_v41 = vmul.f32 %v8215_v4, %v12125_v36 }
 0x730   :  { %v8219_v24 = vpop.eup %8218  ;;  %8238 = vrcp.f32 %v4428_v32  ;;  %4765 = vmatmul.mubr.f32.gmra.mrb[6].mxu1 %v4547_v55  ;;  %v4166_v40 = vpop.f32.mrb[248].mxu0  ;;  %v4550_v39 = vmul.f32 %v8217_v50, %v12124_v59  ;;  %v4363_v25 = vmul.f32 1.442695, %v4244_v13  ;;  %v12151_v13 = vld [vmem:[#allocation66_spill] sm:$0xff] }
 0x731   :  { %v8221_v26 = vpop.eup %8220  ;;  %v4429_v27 = vadd.f32 1.0, %v8219_v24  ;;  %8240 = vpow2.f32 %v4359_v0  ;;  %v4245_v53 = vmin.f32 %v4166_v40, 80.0  ;;  %v4168_v19 = vpop.f32.mrb[249].mxu0  ;;  %v12152_v24 = vld [vmem:[#allocation67_spill] sm:$0xff] }
 0x732   :  { %v8223_v42 = vpop.eup %8222  ;;  %v4430_v9 = vadd.f32 1.0, %v8221_v26  ;;  %8242 = vpow2.f32 %v4361_v52  ;;  %4769 = vmatprep.mubr.f32.mxu1 %v4550_v39  ;;  %v4246_v49 = vmin.f32 %v4168_v19, 80.0 }
 0x733   :  { %v8225_v47 = vpop.eup %8224  ;;  %8244 = vrcp.f32 %v4429_v27  ;;  %v4365_v10 = vmul.f32 1.442695, %v4245_v53  ;;  %v4551_v17 = vmul.f32 %v8223_v42, %v12127_v16 }
 0x734   :  { %v8227_v18 = vpop.eup %8226  ;;  %8246 = vrcp.f32 %v4430_v9  ;;  %4770 = vmatmul.mubr.f32.gmra.mrb[8].mxu1 %v4549_v41  ;;  %v4172_v59 = vpop.f32.mrb[250].mxu0  ;;  %v4552_v11 = vmul.f32 %v8225_v47, %v12126_v38  ;;  %v4367_v22 = vmul.f32 1.442695, %v4246_v49  ;;  %v12153_v49 = vld [vmem:[#allocation68_spill] sm:$0xff] }
 0x735   :  { %v8229_v7 = vpop.eup %8228  ;;  %v4431_v63 = vadd.f32 1.0, %v8227_v18  ;;  %8248 = vpow2.f32 %v4363_v25  ;;  %v4247_v3 = vmin.f32 %v4172_v59, 80.0  ;;  %v4174_v1 = vpop.f32.mrb[251].mxu0 }
 0x736   :  { %v8231_v20 = vpop.eup %8230  ;;  %v4432_v51 = vadd.f32 1.0, %v8229_v7  ;;  %8250 = vpow2.f32 %v4365_v10  ;;  %4774 = vmatprep.mubr.f32.mxu1 %v4552_v11  ;;  %v4248_v36 = vmin.f32 %v4174_v1, 80.0  ;;  %v12154_v10 = vld [vmem:[#allocation69_spill] sm:$0xff] }
 0x737   :  { %v8233_v28 = vpop.eup %8232  ;;  %8252 = vrcp.f32 %v4431_v63  ;;  %v4369_v58 = vmul.f32 1.442695, %v4247_v3  ;;  %v4553_v16 = vmul.f32 %v8231_v20, %v12149_v29  ;;  %v12155_v20 = vld [vmem:[#allocation70_spill] sm:$0xff] }
 0x738   :  { %v8235_v62 = vpop.eup %8234  ;;  %8254 = vrcp.f32 %v4432_v51  ;;  %v4433_v34 = vadd.f32 1.0, %v8233_v28  ;;  %v4371_v38 = vmul.f32 1.442695, %v4248_v36  ;;  %4775 = vmatmul.mubr.f32.gmra.mrb[10].mxu1 %v4551_v17  ;;  %v4178_v48 = vpop.f32.mrb[252].mxu0 }
 0x739   :  { %v8237_v61 = vpop.eup %8236  ;;  %8256 = vpow2.f32 %v4367_v22  ;;  %v4249_v12 = vmin.f32 %v4178_v48, 80.0  ;;  %v4554_v60 = vmul.f32 %v8235_v62, %v12148_v56  ;;  %v4180_v21 = vpop.f32.mrb[253].mxu0  ;;  %v12157_v56 = vld [vmem:[#allocation72_spill] sm:$0xff] }
 0x73a   :  { %v8239_v5 = vpop.eup %8238  ;;  %8258 = vrcp.f32 %v4433_v34  ;;  %v4250_v45 = vmin.f32 %v4180_v21, 80.0  ;;  %v4555_v55 = vmul.f32 %v8237_v61, %v12151_v13  ;;  %v12161_v13 = vld [vmem:[#allocation76_spill] sm:$0xff] }
 0x73b   :  { %v8241_v35 = vpop.eup %8240  ;;  %8260 = vpow2.f32 %v4369_v58  ;;  %v4373_v46 = vmul.f32 1.442695, %v4249_v12  ;;  %4779 = vmatprep.mubr.f32.mxu1 %v4554_v60  ;;  %v4556_v57 = vmul.f32 %v8239_v5, %v12150_v15 }
 0x73c   :  { %v8243_v31 = vpop.eup %8242  ;;  %v4434_v23 = vadd.f32 1.0, %v8241_v35  ;;  %8262 = vpow2.f32 %v4371_v38  ;;  %v4375_v33 = vmul.f32 1.442695, %v4250_v45  ;;  %4780 = vmatmul.mubr.f32.gmra.mrb[12].mxu1 %v4553_v16  ;;  %v4184_v6 = vpop.f32.mrb[254].mxu0  ;;  %v12156_v38 = vld [vmem:[#allocation71_spill] sm:$0xff]  ;;  %v12158_v35 = vld [vmem:[#allocation73_spill] sm:$0xff] }
 0x73d   :  { %v8245_v44 = vpop.eup %8244  ;;  %v4435_v0 = vadd.f32 1.0, %v8243_v31  ;;  %8264 = vpow2.f32 %v4373_v46  ;;  %v4251_v8 = vmin.f32 %v4184_v6, 80.0  ;;  %4784 = vmatprep.mubr.f32.mxu1 %v4556_v57  ;;  %v4186_v37 = vpop.f32.mrb[255].mxu0  ;;  %v12159_v31 = vld [vmem:[#allocation74_spill] sm:$0xff] }
 0x73e   :  { %v8247_v4 = vpop.eup %8246  ;;  %8266 = vrcp.f32 %v4434_v23  ;;  %v4252_v32 = vmin.f32 %v4186_v37, 80.0  ;;  %v4557_v41 = vmul.f32 %v8245_v44, %v12153_v49 }
 0x73f   :  { %v8249_v50 = vpop.eup %8248  ;;  %8268 = vrcp.f32 %v4435_v0  ;;  %v4377_v52 = vmul.f32 1.442695, %v4251_v8  ;;  %v4558_v40 = vmul.f32 %v8247_v4, %v12152_v24  ;;  %v12160_v8 = vld [vmem:[#allocation75_spill] sm:$0xff] }
 0x740   :  { %v8251_v39 = vpop.eup %8250  ;;  %v4436_v26 = vadd.f32 1.0, %v8249_v50  ;;  %8270 = vpow2.f32 %v4375_v33  ;;  %v4379_v27 = vmul.f32 1.442695, %v4252_v32  ;;  %4785 = vmatmul.mubr.f32.gmra.mrb[14].mxu1 %v4555_v55  ;;  %v11043_v25 = vpop.f32.mrb[0].mxu0 }
 0x741   :  { %v8253_v53 = vpop.eup %8252  ;;  %v4437_v19 = vadd.f32 1.0, %v8251_v39  ;;  %8272 = vpow2.f32 %v4377_v52  ;;  %4789 = vmatprep.mubr.f32.mxu1 %v4558_v40  ;;  %v4930_v42 = vpop.f32.mrb[1].mxu0 }
 0x742   :  { %v8255_v9 = vpop.eup %8254  ;;  %8274 = vrcp.f32 %v4436_v26  ;;  %v4559_v51 = vmul.f32 %v8253_v53, %v12155_v20 }
 0x743   :  { %v8257_v47 = vpop.eup %8256  ;;  %v4560_v18 = vmul.f32 %v8255_v9, %v12154_v10  ;;  %8276 = vpow2.f32 %v4379_v27 }
 0x744   :  { %v8259_v59 = vpop.eup %8258  ;;  %v4438_v11 = vadd.f32 1.0, %v8257_v47  ;;  %4790 = vmatmul.mubr.f32.gmra.mrb[16].mxu1 %v4557_v41  ;;  %v11047_v7 = vpop.f32.mrb[2].mxu0  ;;  %8278 = vrcp.f32 %v4437_v19 }
 0x745   :  { %v8261_v63 = vpop.eup %8260  ;;  %4794 = vmatprep.mubr.f32.mxu1 %v4560_v18  ;;  %v4935_v22 = vpop.f32.mrb[3].mxu0  ;;  %v4561_v60 = vmul.f32 %v8259_v59, %v12157_v56 }
 0x746   :  { %v8263_v3 = vpop.eup %8262  ;;  %8280 = vrcp.f32 %v4438_v11  ;;  %v4439_v1 = vadd.f32 1.0, %v8261_v63 }
 0x747   :  { %v8265_v36 = vpop.eup %8264  ;;  %v4440_v17 = vadd.f32 1.0, %v8263_v3 }
 0x748   :  { %v8267_v28 = vpop.eup %8266  ;;  %8282 = vrcp.f32 %v4439_v1  ;;  %v4441_v58 = vadd.f32 1.0, %v8265_v36  ;;  %4795 = vmatmul.mubr.f32.gmra.mrb[18].mxu1 %v4559_v51  ;;  %v11050_v62 = vpop.f32.mrb[4].mxu0 }
 0x749   :  { %v8269_v34 = vpop.eup %8268  ;;  %8284 = vrcp.f32 %v4440_v17  ;;  %v4562_v48 = vmul.f32 %v8267_v28, %v12156_v38  ;;  %v4940_v61 = vpop.f32.mrb[5].mxu0 }
 0x74a   :  { %v8271_v12 = vpop.eup %8270  ;;  %8286 = vrcp.f32 %v4441_v58  ;;  %v4563_v23 = vmul.f32 %v8269_v34, %v12159_v31 }
 0x74b   :  { %v8273_v21 = vpop.eup %8272  ;;  %v4442_v5 = vadd.f32 1.0, %v8271_v12  ;;  %4799 = vmatprep.mubr.f32.mxu1 %v4562_v48 }
 0x74c   :  { %v8275_v45 = vpop.eup %8274  ;;  %v4443_v29 = vadd.f32 1.0, %v8273_v21  ;;  %4800 = vmatmul.mubr.f32.gmra.mrb[20].mxu1 %v4561_v60  ;;  %v11054_v16 = vpop.f32.mrb[6].mxu0 }
 0x74d   :  { %8288 = vrcp.f32 %v4442_v5  ;;  %v4564_v46 = vmul.f32 %v8275_v45, %v12158_v35  ;;  %v4945_v15 = vpop.f32.mrb[7].mxu0  ;;  %v8277_v57 = vpop.eup %8276 }
 0x74e   :  { %v8279_v33 = vpop.eup %8278  ;;  %v4444_v6 = vadd.f32 1.0, %v8277_v57  ;;  %8290 = vrcp.f32 %v4443_v29 }
 0x74f   :  { %4804 = vmatprep.mubr.f32.mxu1 %v4564_v46  ;;  %v4565_v55 = vmul.f32 %v8279_v33, %v12161_v13  ;;  %v5343_v33 = vld [vmem:[%s11821_s10] sm:$0xff] }
 0x750   :  { %v8281_v44 = vpop.eup %8280  ;;  %4805 = vmatmul.mubr.f32.gmra.mrb[22].mxu1 %v4563_v23  ;;  %v11058_v0 = vpop.f32.mrb[8].mxu0  ;;  %8292 = vrcp.f32 %v4444_v6  ;;  %v5344_v6 = vld [vmem:[%s11821_s10 + $0x8] sm:$0xff] }
 0x751   :  { %v4566_v37 = vmul.f32 %v8281_v44, %v12160_v8  ;;  %v4950_v4 = vpop.f32.mrb[9].mxu0  ;;  %v7709_v44 = vpack.c.bf16 %v5344_v6, %v5343_v33 }
 0x752   :  { %v8283_v32 = vpop.eup %8282 }
 0x753   :  { %v8285_v50 = vpop.eup %8284  ;;  %4809 = vmatprep.mubr.f32.mxu1 %v4566_v37  ;;  %v4567_v26 = vmul.f32 %v8283_v32, %v12143_v43  ;;  %v12162_v43 = vld [vmem:[#allocation82_spill] sm:$0xff]  ;;  %7710 = vmatprep.subr.bf16.mxu1 %v7709_v44 }
 0x754   :  { %4810 = vmatmul.mubr.f32.gmra.mrb[24].mxu1 %v4565_v55  ;;  %v4568_v52 = vmul.f32 %v8285_v50, %v12142_v54  ;;  %v11063_v24 = vpop.f32.mrb[10].mxu0  ;;  %v8287_v39 = vpop.eup %8286 }
 0x755   :  { %v4955_v40 = vpop.f32.mrb[11].mxu0  ;;  %v4569_v49 = vmul.f32 %v8287_v39, %v12145_v2  ;;  %7712 = vmatpush3.bf16.msra.mxu1 %v7709_v44 }
 0x756   :  { %4814 = vmatprep.mubr.f32.mxu1 %v4568_v52 }
 0x757   :  { %v8289_v27 = vpop.eup %8288 }
 0x758   :  { %4815 = vmatmul.mubr.f32.gmra.mrb[26].mxu1 %v4567_v26  ;;  %v4570_v53 = vmul.f32 %v8289_v27, %v12144_v14  ;;  %v11067_v19 = vpop.f32.mrb[12].mxu0  ;;  %v8291_v9 = vpop.eup %8290  ;;  %v12163_v26 = vld [vmem:[#allocation2_spill] sm:$0xff] }
 0x759   :  { %v4960_v42 = vpop.f32.mrb[13].mxu0  ;;  %v4571_v18 = vmul.f32 %v8291_v9, %v12162_v43  ;;  %v3708_v27 = vmax.f32 %v12163_v26, 0.0 }
 0x75a   :  { %4819 = vmatprep.mubr.f32.mxu1 %v4570_v53  ;;  %v8293_v41 = vpop.eup %8292 }
 0x75b   :  { %v4572_v54 = vmul.f32 %v8293_v41, %v12146_v30 }
 0x75c   :  { %4820 = vmatmul.mubr.f32.gmra.mrb[28].mxu1 %v4569_v49  ;;  %v11071_v47 = vpop.f32.mrb[14].mxu0 }
 0x75d   :  { %v4965_v10 = vpop.f32.mrb[15].mxu0  ;;  %4824 = vmatprep.mubr.f32.mxu1 %v4572_v54  ;;  %v12164_v54 = vld [vmem:[#allocation3_spill] sm:$0xff] }
 0x75e   :  { %v3709_v10 = vmax.f32 %v12164_v54, 0.0 }
 0x760   :  { %4825 = vmatmul.mubr.f32.gmra.mrb[30].mxu1 %v4571_v18  ;;  %v11074_v59 = vpop.f32.mrb[16].mxu0 }
 0x761   :  { %v4970_v14 = vpop.f32.mrb[17].mxu0 }
 0x764   :  { %v11076_v11 = vpop.f32.mrb[18].mxu0 }
 0x765   :  { %v4975_v63 = vpop.f32.mrb[19].mxu0 }
 0x768   :  { %v11078_v22 = vpop.f32.mrb[20].mxu0 }
 0x769   :  { %v4980_v2 = vpop.f32.mrb[21].mxu0 }
 0x76c   :  { %v11080_v3 = vpop.f32.mrb[22].mxu0 }
 0x76d   :  { %v4985_v1 = vpop.f32.mrb[23].mxu0 }
 0x770   :  { %v11082_v30 = vpop.f32.mrb[24].mxu0 }
 0x771   :  { %v4990_v20 = vpop.f32.mrb[25].mxu0 }
 0x774   :  { %v11084_v51 = vpop.f32.mrb[26].mxu0 }
 0x775   :  { %v4995_v36 = vpop.f32.mrb[27].mxu0 }
 0x776   :  { %v12165_v36 = vld [vmem:[#allocation4_spill] sm:$0xff] }
 0x778   :  { %v11086_v17 = vpop.f32.mrb[28].mxu0 }
 0x779   :  { %v5000_v28 = vpop.f32.mrb[29].mxu0 }
 0x77a   :  { %v3710_v28 = vmax.f32 %v12165_v36, 0.0 }
 0x77c   :  { %v11088_v58 = vpop.f32.mrb[30].mxu0 }
 0x77d   :  { %v5005_v34 = vpop.f32.mrb[31].mxu0 }
 0x780   :  { %v11090_v38 = vpop.f32.mrb[32].mxu0 }
 0x781   :  { %v5010_v48 = vpop.f32.mrb[33].mxu0 }
 0x784   :  { %v11092_v61 = vpop.f32.mrb[34].mxu0 }
 0x785   :  { %v5015_v12 = vpop.f32.mrb[35].mxu0 }
 0x788   :  { %v11094_v56 = vpop.f32.mrb[36].mxu0 }
 0x789   :  { %v5020_v60 = vpop.f32.mrb[37].mxu0 }
 0x78c   :  { %v11096_v21 = vpop.f32.mrb[38].mxu0 }
 0x78d   :  { %v5025_v5 = vpop.f32.mrb[39].mxu0 }
 0x790   :  { %v11098_v45 = vpop.f32.mrb[40].mxu0 }
 0x791   :  { %v5030_v29 = vpop.f32.mrb[41].mxu0 }
 0x794   :  { %v11100_v35 = vpop.f32.mrb[42].mxu0 }
 0x795   :  { %v5035_v46 = vpop.f32.mrb[43].mxu0 }
 0x798   :  { %v11102_v15 = vpop.f32.mrb[44].mxu0 }
 0x799   :  { %v5040_v57 = vpop.f32.mrb[45].mxu0 }
 0x79c   :  { %v11104_v31 = vpop.f32.mrb[46].mxu0 }
 0x79d   :  { %v5045_v23 = vpop.f32.mrb[47].mxu0 }
 0x7a0   :  { %v11112_v8 = vpop.f32.mrb[48].mxu0 }
 0x7a1   :  { %v5050_v37 = vpop.f32.mrb[49].mxu0 }
 0x7a4   :  { %v11114_v4 = vpop.f32.mrb[50].mxu0 }
 0x7a5   :  { %v5055_v32 = vpop.f32.mrb[51].mxu0 }
 0x7a8   :  { %v11116_v13 = vpop.f32.mrb[52].mxu0 }
 0x7a9   :  { %v5060_v55 = vpop.f32.mrb[53].mxu0 }
 0x7ac   :  { %v11118_v50 = vpop.f32.mrb[54].mxu0 }
 0x7ad   :  { %v5065_v52 = vpop.f32.mrb[55].mxu0 }
 0x7ae   :  { %v12167_v52 = vld [vmem:[#allocation6_spill] sm:$0xff] }
 0x7b0   :  { %v11120_v40 = vpop.f32.mrb[56].mxu0 }
 0x7b1   :  { %v5070_v39 = vpop.f32.mrb[57].mxu0 }
 0x7b2   :  { %v3712_v39 = vmax.f32 %v12167_v52, 0.0 }
 0x7b4   :  { %v4671_v53 = vpop.f32.mrb[224].mxu1  ;;  %v11123_v42 = vpop.f32.mrb[58].mxu0 }
 0x7b5   :  { %v4830_v9 = vadd.f32 %v4671_v53, %v3708_v27  ;;  %v4673_v49 = vpop.f32.mrb[225].mxu1  ;;  %v5075_v41 = vpop.f32.mrb[59].mxu0 }
 0x7b6   :  { %v12168_v49 = vld [vmem:[#allocation7_spill] sm:$0xff] }
 0x7b7   :  { %v11127_v43 = vsub.f32 %v4830_v9, %v11043_v25  ;;  %v3713_v41 = vmax.f32 %v12168_v49, 0.0  ;;  %v12172_v49 = vld [vmem:[#allocation11_spill] sm:$0xff] }
 0x7b8   :  { %v4676_v18 = vpop.f32.mrb[226].mxu1  ;;  %v11129_v14 = vpop.f32.mrb[60].mxu0 }
 0x7b9   :  { %v4831_v63 = vadd.f32 %v4676_v18, %v3709_v10  ;;  %v4678_v2 = vpop.f32.mrb[227].mxu1  ;;  %v5119_v1 = vmul.f32 %v11127_v43, %v11127_v43  ;;  %v5080_v20 = vpop.f32.mrb[61].mxu0 }
 0x7bb   :  { %v11135_v34 = vsub.f32 %v4831_v63, %v11047_v7  ;;  %v5151_v48 = vsel %vm518_vm1, %v5119_v1, 0.0  ;;  %v12166_v7 = vld [vmem:[#allocation5_spill] sm:$0xff]  ;;  %v12169_v1 = vld [vmem:[#allocation8_spill] sm:$0xff] }
 0x7bc   :  { %v4681_v12 = vpop.f32.mrb[228].mxu1  ;;  %5152 = vadd.xlane.f32.xlu0 %v5151_v48  ;;  %v11138_v25 = vpop.f32.mrb[62].mxu0  ;;  %v3711_v33 = vmax.f32 %v12166_v7, 0.0  ;;  %v3714_v20 = vmax.f32 %v12169_v1, 0.0  ;;  %v12173_v1 = vld [vmem:[#allocation12_spill] sm:$0xff] }
 0x7bd   :  { %v4832_v60 = vadd.f32 %v4681_v12, %v3710_v28  ;;  %v4683_v5 = vpop.f32.mrb[229].mxu1  ;;  %v5120_v29 = vmul.f32 %v11135_v34, %v11135_v34  ;;  %v5085_v46 = vpop.f32.mrb[63].mxu0 }
 0x7be   :  { %v12170_v5 = vld [vmem:[#allocation9_spill] sm:$0xff] }
 0x7bf   :  { %v11143_v57 = vsub.f32 %v4832_v60, %v11050_v62  ;;  %v5154_v23 = vsel %vm518_vm1, %v5120_v29, 0.0  ;;  %v3715_v29 = vmax.f32 %v12170_v5, 0.0  ;;  %v12174_v5 = vld [vmem:[#allocation13_spill] sm:$0xff] }
 0x7c0   :  { %5155 = vadd.xlane.f32.xlu1 %v5154_v23 }
 0x7c1   :  { %v5121_v6 = vmul.f32 %v11143_v57, %v11143_v57 }
 0x7c2   :  { %v4686_v44 = vpop.f32.mrb[230].mxu1 }
 0x7c3   :  { %v4833_v37 = vadd.f32 %v4686_v44, %v3711_v33  ;;  %v4688_v32 = vpop.f32.mrb[231].mxu1  ;;  %v5157_v55 = vsel %vm518_vm1, %v5121_v6, 0.0  ;;  %v12171_v44 = vld [vmem:[#allocation10_spill] sm:$0xff] }
 0x7c4   :  { %5158 = vadd.xlane.f32.xlu0 %v5157_v55 }
 0x7c5   :  { %v11152_v26 = vsub.f32 %v4833_v37, %v11054_v16  ;;  %v3716_v37 = vmax.f32 %v12171_v44, 0.0  ;;  %v12175_v44 = vld [vmem:[#allocation14_spill] sm:$0xff] }
 0x7c6   :  { %v4691_v62 = vpop.f32.mrb[232].mxu1 }
 0x7c7   :  { %v4834_v27 = vadd.f32 %v4691_v62, %v3712_v39  ;;  %v4693_v53 = vpop.f32.mrb[233].mxu1  ;;  %v5122_v9 = vmul.f32 %v11152_v26, %v11152_v26 }
 0x7c9   :  { %v11158_v54 = vsub.f32 %v4834_v27, %v11058_v0  ;;  %v5160_v10 = vsel %vm518_vm1, %v5122_v9, 0.0  ;;  %v5345_v9 = vld [vmem:[%s11821_s10 + $0x10] sm:$0xff] }
 0x7ca   :  { %v4696_v18 = vpop.f32.mrb[234].mxu1  ;;  %5161 = vadd.xlane.f32.xlu1 %v5160_v10 }
 0x7cb   :  { %v4835_v63 = vadd.f32 %v4696_v18, %v3713_v41  ;;  %v4698_v2 = vpop.f32.mrb[235].mxu1  ;;  %v5123_v16 = vmul.f32 %v11158_v54, %v11158_v54  ;;  %v3717_v41 = vmax.f32 %v12172_v49, 0.0 }
 0x7cd   :  { %v11165_v36 = vsub.f32 %v4835_v63, %v11063_v24  ;;  %v5163_v28 = vsel %vm518_vm1, %v5123_v16, 0.0 }
 0x7ce   :  { %v4701_v48 = vpop.f32.mrb[236].mxu1  ;;  %5164 = vadd.xlane.f32.xlu0 %v5163_v28 }
 0x7cf   :  { %v4836_v0 = vadd.f32 %v4701_v48, %v3714_v20  ;;  %v4703_v12 = vpop.f32.mrb[237].mxu1  ;;  %v5124_v60 = vmul.f32 %v11165_v36, %v11165_v36  ;;  %v3718_v20 = vmax.f32 %v12173_v1, 0.0 }
 0x7d1   :  { %v11172_v46 = vsub.f32 %v4836_v0, %v11067_v19  ;;  %v5166_v23 = vsel %vm518_vm1, %v5124_v60, 0.0 }
 0x7d2   :  { %v4706_v7 = vpop.f32.mrb[238].mxu1  ;;  %5167 = vadd.xlane.f32.xlu1 %v5166_v23 }
 0x7d3   :  { %v4837_v24 = vadd.f32 %v4706_v7, %v3715_v29  ;;  %v4708_v33 = vpop.f32.mrb[239].mxu1  ;;  %v5125_v6 = vmul.f32 %v11172_v46, %v11172_v46  ;;  %v3719_v29 = vmax.f32 %v12174_v5, 0.0 }
 0x7d5   :  { %v11179_v32 = vsub.f32 %v4837_v24, %v11071_v47  ;;  %v5169_v55 = vsel %vm518_vm1, %v5125_v6, 0.0  ;;  %v5346_v47 = vld [vmem:[%s11821_s10 + $0x18] sm:$0xff] }
 0x7d6   :  { %v4711_v52 = vpop.f32.mrb[240].mxu1  ;;  %5170 = vadd.xlane.f32.xlu0 %v5169_v55  ;;  %v7713_v10 = vpack.c.bf16 %v5346_v47, %v5345_v9 }
 0x7d7   :  { %v4838_v19 = vadd.f32 %v4711_v52, %v3716_v37  ;;  %v4713_v39 = vpop.f32.mrb[241].mxu1  ;;  %v5126_v62 = vmul.f32 %v11179_v32, %v11179_v32  ;;  %v3720_v37 = vmax.f32 %v12175_v44, 0.0 }
 0x7d8   :  { %7714 = vmatprep.subr.bf16.mxu1 %v7713_v10 }
 0x7d9   :  { %v11185_v27 = vsub.f32 %v4838_v19, %v11074_v59  ;;  %v5172_v53 = vsel %vm518_vm1, %v5126_v62, 0.0  ;;  %7716 = vmatpush3.bf16.msra.mxu1 %v7713_v10 }
 0x7da   :  { %5173 = vadd.xlane.f32.xlu1 %v5172_v53  ;;  %v12176_v53 = vld [vmem:[#allocation15_spill] sm:$0xff] }
 0x7db   :  { %v4716_v18 = vpop.f32.mrb[242].mxu1  ;;  %v5127_v63 = vmul.f32 %v11185_v27, %v11185_v27  ;;  %v3721_v9 = vmax.f32 %v12176_v53, 0.0 }
 0x7dc   :  { %v4839_v59 = vadd.f32 %v4716_v18, %v3717_v41  ;;  %v4718_v2 = vpop.f32.mrb[243].mxu1 }
 0x7dd   :  { %v5175_v16 = vsel %vm518_vm1, %v5127_v63, 0.0  ;;  %v12177_v63 = vld [vmem:[#allocation16_spill] sm:$0xff] }
 0x7de   :  { %v11200_v28 = vsub.f32 %v4839_v59, %v11076_v11  ;;  %5176 = vadd.xlane.f32.xlu0 %v5175_v16  ;;  %v3722_v59 = vmax.f32 %v12177_v63, 0.0 }
 0x7df   :  { %v4721_v48 = vpop.f32.mrb[244].mxu1 }
 0x7e0   :  { %v4840_v0 = vadd.f32 %v4721_v48, %v3718_v20  ;;  %v4723_v12 = vpop.f32.mrb[245].mxu1  ;;  %v5128_v60 = vmul.f32 %v11200_v28, %v11200_v28 }
 0x7e2   :  { %v11206_v23 = vsub.f32 %v4840_v0, %v11078_v22  ;;  %v5178_v7 = vsel %vm518_vm1, %v5128_v60, 0.0  ;;  %v12178_v0 = vld [vmem:[#allocation17_spill] sm:$0xff] }
 0x7e3   :  { %v4726_v24 = vpop.f32.mrb[246].mxu1  ;;  %5179 = vadd.xlane.f32.xlu1 %v5178_v7  ;;  %v3723_v12 = vmax.f32 %v12178_v0, 0.0 }
 0x7e4   :  { %v4841_v33 = vadd.f32 %v4726_v24, %v3719_v29  ;;  %v4728_v6 = vpop.f32.mrb[247].mxu1  ;;  %v5129_v11 = vmul.f32 %v11206_v23, %v11206_v23 }
 0x7e6   :  { %v11213_v55 = vsub.f32 %v4841_v33, %v11080_v3  ;;  %v5181_v52 = vsel %vm518_vm1, %v5129_v11, 0.0  ;;  %v12179_v33 = vld [vmem:[#allocation18_spill] sm:$0xff] }
 0x7e7   :  { %v4731_v19 = vpop.f32.mrb[248].mxu1  ;;  %5182 = vadd.xlane.f32.xlu0 %v5181_v52  ;;  %v3724_v6 = vmax.f32 %v12179_v33, 0.0 }
 0x7e8   :  { %v4842_v22 = vadd.f32 %v4731_v19, %v3720_v37  ;;  %v4733_v39 = vpop.f32.mrb[249].mxu1  ;;  %v5130_v62 = vmul.f32 %v11213_v55, %v11213_v55 }
 0x7ea   :  { %v11220_v47 = vsub.f32 %v4842_v22, %v11082_v30  ;;  %v5184_v49 = vsel %vm518_vm1, %v5130_v62, 0.0  ;;  %v12180_v22 = vld [vmem:[#allocation19_spill] sm:$0xff] }
 0x7eb   :  { %v4736_v41 = vpop.f32.mrb[250].mxu1  ;;  %5185 = vadd.xlane.f32.xlu1 %v5184_v49  ;;  %v3725_v39 = vmax.f32 %v12180_v22, 0.0 }
 0x7ec   :  { %v4843_v3 = vadd.f32 %v4736_v41, %v3721_v9  ;;  %v4738_v10 = vpop.f32.mrb[251].mxu1  ;;  %v5131_v18 = vmul.f32 %v11220_v47, %v11220_v47 }
 0x7ee   :  { %v11227_v2 = vsub.f32 %v4843_v3, %v11084_v51  ;;  %v5187_v16 = vsel %vm518_vm1, %v5131_v18, 0.0  ;;  %v12181_v3 = vld [vmem:[#allocation21_spill] sm:$0xff] }
 0x7ef   :  { %v4741_v1 = vpop.f32.mrb[252].mxu1  ;;  %5188 = vadd.xlane.f32.xlu0 %v5187_v16  ;;  %v3726_v10 = vmax.f32 %v12181_v3, 0.0 }
 0x7f0   :  { %v4844_v30 = vadd.f32 %v4741_v1, %v3722_v59  ;;  %v4743_v20 = vpop.f32.mrb[253].mxu1  ;;  %v5132_v48 = vmul.f32 %v11227_v2, %v11227_v2 }
 0x7f2   :  { %v11234_v60 = vsub.f32 %v4844_v30, %v11086_v17  ;;  %v5190_v5 = vsel %vm518_vm1, %v5132_v48, 0.0  ;;  %v12182_v30 = vld [vmem:[#allocation22_spill] sm:$0xff] }
 0x7f3   :  { %v4746_v29 = vpop.f32.mrb[254].mxu1  ;;  %5191 = vadd.xlane.f32.xlu1 %v5190_v5  ;;  %v3727_v20 = vmax.f32 %v12182_v30, 0.0 }
 0x7f4   :  { %v4845_v51 = vadd.f32 %v4746_v29, %v3723_v12  ;;  %v4748_v7 = vpop.f32.mrb[255].mxu1  ;;  %v5133_v24 = vmul.f32 %v11234_v60, %v11234_v60 }
 0x7f6   :  { %v11241_v11 = vsub.f32 %v4845_v51, %v11088_v58  ;;  %v5193_v44 = vsel %vm518_vm1, %v5133_v24, 0.0  ;;  %v12183_v51 = vld [vmem:[#allocation23_spill] sm:$0xff] }
 0x7f7   :  { %v4751_v37 = vpop.f32.mrb[0].mxu1  ;;  %5194 = vadd.xlane.f32.xlu0 %v5193_v44  ;;  %v3728_v7 = vmax.f32 %v12183_v51, 0.0 }
 0x7f8   :  { %v4846_v17 = vadd.f32 %v4751_v37, %v3724_v6  ;;  %v4753_v52 = vpop.f32.mrb[1].mxu1  ;;  %v5134_v19 = vmul.f32 %v11241_v11, %v11241_v11 }
 0x7fa   :  { %v11248_v62 = vsub.f32 %v4846_v17, %v11090_v38  ;;  %v5196_v53 = vsel %vm518_vm1, %v5134_v19, 0.0  ;;  %v12184_v17 = vld [vmem:[#allocation24_spill] sm:$0xff] }
 0x7fb   :  { %v4756_v9 = vpop.f32.mrb[2].mxu1  ;;  %5197 = vadd.xlane.f32.xlu1 %v5196_v53  ;;  %v3729_v52 = vmax.f32 %v12184_v17, 0.0 }
 0x7fc   :  { %v4847_v58 = vadd.f32 %v4756_v9, %v3725_v39  ;;  %v4758_v49 = vpop.f32.mrb[3].mxu1  ;;  %v5135_v41 = vmul.f32 %v11248_v62, %v11248_v62 }
 0x7fe   :  { %v11255_v18 = vsub.f32 %v4847_v58, %v11092_v61  ;;  %v5199_v63 = vsel %vm518_vm1, %v5135_v41, 0.0  ;;  %v12185_v58 = vld [vmem:[#allocation25_spill] sm:$0xff] }
 0x7ff   :  { %v4761_v59 = vpop.f32.mrb[4].mxu1  ;;  %5200 = vadd.xlane.f32.xlu0 %v5199_v63  ;;  %v3730_v49 = vmax.f32 %v12185_v58, 0.0 }
 0x800   :  { %v4848_v38 = vadd.f32 %v4761_v59, %v3726_v10  ;;  %v4763_v16 = vpop.f32.mrb[5].mxu1  ;;  %v5136_v1 = vmul.f32 %v11255_v18, %v11255_v18 }
 0x802   :  { %v11262_v48 = vsub.f32 %v4848_v38, %v11094_v56  ;;  %v5202_v0 = vsel %vm518_vm1, %v5136_v1, 0.0  ;;  %v12186_v38 = vld [vmem:[#allocation26_spill] sm:$0xff] }
 0x803   :  { %v4766_v12 = vpop.f32.mrb[6].mxu1  ;;  %5203 = vadd.xlane.f32.xlu1 %v5202_v0  ;;  %v3731_v16 = vmax.f32 %v12186_v38, 0.0 }
 0x804   :  { %v4849_v61 = vadd.f32 %v4766_v12, %v3727_v20  ;;  %v4768_v5 = vpop.f32.mrb[7].mxu1  ;;  %v5137_v29 = vmul.f32 %v11262_v48, %v11262_v48 }
 0x806   :  { %v11269_v24 = vsub.f32 %v4849_v61, %v11096_v21  ;;  %v5205_v33 = vsel %vm518_vm1, %v5137_v29, 0.0  ;;  %v12187_v61 = vld [vmem:[#allocation27_spill] sm:$0xff] }
 0x807   :  { %v4771_v6 = vpop.f32.mrb[8].mxu1  ;;  %5206 = vadd.xlane.f32.xlu0 %v5205_v33  ;;  %v3732_v5 = vmax.f32 %v12187_v61, 0.0 }
 0x808   :  { %v4850_v56 = vadd.f32 %v4771_v6, %v3728_v7  ;;  %v4773_v44 = vpop.f32.mrb[9].mxu1  ;;  %v5138_v37 = vmul.f32 %v11269_v24, %v11269_v24 }
 0x80a   :  { %v11276_v19 = vsub.f32 %v4850_v56, %v11098_v45  ;;  %v5208_v22 = vsel %vm518_vm1, %v5138_v37, 0.0  ;;  %v12188_v56 = vld [vmem:[#allocation28_spill] sm:$0xff] }
 0x80b   :  { %v4776_v39 = vpop.f32.mrb[10].mxu1  ;;  %5209 = vadd.xlane.f32.xlu1 %v5208_v22  ;;  %v3733_v44 = vmax.f32 %v12188_v56, 0.0 }
 0x80c   :  { %v4851_v21 = vadd.f32 %v4776_v39, %v3729_v52  ;;  %v4778_v53 = vpop.f32.mrb[11].mxu1  ;;  %v5139_v9 = vmul.f32 %v11276_v19, %v11276_v19 }
 0x80e   :  { %v11283_v41 = vsub.f32 %v4851_v21, %v11100_v35  ;;  %v5211_v3 = vsel %vm518_vm1, %v5139_v9, 0.0  ;;  %v12189_v21 = vld [vmem:[#allocation29_spill] sm:$0xff] }
 0x80f   :  { %v4781_v10 = vpop.f32.mrb[12].mxu1  ;;  %5212 = vadd.xlane.f32.xlu0 %v5211_v3  ;;  %v3734_v53 = vmax.f32 %v12189_v21, 0.0 }
 0x810   :  { %v4852_v45 = vadd.f32 %v4781_v10, %v3730_v49  ;;  %v4783_v63 = vpop.f32.mrb[13].mxu1  ;;  %v5140_v59 = vmul.f32 %v11283_v41, %v11283_v41 }
 0x812   :  { %v11290_v1 = vsub.f32 %v4852_v45, %v11102_v15  ;;  %v5214_v30 = vsel %vm518_vm1, %v5140_v59, 0.0  ;;  %v12190_v45 = vld [vmem:[#allocation30_spill] sm:$0xff] }
 0x813   :  { %v4786_v20 = vpop.f32.mrb[14].mxu1  ;;  %5215 = vadd.xlane.f32.xlu1 %v5214_v30  ;;  %v3735_v63 = vmax.f32 %v12190_v45, 0.0 }
 0x814   :  { %v4853_v35 = vadd.f32 %v4786_v20, %v3731_v16  ;;  %v4788_v0 = vpop.f32.mrb[15].mxu1  ;;  %v5141_v12 = vmul.f32 %v11290_v1, %v11290_v1 }
 0x816   :  { %v11297_v29 = vsub.f32 %v4853_v35, %v11104_v31  ;;  %v5217_v51 = vsel %vm518_vm1, %v5141_v12, 0.0  ;;  %v12191_v35 = vld [vmem:[#allocation31_spill] sm:$0xff] }
 0x817   :  { %v4791_v7 = vpop.f32.mrb[16].mxu1  ;;  %5218 = vadd.xlane.f32.xlu0 %v5217_v51  ;;  %v3736_v0 = vmax.f32 %v12191_v35, 0.0 }
 0x818   :  { %v4854_v15 = vadd.f32 %v4791_v7, %v3732_v5  ;;  %v4793_v33 = vpop.f32.mrb[17].mxu1  ;;  %v5142_v6 = vmul.f32 %v11297_v29, %v11297_v29 }
 0x81a   :  { %v11304_v37 = vsub.f32 %v4854_v15, %v11112_v8  ;;  %v5220_v17 = vsel %vm518_vm1, %v5142_v6, 0.0  ;;  %v12192_v15 = vld [vmem:[#allocation32_spill] sm:$0xff] }
 0x81b   :  { %v4796_v52 = vpop.f32.mrb[18].mxu1  ;;  %5221 = vadd.xlane.f32.xlu1 %v5220_v17  ;;  %v3737_v33 = vmax.f32 %v12192_v15, 0.0 }
 0x81c   :  { %v4855_v31 = vadd.f32 %v4796_v52, %v3733_v44  ;;  %v4798_v22 = vpop.f32.mrb[19].mxu1  ;;  %v5143_v39 = vmul.f32 %v11304_v37, %v11304_v37 }
 0x81e   :  { %v11311_v9 = vsub.f32 %v4855_v31, %v11114_v4  ;;  %v5223_v58 = vsel %vm518_vm1, %v5143_v39, 0.0  ;;  %v12193_v31 = vld [vmem:[#allocation33_spill] sm:$0xff] }
 0x81f   :  { %v4801_v49 = vpop.f32.mrb[20].mxu1  ;;  %5224 = vadd.xlane.f32.xlu0 %v5223_v58  ;;  %v3738_v22 = vmax.f32 %v12193_v31, 0.0 }
 0x820   :  { %v4856_v8 = vadd.f32 %v4801_v49, %v3734_v53  ;;  %v4803_v3 = vpop.f32.mrb[21].mxu1  ;;  %v5144_v10 = vmul.f32 %v11311_v9, %v11311_v9 }
 0x822   :  { %v11318_v59 = vsub.f32 %v4856_v8, %v11116_v13  ;;  %v5226_v38 = vsel %vm518_vm1, %v5144_v10, 0.0  ;;  %v12194_v8 = vld [vmem:[#allocation34_spill] sm:$0xff] }
 0x823   :  { %v4806_v16 = vpop.f32.mrb[22].mxu1  ;;  %5227 = vadd.xlane.f32.xlu1 %v5226_v38  ;;  %v3739_v3 = vmax.f32 %v12194_v8, 0.0 }
 0x824   :  { %v4857_v4 = vadd.f32 %v4806_v16, %v3735_v63  ;;  %v4808_v30 = vpop.f32.mrb[23].mxu1  ;;  %v5145_v20 = vmul.f32 %v11318_v59, %v11318_v59 }
 0x826   :  { %v11325_v12 = vsub.f32 %v4857_v4, %v11118_v50  ;;  %v5229_v61 = vsel %vm518_vm1, %v5145_v20, 0.0 }
 0x827   :  { %v4811_v5 = vpop.f32.mrb[24].mxu1  ;;  %5230 = vadd.xlane.f32.xlu0 %v5229_v61 }
 0x828   :  { %v4858_v13 = vadd.f32 %v4811_v5, %v3736_v0  ;;  %v4813_v51 = vpop.f32.mrb[25].mxu1  ;;  %v5146_v7 = vmul.f32 %v11325_v12, %v11325_v12 }
 0x82a   :  { %v11332_v6 = vsub.f32 %v4858_v13, %v11120_v40  ;;  %v5232_v56 = vsel %vm518_vm1, %v5146_v7, 0.0 }
 0x82b   :  { %v4816_v44 = vpop.f32.mrb[26].mxu1  ;;  %5233 = vadd.xlane.f32.xlu1 %v5232_v56 }
 0x82c   :  { %v4859_v50 = vadd.f32 %v4816_v44, %v3737_v33  ;;  %v4818_v17 = vpop.f32.mrb[27].mxu1  ;;  %v5147_v52 = vmul.f32 %v11332_v6, %v11332_v6 }
 0x82e   :  { %v11339_v39 = vsub.f32 %v4859_v50, %v11123_v42  ;;  %v5235_v21 = vsel %vm518_vm1, %v5147_v52, 0.0 }
 0x82f   :  { %v4821_v53 = vpop.f32.mrb[28].mxu1  ;;  %5236 = vadd.xlane.f32.xlu0 %v5235_v21 }
 0x830   :  { %v4860_v40 = vadd.f32 %v4821_v53, %v3738_v22  ;;  %v4823_v58 = vpop.f32.mrb[29].mxu1  ;;  %v5148_v49 = vmul.f32 %v11339_v39, %v11339_v39 }
 0x832   :  { %v11346_v10 = vsub.f32 %v4860_v40, %v11129_v14  ;;  %v5238_v45 = vsel %vm518_vm1, %v5148_v49, 0.0 }
 0x833   :  { %5239 = vadd.xlane.f32.xlu1 %v5238_v45  ;;  %v4826_v63 = vpop.f32.mrb[30].mxu1 }
 0x834   :  { %v4861_v42 = vadd.f32 %v4826_v63, %v3739_v3  ;;  %v4828_v38 = vpop.f32.mrb[31].mxu1  ;;  %v5149_v16 = vmul.f32 %v11346_v10, %v11346_v10 }
 0x836   :  { %v11352_v4 = vsub.f32 %v4861_v42, %v11138_v25  ;;  %v5241_v30 = vsel %vm518_vm1, %v5149_v16, 0.0 }
 0x837   :  { %5242 = vadd.xlane.f32.xlu0 %v5241_v30 }
 0x838   :  { %v5150_v20 = vmul.f32 %v11352_v4, %v11352_v4 }
 0x83a   :  { %v5244_v14 = vsel %vm518_vm1, %v5150_v20, 0.0 }
 0x83b   :  { %5245 = vadd.xlane.f32.xlu1 %v5244_v14 }
 0x849   :  { %v5153_v35 = vpop.xlane.xlu0 %5152 }
 0x84a   :  { %v5247_v0 = vmax.f32 %v5153_v35, 1e-24 }
 0x84c   :  { %8294 = vrsqrt.f32 %v5247_v0 }
 0x84d   :  { %v5156_v61 = vpop.xlane.xlu1 %5155 }
 0x84e   :  { %v5248_v5 = vmax.f32 %v5156_v61, 1e-24 }
 0x850   :  { %8296 = vrsqrt.f32 %v5248_v5 }
 0x851   :  { %v5159_v13 = vpop.xlane.xlu0 %5158 }
 0x852   :  { %v5249_v51 = vmax.f32 %v5159_v13, 1e-24 }
 0x854   :  { %8298 = vrsqrt.f32 %v5249_v51 }
 0x856   :  { %v8295_v25 = vpop.eup %8294 }
 0x857   :  { %v5162_v7 = vpop.xlane.xlu1 %5161  ;;  %v5311_v15 = vmul.f32 %v8295_v25, %v11127_v43 }
 0x858   :  { %v5250_v33 = vmax.f32 %v5162_v7, 1e-24 }
 0x859   :  { %7309 = vmatprep.mubr.msk.f32.mxu1 %vm518_vm1, %v5311_v15 }
 0x85a   :  { %v8297_v56 = vpop.eup %8296  ;;  %8300 = vrsqrt.f32 %v5250_v33 }
 0x85b   :  { %v5312_v44 = vmul.f32 %v8297_v56, %v11135_v34  ;;  %v5165_v50 = vpop.xlane.xlu0 %5164 }
 0x85c   :  { %v5251_v17 = vmax.f32 %v5165_v50, 1e-24 }
 0x85d   :  { %7310 = vmatmul.mubr.msk.f32.vlgmr.msra.gmra.mrb[32].mxu1 %vm518_vm1, %v5312_v44 }
 0x85e   :  { %v8299_v52 = vpop.eup %8298  ;;  %8302 = vrsqrt.f32 %v5251_v17 }
 0x85f   :  { %v5168_v31 = vpop.xlane.xlu1 %5167  ;;  %v5313_v22 = vmul.f32 %v8299_v52, %v11143_v57 }
 0x860   :  { %v5252_v21 = vmax.f32 %v5168_v31, 1e-24 }
 0x861   :  { %7312 = vmatprep.mubr.msk.f32.mxu1 %vm518_vm1, %v5313_v22 }
 0x862   :  { %8304 = vrsqrt.f32 %v5252_v21 }
 0x863   :  { %v5171_v43 = vpop.xlane.xlu0 %5170 }
 0x864   :  { %v8301_v53 = vpop.eup %8300  ;;  %v5253_v40 = vmax.f32 %v5171_v43, 1e-24 }
 0x865   :  { %v5314_v58 = vmul.f32 %v8301_v53, %v11152_v26 }
 0x866   :  { %8306 = vrsqrt.f32 %v5253_v40 }
 0x867   :  { %v5174_v34 = vpop.xlane.xlu1 %5173  ;;  %7313 = vmatmul.mubr.msk.f32.gmra.mrb[34].mxu1 %vm518_vm1, %v5314_v58 }
 0x868   :  { %v8303_v49 = vpop.eup %8302  ;;  %v5254_v8 = vmax.f32 %v5174_v34, 1e-24 }
 0x869   :  { %v5315_v3 = vmul.f32 %v8303_v49, %v11158_v54 }
 0x86a   :  { %8308 = vrsqrt.f32 %v5254_v8 }
 0x86b   :  { %v5177_v45 = vpop.xlane.xlu0 %5176  ;;  %7315 = vmatprep.mubr.msk.f32.mxu1 %vm518_vm1, %v5315_v3 }
 0x86c   :  { %v8305_v57 = vpop.eup %8304  ;;  %v5255_v63 = vmax.f32 %v5177_v45, 1e-24 }
 0x86d   :  { %v5316_v42 = vmul.f32 %v8305_v57, %v11165_v36 }
 0x86e   :  { %8310 = vrsqrt.f32 %v5255_v63 }
 0x86f   :  { %7316 = vmatmul.mubr.msk.f32.gmra.mrb[36].mxu1 %vm518_vm1, %v5316_v42 }
 0x870   :  { %v8307_v26 = vpop.eup %8306  ;;  %v5180_v38 = vpop.xlane.xlu1 %5179 }
 0x871   :  { %v5256_v16 = vmax.f32 %v5180_v38, 1e-24  ;;  %v5317_v30 = vmul.f32 %v8307_v26, %v11172_v46 }
 0x873   :  { %8312 = vrsqrt.f32 %v5256_v16  ;;  %7318 = vmatprep.mubr.msk.f32.mxu1 %vm518_vm1, %v5317_v30 }
 0x874   :  { %v8309_v54 = vpop.eup %8308  ;;  %v5183_v20 = vpop.xlane.xlu0 %5182 }
 0x875   :  { %v5318_v14 = vmul.f32 %v8309_v54, %v11179_v32  ;;  %v5257_v35 = vmax.f32 %v5183_v20, 1e-24 }
 0x877   :  { %8314 = vrsqrt.f32 %v5257_v35  ;;  %7319 = vmatmul.mubr.msk.f32.gmra.mrb[38].mxu1 %vm518_vm1, %v5318_v14 }
 0x878   :  { %v8311_v36 = vpop.eup %8310  ;;  %v5186_v0 = vpop.xlane.xlu1 %5185 }
 0x879   :  { %v5258_v61 = vmax.f32 %v5186_v0, 1e-24  ;;  %v5319_v5 = vmul.f32 %v8311_v36, %v11185_v27 }
 0x87b   :  { %8316 = vrsqrt.f32 %v5258_v61  ;;  %7321 = vmatprep.mubr.msk.f32.mxu1 %vm518_vm1, %v5319_v5 }
 0x87c   :  { %v5189_v46 = vpop.xlane.xlu0 %5188 }
 0x87d   :  { %v8313_v13 = vpop.eup %8312  ;;  %v5259_v51 = vmax.f32 %v5189_v46, 1e-24 }
 0x87e   :  { %v5320_v25 = vmul.f32 %v8313_v13, %v11200_v28 }
 0x87f   :  { %8318 = vrsqrt.f32 %v5259_v51 }
 0x880   :  { %v5192_v7 = vpop.xlane.xlu1 %5191  ;;  %7322 = vmatmul.mubr.msk.f32.gmra.mrb[40].mxu1 %vm518_vm1, %v5320_v25 }
 0x881   :  { %v8315_v32 = vpop.eup %8314  ;;  %v5260_v15 = vmax.f32 %v5192_v7, 1e-24 }
 0x882   :  { %v5321_v33 = vmul.f32 %v8315_v32, %v11206_v23 }
 0x883   :  { %8320 = vrsqrt.f32 %v5260_v15 }
 0x884   :  { %v5195_v56 = vpop.xlane.xlu0 %5194  ;;  %7324 = vmatprep.mubr.msk.f32.mxu1 %vm518_vm1, %v5321_v33 }
 0x885   :  { %v8317_v27 = vpop.eup %8316  ;;  %v5261_v44 = vmax.f32 %v5195_v56, 1e-24 }
 0x886   :  { %v5322_v50 = vmul.f32 %v8317_v27, %v11213_v55 }
 0x887   :  { %8322 = vrsqrt.f32 %v5261_v44 }
 0x888   :  { %v5198_v17 = vpop.xlane.xlu1 %5197  ;;  %7325 = vmatmul.mubr.msk.f32.gmra.mrb[42].mxu1 %vm518_vm1, %v5322_v50 }
 0x889   :  { %v8319_v28 = vpop.eup %8318  ;;  %v5262_v52 = vmax.f32 %v5198_v17, 1e-24 }
 0x88a   :  { %v5323_v31 = vmul.f32 %v8319_v28, %v11220_v47 }
 0x88b   :  { %8324 = vrsqrt.f32 %v5262_v52 }
 0x88c   :  { %v5201_v22 = vpop.xlane.xlu0 %5200  ;;  %7327 = vmatprep.mubr.msk.f32.mxu1 %vm518_vm1, %v5323_v31 }
 0x88d   :  { %v8321_v23 = vpop.eup %8320  ;;  %v5263_v21 = vmax.f32 %v5201_v22, 1e-24 }
 0x88e   :  { %v5324_v43 = vmul.f32 %v8321_v23, %v11227_v2 }
 0x88f   :  { %8326 = vrsqrt.f32 %v5263_v21 }
 0x890   :  { %v5204_v53 = vpop.xlane.xlu1 %5203  ;;  %7328 = vmatmul.mubr.msk.f32.gmra.mrb[44].mxu1 %vm518_vm1, %v5324_v43 }
 0x891   :  { %v8323_v55 = vpop.eup %8322  ;;  %v5264_v40 = vmax.f32 %v5204_v53, 1e-24 }
 0x892   :  { %v5325_v58 = vmul.f32 %v8323_v55, %v11234_v60 }
 0x893   :  { %8328 = vrsqrt.f32 %v5264_v40 }
 0x894   :  { %v5207_v34 = vpop.xlane.xlu0 %5206  ;;  %7330 = vmatprep.mubr.msk.f32.mxu1 %vm518_vm1, %v5325_v58 }
 0x895   :  { %v8325_v47 = vpop.eup %8324  ;;  %v5265_v49 = vmax.f32 %v5207_v34, 1e-24 }
 0x896   :  { %v5326_v8 = vmul.f32 %v8325_v47, %v11241_v11 }
 0x897   :  { %8330 = vrsqrt.f32 %v5265_v49 }
 0x898   :  { %v5210_v3 = vpop.xlane.xlu1 %5209  ;;  %7331 = vmatmul.mubr.msk.f32.gmra.mrb[46].mxu1 %vm518_vm1, %v5326_v8 }
 0x899   :  { %v8327_v2 = vpop.eup %8326  ;;  %v5266_v45 = vmax.f32 %v5210_v3, 1e-24 }
 0x89a   :  { %v5327_v57 = vmul.f32 %v8327_v2, %v11248_v62 }
 0x89b   :  { %8332 = vrsqrt.f32 %v5266_v45 }
 0x89c   :  { %v5213_v63 = vpop.xlane.xlu0 %5212  ;;  %7333 = vmatprep.mubr.msk.f32.mxu1 %vm518_vm1, %v5327_v57 }
 0x89d   :  { %v8329_v60 = vpop.eup %8328  ;;  %v5267_v42 = vmax.f32 %v5213_v63, 1e-24 }
 0x89e   :  { %v5328_v26 = vmul.f32 %v8329_v60, %v11255_v18 }
 0x89f   :  { %8334 = vrsqrt.f32 %v5267_v42 }
 0x8a0   :  { %v5216_v38 = vpop.xlane.xlu1 %5215  ;;  %7334 = vmatmul.mubr.msk.f32.gmra.mrb[48].mxu1 %vm518_vm1, %v5328_v26 }
 0x8a1   :  { %v8331_v11 = vpop.eup %8330  ;;  %v5268_v16 = vmax.f32 %v5216_v38, 1e-24 }
 0x8a2   :  { %v5329_v30 = vmul.f32 %v8331_v11, %v11262_v48 }
 0x8a3   :  { %8336 = vrsqrt.f32 %v5268_v16 }
 0x8a4   :  { %v5219_v54 = vpop.xlane.xlu0 %5218  ;;  %7336 = vmatprep.mubr.msk.f32.mxu1 %vm518_vm1, %v5329_v30 }
 0x8a5   :  { %v8333_v62 = vpop.eup %8332  ;;  %v5269_v20 = vmax.f32 %v5219_v54, 1e-24 }
 0x8a6   :  { %v5330_v14 = vmul.f32 %v8333_v62, %v11269_v24 }
 0x8a7   :  { %8338 = vrsqrt.f32 %v5269_v20 }
 0x8a8   :  { %v5222_v35 = vpop.xlane.xlu1 %5221  ;;  %7337 = vmatmul.mubr.msk.f32.gmra.mrb[50].mxu1 %vm518_vm1, %v5330_v14 }
 0x8a9   :  { %v8335_v18 = vpop.eup %8334  ;;  %v5270_v36 = vmax.f32 %v5222_v35, 1e-24 }
 0x8aa   :  { %v5331_v0 = vmul.f32 %v8335_v18, %v11276_v19 }
 0x8ab   :  { %8340 = vrsqrt.f32 %v5270_v36 }
 0x8ac   :  { %v5225_v61 = vpop.xlane.xlu0 %5224  ;;  %7339 = vmatprep.mubr.msk.f32.mxu1 %vm518_vm1, %v5331_v0 }
 0x8ad   :  { %v8337_v48 = vpop.eup %8336  ;;  %v5271_v5 = vmax.f32 %v5225_v61, 1e-24 }
 0x8ae   :  { %v5332_v46 = vmul.f32 %v8337_v48, %v11283_v41 }
 0x8af   :  { %8342 = vrsqrt.f32 %v5271_v5 }
 0x8b0   :  { %v5228_v13 = vpop.xlane.xlu1 %5227  ;;  %7340 = vmatmul.mubr.msk.f32.gmra.mrb[52].mxu1 %vm518_vm1, %v5332_v46 }
 0x8b1   :  { %v8339_v24 = vpop.eup %8338  ;;  %v5272_v51 = vmax.f32 %v5228_v13, 1e-24 }
 0x8b2   :  { %v5333_v25 = vmul.f32 %v8339_v24, %v11290_v1 }
 0x8b3   :  { %8344 = vrsqrt.f32 %v5272_v51 }
 0x8b4   :  { %v5231_v7 = vpop.xlane.xlu0 %5230  ;;  %7342 = vmatprep.mubr.msk.f32.mxu1 %vm518_vm1, %v5333_v25 }
 0x8b5   :  { %v8341_v19 = vpop.eup %8340  ;;  %v5273_v32 = vmax.f32 %v5231_v7, 1e-24 }
 0x8b6   :  { %v5334_v15 = vmul.f32 %v8341_v19, %v11297_v29 }
 0x8b7   :  { %8346 = vrsqrt.f32 %v5273_v32 }
 0x8b8   :  { %v5234_v33 = vpop.xlane.xlu1 %5233  ;;  %7343 = vmatmul.mubr.msk.f32.gmra.mrb[54].mxu1 %vm518_vm1, %v5334_v15 }
 0x8b9   :  { %v8343_v41 = vpop.eup %8342  ;;  %v5274_v56 = vmax.f32 %v5234_v33, 1e-24 }
 0x8ba   :  { %v5335_v27 = vmul.f32 %v8343_v41, %v11304_v37 }
 0x8bb   :  { %8348 = vrsqrt.f32 %v5274_v56 }
 0x8bc   :  { %v5237_v44 = vpop.xlane.xlu0 %5236  ;;  %7345 = vmatprep.mubr.msk.f32.mxu1 %vm518_vm1, %v5335_v27 }
 0x8bd   :  { %v8345_v1 = vpop.eup %8344  ;;  %v5275_v50 = vmax.f32 %v5237_v44, 1e-24 }
 0x8be   :  { %v5336_v17 = vmul.f32 %v8345_v1, %v11311_v9 }
 0x8bf   :  { %8350 = vrsqrt.f32 %v5275_v50 }
 0x8c0   :  { %v5240_v28 = vpop.xlane.xlu1 %5239  ;;  %7346 = vmatmul.mubr.msk.f32.gmra.mrb[56].mxu1 %vm518_vm1, %v5336_v17 }
 0x8c1   :  { %v8347_v29 = vpop.eup %8346  ;;  %v5276_v52 = vmax.f32 %v5240_v28, 1e-24 }
 0x8c2   :  { %v5337_v31 = vmul.f32 %v8347_v29, %v11318_v59 }
 0x8c3   :  { %8352 = vrsqrt.f32 %v5276_v52 }
 0x8c4   :  { %v5243_v22 = vpop.xlane.xlu0 %5242  ;;  %7348 = vmatprep.mubr.msk.f32.mxu1 %vm518_vm1, %v5337_v31 }
 0x8c5   :  { %v8349_v37 = vpop.eup %8348  ;;  %v5277_v23 = vmax.f32 %v5243_v22, 1e-24 }
 0x8c6   :  { %v5338_v21 = vmul.f32 %v8349_v37, %v11325_v12 }
 0x8c7   :  { %8354 = vrsqrt.f32 %v5277_v23 }
 0x8c8   :  { %7349 = vmatmul.mubr.msk.f32.gmra.mrb[58].mxu1 %vm518_vm1, %v5338_v21  ;;  %v5246_v9 = vpop.xlane.xlu1 %5245 }
 0x8c9   :  { %v8351_v43 = vpop.eup %8350  ;;  %v5278_v53 = vmax.f32 %v5246_v9, 1e-24 }
 0x8ca   :  { %v5339_v55 = vmul.f32 %v8351_v43, %v11332_v6  ;;  %v11425_v6 = vld [vmem:[%s11822_s11] ss:$0 sm:$0xff] }
 0x8cb   :  { %8356 = vrsqrt.f32 %v5278_v53 }
 0x8cc   :  { %7351 = vmatprep.mubr.msk.f32.mxu1 %vm518_vm1, %v5339_v55 }
 0x8cd   :  { %v8353_v59 = vpop.eup %8352 }
 0x8ce   :  { %v5340_v40 = vmul.f32 %v8353_v59, %v11339_v39 }
 0x8d0   :  { %7352 = vmatmul.mubr.msk.f32.gmra.mrb[60].mxu1 %vm518_vm1, %v5340_v40 }
 0x8d1   :  { %v8355_v58 = vpop.eup %8354 }
 0x8d2   :  { %v5341_v34 = vmul.f32 %v8355_v58, %v11346_v10 }
 0x8d4   :  { %7354 = vmatprep.mubr.msk.f32.mxu1 %vm518_vm1, %v5341_v34 }
 0x8d5   :  { %v8357_v12 = vpop.eup %8356 }
 0x8d6   :  { %v5342_v47 = vmul.f32 %v8357_v12, %v11352_v4 }
 0x8d8   :  { %7355 = vmatmul.mubr.msk.f32.gmra.mrb[62].mxu1 %vm518_vm1, %v5342_v47 }
 0x930   :  { %v7311_v49 = vpop.f32.mrb[32].mxu1 }
 0x931   :  { %v11428_v39 = vadd.f32 %v7311_v49, %v11425_v6  ;;  %v5516_v8 = vpop.f32.mrb[33].mxu1 }
 0x932   :  { %v11431_v3 = vadd.f32 %v11425_v6, %v5516_v8 }
 0x933   :  { %5677 = vmax.xlane.f32.xlu1 %v11428_v39 }
 0x934   :  { %5675 = vmax.xlane.f32.xlu0 %v11431_v3 }
 0x93a   :  { %v7314_v10 = vpop.f32.mrb[34].mxu1 }
 0x93b   :  { %v11436_v4 = vadd.f32 %v7314_v10, %v11425_v6  ;;  %v5526_v2 = vpop.f32.mrb[35].mxu1 }
 0x93c   :  { %v11439_v45 = vadd.f32 %v11425_v6, %v5526_v2 }
 0x93d   :  { %5681 = vmax.xlane.f32.xlu1 %v11436_v4 }
 0x93e   :  { %5679 = vmax.xlane.f32.xlu0 %v11439_v45 }
 0x942   :  { %v7317_v57 = vpop.f32.mrb[36].mxu1 }
 0x943   :  { %v11444_v63 = vadd.f32 %v7317_v57, %v11425_v6  ;;  %v5536_v60 = vpop.f32.mrb[37].mxu1 }
 0x944   :  { %v11447_v42 = vadd.f32 %v11425_v6, %v5536_v60 }
 0x945   :  { %5685 = vmax.xlane.f32.xlu1 %v11444_v63 }
 0x946   :  { %5683 = vmax.xlane.f32.xlu0 %v11447_v42 }
 0x94a   :  { %v7320_v26 = vpop.f32.mrb[38].mxu1 }
 0x94b   :  { %v11452_v38 = vadd.f32 %v7320_v26, %v11425_v6  ;;  %v5546_v11 = vpop.f32.mrb[39].mxu1 }
 0x94c   :  { %v11455_v16 = vadd.f32 %v11425_v6, %v5546_v11 }
 0x94d   :  { %5689 = vmax.xlane.f32.xlu1 %v11452_v38 }
 0x94e   :  { %5687 = vmax.xlane.f32.xlu0 %v11455_v16 }
 0x953   :  { %v7323_v30 = vpop.f32.mrb[40].mxu1 }
 0x954   :  { %v11460_v54 = vadd.f32 %v7323_v30, %v11425_v6  ;;  %v5556_v62 = vpop.f32.mrb[41].mxu1 }
 0x955   :  { %v11463_v20 = vadd.f32 %v11425_v6, %v5556_v62 }
 0x956   :  { %5693 = vmax.xlane.f32.xlu1 %v11460_v54 }
 0x957   :  { %5691 = vmax.xlane.f32.xlu0 %v11463_v20 }
 0x95b   :  { %v7326_v14 = vpop.f32.mrb[42].mxu1 }
 0x95c   :  { %v11468_v35 = vadd.f32 %v7326_v14, %v11425_v6  ;;  %v5566_v18 = vpop.f32.mrb[43].mxu1 }
 0x95d   :  { %v11471_v36 = vadd.f32 %v11425_v6, %v5566_v18 }
 0x95e   :  { %5697 = vmax.xlane.f32.xlu1 %v11468_v35 }
 0x95f   :  { %5695 = vmax.xlane.f32.xlu0 %v11471_v36 }
 0x963   :  { %v7329_v0 = vpop.f32.mrb[44].mxu1 }
 0x964   :  { %v11476_v61 = vadd.f32 %v7329_v0, %v11425_v6  ;;  %v5576_v48 = vpop.f32.mrb[45].mxu1 }
 0x965   :  { %v11479_v5 = vadd.f32 %v11425_v6, %v5576_v48 }
 0x966   :  { %5701 = vmax.xlane.f32.xlu1 %v11476_v61 }
 0x967   :  { %5699 = vmax.xlane.f32.xlu0 %v11479_v5 }
 0x96b   :  { %v7332_v46 = vpop.f32.mrb[46].mxu1 }
 0x96c   :  { %v11484_v13 = vadd.f32 %v7332_v46, %v11425_v6  ;;  %v5586_v24 = vpop.f32.mrb[47].mxu1 }
 0x96d   :  { %v11487_v51 = vadd.f32 %v11425_v6, %v5586_v24 }
 0x96e   :  { %5705 = vmax.xlane.f32.xlu1 %v11484_v13 }
 0x96f   :  { %5703 = vmax.xlane.f32.xlu0 %v11487_v51 }
 0x973   :  { %v7335_v25 = vpop.f32.mrb[48].mxu1 }
 0x974   :  { %v11492_v7 = vadd.f32 %v7335_v25, %v11425_v6  ;;  %v5596_v19 = vpop.f32.mrb[49].mxu1 }
 0x975   :  { %v11495_v32 = vadd.f32 %v11425_v6, %v5596_v19 }
 0x976   :  { %5709 = vmax.xlane.f32.xlu1 %v11492_v7 }
 0x977   :  { %5707 = vmax.xlane.f32.xlu0 %v11495_v32 }
 0x97b   :  { %v7338_v15 = vpop.f32.mrb[50].mxu1 }
 0x97c   :  { %v11500_v33 = vadd.f32 %v7338_v15, %v11425_v6  ;;  %v5606_v41 = vpop.f32.mrb[51].mxu1 }
 0x97d   :  { %v11503_v56 = vadd.f32 %v11425_v6, %v5606_v41 }
 0x97e   :  { %5713 = vmax.xlane.f32.xlu1 %v11500_v33 }
 0x97f   :  { %5711 = vmax.xlane.f32.xlu0 %v11503_v56 }
 0x983   :  { %v7341_v27 = vpop.f32.mrb[52].mxu1 }
 0x984   :  { %v11508_v44 = vadd.f32 %v7341_v27, %v11425_v6  ;;  %v5616_v1 = vpop.f32.mrb[53].mxu1 }
 0x985   :  { %v11511_v50 = vadd.f32 %v11425_v6, %v5616_v1 }
 0x986   :  { %5717 = vmax.xlane.f32.xlu1 %v11508_v44 }
 0x987   :  { %5715 = vmax.xlane.f32.xlu0 %v11511_v50 }
 0x98b   :  { %v7344_v17 = vpop.f32.mrb[54].mxu1 }
 0x98c   :  { %v11516_v28 = vadd.f32 %v7344_v17, %v11425_v6  ;;  %v5626_v29 = vpop.f32.mrb[55].mxu1 }
 0x98d   :  { %v11519_v52 = vadd.f32 %v11425_v6, %v5626_v29 }
 0x98e   :  { %5721 = vmax.xlane.f32.xlu1 %v11516_v28 }
 0x98f   :  { %5719 = vmax.xlane.f32.xlu0 %v11519_v52 }
 0x993   :  { %v7347_v31 = vpop.f32.mrb[56].mxu1 }
 0x994   :  { %v11524_v22 = vadd.f32 %v7347_v31, %v11425_v6  ;;  %v5636_v37 = vpop.f32.mrb[57].mxu1 }
 0x995   :  { %v11527_v23 = vadd.f32 %v11425_v6, %v5636_v37 }
 0x996   :  { %5725 = vmax.xlane.f32.xlu1 %v11524_v22 }
 0x997   :  { %5723 = vmax.xlane.f32.xlu0 %v11527_v23 }
 0x99b   :  { %v7350_v21 = vpop.f32.mrb[58].mxu1 }
 0x99c   :  { %v11532_v9 = vadd.f32 %v7350_v21, %v11425_v6  ;;  %v5646_v43 = vpop.f32.mrb[59].mxu1 }
 0x99d   :  { %v11535_v53 = vadd.f32 %v11425_v6, %v5646_v43 }
 0x99e   :  { %5729 = vmax.xlane.f32.xlu1 %v11532_v9 }
 0x99f   :  { %5727 = vmax.xlane.f32.xlu0 %v11535_v53 }
 0x9a3   :  { %v7353_v55 = vpop.f32.mrb[60].mxu1 }
 0x9a4   :  { %v11540_v59 = vadd.f32 %v7353_v55, %v11425_v6  ;;  %v5656_v40 = vpop.f32.mrb[61].mxu1 }
 0x9a5   :  { %v11543_v58 = vadd.f32 %v11425_v6, %v5656_v40 }
 0x9a6   :  { %5733 = vmax.xlane.f32.xlu1 %v11540_v59 }
 0x9a7   :  { %5731 = vmax.xlane.f32.xlu0 %v11543_v58 }
 0x9ab   :  { %v7356_v34 = vpop.f32.mrb[62].mxu1 }
 0x9ac   :  { %v11548_v12 = vadd.f32 %v7356_v34, %v11425_v6  ;;  %v5666_v47 = vpop.f32.mrb[63].mxu1 }
 0x9ad   :  { %v11551_v49 = vadd.f32 %v11425_v6, %v5666_v47 }
 0x9ae   :  { %5737 = vmax.xlane.f32.xlu1 %v11548_v12 }
 0x9af   :  { %5735 = vmax.xlane.f32.xlu0 %v11551_v49 }
 0x9c0   :  { %v5678_v8 = vpop.xlane.xlu1 %5677 }
 0x9c1   :  { %v11556_v10 = vsub.f32 %v11428_v39, %v5678_v8  ;;  %v5676_v2 = vpop.xlane.xlu0 %5675 }
 0x9c2   :  { %v11559_v57 = vsub.f32 %v11431_v3, %v5676_v2 }
 0x9c3   :  { %v5773_v60 = vmul.f32 1.442695, %v11556_v10 }
 0x9c4   :  { %v5771_v26 = vmul.f32 1.442695, %v11559_v57 }
 0x9c5   :  { %8358 = vpow2.f32 %v5773_v60 }
 0x9c6   :  { %8360 = vpow2.f32 %v5771_v26 }
 0x9ca   :  { %v5682_v6 = vpop.xlane.xlu1 %5681 }
 0x9cb   :  { %v11564_v11 = vsub.f32 %v11436_v4, %v5682_v6  ;;  %v5680_v30 = vpop.xlane.xlu0 %5679 }
 0x9cc   :  { %v11567_v62 = vsub.f32 %v11439_v45, %v5680_v30 }
 0x9cd   :  { %v5777_v39 = vmul.f32 1.442695, %v11564_v11 }
 0x9ce   :  { %v5775_v14 = vmul.f32 1.442695, %v11567_v62 }
 0x9cf   :  { %v8359_v3 = vpop.eup %8358  ;;  %8362 = vpow2.f32 %v5777_v39 }
 0x9d0   :  { %v8361_v18 = vpop.eup %8360  ;;  %8364 = vpow2.f32 %v5775_v14  ;;  %5837 = vadd.xlane.f32.xlu1 %v8359_v3 }
 0x9d1   :  { %5835 = vadd.xlane.f32.xlu0 %v8361_v18 }
 0x9d2   :  { %v5686_v0 = vpop.xlane.xlu1 %5685 }
 0x9d3   :  { %v11572_v48 = vsub.f32 %v11444_v63, %v5686_v0  ;;  %v5684_v4 = vpop.xlane.xlu0 %5683 }
 0x9d4   :  { %v11575_v46 = vsub.f32 %v11447_v42, %v5684_v4 }
 0x9d5   :  { %v5781_v45 = vmul.f32 1.442695, %v11572_v48 }
 0x9d6   :  { %v5779_v24 = vmul.f32 1.442695, %v11575_v46 }
 0x9d7   :  { %8366 = vpow2.f32 %v5781_v45 }
 0x9d8   :  { %8368 = vpow2.f32 %v5779_v24 }
 0x9d9   :  { %v8363_v25 = vpop.eup %8362 }
 0x9da   :  { %v8365_v19 = vpop.eup %8364  ;;  %v5690_v15 = vpop.xlane.xlu1 %5689  ;;  %5841 = vadd.xlane.f32.xlu1 %v8363_v25 }
 0x9db   :  { %v11580_v41 = vsub.f32 %v11452_v38, %v5690_v15  ;;  %5839 = vadd.xlane.f32.xlu0 %v8365_v19  ;;  %v5688_v63 = vpop.xlane.xlu0 %5687 }
 0x9dc   :  { %v11583_v27 = vsub.f32 %v11455_v16, %v5688_v63 }
 0x9dd   :  { %v5785_v42 = vmul.f32 1.442695, %v11580_v41 }
 0x9de   :  { %v5783_v1 = vmul.f32 1.442695, %v11583_v27 }
 0x9df   :  { %8370 = vpow2.f32 %v5785_v42 }
 0x9e0   :  { %8372 = vpow2.f32 %v5783_v1 }
 0x9e1   :  { %v8367_v17 = vpop.eup %8366 }
 0x9e2   :  { %v8369_v29 = vpop.eup %8368  ;;  %5845 = vadd.xlane.f32.xlu1 %v8367_v17 }
 0x9e3   :  { %v5694_v31 = vpop.xlane.xlu1 %5693  ;;  %5843 = vadd.xlane.f32.xlu0 %v8369_v29 }
 0x9e4   :  { %v11588_v37 = vsub.f32 %v11460_v54, %v5694_v31  ;;  %v5692_v38 = vpop.xlane.xlu0 %5691 }
 0x9e5   :  { %v11591_v21 = vsub.f32 %v11463_v20, %v5692_v38 }
 0x9e6   :  { %v5789_v16 = vmul.f32 1.442695, %v11588_v37 }
 0x9e7   :  { %v5787_v43 = vmul.f32 1.442695, %v11591_v21 }
 0x9e8   :  { %8374 = vpow2.f32 %v5789_v16 }
 0x9e9   :  { %v8371_v55 = vpop.eup %8370  ;;  %8376 = vpow2.f32 %v5787_v43 }
 0x9ea   :  { %v8373_v40 = vpop.eup %8372  ;;  %5849 = vadd.xlane.f32.xlu1 %v8371_v55 }
 0x9eb   :  { %v5698_v34 = vpop.xlane.xlu1 %5697  ;;  %5847 = vadd.xlane.f32.xlu0 %v8373_v40 }
 0x9ec   :  { %v11596_v47 = vsub.f32 %v11468_v35, %v5698_v34  ;;  %v5696_v54 = vpop.xlane.xlu0 %5695 }
 0x9ed   :  { %v11599_v8 = vsub.f32 %v11471_v36, %v5696_v54 }
 0x9ee   :  { %v5793_v20 = vmul.f32 1.442695, %v11596_v47 }
 0x9ef   :  { %v5791_v2 = vmul.f32 1.442695, %v11599_v8 }
 0x9f0   :  { %8378 = vpow2.f32 %v5793_v20 }
 0x9f1   :  { %8380 = vpow2.f32 %v5791_v2 }
 0x9f2   :  { %v8375_v60 = vpop.eup %8374 }
 0x9f3   :  { %v8377_v26 = vpop.eup %8376  ;;  %v5702_v6 = vpop.xlane.xlu1 %5701  ;;  %5853 = vadd.xlane.f32.xlu1 %v8375_v60 }
 0x9f4   :  { %v11604_v30 = vsub.f32 %v11476_v61, %v5702_v6  ;;  %5851 = vadd.xlane.f32.xlu0 %v8377_v26  ;;  %v5700_v35 = vpop.xlane.xlu0 %5699 }
 0x9f5   :  { %v11607_v39 = vsub.f32 %v11479_v5, %v5700_v35 }
 0x9f6   :  { %v5797_v36 = vmul.f32 1.442695, %v11604_v30 }
 0x9f7   :  { %v5795_v14 = vmul.f32 1.442695, %v11607_v39 }
 0x9f8   :  { %8382 = vpow2.f32 %v5797_v36 }
 0x9f9   :  { %8384 = vpow2.f32 %v5795_v14 }
 0x9fa   :  { %v8379_v3 = vpop.eup %8378 }
 0x9fb   :  { %v8381_v18 = vpop.eup %8380  ;;  %v5706_v0 = vpop.xlane.xlu1 %5705  ;;  %5857 = vadd.xlane.f32.xlu1 %v8379_v3 }
 0x9fc   :  { %v11612_v4 = vsub.f32 %v11484_v13, %v5706_v0  ;;  %5855 = vadd.xlane.f32.xlu0 %v8381_v18  ;;  %v5704_v61 = vpop.xlane.xlu0 %5703 }
 0x9fd   :  { %v11615_v45 = vsub.f32 %v11487_v51, %v5704_v61 }
 0x9fe   :  { %v5801_v5 = vmul.f32 1.442695, %v11612_v4 }
 0x9ff   :  { %v5799_v24 = vmul.f32 1.442695, %v11615_v45 }
 0xa00   :  { %8386 = vpow2.f32 %v5801_v5 }
 0xa01   :  { %8388 = vpow2.f32 %v5799_v24 }
 0xa02   :  { %v8383_v25 = vpop.eup %8382 }
 0xa03   :  { %v8385_v19 = vpop.eup %8384  ;;  %v5710_v15 = vpop.xlane.xlu1 %5709  ;;  %5861 = vadd.xlane.f32.xlu1 %v8383_v25 }
 0xa04   :  { %v11620_v63 = vsub.f32 %v11492_v7, %v5710_v15  ;;  %5859 = vadd.xlane.f32.xlu0 %v8385_v19  ;;  %v5708_v13 = vpop.xlane.xlu0 %5707 }
 0xa05   :  { %v11623_v42 = vsub.f32 %v11495_v32, %v5708_v13 }
 0xa06   :  { %v5805_v51 = vmul.f32 1.442695, %v11620_v63 }
 0xa07   :  { %v5803_v1 = vmul.f32 1.442695, %v11623_v42 }
 0xa08   :  { %8390 = vpow2.f32 %v5805_v51 }
 0xa09   :  { %8392 = vpow2.f32 %v5803_v1 }
 0xa0a   :  { %v8387_v17 = vpop.eup %8386 }
 0xa0b   :  { %v8389_v29 = vpop.eup %8388  ;;  %v5714_v31 = vpop.xlane.xlu1 %5713  ;;  %5865 = vadd.xlane.f32.xlu1 %v8387_v17 }
 0xa0c   :  { %v11628_v38 = vsub.f32 %v11500_v33, %v5714_v31  ;;  %5863 = vadd.xlane.f32.xlu0 %v8389_v29  ;;  %v5712_v7 = vpop.xlane.xlu0 %5711 }
 0xa0d   :  { %v11631_v16 = vsub.f32 %v11503_v56, %v5712_v7 }
 0xa0e   :  { %v5809_v32 = vmul.f32 1.442695, %v11628_v38 }
 0xa0f   :  { %v5807_v43 = vmul.f32 1.442695, %v11631_v16 }
 0xa10   :  { %8394 = vpow2.f32 %v5809_v32 }
 0xa11   :  { %8396 = vpow2.f32 %v5807_v43 }
 0xa12   :  { %v8391_v55 = vpop.eup %8390 }
 0xa13   :  { %v8393_v40 = vpop.eup %8392  ;;  %v5718_v34 = vpop.xlane.xlu1 %5717  ;;  %5869 = vadd.xlane.f32.xlu1 %v8391_v55 }
 0xa14   :  { %v11636_v54 = vsub.f32 %v11508_v44, %v5718_v34  ;;  %5867 = vadd.xlane.f32.xlu0 %v8393_v40  ;;  %v5716_v33 = vpop.xlane.xlu0 %5715 }
 0xa15   :  { %v11639_v20 = vsub.f32 %v11511_v50, %v5716_v33 }
 0xa16   :  { %v5813_v56 = vmul.f32 1.442695, %v11636_v54 }
 0xa17   :  { %v5811_v2 = vmul.f32 1.442695, %v11639_v20 }
 0xa18   :  { %8398 = vpow2.f32 %v5813_v56 }
 0xa19   :  { %8400 = vpow2.f32 %v5811_v2 }
 0xa1a   :  { %v8395_v60 = vpop.eup %8394 }
 0xa1b   :  { %v8397_v26 = vpop.eup %8396  ;;  %v5722_v6 = vpop.xlane.xlu1 %5721  ;;  %5873 = vadd.xlane.f32.xlu1 %v8395_v60 }
 0xa1c   :  { %v11644_v35 = vsub.f32 %v11516_v28, %v5722_v6  ;;  %5871 = vadd.xlane.f32.xlu0 %v8397_v26  ;;  %v5720_v44 = vpop.xlane.xlu0 %5719 }
 0xa1d   :  { %v11647_v36 = vsub.f32 %v11519_v52, %v5720_v44 }
 0xa1e   :  { %v5817_v50 = vmul.f32 1.442695, %v11644_v35 }
 0xa1f   :  { %v5815_v14 = vmul.f32 1.442695, %v11647_v36 }
 0xa20   :  { %8402 = vpow2.f32 %v5817_v50 }
 0xa21   :  { %8404 = vpow2.f32 %v5815_v14 }
 0xa22   :  { %v8399_v3 = vpop.eup %8398 }
 0xa23   :  { %v8401_v18 = vpop.eup %8400  ;;  %v5726_v0 = vpop.xlane.xlu1 %5725  ;;  %5877 = vadd.xlane.f32.xlu1 %v8399_v3 }
 0xa24   :  { %v11652_v61 = vsub.f32 %v11524_v22, %v5726_v0  ;;  %5875 = vadd.xlane.f32.xlu0 %v8401_v18  ;;  %v5724_v28 = vpop.xlane.xlu0 %5723 }
 0xa25   :  { %v11655_v5 = vsub.f32 %v11527_v23, %v5724_v28 }
 0xa26   :  { %v5821_v52 = vmul.f32 1.442695, %v11652_v61 }
 0xa27   :  { %v5819_v24 = vmul.f32 1.442695, %v11655_v5 }
 0xa28   :  { %8406 = vpow2.f32 %v5821_v52 }
 0xa29   :  { %8408 = vpow2.f32 %v5819_v24 }
 0xa2a   :  { %v8403_v25 = vpop.eup %8402 }
 0xa2b   :  { %v8405_v19 = vpop.eup %8404  ;;  %v5730_v15 = vpop.xlane.xlu1 %5729  ;;  %5881 = vadd.xlane.f32.xlu1 %v8403_v25 }
 0xa2c   :  { %v11660_v13 = vsub.f32 %v11532_v9, %v5730_v15  ;;  %5879 = vadd.xlane.f32.xlu0 %v8405_v19  ;;  %v5728_v22 = vpop.xlane.xlu0 %5727 }
 0xa2d   :  { %v11663_v51 = vsub.f32 %v11535_v53, %v5728_v22 }
 0xa2e   :  { %v5825_v23 = vmul.f32 1.442695, %v11660_v13 }
 0xa2f   :  { %v5823_v1 = vmul.f32 1.442695, %v11663_v51 }
 0xa30   :  { %8410 = vpow2.f32 %v5825_v23 }
 0xa31   :  { %8412 = vpow2.f32 %v5823_v1 }
 0xa32   :  { %v8407_v17 = vpop.eup %8406 }
 0xa33   :  { %v8409_v29 = vpop.eup %8408  ;;  %v5734_v31 = vpop.xlane.xlu1 %5733  ;;  %5885 = vadd.xlane.f32.xlu1 %v8407_v17 }
 0xa34   :  { %v11668_v7 = vsub.f32 %v11540_v59, %v5734_v31  ;;  %5883 = vadd.xlane.f32.xlu0 %v8409_v29  ;;  %v5732_v9 = vpop.xlane.xlu0 %5731 }
 0xa35   :  { %v11671_v32 = vsub.f32 %v11543_v58, %v5732_v9 }
 0xa36   :  { %v5829_v53 = vmul.f32 1.442695, %v11668_v7 }
 0xa37   :  { %v5827_v43 = vmul.f32 1.442695, %v11671_v32 }
 0xa38   :  { %8414 = vpow2.f32 %v5829_v53 }
 0xa39   :  { %8416 = vpow2.f32 %v5827_v43 }
 0xa3a   :  { %v8411_v55 = vpop.eup %8410 }
 0xa3b   :  { %v8413_v40 = vpop.eup %8412  ;;  %5889 = vadd.xlane.f32.xlu1 %v8411_v55  ;;  %v5738_v34 = vpop.xlane.xlu1 %5737 }
 0xa3c   :  { %v11676_v33 = vsub.f32 %v11548_v12, %v5738_v34  ;;  %5887 = vadd.xlane.f32.xlu0 %v8413_v40  ;;  %v5736_v59 = vpop.xlane.xlu0 %5735 }
 0xa3d   :  { %v11679_v56 = vsub.f32 %v11551_v49, %v5736_v59 }
 0xa3e   :  { %v5833_v58 = vmul.f32 1.442695, %v11676_v33 }
 0xa3f   :  { %v5831_v2 = vmul.f32 1.442695, %v11679_v56 }
 0xa40   :  { %8418 = vpow2.f32 %v5833_v58 }
 0xa41   :  { %8420 = vpow2.f32 %v5831_v2 }
 0xa42   :  { %v8415_v60 = vpop.eup %8414 }
 0xa43   :  { %v8417_v26 = vpop.eup %8416  ;;  %5893 = vadd.xlane.f32.xlu1 %v8415_v60 }
 0xa44   :  { %5891 = vadd.xlane.f32.xlu0 %v8417_v26 }
 0xa4a   :  { %v8419_v6 = vpop.eup %8418 }
 0xa4b   :  { %v8421_v44 = vpop.eup %8420  ;;  %5897 = vadd.xlane.f32.xlu1 %v8419_v6 }
 0xa4c   :  { %5895 = vadd.xlane.f32.xlu0 %v8421_v44 }
 0xa5d   :  { %v5838_v12 = vpop.xlane.xlu1 %5837 }
 0xa5e   :  { %8422 = vlog2.f32 %v5838_v12  ;;  %v5836_v50 = vpop.xlane.xlu0 %5835 }
 0xa5f   :  { %8424 = vlog2.f32 %v5836_v50 }
 0xa67   :  { %v5842_v49 = vpop.xlane.xlu1 %5841 }
 0xa68   :  { %v8423_v14 = vpop.eup %8422  ;;  %8426 = vlog2.f32 %v5842_v49  ;;  %v5840_v3 = vpop.xlane.xlu0 %5839 }
 0xa69   :  { %v8425_v18 = vpop.eup %8424  ;;  %v5902_v0 = vmul.f32 0.6931472, %v8423_v14  ;;  %8428 = vlog2.f32 %v5840_v3 }
 0xa6a   :  { %v5900_v28 = vmul.f32 0.6931472, %v8425_v18 }
 0xa6b   :  { %v5964_v52 = vsub.f32 %v11556_v10, %v5902_v0 }
 0xa6c   :  { %v5963_v24 = vsub.f32 %v11559_v57, %v5900_v28 }
 0xa6d   :  { %5996 = vst [vmem:[%s11823_s12 + $0x8] sm:$0xff] %v5964_v52 }
 0xa6e   :  { %5995 = vst [vmem:[%s11823_s12] sm:$0xff] %v5963_v24 }
 0xa6f   :  { %v5846_v25 = vpop.xlane.xlu1 %5845 }
 0xa70   :  { %8430 = vlog2.f32 %v5846_v25  ;;  %v5844_v19 = vpop.xlane.xlu0 %5843 }
 0xa71   :  { %8432 = vlog2.f32 %v5844_v19 }
 0xa72   :  { %v8427_v15 = vpop.eup %8426 }
 0xa73   :  { %v8429_v22 = vpop.eup %8428  ;;  %v5906_v23 = vmul.f32 0.6931472, %v8427_v15 }
 0xa74   :  { %v5904_v1 = vmul.f32 0.6931472, %v8429_v22 }
 0xa75   :  { %v5966_v10 = vsub.f32 %v11564_v11, %v5906_v23 }
 0xa76   :  { %v5965_v57 = vsub.f32 %v11567_v62, %v5904_v1 }
 0xa77   :  { %5998 = vst [vmem:[%s11823_s12 + $0x18] sm:$0xff] %v5966_v10  ;;  %v5850_v17 = vpop.xlane.xlu1 %5849 }
 0xa78   :  { %5997 = vst [vmem:[%s11823_s12 + $0x10] sm:$0xff] %v5965_v57  ;;  %8434 = vlog2.f32 %v5850_v17  ;;  %v5848_v29 = vpop.xlane.xlu0 %5847 }
 0xa79   :  { %8436 = vlog2.f32 %v5848_v29 }
 0xa7a   :  { %v8431_v31 = vpop.eup %8430 }
 0xa7b   :  { %v8433_v9 = vpop.eup %8432  ;;  %v5910_v53 = vmul.f32 0.6931472, %v8431_v31 }
 0xa7c   :  { %v5908_v43 = vmul.f32 0.6931472, %v8433_v9 }
 0xa7d   :  { %v5968_v11 = vsub.f32 %v11572_v48, %v5910_v53 }
 0xa7e   :  { %v5967_v62 = vsub.f32 %v11575_v46, %v5908_v43 }
 0xa7f   :  { %6000 = vst [vmem:[%s11823_s12 + $0x28] sm:$0xff] %v5968_v11 }
 0xa80   :  { %5999 = vst [vmem:[%s11823_s12 + $0x20] sm:$0xff] %v5967_v62  ;;  %v5854_v55 = vpop.xlane.xlu1 %5853 }
 0xa81   :  { %8438 = vlog2.f32 %v5854_v55  ;;  %v5852_v40 = vpop.xlane.xlu0 %5851 }
 0xa82   :  { %v8435_v34 = vpop.eup %8434  ;;  %8440 = vlog2.f32 %v5852_v40 }
 0xa83   :  { %v8437_v59 = vpop.eup %8436  ;;  %v5914_v58 = vmul.f32 0.6931472, %v8435_v34 }
 0xa84   :  { %v5912_v2 = vmul.f32 0.6931472, %v8437_v59 }
 0xa85   :  { %v5970_v48 = vsub.f32 %v11580_v41, %v5914_v58 }
 0xa86   :  { %v5969_v46 = vsub.f32 %v11583_v27, %v5912_v2 }
 0xa87   :  { %6002 = vst [vmem:[%s11823_s12 + $0x38] sm:$0xff] %v5970_v48 }
 0xa88   :  { %6001 = vst [vmem:[%s11823_s12 + $0x30] sm:$0xff] %v5969_v46  ;;  %v5858_v60 = vpop.xlane.xlu1 %5857 }
 0xa89   :  { %8442 = vlog2.f32 %v5858_v60  ;;  %v5856_v26 = vpop.xlane.xlu0 %5855 }
 0xa8a   :  { %8444 = vlog2.f32 %v5856_v26 }
 0xa8b   :  { %v8439_v6 = vpop.eup %8438 }
 0xa8c   :  { %v8441_v44 = vpop.eup %8440  ;;  %v5918_v12 = vmul.f32 0.6931472, %v8439_v6 }
 0xa8d   :  { %v5916_v50 = vmul.f32 0.6931472, %v8441_v44 }
 0xa8e   :  { %v5972_v41 = vsub.f32 %v11588_v37, %v5918_v12 }
 0xa8f   :  { %v5971_v27 = vsub.f32 %v11591_v21, %v5916_v50 }
 0xa90   :  { %6004 = vst [vmem:[%s11823_s12 + $0x48] sm:$0xff] %v5972_v41  ;;  %v5862_v49 = vpop.xlane.xlu1 %5861 }
 0xa91   :  { %6003 = vst [vmem:[%s11823_s12 + $0x40] sm:$0xff] %v5971_v27  ;;  %8446 = vlog2.f32 %v5862_v49  ;;  %v5860_v14 = vpop.xlane.xlu0 %5859 }
 0xa92   :  { %8448 = vlog2.f32 %v5860_v14 }
 0xa93   :  { %v8443_v3 = vpop.eup %8442 }
 0xa94   :  { %v8445_v18 = vpop.eup %8444  ;;  %v5922_v0 = vmul.f32 0.6931472, %v8443_v3 }
 0xa95   :  { %v5920_v28 = vmul.f32 0.6931472, %v8445_v18 }
 0xa96   :  { %v5974_v37 = vsub.f32 %v11596_v47, %v5922_v0 }
 0xa97   :  { %v5973_v21 = vsub.f32 %v11599_v8, %v5920_v28 }
 0xa98   :  { %6006 = vst [vmem:[%s11823_s12 + $0x58] sm:$0xff] %v5974_v37  ;;  %v5866_v52 = vpop.xlane.xlu1 %5865 }
 0xa99   :  { %6005 = vst [vmem:[%s11823_s12 + $0x50] sm:$0xff] %v5973_v21  ;;  %8450 = vlog2.f32 %v5866_v52  ;;  %v5864_v24 = vpop.xlane.xlu0 %5863 }
 0xa9a   :  { %8452 = vlog2.f32 %v5864_v24 }
 0xa9b   :  { %v8447_v25 = vpop.eup %8446 }
 0xa9c   :  { %v8449_v19 = vpop.eup %8448  ;;  %v5926_v15 = vmul.f32 0.6931472, %v8447_v25 }
 0xa9d   :  { %v5924_v22 = vmul.f32 0.6931472, %v8449_v19 }
 0xa9e   :  { %v5976_v47 = vsub.f32 %v11604_v30, %v5926_v15 }
 0xa9f   :  { %v5975_v8 = vsub.f32 %v11607_v39, %v5924_v22 }
 0xaa0   :  { %6008 = vst [vmem:[%s11823_s12 + $0x68] sm:$0xff] %v5976_v47  ;;  %v5870_v23 = vpop.xlane.xlu1 %5869 }
 0xaa1   :  { %6007 = vst [vmem:[%s11823_s12 + $0x60] sm:$0xff] %v5975_v8  ;;  %8454 = vlog2.f32 %v5870_v23  ;;  %v5868_v1 = vpop.xlane.xlu0 %5867 }
 0xaa2   :  { %8456 = vlog2.f32 %v5868_v1 }
 0xaa3   :  { %v8451_v10 = vpop.eup %8450 }
 0xaa4   :  { %v8453_v57 = vpop.eup %8452  ;;  %v5930_v17 = vmul.f32 0.6931472, %v8451_v10 }
 0xaa5   :  { %v5928_v29 = vmul.f32 0.6931472, %v8453_v57 }
 0xaa6   :  { %v5978_v30 = vsub.f32 %v11612_v4, %v5930_v17 }
 0xaa7   :  { %v5977_v39 = vsub.f32 %v11615_v45, %v5928_v29 }
 0xaa8   :  { %6010 = vst [vmem:[%s11823_s12 + $0x78] sm:$0xff] %v5978_v30  ;;  %v5874_v31 = vpop.xlane.xlu1 %5873 }
 0xaa9   :  { %6009 = vst [vmem:[%s11823_s12 + $0x70] sm:$0xff] %v5977_v39  ;;  %8458 = vlog2.f32 %v5874_v31  ;;  %v5872_v9 = vpop.xlane.xlu0 %5871 }
 0xaaa   :  { %8460 = vlog2.f32 %v5872_v9 }
 0xaab   :  { %v8455_v53 = vpop.eup %8454 }
 0xaac   :  { %v8457_v43 = vpop.eup %8456  ;;  %v5934_v11 = vmul.f32 0.6931472, %v8455_v53 }
 0xaad   :  { %v5932_v62 = vmul.f32 0.6931472, %v8457_v43 }
 0xaae   :  { %v5980_v4 = vsub.f32 %v11620_v63, %v5934_v11 }
 0xaaf   :  { %v5979_v45 = vsub.f32 %v11623_v42, %v5932_v62 }
 0xab0   :  { %6012 = vst [vmem:[%s11823_s12 + $0x88] sm:$0xff] %v5980_v4  ;;  %v5878_v55 = vpop.xlane.xlu1 %5877 }
 0xab1   :  { %6011 = vst [vmem:[%s11823_s12 + $0x80] sm:$0xff] %v5979_v45  ;;  %8462 = vlog2.f32 %v5878_v55  ;;  %v5876_v40 = vpop.xlane.xlu0 %5875 }
 0xab2   :  { %8464 = vlog2.f32 %v5876_v40 }
 0xab3   :  { %v8459_v34 = vpop.eup %8458 }
 0xab4   :  { %v8461_v59 = vpop.eup %8460  ;;  %v5938_v58 = vmul.f32 0.6931472, %v8459_v34 }
 0xab5   :  { %v5936_v2 = vmul.f32 0.6931472, %v8461_v59 }
 0xab6   :  { %v5982_v63 = vsub.f32 %v11628_v38, %v5938_v58 }
 0xab7   :  { %v5981_v42 = vsub.f32 %v11631_v16, %v5936_v2 }
 0xab8   :  { %6014 = vst [vmem:[%s11823_s12 + $0x98] sm:$0xff] %v5982_v63  ;;  %v5882_v48 = vpop.xlane.xlu1 %5881 }
 0xab9   :  { %6013 = vst [vmem:[%s11823_s12 + $0x90] sm:$0xff] %v5981_v42  ;;  %8466 = vlog2.f32 %v5882_v48  ;;  %v5880_v46 = vpop.xlane.xlu0 %5879 }
 0xaba   :  { %8468 = vlog2.f32 %v5880_v46 }
 0xabb   :  { %v8463_v60 = vpop.eup %8462 }
 0xabc   :  { %v8465_v26 = vpop.eup %8464  ;;  %v5942_v6 = vmul.f32 0.6931472, %v8463_v60 }
 0xabd   :  { %v5940_v44 = vmul.f32 0.6931472, %v8465_v26 }
 0xabe   :  { %v5984_v38 = vsub.f32 %v11636_v54, %v5942_v6 }
 0xabf   :  { %v5983_v16 = vsub.f32 %v11639_v20, %v5940_v44 }
 0xac0   :  { %6016 = vst [vmem:[%s11823_s12 + $0xa8] sm:$0xff] %v5984_v38  ;;  %v5886_v12 = vpop.xlane.xlu1 %5885 }
 0xac1   :  { %6015 = vst [vmem:[%s11823_s12 + $0xa0] sm:$0xff] %v5983_v16  ;;  %8470 = vlog2.f32 %v5886_v12  ;;  %v5884_v50 = vpop.xlane.xlu0 %5883 }
 0xac2   :  { %8472 = vlog2.f32 %v5884_v50 }
 0xac3   :  { %v8467_v41 = vpop.eup %8466 }
 0xac4   :  { %v8469_v27 = vpop.eup %8468  ;;  %v5946_v49 = vmul.f32 0.6931472, %v8467_v41 }
 0xac5   :  { %v5944_v14 = vmul.f32 0.6931472, %v8469_v27 }
 0xac6   :  { %v5986_v54 = vsub.f32 %v11644_v35, %v5946_v49 }
 0xac7   :  { %v5985_v20 = vsub.f32 %v11647_v36, %v5944_v14 }
 0xac8   :  { %6018 = vst [vmem:[%s11823_s12 + $0xb8] sm:$0xff] %v5986_v54  ;;  %v5890_v3 = vpop.xlane.xlu1 %5889 }
 0xac9   :  { %6017 = vst [vmem:[%s11823_s12 + $0xb0] sm:$0xff] %v5985_v20  ;;  %8474 = vlog2.f32 %v5890_v3  ;;  %v5888_v18 = vpop.xlane.xlu0 %5887 }
 0xaca   :  { %8476 = vlog2.f32 %v5888_v18 }
 0xacb   :  { %v8471_v0 = vpop.eup %8470 }
 0xacc   :  { %v8473_v28 = vpop.eup %8472  ;;  %v5950_v37 = vmul.f32 0.6931472, %v8471_v0 }
 0xacd   :  { %v5948_v21 = vmul.f32 0.6931472, %v8473_v28 }
 0xace   :  { %v5988_v35 = vsub.f32 %v11652_v61, %v5950_v37 }
 0xacf   :  { %v5987_v36 = vsub.f32 %v11655_v5, %v5948_v21 }
 0xad0   :  { %6020 = vst [vmem:[%s11823_s12 + $0xc8] sm:$0xff] %v5988_v35  ;;  %v5894_v52 = vpop.xlane.xlu1 %5893 }
 0xad1   :  { %6019 = vst [vmem:[%s11823_s12 + $0xc0] sm:$0xff] %v5987_v36  ;;  %8478 = vlog2.f32 %v5894_v52  ;;  %v5892_v24 = vpop.xlane.xlu0 %5891 }
 0xad2   :  { %8480 = vlog2.f32 %v5892_v24 }
 0xad3   :  { %v8475_v25 = vpop.eup %8474 }
 0xad4   :  { %v8477_v19 = vpop.eup %8476  ;;  %v5954_v15 = vmul.f32 0.6931472, %v8475_v25 }
 0xad5   :  { %v5952_v22 = vmul.f32 0.6931472, %v8477_v19 }
 0xad6   :  { %v5990_v61 = vsub.f32 %v11660_v13, %v5954_v15 }
 0xad7   :  { %v5989_v5 = vsub.f32 %v11663_v51, %v5952_v22 }
 0xad8   :  { %6022 = vst [vmem:[%s11823_s12 + $0xd8] sm:$0xff] %v5990_v61  ;;  %v5898_v47 = vpop.xlane.xlu1 %5897 }
 0xad9   :  { %6021 = vst [vmem:[%s11823_s12 + $0xd0] sm:$0xff] %v5989_v5  ;;  %8482 = vlog2.f32 %v5898_v47  ;;  %v5896_v8 = vpop.xlane.xlu0 %5895 }
 0xada   :  { %8484 = vlog2.f32 %v5896_v8 }
 0xadb   :  { %v8479_v23 = vpop.eup %8478 }
 0xadc   :  { %v8481_v1 = vpop.eup %8480  ;;  %v5958_v10 = vmul.f32 0.6931472, %v8479_v23 }
 0xadd   :  { %v5956_v57 = vmul.f32 0.6931472, %v8481_v1 }
 0xade   :  { %v5992_v13 = vsub.f32 %v11668_v7, %v5958_v10 }
 0xadf   :  { %v5991_v51 = vsub.f32 %v11671_v32, %v5956_v57 }
 0xae0   :  { %6024 = vst [vmem:[%s11823_s12 + $0xe8] sm:$0xff] %v5992_v13 }
 0xae1   :  { %6023 = vst [vmem:[%s11823_s12 + $0xe0] sm:$0xff] %v5991_v51 }
 0xae3   :  { %v8483_v17 = vpop.eup %8482 }
 0xae4   :  { %v8485_v29 = vpop.eup %8484  ;;  %v5962_v30 = vmul.f32 0.6931472, %v8483_v17 }
 0xae5   :  { %v5960_v39 = vmul.f32 0.6931472, %v8485_v29 }
 0xae6   :  { %v5994_v31 = vsub.f32 %v11676_v33, %v5962_v30 }
 0xae7   :  { %v5993_v9 = vsub.f32 %v11679_v56, %v5960_v39 }
 0xae8   :  { %6026 = vst [vmem:[%s11823_s12 + $0xf8] sm:$0xff] %v5994_v31 }
 0xae9   :  { %6025 = vst [vmem:[%s11823_s12 + $0xf0] sm:$0xff] %v5993_v9 }

</bundles_post_ra>
